<compile_context>
chip_gen: v7x
topology: tpu7x:2x2x1
jax: 0.10.0
libtpu: 0.0.40
codegen_flags: <defaults>
</compile_context>

<pallas_src>
import functools

import jax
import jax.numpy as jnp
from jax import lax
from jax.experimental import pallas as pl
from jax.experimental.pallas import tpu as pltpu


def lane_pad(n):
    """Round a feature width up to the 128-lane tile width (min 128)."""
    return max(128, ((n + 127) // 128) * 128)


# ----------------------------------------------------------------------------
# GRU cell (PyTorch gate order r, z, n). gi already contains
# W_ih x + b_ih (+ b_hh_r / b_hh_z folded). Gate slices are 128-lane aligned.
# ----------------------------------------------------------------------------
def _gru_cell(gi, h, whh, b_hn, hp):
    gh = jnp.dot(h, whh, preferred_element_type=jnp.float32)
    r = jax.nn.sigmoid(gi[:, 0 * hp:1 * hp] + gh[:, 0 * hp:1 * hp])
    z = jax.nn.sigmoid(gi[:, 1 * hp:2 * hp] + gh[:, 1 * hp:2 * hp])
    n = jnp.tanh(gi[:, 2 * hp:3 * hp] + r * (gh[:, 2 * hp:3 * hp] + b_hn))
    return (1.0 - z) * n + z * h


# ----------------------------------------------------------------------------
# Single fused S2S forward kernel (attention=False, layer=1).
# ----------------------------------------------------------------------------
def _s2s_kernel(
        x_ref, y_ref,
        enc_w1_ref, enc_b1_ref, enc_wih_ref, enc_gib_ref,
        enc_whh_f_ref, enc_whh_b_ref, enc_bhn_f_ref, enc_bhn_b_ref,
        ln_g_ref, ln_b_ref, wnew_ref, bnew_ref,
        dec_w1_ref, dec_b1_ref, dec_wih_ref, dec_gib_ref,
        dec_whh_ref, dec_bhn_ref, wout_ref, bout_ref,
        out_ref, hid_ref,
        gi_enc, gi_dec,
        *, src_len, tgt_len, hidden_size, hp):
    B = x_ref.shape[1]
    H = hidden_size

    # ---- 1) encoder: tanh(linear(x)) and fused fwd+bwd W_ih precompute -------
    enc_w1 = enc_w1_ref[...]
    enc_b1 = enc_b1_ref[...]
    enc_wih = enc_wih_ref[...]
    enc_gib = enc_gib_ref[...]

    def enc_proj(t, c):
        a = jnp.tanh(jnp.dot(x_ref[t], enc_w1,
                             preferred_element_type=jnp.float32) + enc_b1)
        gi_enc[t] = jnp.dot(a, enc_wih,
                            preferred_element_type=jnp.float32) + enc_gib
        return c

    lax.fori_loop(0, src_len, enc_proj, 0, unroll=True)

    # ---- 2) decoder: relu(tanh(linear(y))) and W_ih precompute ---------------
    #      (independent of the encoder recurrence -> MXU work that the
    #       scheduler can interleave with the encoder gate math below)
    dec_w1 = dec_w1_ref[...]
    dec_b1 = dec_b1_ref[...]
    dec_wih = dec_wih_ref[...]
    dec_gib = dec_gib_ref[...]

    def dec_proj(t, c):
        a = jnp.tanh(jnp.dot(y_ref[t], dec_w1,
                             preferred_element_type=jnp.float32) + dec_b1)
        a = jnp.maximum(a, 0.0)                      # relu(tanh(.))
        gi_dec[t] = jnp.dot(a, dec_wih,
                            preferred_element_type=jnp.float32) + dec_gib
        return c

    lax.fori_loop(0, tgt_len, dec_proj, 0, unroll=True)

    # ---- 3) bidirectional encoder GRU recurrence ------------------------------
    whh_f = enc_whh_f_ref[...]
    whh_b = enc_whh_b_ref[...]
    bhn_f = enc_bhn_f_ref[...]
    bhn_b = enc_bhn_b_ref[...]
    h0 = jnp.zeros((B, hp), jnp.float32)

    def enc_step(t, carry):
        h_f, h_b = carry
        g_f = gi_enc[t][:, :3 * hp]                       # fwd gates at t
        g_b = gi_enc[src_len - 1 - t][:, 3 * hp:]         # bwd gates at S-1-t
        h_f = _gru_cell(g_f, h_f, whh_f, bhn_f, hp)
        h_b = _gru_cell(g_b, h_b, whh_b, bhn_b, hp)
        return h_f, h_b

    h_f, h_b = lax.fori_loop(0, src_len, enc_step, (h0, h0), unroll=True)

    # ---- 4) hidden = tanh(linear_new(LayerNorm(cat(h_fwd_fin, h_bwd_fin)))) ---
    h_cat = jnp.concatenate([h_f[:, :H], h_b[:, :H]], axis=-1)       # (B, 2H)
    mean = jnp.mean(h_cat, axis=-1, keepdims=True)
    var = jnp.mean((h_cat - mean) ** 2, axis=-1, keepdims=True)
    ln = (h_cat - mean) * lax.rsqrt(var + 1e-5)
    ln = ln * ln_g_ref[...] + ln_b_ref[...]
    h_dec = jnp.tanh(jnp.dot(ln, wnew_ref[...],
                             preferred_element_type=jnp.float32) + bnew_ref[...])
    # padded lanes of h_dec are tanh(0) = 0 -> recurrence keeps them zero.

    # ---- 5) decoder GRU recurrence + fused (lane-padded) output projection ----
    dec_whh = dec_whh_ref[...]
    dec_bhn = dec_bhn_ref[...]
    wout = wout_ref[...]
    bout = bout_ref[...]

    def dec_step(t, h):
        h = _gru_cell(gi_dec[t], h, dec_whh, dec_bhn, hp)
        out_ref[t] = (jnp.dot(h, wout, preferred_element_type=jnp.float32)
                      + bout).astype(out_ref.dtype)
        return h

    h_fin = lax.fori_loop(0, tgt_len, dec_step, h_dec, unroll=True)
    hid_ref[...] = h_fin.astype(hid_ref.dtype)


# ----------------------------------------------------------------------------
# Parameters: logical (PyTorch-layout, pre-transposed) init + one-time packing
# into lane-padded / fused kernel weights.
# ----------------------------------------------------------------------------
def init_params(key, num_embeddings, embedding_dim, hidden_size, output_size):
    V, E, H, O = num_embeddings, embedding_dim, hidden_size, output_size
    ks = jax.random.split(key, 32)

    def w(k, shape, scale=0.1):
        return (scale * jax.random.normal(k, shape)).astype(jnp.float32)

    return {
        "embedding": w(ks[0], (V, E)),
        # encoder
        "enc_lin_w": w(ks[1], (E, H)), "enc_lin_b": w(ks[2], (1, H)),
        "enc_linnew_w": w(ks[3], (2 * H, H)), "enc_linnew_b": w(ks[4], (1, H)),
        "enc_ln_g": jnp.ones((1, 2 * H), jnp.float32),
        "enc_ln_b": jnp.zeros((1, 2 * H), jnp.float32),
        # bidirectional GRU (weights pre-transposed, gate order [r|z|n])
        "enc_wih_f": w(ks[5], (H, 3 * H)), "enc_whh_f": w(ks[6], (H, 3 * H)),
        "enc_bih_f": w(ks[7], (1, 3 * H)), "enc_bhh_f": w(ks[8], (1, 3 * H)),
        "enc_wih_b": w(ks[9], (H, 3 * H)), "enc_whh_b": w(ks[10], (H, 3 * H)),
        "enc_bih_b": w(ks[11], (1, 3 * H)), "enc_bhh_b": w(ks[12], (1, 3 * H)),
        # decoder
        "dec_lin_w": w(ks[13], (E, H)), "dec_lin_b": w(ks[14], (1, H)),
        "dec_wih": w(ks[15], (H, 3 * H)), "dec_whh": w(ks[16], (H, 3 * H)),
        "dec_bih": w(ks[17], (1, 3 * H)), "dec_bhh": w(ks[18], (1, 3 * H)),
        # final projection
        "out_w": w(ks[19], (H, O)), "out_b": w(ks[20], (1, O)),
    }


def pack_params(p, hidden_size, output_size, hp, op):
    """Pad gate blocks to the 128-lane tile width and fold constant biases."""
    H, HP, O, OP = hidden_size, hp, output_size, op

    def pad_gate_mat(w):                       # (Fin, 3H) -> (Fin, 3HP)
        out = jnp.zeros((w.shape[0], 3 * HP), jnp.float32)
        for g in range(3):
            out = out.at[:, g * HP:g * HP + H].set(w[:, g * H:(g + 1) * H])
        return out

    def pad_gate_vec(b):                       # (1, 3H) -> (1, 3HP)
        out = jnp.zeros((1, 3 * HP), jnp.float32)
        for g in range(3):
            out = out.at[:, g * HP:g * HP + H].set(b[:, g * H:(g + 1) * H])
        return out

    def pad_hh(w):                             # (H, 3H) -> (HP, 3HP)
        out = jnp.zeros((HP, 3 * HP), jnp.float32)
        for g in range(3):
            out = out.at[:H, g * HP:g * HP + H].set(w[:, g * H:(g + 1) * H])
        return out

    def gi_bias(b_ih, b_hh):                   # fold b_hh of r,z gates into gi
        fold = jnp.concatenate(
            [b_hh[:, :2 * H], jnp.zeros((1, H), jnp.float32)], axis=-1)
        return pad_gate_vec(b_ih) + pad_gate_vec(fold)

    def b_hn(b_hh):                            # n-gate recurrent bias (1, HP)
        return jnp.zeros((1, HP), jnp.float32).at[:, :H].set(b_hh[:, 2 * H:])

    return {
        "embedding": p["embedding"],
        # encoder input projection + fused fwd/bwd W_ih precompute
        "enc_lin_w": p["enc_lin_w"], "enc_lin_b": p["enc_lin_b"],
        "enc_wih_cat": jnp.concatenate(
            [pad_gate_mat(p["enc_wih_f"]), pad_gate_mat(p["enc_wih_b"])], axis=1),
        "enc_gi_b_cat": jnp.concatenate(
            [gi_bias(p["enc_bih_f"], p["enc_bhh_f"]),
             gi_bias(p["enc_bih_b"], p["enc_bhh_b"])], axis=1),
        "enc_whh_f": pad_hh(p["enc_whh_f"]), "enc_whh_b": pad_hh(p["enc_whh_b"]),
        "enc_bhn_f": b_hn(p["enc_bhh_f"]), "enc_bhn_b": b_hn(p["enc_bhh_b"]),
        "enc_ln_g": p["enc_ln_g"], "enc_ln_b": p["enc_ln_b"],
        "enc_linnew_w": jnp.zeros((2 * H, HP), jnp.float32)
                           .at[:, :H].set(p["enc_linnew_w"]),
        "enc_linnew_b": jnp.zeros((1, HP), jnp.float32)
                           .at[:, :H].set(p["enc_linnew_b"]),
        # decoder
        "dec_lin_w": p["dec_lin_w"], "dec_lin_b": p["dec_lin_b"],
        "dec_wih": pad_gate_mat(p["dec_wih"]),
        "dec_gi_b": gi_bias(p["dec_bih"], p["dec_bhh"]),
        "dec_whh": pad_hh(p["dec_whh"]),
        "dec_bhn": b_hn(p["dec_bhh"]),
        # final projection, padded (HP, OP) so per-step stores are lane-dense
        "out_w": jnp.zeros((HP, OP), jnp.float32).at[:H, :O].set(p["out_w"]),
        "out_b": jnp.zeros((1, OP), jnp.float32).at[:, :O].set(p["out_b"]),
    }


# ----------------------------------------------------------------------------
# S2S forward (attention=False, layer=1)
# ----------------------------------------------------------------------------
def s2s_forward(kp, input_ids, label_ids, *, hidden_size, output_size, hp):
    H, HP, O = hidden_size, hp, output_size
    emb = kp["embedding"]

    x = jnp.take(emb, input_ids, axis=0)          # (S, B, E)
    y = jnp.take(emb, label_ids, axis=0)          # (T, B, E)
    S, B, _ = x.shape
    T = y.shape[0]
    OP = kp["out_w"].shape[1]

    # TODO(synk): encoder output sequence + its LayerNorm (decoder.enc_output)
    # are only consumed by the attention=True path, which is not implemented.
    out_p, hid_p = pl.pallas_call(
        functools.partial(_s2s_kernel, src_len=S, tgt_len=T,
                          hidden_size=H, hp=HP),
        out_shape=(jax.ShapeDtypeStruct((T, B, OP), jnp.float32),
                   jax.ShapeDtypeStruct((B, HP), jnp.float32)),
        scratch_shapes=[pltpu.VMEM((S, B, 6 * HP), jnp.float32),   # enc gi
                        pltpu.VMEM((T, B, 3 * HP), jnp.float32)],  # dec gi
    )(x, y,
      kp["enc_lin_w"], kp["enc_lin_b"], kp["enc_wih_cat"], kp["enc_gi_b_cat"],
      kp["enc_whh_f"], kp["enc_whh_b"], kp["enc_bhn_f"], kp["enc_bhn_b"],
      kp["enc_ln_g"], kp["enc_ln_b"], kp["enc_linnew_w"], kp["enc_linnew_b"],
      kp["dec_lin_w"], kp["dec_lin_b"], kp["dec_wih"], kp["dec_gi_b"],
      kp["dec_whh"], kp["dec_bhn"], kp["out_w"], kp["out_b"])

    out = out_p[..., :O]                          # (T, B, O)
    dec_hidden = hid_p[None, :, :H]               # (1, B, H)
    return out, dec_hidden, None


# ----------------------------------------------------------------------------
if __name__ == "__main__":
    NUM_EMBEDDINGS = 20
    EMBED_DIM = 16
    HIDDEN = 32
    OUTPUT = 10
    S, T, B = 8, 6, 2
    HP = lane_pad(HIDDEN)     # 128: lane-padded gate / hidden width
    OP = lane_pad(OUTPUT)     # 128: lane-padded output width

    key = jax.random.PRNGKey(0)
    k_param, k_in, k_lab = jax.random.split(key, 3)

    params = init_params(k_param, NUM_EMBEDDINGS, EMBED_DIM, HIDDEN, OUTPUT)
    kp = pack_params(params, HIDDEN, OUTPUT, HP, OP)

    input_ids = jax.random.randint(k_in, (S, B), 0, NUM_EMBEDDINGS, dtype=jnp.int32)
    label_ids = jax.random.randint(k_lab, (T, B), 0, NUM_EMBEDDINGS, dtype=jnp.int32)

    fwd = jax.jit(functools.partial(
        s2s_forward, hidden_size=HIDDEN, output_size=OUTPUT, hp=HP))
    out, hidden, att_w = fwd(kp, input_ids, label_ids)

    jax.block_until_ready((out, hidden))
    assert out.shape == (T, B, OUTPUT)
    assert hidden.shape == (1, B, HIDDEN)
    assert att_w is None
    print("KERNEL_OK")
</pallas_src>

<mosaic_0001>
module attributes {stable_mosaic.version = 11 : i64} {
  func.func @_s2s_kernel(%arg0: memref<8x2x16xf32, #tpu.memory_space<vmem>>, %arg1: memref<6x2x16xf32, #tpu.memory_space<vmem>>, %arg2: memref<16x32xf32, #tpu.memory_space<vmem>>, %arg3: memref<1x32xf32, #tpu.memory_space<vmem>>, %arg4: memref<32x768xf32, #tpu.memory_space<vmem>>, %arg5: memref<1x768xf32, #tpu.memory_space<vmem>>, %arg6: memref<128x384xf32, #tpu.memory_space<vmem>>, %arg7: memref<128x384xf32, #tpu.memory_space<vmem>>, %arg8: memref<1x128xf32, #tpu.memory_space<vmem>>, %arg9: memref<1x128xf32, #tpu.memory_space<vmem>>, %arg10: memref<1x64xf32, #tpu.memory_space<vmem>>, %arg11: memref<1x64xf32, #tpu.memory_space<vmem>>, %arg12: memref<64x128xf32, #tpu.memory_space<vmem>>, %arg13: memref<1x128xf32, #tpu.memory_space<vmem>>, %arg14: memref<16x32xf32, #tpu.memory_space<vmem>>, %arg15: memref<1x32xf32, #tpu.memory_space<vmem>>, %arg16: memref<32x384xf32, #tpu.memory_space<vmem>>, %arg17: memref<1x384xf32, #tpu.memory_space<vmem>>, %arg18: memref<128x384xf32, #tpu.memory_space<vmem>>, %arg19: memref<1x128xf32, #tpu.memory_space<vmem>>, %arg20: memref<128x128xf32, #tpu.memory_space<vmem>>, %arg21: memref<1x128xf32, #tpu.memory_space<vmem>>, %arg22: memref<6x2x128xf32, #tpu.memory_space<vmem>>, %arg23: memref<2x128xf32, #tpu.memory_space<vmem>>, %arg24: memref<8x2x768xf32, #tpu.memory_space<vmem>>, %arg25: memref<6x2x384xf32, #tpu.memory_space<vmem>>) attributes {dimension_semantics = [], scalar_prefetch = 0 : i64, scratch_operands = 2 : i64, tpu.core_type = #tpu.core_type<tc>} {
    %c0 = arith.constant 0 : index
    %c0_0 = arith.constant 0 : index
    %0 = vector.load %arg2[%c0, %c0_0] : memref<16x32xf32, #tpu.memory_space<vmem>>, vector<16x32xf32>
    %c0_1 = arith.constant 0 : index
    %c0_2 = arith.constant 0 : index
    %1 = vector.load %arg3[%c0_1, %c0_2] : memref<1x32xf32, #tpu.memory_space<vmem>>, vector<1x32xf32>
    %c0_3 = arith.constant 0 : index
    %c0_4 = arith.constant 0 : index
    %2 = vector.load %arg4[%c0_3, %c0_4] : memref<32x768xf32, #tpu.memory_space<vmem>>, vector<32x768xf32>
    %c0_5 = arith.constant 0 : index
    %c0_6 = arith.constant 0 : index
    %3 = vector.load %arg5[%c0_5, %c0_6] : memref<1x768xf32, #tpu.memory_space<vmem>>, vector<1x768xf32>
    %c0_i32 = arith.constant 0 : i32
    %4 = arith.index_cast %c0_i32 : i32 to index
    %c0_7 = arith.constant 0 : index
    %c0_8 = arith.constant 0 : index
    %5 = vector.load %arg0[%4, %c0_7, %c0_8] : memref<8x2x16xf32, #tpu.memory_space<vmem>>, vector<1x2x16xf32>
    %6 = vector.shape_cast %5 : vector<1x2x16xf32> to vector<2x16xf32>
    %cst = arith.constant dense<0.000000e+00> : vector<2x32xf32>
    %7 = tpu.matmul %6, %0, %cst {dimension_numbers = #tpu.dot_dimension_numbers<[1], [0], [0], [1], [0, 0, 1, 1], [], []>} : vector<2x16xf32>, vector<16x32xf32>, vector<2x32xf32> -> vector<2x32xf32>
    %8 = vector.broadcast %1 : vector<1x32xf32> to vector<2x32xf32>
    %9 = arith.addf %7, %8 : vector<2x32xf32>
    %10 = math.tanh %9 : vector<2x32xf32>
    %cst_9 = arith.constant dense<0.000000e+00> : vector<2x768xf32>
    %11 = tpu.matmul %10, %2, %cst_9 {dimension_numbers = #tpu.dot_dimension_numbers<[1], [0], [0], [1], [0, 0, 1, 1], [], []>} : vector<2x32xf32>, vector<32x768xf32>, vector<2x768xf32> -> vector<2x768xf32>
    %12 = vector.broadcast %3 : vector<1x768xf32> to vector<2x768xf32>
    %13 = arith.addf %11, %12 : vector<2x768xf32>
    %14 = arith.index_cast %c0_i32 : i32 to index
    %c0_10 = arith.constant 0 : index
    %c0_11 = arith.constant 0 : index
    %15 = vector.load %arg24[%14, %c0_10, %c0_11] : memref<8x2x768xf32, #tpu.memory_space<vmem>>, vector<1x2x768xf32>
    %16 = vector.shape_cast %15 : vector<1x2x768xf32> to vector<2x768xf32>
    %17 = vector.shape_cast %13 : vector<2x768xf32> to vector<1x2x768xf32>
    tpu.vector_store %arg24[%14, %c0_10, %c0_11], %17 {strides = array<i32>} : memref<8x2x768xf32, #tpu.memory_space<vmem>>, vector<1x2x768xf32>,
    %c1_i32 = arith.constant 1 : i32
    %18 = arith.index_cast %c1_i32 : i32 to index
    %c0_12 = arith.constant 0 : index
    %c0_13 = arith.constant 0 : index
    %19 = vector.load %arg0[%18, %c0_12, %c0_13] : memref<8x2x16xf32, #tpu.memory_space<vmem>>, vector<1x2x16xf32>
    %20 = vector.shape_cast %19 : vector<1x2x16xf32> to vector<2x16xf32>
    %cst_14 = arith.constant dense<0.000000e+00> : vector<2x32xf32>
    %21 = tpu.matmul %20, %0, %cst_14 {dimension_numbers = #tpu.dot_dimension_numbers<[1], [0], [0], [1], [0, 0, 1, 1], [], []>} : vector<2x16xf32>, vector<16x32xf32>, vector<2x32xf32> -> vector<2x32xf32>
    %22 = vector.broadcast %1 : vector<1x32xf32> to vector<2x32xf32>
    %23 = arith.addf %21, %22 : vector<2x32xf32>
    %24 = math.tanh %23 : vector<2x32xf32>
    %cst_15 = arith.constant dense<0.000000e+00> : vector<2x768xf32>
    %25 = tpu.matmul %24, %2, %cst_15 {dimension_numbers = #tpu.dot_dimension_numbers<[1], [0], [0], [1], [0, 0, 1, 1], [], []>} : vector<2x32xf32>, vector<32x768xf32>, vector<2x768xf32> -> vector<2x768xf32>
    %26 = vector.broadcast %3 : vector<1x768xf32> to vector<2x768xf32>
    %27 = arith.addf %25, %26 : vector<2x768xf32>
    %28 = arith.index_cast %c1_i32 : i32 to index
    %c0_16 = arith.constant 0 : index
    %c0_17 = arith.constant 0 : index
    %29 = vector.load %arg24[%28, %c0_16, %c0_17] : memref<8x2x768xf32, #tpu.memory_space<vmem>>, vector<1x2x768xf32>
    %30 = vector.shape_cast %29 : vector<1x2x768xf32> to vector<2x768xf32>
    %31 = vector.shape_cast %27 : vector<2x768xf32> to vector<1x2x768xf32>
    tpu.vector_store %arg24[%28, %c0_16, %c0_17], %31 {strides = array<i32>} : memref<8x2x768xf32, #tpu.memory_space<vmem>>, vector<1x2x768xf32>,
    %c2_i32 = arith.constant 2 : i32
    %32 = arith.index_cast %c2_i32 : i32 to index
    %c0_18 = arith.constant 0 : index
    %c0_19 = arith.constant 0 : index
    %33 = vector.load %arg0[%32, %c0_18, %c0_19] : memref<8x2x16xf32, #tpu.memory_space<vmem>>, vector<1x2x16xf32>
    %34 = vector.shape_cast %33 : vector<1x2x16xf32> to vector<2x16xf32>
    %cst_20 = arith.constant dense<0.000000e+00> : vector<2x32xf32>
    %35 = tpu.matmul %34, %0, %cst_20 {dimension_numbers = #tpu.dot_dimension_numbers<[1], [0], [0], [1], [0, 0, 1, 1], [], []>} : vector<2x16xf32>, vector<16x32xf32>, vector<2x32xf32> -> vector<2x32xf32>
    %36 = vector.broadcast %1 : vector<1x32xf32> to vector<2x32xf32>
    %37 = arith.addf %35, %36 : vector<2x32xf32>
    %38 = math.tanh %37 : vector<2x32xf32>
    %cst_21 = arith.constant dense<0.000000e+00> : vector<2x768xf32>
    %39 = tpu.matmul %38, %2, %cst_21 {dimension_numbers = #tpu.dot_dimension_numbers<[1], [0], [0], [1], [0, 0, 1, 1], [], []>} : vector<2x32xf32>, vector<32x768xf32>, vector<2x768xf32> -> vector<2x768xf32>
    %40 = vector.broadcast %3 : vector<1x768xf32> to vector<2x768xf32>
    %41 = arith.addf %39, %40 : vector<2x768xf32>
    %42 = arith.index_cast %c2_i32 : i32 to index
    %c0_22 = arith.constant 0 : index
    %c0_23 = arith.constant 0 : index
    %43 = vector.load %arg24[%42, %c0_22, %c0_23] : memref<8x2x768xf32, #tpu.memory_space<vmem>>, vector<1x2x768xf32>
    %44 = vector.shape_cast %43 : vector<1x2x768xf32> to vector<2x768xf32>
    %45 = vector.shape_cast %41 : vector<2x768xf32> to vector<1x2x768xf32>
    tpu.vector_store %arg24[%42, %c0_22, %c0_23], %45 {strides = array<i32>} : memref<8x2x768xf32, #tpu.memory_space<vmem>>, vector<1x2x768xf32>,
    %c3_i32 = arith.constant 3 : i32
    %46 = arith.index_cast %c3_i32 : i32 to index
    %c0_24 = arith.constant 0 : index
    %c0_25 = arith.constant 0 : index
    %47 = vector.load %arg0[%46, %c0_24, %c0_25] : memref<8x2x16xf32, #tpu.memory_space<vmem>>, vector<1x2x16xf32>
    %48 = vector.shape_cast %47 : vector<1x2x16xf32> to vector<2x16xf32>
    %cst_26 = arith.constant dense<0.000000e+00> : vector<2x32xf32>
    %49 = tpu.matmul %48, %0, %cst_26 {dimension_numbers = #tpu.dot_dimension_numbers<[1], [0], [0], [1], [0, 0, 1, 1], [], []>} : vector<2x16xf32>, vector<16x32xf32>, vector<2x32xf32> -> vector<2x32xf32>
    %50 = vector.broadcast %1 : vector<1x32xf32> to vector<2x32xf32>
    %51 = arith.addf %49, %50 : vector<2x32xf32>
    %52 = math.tanh %51 : vector<2x32xf32>
    %cst_27 = arith.constant dense<0.000000e+00> : vector<2x768xf32>
    %53 = tpu.matmul %52, %2, %cst_27 {dimension_numbers = #tpu.dot_dimension_numbers<[1], [0], [0], [1], [0, 0, 1, 1], [], []>} : vector<2x32xf32>, vector<32x768xf32>, vector<2x768xf32> -> vector<2x768xf32>
    %54 = vector.broadcast %3 : vector<1x768xf32> to vector<2x768xf32>
    %55 = arith.addf %53, %54 : vector<2x768xf32>
    %56 = arith.index_cast %c3_i32 : i32 to index
    %c0_28 = arith.constant 0 : index
    %c0_29 = arith.constant 0 : index
    %57 = vector.load %arg24[%56, %c0_28, %c0_29] : memref<8x2x768xf32, #tpu.memory_space<vmem>>, vector<1x2x768xf32>
    %58 = vector.shape_cast %57 : vector<1x2x768xf32> to vector<2x768xf32>
    %59 = vector.shape_cast %55 : vector<2x768xf32> to vector<1x2x768xf32>
    tpu.vector_store %arg24[%56, %c0_28, %c0_29], %59 {strides = array<i32>} : memref<8x2x768xf32, #tpu.memory_space<vmem>>, vector<1x2x768xf32>,
    %c4_i32 = arith.constant 4 : i32
    %60 = arith.index_cast %c4_i32 : i32 to index
    %c0_30 = arith.constant 0 : index
    %c0_31 = arith.constant 0 : index
    %61 = vector.load %arg0[%60, %c0_30, %c0_31] : memref<8x2x16xf32, #tpu.memory_space<vmem>>, vector<1x2x16xf32>
    %62 = vector.shape_cast %61 : vector<1x2x16xf32> to vector<2x16xf32>
    %cst_32 = arith.constant dense<0.000000e+00> : vector<2x32xf32>
    %63 = tpu.matmul %62, %0, %cst_32 {dimension_numbers = #tpu.dot_dimension_numbers<[1], [0], [0], [1], [0, 0, 1, 1], [], []>} : vector<2x16xf32>, vector<16x32xf32>, vector<2x32xf32> -> vector<2x32xf32>
    %64 = vector.broadcast %1 : vector<1x32xf32> to vector<2x32xf32>
    %65 = arith.addf %63, %64 : vector<2x32xf32>
    %66 = math.tanh %65 : vector<2x32xf32>
    %cst_33 = arith.constant dense<0.000000e+00> : vector<2x768xf32>
    %67 = tpu.matmul %66, %2, %cst_33 {dimension_numbers = #tpu.dot_dimension_numbers<[1], [0], [0], [1], [0, 0, 1, 1], [], []>} : vector<2x32xf32>, vector<32x768xf32>, vector<2x768xf32> -> vector<2x768xf32>
    %68 = vector.broadcast %3 : vector<1x768xf32> to vector<2x768xf32>
    %69 = arith.addf %67, %68 : vector<2x768xf32>
    %70 = arith.index_cast %c4_i32 : i32 to index
    %c0_34 = arith.constant 0 : index
    %c0_35 = arith.constant 0 : index
    %71 = vector.load %arg24[%70, %c0_34, %c0_35] : memref<8x2x768xf32, #tpu.memory_space<vmem>>, vector<1x2x768xf32>
    %72 = vector.shape_cast %71 : vector<1x2x768xf32> to vector<2x768xf32>
    %73 = vector.shape_cast %69 : vector<2x768xf32> to vector<1x2x768xf32>
    tpu.vector_store %arg24[%70, %c0_34, %c0_35], %73 {strides = array<i32>} : memref<8x2x768xf32, #tpu.memory_space<vmem>>, vector<1x2x768xf32>,
    %c5_i32 = arith.constant 5 : i32
    %74 = arith.index_cast %c5_i32 : i32 to index
    %c0_36 = arith.constant 0 : index
    %c0_37 = arith.constant 0 : index
    %75 = vector.load %arg0[%74, %c0_36, %c0_37] : memref<8x2x16xf32, #tpu.memory_space<vmem>>, vector<1x2x16xf32>
    %76 = vector.shape_cast %75 : vector<1x2x16xf32> to vector<2x16xf32>
    %cst_38 = arith.constant dense<0.000000e+00> : vector<2x32xf32>
    %77 = tpu.matmul %76, %0, %cst_38 {dimension_numbers = #tpu.dot_dimension_numbers<[1], [0], [0], [1], [0, 0, 1, 1], [], []>} : vector<2x16xf32>, vector<16x32xf32>, vector<2x32xf32> -> vector<2x32xf32>
    %78 = vector.broadcast %1 : vector<1x32xf32> to vector<2x32xf32>
    %79 = arith.addf %77, %78 : vector<2x32xf32>
    %80 = math.tanh %79 : vector<2x32xf32>
    %cst_39 = arith.constant dense<0.000000e+00> : vector<2x768xf32>
    %81 = tpu.matmul %80, %2, %cst_39 {dimension_numbers = #tpu.dot_dimension_numbers<[1], [0], [0], [1], [0, 0, 1, 1], [], []>} : vector<2x32xf32>, vector<32x768xf32>, vector<2x768xf32> -> vector<2x768xf32>
    %82 = vector.broadcast %3 : vector<1x768xf32> to vector<2x768xf32>
    %83 = arith.addf %81, %82 : vector<2x768xf32>
    %84 = arith.index_cast %c5_i32 : i32 to index
    %c0_40 = arith.constant 0 : index
    %c0_41 = arith.constant 0 : index
    %85 = vector.load %arg24[%84, %c0_40, %c0_41] : memref<8x2x768xf32, #tpu.memory_space<vmem>>, vector<1x2x768xf32>
    %86 = vector.shape_cast %85 : vector<1x2x768xf32> to vector<2x768xf32>
    %87 = vector.shape_cast %83 : vector<2x768xf32> to vector<1x2x768xf32>
    tpu.vector_store %arg24[%84, %c0_40, %c0_41], %87 {strides = array<i32>} : memref<8x2x768xf32, #tpu.memory_space<vmem>>, vector<1x2x768xf32>,
    %c6_i32 = arith.constant 6 : i32
    %88 = arith.index_cast %c6_i32 : i32 to index
    %c0_42 = arith.constant 0 : index
    %c0_43 = arith.constant 0 : index
    %89 = vector.load %arg0[%88, %c0_42, %c0_43] : memref<8x2x16xf32, #tpu.memory_space<vmem>>, vector<1x2x16xf32>
    %90 = vector.shape_cast %89 : vector<1x2x16xf32> to vector<2x16xf32>
    %cst_44 = arith.constant dense<0.000000e+00> : vector<2x32xf32>
    %91 = tpu.matmul %90, %0, %cst_44 {dimension_numbers = #tpu.dot_dimension_numbers<[1], [0], [0], [1], [0, 0, 1, 1], [], []>} : vector<2x16xf32>, vector<16x32xf32>, vector<2x32xf32> -> vector<2x32xf32>
    %92 = vector.broadcast %1 : vector<1x32xf32> to vector<2x32xf32>
    %93 = arith.addf %91, %92 : vector<2x32xf32>
    %94 = math.tanh %93 : vector<2x32xf32>
    %cst_45 = arith.constant dense<0.000000e+00> : vector<2x768xf32>
    %95 = tpu.matmul %94, %2, %cst_45 {dimension_numbers = #tpu.dot_dimension_numbers<[1], [0], [0], [1], [0, 0, 1, 1], [], []>} : vector<2x32xf32>, vector<32x768xf32>, vector<2x768xf32> -> vector<2x768xf32>
    %96 = vector.broadcast %3 : vector<1x768xf32> to vector<2x768xf32>
    %97 = arith.addf %95, %96 : vector<2x768xf32>
    %98 = arith.index_cast %c6_i32 : i32 to index
    %c0_46 = arith.constant 0 : index
    %c0_47 = arith.constant 0 : index
    %99 = vector.load %arg24[%98, %c0_46, %c0_47] : memref<8x2x768xf32, #tpu.memory_space<vmem>>, vector<1x2x768xf32>
    %100 = vector.shape_cast %99 : vector<1x2x768xf32> to vector<2x768xf32>
    %101 = vector.shape_cast %97 : vector<2x768xf32> to vector<1x2x768xf32>
    tpu.vector_store %arg24[%98, %c0_46, %c0_47], %101 {strides = array<i32>} : memref<8x2x768xf32, #tpu.memory_space<vmem>>, vector<1x2x768xf32>,
    %c7_i32 = arith.constant 7 : i32
    %102 = arith.index_cast %c7_i32 : i32 to index
    %c0_48 = arith.constant 0 : index
    %c0_49 = arith.constant 0 : index
    %103 = vector.load %arg0[%102, %c0_48, %c0_49] : memref<8x2x16xf32, #tpu.memory_space<vmem>>, vector<1x2x16xf32>
    %104 = vector.shape_cast %103 : vector<1x2x16xf32> to vector<2x16xf32>
    %cst_50 = arith.constant dense<0.000000e+00> : vector<2x32xf32>
    %105 = tpu.matmul %104, %0, %cst_50 {dimension_numbers = #tpu.dot_dimension_numbers<[1], [0], [0], [1], [0, 0, 1, 1], [], []>} : vector<2x16xf32>, vector<16x32xf32>, vector<2x32xf32> -> vector<2x32xf32>
    %106 = vector.broadcast %1 : vector<1x32xf32> to vector<2x32xf32>
    %107 = arith.addf %105, %106 : vector<2x32xf32>
    %108 = math.tanh %107 : vector<2x32xf32>
    %cst_51 = arith.constant dense<0.000000e+00> : vector<2x768xf32>
    %109 = tpu.matmul %108, %2, %cst_51 {dimension_numbers = #tpu.dot_dimension_numbers<[1], [0], [0], [1], [0, 0, 1, 1], [], []>} : vector<2x32xf32>, vector<32x768xf32>, vector<2x768xf32> -> vector<2x768xf32>
    %110 = vector.broadcast %3 : vector<1x768xf32> to vector<2x768xf32>
    %111 = arith.addf %109, %110 : vector<2x768xf32>
    %112 = arith.index_cast %c7_i32 : i32 to index
    %c0_52 = arith.constant 0 : index
    %c0_53 = arith.constant 0 : index
    %113 = vector.load %arg24[%112, %c0_52, %c0_53] : memref<8x2x768xf32, #tpu.memory_space<vmem>>, vector<1x2x768xf32>
    %114 = vector.shape_cast %113 : vector<1x2x768xf32> to vector<2x768xf32>
    %115 = vector.shape_cast %111 : vector<2x768xf32> to vector<1x2x768xf32>
    tpu.vector_store %arg24[%112, %c0_52, %c0_53], %115 {strides = array<i32>} : memref<8x2x768xf32, #tpu.memory_space<vmem>>, vector<1x2x768xf32>,
    %c8_i32 = arith.constant 8 : i32
    %c0_54 = arith.constant 0 : index
    %c0_55 = arith.constant 0 : index
    %116 = vector.load %arg14[%c0_54, %c0_55] : memref<16x32xf32, #tpu.memory_space<vmem>>, vector<16x32xf32>
    %c0_56 = arith.constant 0 : index
    %c0_57 = arith.constant 0 : index
    %117 = vector.load %arg15[%c0_56, %c0_57] : memref<1x32xf32, #tpu.memory_space<vmem>>, vector<1x32xf32>
    %c0_58 = arith.constant 0 : index
    %c0_59 = arith.constant 0 : index
    %118 = vector.load %arg16[%c0_58, %c0_59] : memref<32x384xf32, #tpu.memory_space<vmem>>, vector<32x384xf32>
    %c0_60 = arith.constant 0 : index
    %c0_61 = arith.constant 0 : index
    %119 = vector.load %arg17[%c0_60, %c0_61] : memref<1x384xf32, #tpu.memory_space<vmem>>, vector<1x384xf32>
    %c0_i32_62 = arith.constant 0 : i32
    %120 = arith.index_cast %c0_i32_62 : i32 to index
    %c0_63 = arith.constant 0 : index
    %c0_64 = arith.constant 0 : index
    %121 = vector.load %arg1[%120, %c0_63, %c0_64] : memref<6x2x16xf32, #tpu.memory_space<vmem>>, vector<1x2x16xf32>
    %122 = vector.shape_cast %121 : vector<1x2x16xf32> to vector<2x16xf32>
    %cst_65 = arith.constant dense<0.000000e+00> : vector<2x32xf32>
    %123 = tpu.matmul %122, %116, %cst_65 {dimension_numbers = #tpu.dot_dimension_numbers<[1], [0], [0], [1], [0, 0, 1, 1], [], []>} : vector<2x16xf32>, vector<16x32xf32>, vector<2x32xf32> -> vector<2x32xf32>
    %124 = vector.broadcast %117 : vector<1x32xf32> to vector<2x32xf32>
    %125 = arith.addf %123, %124 : vector<2x32xf32>
    %126 = math.tanh %125 : vector<2x32xf32>
    %cst_66 = arith.constant 0.000000e+00 : f32
    %127 = vector.broadcast %cst_66 : f32 to vector<2x32xf32>
    %128 = arith.maximumf %126, %127 : vector<2x32xf32>
    %cst_67 = arith.constant dense<0.000000e+00> : vector<2x384xf32>
    %129 = tpu.matmul %128, %118, %cst_67 {dimension_numbers = #tpu.dot_dimension_numbers<[1], [0], [0], [1], [0, 0, 1, 1], [], []>} : vector<2x32xf32>, vector<32x384xf32>, vector<2x384xf32> -> vector<2x384xf32>
    %130 = vector.broadcast %119 : vector<1x384xf32> to vector<2x384xf32>
    %131 = arith.addf %129, %130 : vector<2x384xf32>
    %132 = arith.index_cast %c0_i32_62 : i32 to index
    %c0_68 = arith.constant 0 : index
    %c0_69 = arith.constant 0 : index
    %133 = vector.load %arg25[%132, %c0_68, %c0_69] : memref<6x2x384xf32, #tpu.memory_space<vmem>>, vector<1x2x384xf32>
    %134 = vector.shape_cast %133 : vector<1x2x384xf32> to vector<2x384xf32>
    %135 = vector.shape_cast %131 : vector<2x384xf32> to vector<1x2x384xf32>
    tpu.vector_store %arg25[%132, %c0_68, %c0_69], %135 {strides = array<i32>} : memref<6x2x384xf32, #tpu.memory_space<vmem>>, vector<1x2x384xf32>,
    %c1_i32_70 = arith.constant 1 : i32
    %136 = arith.index_cast %c1_i32_70 : i32 to index
    %c0_71 = arith.constant 0 : index
    %c0_72 = arith.constant 0 : index
    %137 = vector.load %arg1[%136, %c0_71, %c0_72] : memref<6x2x16xf32, #tpu.memory_space<vmem>>, vector<1x2x16xf32>
    %138 = vector.shape_cast %137 : vector<1x2x16xf32> to vector<2x16xf32>
    %cst_73 = arith.constant dense<0.000000e+00> : vector<2x32xf32>
    %139 = tpu.matmul %138, %116, %cst_73 {dimension_numbers = #tpu.dot_dimension_numbers<[1], [0], [0], [1], [0, 0, 1, 1], [], []>} : vector<2x16xf32>, vector<16x32xf32>, vector<2x32xf32> -> vector<2x32xf32>
    %140 = vector.broadcast %117 : vector<1x32xf32> to vector<2x32xf32>
    %141 = arith.addf %139, %140 : vector<2x32xf32>
    %142 = math.tanh %141 : vector<2x32xf32>
    %cst_74 = arith.constant 0.000000e+00 : f32
    %143 = vector.broadcast %cst_74 : f32 to vector<2x32xf32>
    %144 = arith.maximumf %142, %143 : vector<2x32xf32>
    %cst_75 = arith.constant dense<0.000000e+00> : vector<2x384xf32>
    %145 = tpu.matmul %144, %118, %cst_75 {dimension_numbers = #tpu.dot_dimension_numbers<[1], [0], [0], [1], [0, 0, 1, 1], [], []>} : vector<2x32xf32>, vector<32x384xf32>, vector<2x384xf32> -> vector<2x384xf32>
    %146 = vector.broadcast %119 : vector<1x384xf32> to vector<2x384xf32>
    %147 = arith.addf %145, %146 : vector<2x384xf32>
    %148 = arith.index_cast %c1_i32_70 : i32 to index
    %c0_76 = arith.constant 0 : index
    %c0_77 = arith.constant 0 : index
    %149 = vector.load %arg25[%148, %c0_76, %c0_77] : memref<6x2x384xf32, #tpu.memory_space<vmem>>, vector<1x2x384xf32>
    %150 = vector.shape_cast %149 : vector<1x2x384xf32> to vector<2x384xf32>
    %151 = vector.shape_cast %147 : vector<2x384xf32> to vector<1x2x384xf32>
    tpu.vector_store %arg25[%148, %c0_76, %c0_77], %151 {strides = array<i32>} : memref<6x2x384xf32, #tpu.memory_space<vmem>>, vector<1x2x384xf32>,
    %c2_i32_78 = arith.constant 2 : i32
    %152 = arith.index_cast %c2_i32_78 : i32 to index
    %c0_79 = arith.constant 0 : index
    %c0_80 = arith.constant 0 : index
    %153 = vector.load %arg1[%152, %c0_79, %c0_80] : memref<6x2x16xf32, #tpu.memory_space<vmem>>, vector<1x2x16xf32>
    %154 = vector.shape_cast %153 : vector<1x2x16xf32> to vector<2x16xf32>
    %cst_81 = arith.constant dense<0.000000e+00> : vector<2x32xf32>
    %155 = tpu.matmul %154, %116, %cst_81 {dimension_numbers = #tpu.dot_dimension_numbers<[1], [0], [0], [1], [0, 0, 1, 1], [], []>} : vector<2x16xf32>, vector<16x32xf32>, vector<2x32xf32> -> vector<2x32xf32>
    %156 = vector.broadcast %117 : vector<1x32xf32> to vector<2x32xf32>
    %157 = arith.addf %155, %156 : vector<2x32xf32>
    %158 = math.tanh %157 : vector<2x32xf32>
    %cst_82 = arith.constant 0.000000e+00 : f32
    %159 = vector.broadcast %cst_82 : f32 to vector<2x32xf32>
    %160 = arith.maximumf %158, %159 : vector<2x32xf32>
    %cst_83 = arith.constant dense<0.000000e+00> : vector<2x384xf32>
    %161 = tpu.matmul %160, %118, %cst_83 {dimension_numbers = #tpu.dot_dimension_numbers<[1], [0], [0], [1], [0, 0, 1, 1], [], []>} : vector<2x32xf32>, vector<32x384xf32>, vector<2x384xf32> -> vector<2x384xf32>
    %162 = vector.broadcast %119 : vector<1x384xf32> to vector<2x384xf32>
    %163 = arith.addf %161, %162 : vector<2x384xf32>
    %164 = arith.index_cast %c2_i32_78 : i32 to index
    %c0_84 = arith.constant 0 : index
    %c0_85 = arith.constant 0 : index
    %165 = vector.load %arg25[%164, %c0_84, %c0_85] : memref<6x2x384xf32, #tpu.memory_space<vmem>>, vector<1x2x384xf32>
    %166 = vector.shape_cast %165 : vector<1x2x384xf32> to vector<2x384xf32>
    %167 = vector.shape_cast %163 : vector<2x384xf32> to vector<1x2x384xf32>
    tpu.vector_store %arg25[%164, %c0_84, %c0_85], %167 {strides = array<i32>} : memref<6x2x384xf32, #tpu.memory_space<vmem>>, vector<1x2x384xf32>,
    %c3_i32_86 = arith.constant 3 : i32
    %168 = arith.index_cast %c3_i32_86 : i32 to index
    %c0_87 = arith.constant 0 : index
    %c0_88 = arith.constant 0 : index
    %169 = vector.load %arg1[%168, %c0_87, %c0_88] : memref<6x2x16xf32, #tpu.memory_space<vmem>>, vector<1x2x16xf32>
    %170 = vector.shape_cast %169 : vector<1x2x16xf32> to vector<2x16xf32>
    %cst_89 = arith.constant dense<0.000000e+00> : vector<2x32xf32>
    %171 = tpu.matmul %170, %116, %cst_89 {dimension_numbers = #tpu.dot_dimension_numbers<[1], [0], [0], [1], [0, 0, 1, 1], [], []>} : vector<2x16xf32>, vector<16x32xf32>, vector<2x32xf32> -> vector<2x32xf32>
    %172 = vector.broadcast %117 : vector<1x32xf32> to vector<2x32xf32>
    %173 = arith.addf %171, %172 : vector<2x32xf32>
    %174 = math.tanh %173 : vector<2x32xf32>
    %cst_90 = arith.constant 0.000000e+00 : f32
    %175 = vector.broadcast %cst_90 : f32 to vector<2x32xf32>
    %176 = arith.maximumf %174, %175 : vector<2x32xf32>
    %cst_91 = arith.constant dense<0.000000e+00> : vector<2x384xf32>
    %177 = tpu.matmul %176, %118, %cst_91 {dimension_numbers = #tpu.dot_dimension_numbers<[1], [0], [0], [1], [0, 0, 1, 1], [], []>} : vector<2x32xf32>, vector<32x384xf32>, vector<2x384xf32> -> vector<2x384xf32>
    %178 = vector.broadcast %119 : vector<1x384xf32> to vector<2x384xf32>
    %179 = arith.addf %177, %178 : vector<2x384xf32>
    %180 = arith.index_cast %c3_i32_86 : i32 to index
    %c0_92 = arith.constant 0 : index
    %c0_93 = arith.constant 0 : index
    %181 = vector.load %arg25[%180, %c0_92, %c0_93] : memref<6x2x384xf32, #tpu.memory_space<vmem>>, vector<1x2x384xf32>
    %182 = vector.shape_cast %181 : vector<1x2x384xf32> to vector<2x384xf32>
    %183 = vector.shape_cast %179 : vector<2x384xf32> to vector<1x2x384xf32>
    tpu.vector_store %arg25[%180, %c0_92, %c0_93], %183 {strides = array<i32>} : memref<6x2x384xf32, #tpu.memory_space<vmem>>, vector<1x2x384xf32>,
    %c4_i32_94 = arith.constant 4 : i32
    %184 = arith.index_cast %c4_i32_94 : i32 to index
    %c0_95 = arith.constant 0 : index
    %c0_96 = arith.constant 0 : index
    %185 = vector.load %arg1[%184, %c0_95, %c0_96] : memref<6x2x16xf32, #tpu.memory_space<vmem>>, vector<1x2x16xf32>
    %186 = vector.shape_cast %185 : vector<1x2x16xf32> to vector<2x16xf32>
    %cst_97 = arith.constant dense<0.000000e+00> : vector<2x32xf32>
    %187 = tpu.matmul %186, %116, %cst_97 {dimension_numbers = #tpu.dot_dimension_numbers<[1], [0], [0], [1], [0, 0, 1, 1], [], []>} : vector<2x16xf32>, vector<16x32xf32>, vector<2x32xf32> -> vector<2x32xf32>
    %188 = vector.broadcast %117 : vector<1x32xf32> to vector<2x32xf32>
    %189 = arith.addf %187, %188 : vector<2x32xf32>
    %190 = math.tanh %189 : vector<2x32xf32>
    %cst_98 = arith.constant 0.000000e+00 : f32
    %191 = vector.broadcast %cst_98 : f32 to vector<2x32xf32>
    %192 = arith.maximumf %190, %191 : vector<2x32xf32>
    %cst_99 = arith.constant dense<0.000000e+00> : vector<2x384xf32>
    %193 = tpu.matmul %192, %118, %cst_99 {dimension_numbers = #tpu.dot_dimension_numbers<[1], [0], [0], [1], [0, 0, 1, 1], [], []>} : vector<2x32xf32>, vector<32x384xf32>, vector<2x384xf32> -> vector<2x384xf32>
    %194 = vector.broadcast %119 : vector<1x384xf32> to vector<2x384xf32>
    %195 = arith.addf %193, %194 : vector<2x384xf32>
    %196 = arith.index_cast %c4_i32_94 : i32 to index
    %c0_100 = arith.constant 0 : index
    %c0_101 = arith.constant 0 : index
    %197 = vector.load %arg25[%196, %c0_100, %c0_101] : memref<6x2x384xf32, #tpu.memory_space<vmem>>, vector<1x2x384xf32>
    %198 = vector.shape_cast %197 : vector<1x2x384xf32> to vector<2x384xf32>
    %199 = vector.shape_cast %195 : vector<2x384xf32> to vector<1x2x384xf32>
    tpu.vector_store %arg25[%196, %c0_100, %c0_101], %199 {strides = array<i32>} : memref<6x2x384xf32, #tpu.memory_space<vmem>>, vector<1x2x384xf32>,
    %c5_i32_102 = arith.constant 5 : i32
    %200 = arith.index_cast %c5_i32_102 : i32 to index
    %c0_103 = arith.constant 0 : index
    %c0_104 = arith.constant 0 : index
    %201 = vector.load %arg1[%200, %c0_103, %c0_104] : memref<6x2x16xf32, #tpu.memory_space<vmem>>, vector<1x2x16xf32>
    %202 = vector.shape_cast %201 : vector<1x2x16xf32> to vector<2x16xf32>
    %cst_105 = arith.constant dense<0.000000e+00> : vector<2x32xf32>
    %203 = tpu.matmul %202, %116, %cst_105 {dimension_numbers = #tpu.dot_dimension_numbers<[1], [0], [0], [1], [0, 0, 1, 1], [], []>} : vector<2x16xf32>, vector<16x32xf32>, vector<2x32xf32> -> vector<2x32xf32>
    %204 = vector.broadcast %117 : vector<1x32xf32> to vector<2x32xf32>
    %205 = arith.addf %203, %204 : vector<2x32xf32>
    %206 = math.tanh %205 : vector<2x32xf32>
    %cst_106 = arith.constant 0.000000e+00 : f32
    %207 = vector.broadcast %cst_106 : f32 to vector<2x32xf32>
    %208 = arith.maximumf %206, %207 : vector<2x32xf32>
    %cst_107 = arith.constant dense<0.000000e+00> : vector<2x384xf32>
    %209 = tpu.matmul %208, %118, %cst_107 {dimension_numbers = #tpu.dot_dimension_numbers<[1], [0], [0], [1], [0, 0, 1, 1], [], []>} : vector<2x32xf32>, vector<32x384xf32>, vector<2x384xf32> -> vector<2x384xf32>
    %210 = vector.broadcast %119 : vector<1x384xf32> to vector<2x384xf32>
    %211 = arith.addf %209, %210 : vector<2x384xf32>
    %212 = arith.index_cast %c5_i32_102 : i32 to index
    %c0_108 = arith.constant 0 : index
    %c0_109 = arith.constant 0 : index
    %213 = vector.load %arg25[%212, %c0_108, %c0_109] : memref<6x2x384xf32, #tpu.memory_space<vmem>>, vector<1x2x384xf32>
    %214 = vector.shape_cast %213 : vector<1x2x384xf32> to vector<2x384xf32>
    %215 = vector.shape_cast %211 : vector<2x384xf32> to vector<1x2x384xf32>
    tpu.vector_store %arg25[%212, %c0_108, %c0_109], %215 {strides = array<i32>} : memref<6x2x384xf32, #tpu.memory_space<vmem>>, vector<1x2x384xf32>,
    %c6_i32_110 = arith.constant 6 : i32
    %c0_111 = arith.constant 0 : index
    %c0_112 = arith.constant 0 : index
    %216 = vector.load %arg6[%c0_111, %c0_112] : memref<128x384xf32, #tpu.memory_space<vmem>>, vector<128x384xf32>
    %c0_113 = arith.constant 0 : index
    %c0_114 = arith.constant 0 : index
    %217 = vector.load %arg7[%c0_113, %c0_114] : memref<128x384xf32, #tpu.memory_space<vmem>>, vector<128x384xf32>
    %c0_115 = arith.constant 0 : index
    %c0_116 = arith.constant 0 : index
    %218 = vector.load %arg8[%c0_115, %c0_116] : memref<1x128xf32, #tpu.memory_space<vmem>>, vector<1x128xf32>
    %c0_117 = arith.constant 0 : index
    %c0_118 = arith.constant 0 : index
    %219 = vector.load %arg9[%c0_117, %c0_118] : memref<1x128xf32, #tpu.memory_space<vmem>>, vector<1x128xf32>
    %cst_119 = arith.constant 0.000000e+00 : f32
    %220 = vector.broadcast %cst_119 : f32 to vector<2x128xf32>
    %c0_i32_120 = arith.constant 0 : i32
    %221 = arith.index_cast %c0_i32_120 : i32 to index
    %c0_121 = arith.constant 0 : index
    %c0_122 = arith.constant 0 : index
    %222 = vector.load %arg24[%221, %c0_121, %c0_122] : memref<8x2x768xf32, #tpu.memory_space<vmem>>, vector<1x2x768xf32>
    %223 = vector.shape_cast %222 : vector<1x2x768xf32> to vector<2x768xf32>
    %224 = vector.extract_strided_slice %223 {offsets = [0, 0], sizes = [2, 384], strides = [1, 1]} : vector<2x768xf32> to vector<2x384xf32>
    %c7_i32_123 = arith.constant 7 : i32
    %225 = arith.subi %c7_i32_123, %c0_i32_120 : i32
    %226 = arith.index_cast %225 : i32 to index
    %c0_124 = arith.constant 0 : index
    %c0_125 = arith.constant 0 : index
    %227 = vector.load %arg24[%226, %c0_124, %c0_125] : memref<8x2x768xf32, #tpu.memory_space<vmem>>, vector<1x2x768xf32>
    %228 = vector.shape_cast %227 : vector<1x2x768xf32> to vector<2x768xf32>
    %229 = vector.extract_strided_slice %228 {offsets = [0, 384], sizes = [2, 384], strides = [1, 1]} : vector<2x768xf32> to vector<2x384xf32>
    %cst_126 = arith.constant dense<0.000000e+00> : vector<2x384xf32>
    %230 = tpu.matmul %220, %216, %cst_126 {dimension_numbers = #tpu.dot_dimension_numbers<[1], [0], [0], [1], [0, 0, 1, 1], [], []>} : vector<2x128xf32>, vector<128x384xf32>, vector<2x384xf32> -> vector<2x384xf32>
    %231 = vector.extract_strided_slice %224 {offsets = [0, 0], sizes = [2, 128], strides = [1, 1]} : vector<2x384xf32> to vector<2x128xf32>
    %232 = vector.extract_strided_slice %230 {offsets = [0, 0], sizes = [2, 128], strides = [1, 1]} : vector<2x384xf32> to vector<2x128xf32>
    %233 = arith.addf %231, %232 : vector<2x128xf32>
    %234 = arith.negf %233 : vector<2x128xf32>
    %235 = math.exp %234 : vector<2x128xf32>
    %cst_127 = arith.constant 1.000000e+00 : f32
    %236 = vector.broadcast %cst_127 : f32 to vector<2x128xf32>
    %237 = arith.addf %236, %235 : vector<2x128xf32>
    %238 = arith.divf %236, %237 : vector<2x128xf32>
    %239 = vector.extract_strided_slice %224 {offsets = [0, 128], sizes = [2, 128], strides = [1, 1]} : vector<2x384xf32> to vector<2x128xf32>
    %240 = vector.extract_strided_slice %230 {offsets = [0, 128], sizes = [2, 128], strides = [1, 1]} : vector<2x384xf32> to vector<2x128xf32>
    %241 = arith.addf %239, %240 : vector<2x128xf32>
    %242 = arith.negf %241 : vector<2x128xf32>
    %243 = math.exp %242 : vector<2x128xf32>
    %cst_128 = arith.constant 1.000000e+00 : f32
    %244 = vector.broadcast %cst_128 : f32 to vector<2x128xf32>
    %245 = arith.addf %244, %243 : vector<2x128xf32>
    %246 = arith.divf %244, %245 : vector<2x128xf32>
    %247 = vector.extract_strided_slice %224 {offsets = [0, 256], sizes = [2, 128], strides = [1, 1]} : vector<2x384xf32> to vector<2x128xf32>
    %248 = vector.extract_strided_slice %230 {offsets = [0, 256], sizes = [2, 128], strides = [1, 1]} : vector<2x384xf32> to vector<2x128xf32>
    %249 = vector.broadcast %218 : vector<1x128xf32> to vector<2x128xf32>
    %250 = arith.addf %248, %249 : vector<2x128xf32>
    %251 = arith.mulf %238, %250 : vector<2x128xf32>
    %252 = arith.addf %247, %251 : vector<2x128xf32>
    %253 = math.tanh %252 : vector<2x128xf32>
    %cst_129 = arith.constant 1.000000e+00 : f32
    %254 = vector.broadcast %cst_129 : f32 to vector<2x128xf32>
    %255 = arith.subf %254, %246 : vector<2x128xf32>
    %256 = arith.mulf %255, %253 : vector<2x128xf32>
    %257 = arith.mulf %246, %220 : vector<2x128xf32>
    %258 = arith.addf %256, %257 : vector<2x128xf32>
    %cst_130 = arith.constant dense<0.000000e+00> : vector<2x384xf32>
    %259 = tpu.matmul %220, %217, %cst_130 {dimension_numbers = #tpu.dot_dimension_numbers<[1], [0], [0], [1], [0, 0, 1, 1], [], []>} : vector<2x128xf32>, vector<128x384xf32>, vector<2x384xf32> -> vector<2x384xf32>
    %260 = vector.extract_strided_slice %229 {offsets = [0, 0], sizes = [2, 128], strides = [1, 1]} : vector<2x384xf32> to vector<2x128xf32>
    %261 = vector.extract_strided_slice %259 {offsets = [0, 0], sizes = [2, 128], strides = [1, 1]} : vector<2x384xf32> to vector<2x128xf32>
    %262 = arith.addf %260, %261 : vector<2x128xf32>
    %263 = arith.negf %262 : vector<2x128xf32>
    %264 = math.exp %263 : vector<2x128xf32>
    %cst_131 = arith.constant 1.000000e+00 : f32
    %265 = vector.broadcast %cst_131 : f32 to vector<2x128xf32>
    %266 = arith.addf %265, %264 : vector<2x128xf32>
    %267 = arith.divf %265, %266 : vector<2x128xf32>
    %268 = vector.extract_strided_slice %229 {offsets = [0, 128], sizes = [2, 128], strides = [1, 1]} : vector<2x384xf32> to vector<2x128xf32>
    %269 = vector.extract_strided_slice %259 {offsets = [0, 128], sizes = [2, 128], strides = [1, 1]} : vector<2x384xf32> to vector<2x128xf32>
    %270 = arith.addf %268, %269 : vector<2x128xf32>
    %271 = arith.negf %270 : vector<2x128xf32>
    %272 = math.exp %271 : vector<2x128xf32>
    %cst_132 = arith.constant 1.000000e+00 : f32
    %273 = vector.broadcast %cst_132 : f32 to vector<2x128xf32>
    %274 = arith.addf %273, %272 : vector<2x128xf32>
    %275 = arith.divf %273, %274 : vector<2x128xf32>
    %276 = vector.extract_strided_slice %229 {offsets = [0, 256], sizes = [2, 128], strides = [1, 1]} : vector<2x384xf32> to vector<2x128xf32>
    %277 = vector.extract_strided_slice %259 {offsets = [0, 256], sizes = [2, 128], strides = [1, 1]} : vector<2x384xf32> to vector<2x128xf32>
    %278 = vector.broadcast %219 : vector<1x128xf32> to vector<2x128xf32>
    %279 = arith.addf %277, %278 : vector<2x128xf32>
    %280 = arith.mulf %267, %279 : vector<2x128xf32>
    %281 = arith.addf %276, %280 : vector<2x128xf32>
    %282 = math.tanh %281 : vector<2x128xf32>
    %cst_133 = arith.constant 1.000000e+00 : f32
    %283 = vector.broadcast %cst_133 : f32 to vector<2x128xf32>
    %284 = arith.subf %283, %275 : vector<2x128xf32>
    %285 = arith.mulf %284, %282 : vector<2x128xf32>
    %286 = arith.mulf %275, %220 : vector<2x128xf32>
    %287 = arith.addf %285, %286 : vector<2x128xf32>
    %c1_i32_134 = arith.constant 1 : i32
    %288 = arith.index_cast %c1_i32_134 : i32 to index
    %c0_135 = arith.constant 0 : index
    %c0_136 = arith.constant 0 : index
    %289 = vector.load %arg24[%288, %c0_135, %c0_136] : memref<8x2x768xf32, #tpu.memory_space<vmem>>, vector<1x2x768xf32>
    %290 = vector.shape_cast %289 : vector<1x2x768xf32> to vector<2x768xf32>
    %291 = vector.extract_strided_slice %290 {offsets = [0, 0], sizes = [2, 384], strides = [1, 1]} : vector<2x768xf32> to vector<2x384xf32>
    %c7_i32_137 = arith.constant 7 : i32
    %292 = arith.subi %c7_i32_137, %c1_i32_134 : i32
    %293 = arith.index_cast %292 : i32 to index
    %c0_138 = arith.constant 0 : index
    %c0_139 = arith.constant 0 : index
    %294 = vector.load %arg24[%293, %c0_138, %c0_139] : memref<8x2x768xf32, #tpu.memory_space<vmem>>, vector<1x2x768xf32>
    %295 = vector.shape_cast %294 : vector<1x2x768xf32> to vector<2x768xf32>
    %296 = vector.extract_strided_slice %295 {offsets = [0, 384], sizes = [2, 384], strides = [1, 1]} : vector<2x768xf32> to vector<2x384xf32>
    %cst_140 = arith.constant dense<0.000000e+00> : vector<2x384xf32>
    %297 = tpu.matmul %258, %216, %cst_140 {dimension_numbers = #tpu.dot_dimension_numbers<[1], [0], [0], [1], [0, 0, 1, 1], [], []>} : vector<2x128xf32>, vector<128x384xf32>, vector<2x384xf32> -> vector<2x384xf32>
    %298 = vector.extract_strided_slice %291 {offsets = [0, 0], sizes = [2, 128], strides = [1, 1]} : vector<2x384xf32> to vector<2x128xf32>
    %299 = vector.extract_strided_slice %297 {offsets = [0, 0], sizes = [2, 128], strides = [1, 1]} : vector<2x384xf32> to vector<2x128xf32>
    %300 = arith.addf %298, %299 : vector<2x128xf32>
    %301 = arith.negf %300 : vector<2x128xf32>
    %302 = math.exp %301 : vector<2x128xf32>
    %cst_141 = arith.constant 1.000000e+00 : f32
    %303 = vector.broadcast %cst_141 : f32 to vector<2x128xf32>
    %304 = arith.addf %303, %302 : vector<2x128xf32>
    %305 = arith.divf %303, %304 : vector<2x128xf32>
    %306 = vector.extract_strided_slice %291 {offsets = [0, 128], sizes = [2, 128], strides = [1, 1]} : vector<2x384xf32> to vector<2x128xf32>
    %307 = vector.extract_strided_slice %297 {offsets = [0, 128], sizes = [2, 128], strides = [1, 1]} : vector<2x384xf32> to vector<2x128xf32>
    %308 = arith.addf %306, %307 : vector<2x128xf32>
    %309 = arith.negf %308 : vector<2x128xf32>
    %310 = math.exp %309 : vector<2x128xf32>
    %cst_142 = arith.constant 1.000000e+00 : f32
    %311 = vector.broadcast %cst_142 : f32 to vector<2x128xf32>
    %312 = arith.addf %311, %310 : vector<2x128xf32>
    %313 = arith.divf %311, %312 : vector<2x128xf32>
    %314 = vector.extract_strided_slice %291 {offsets = [0, 256], sizes = [2, 128], strides = [1, 1]} : vector<2x384xf32> to vector<2x128xf32>
    %315 = vector.extract_strided_slice %297 {offsets = [0, 256], sizes = [2, 128], strides = [1, 1]} : vector<2x384xf32> to vector<2x128xf32>
    %316 = vector.broadcast %218 : vector<1x128xf32> to vector<2x128xf32>
    %317 = arith.addf %315, %316 : vector<2x128xf32>
    %318 = arith.mulf %305, %317 : vector<2x128xf32>
    %319 = arith.addf %314, %318 : vector<2x128xf32>
    %320 = math.tanh %319 : vector<2x128xf32>
    %cst_143 = arith.constant 1.000000e+00 : f32
    %321 = vector.broadcast %cst_143 : f32 to vector<2x128xf32>
    %322 = arith.subf %321, %313 : vector<2x128xf32>
    %323 = arith.mulf %322, %320 : vector<2x128xf32>
    %324 = arith.mulf %313, %258 : vector<2x128xf32>
    %325 = arith.addf %323, %324 : vector<2x128xf32>
    %cst_144 = arith.constant dense<0.000000e+00> : vector<2x384xf32>
    %326 = tpu.matmul %287, %217, %cst_144 {dimension_numbers = #tpu.dot_dimension_numbers<[1], [0], [0], [1], [0, 0, 1, 1], [], []>} : vector<2x128xf32>, vector<128x384xf32>, vector<2x384xf32> -> vector<2x384xf32>
    %327 = vector.extract_strided_slice %296 {offsets = [0, 0], sizes = [2, 128], strides = [1, 1]} : vector<2x384xf32> to vector<2x128xf32>
    %328 = vector.extract_strided_slice %326 {offsets = [0, 0], sizes = [2, 128], strides = [1, 1]} : vector<2x384xf32> to vector<2x128xf32>
    %329 = arith.addf %327, %328 : vector<2x128xf32>
    %330 = arith.negf %329 : vector<2x128xf32>
    %331 = math.exp %330 : vector<2x128xf32>
    %cst_145 = arith.constant 1.000000e+00 : f32
    %332 = vector.broadcast %cst_145 : f32 to vector<2x128xf32>
    %333 = arith.addf %332, %331 : vector<2x128xf32>
    %334 = arith.divf %332, %333 : vector<2x128xf32>
    %335 = vector.extract_strided_slice %296 {offsets = [0, 128], sizes = [2, 128], strides = [1, 1]} : vector<2x384xf32> to vector<2x128xf32>
    %336 = vector.extract_strided_slice %326 {offsets = [0, 128], sizes = [2, 128], strides = [1, 1]} : vector<2x384xf32> to vector<2x128xf32>
    %337 = arith.addf %335, %336 : vector<2x128xf32>
    %338 = arith.negf %337 : vector<2x128xf32>
    %339 = math.exp %338 : vector<2x128xf32>
    %cst_146 = arith.constant 1.000000e+00 : f32
    %340 = vector.broadcast %cst_146 : f32 to vector<2x128xf32>
    %341 = arith.addf %340, %339 : vector<2x128xf32>
    %342 = arith.divf %340, %341 : vector<2x128xf32>
    %343 = vector.extract_strided_slice %296 {offsets = [0, 256], sizes = [2, 128], strides = [1, 1]} : vector<2x384xf32> to vector<2x128xf32>
    %344 = vector.extract_strided_slice %326 {offsets = [0, 256], sizes = [2, 128], strides = [1, 1]} : vector<2x384xf32> to vector<2x128xf32>
    %345 = vector.broadcast %219 : vector<1x128xf32> to vector<2x128xf32>
    %346 = arith.addf %344, %345 : vector<2x128xf32>
    %347 = arith.mulf %334, %346 : vector<2x128xf32>
    %348 = arith.addf %343, %347 : vector<2x128xf32>
    %349 = math.tanh %348 : vector<2x128xf32>
    %cst_147 = arith.constant 1.000000e+00 : f32
    %350 = vector.broadcast %cst_147 : f32 to vector<2x128xf32>
    %351 = arith.subf %350, %342 : vector<2x128xf32>
    %352 = arith.mulf %351, %349 : vector<2x128xf32>
    %353 = arith.mulf %342, %287 : vector<2x128xf32>
    %354 = arith.addf %352, %353 : vector<2x128xf32>
    %c2_i32_148 = arith.constant 2 : i32
    %355 = arith.index_cast %c2_i32_148 : i32 to index
    %c0_149 = arith.constant 0 : index
    %c0_150 = arith.constant 0 : index
    %356 = vector.load %arg24[%355, %c0_149, %c0_150] : memref<8x2x768xf32, #tpu.memory_space<vmem>>, vector<1x2x768xf32>
    %357 = vector.shape_cast %356 : vector<1x2x768xf32> to vector<2x768xf32>
    %358 = vector.extract_strided_slice %357 {offsets = [0, 0], sizes = [2, 384], strides = [1, 1]} : vector<2x768xf32> to vector<2x384xf32>
    %c7_i32_151 = arith.constant 7 : i32
    %359 = arith.subi %c7_i32_151, %c2_i32_148 : i32
    %360 = arith.index_cast %359 : i32 to index
    %c0_152 = arith.constant 0 : index
    %c0_153 = arith.constant 0 : index
    %361 = vector.load %arg24[%360, %c0_152, %c0_153] : memref<8x2x768xf32, #tpu.memory_space<vmem>>, vector<1x2x768xf32>
    %362 = vector.shape_cast %361 : vector<1x2x768xf32> to vector<2x768xf32>
    %363 = vector.extract_strided_slice %362 {offsets = [0, 384], sizes = [2, 384], strides = [1, 1]} : vector<2x768xf32> to vector<2x384xf32>
    %cst_154 = arith.constant dense<0.000000e+00> : vector<2x384xf32>
    %364 = tpu.matmul %325, %216, %cst_154 {dimension_numbers = #tpu.dot_dimension_numbers<[1], [0], [0], [1], [0, 0, 1, 1], [], []>} : vector<2x128xf32>, vector<128x384xf32>, vector<2x384xf32> -> vector<2x384xf32>
    %365 = vector.extract_strided_slice %358 {offsets = [0, 0], sizes = [2, 128], strides = [1, 1]} : vector<2x384xf32> to vector<2x128xf32>
    %366 = vector.extract_strided_slice %364 {offsets = [0, 0], sizes = [2, 128], strides = [1, 1]} : vector<2x384xf32> to vector<2x128xf32>
    %367 = arith.addf %365, %366 : vector<2x128xf32>
    %368 = arith.negf %367 : vector<2x128xf32>
    %369 = math.exp %368 : vector<2x128xf32>
    %cst_155 = arith.constant 1.000000e+00 : f32
    %370 = vector.broadcast %cst_155 : f32 to vector<2x128xf32>
    %371 = arith.addf %370, %369 : vector<2x128xf32>
    %372 = arith.divf %370, %371 : vector<2x128xf32>
    %373 = vector.extract_strided_slice %358 {offsets = [0, 128], sizes = [2, 128], strides = [1, 1]} : vector<2x384xf32> to vector<2x128xf32>
    %374 = vector.extract_strided_slice %364 {offsets = [0, 128], sizes = [2, 128], strides = [1, 1]} : vector<2x384xf32> to vector<2x128xf32>
    %375 = arith.addf %373, %374 : vector<2x128xf32>
    %376 = arith.negf %375 : vector<2x128xf32>
    %377 = math.exp %376 : vector<2x128xf32>
    %cst_156 = arith.constant 1.000000e+00 : f32
    %378 = vector.broadcast %cst_156 : f32 to vector<2x128xf32>
    %379 = arith.addf %378, %377 : vector<2x128xf32>
    %380 = arith.divf %378, %379 : vector<2x128xf32>
    %381 = vector.extract_strided_slice %358 {offsets = [0, 256], sizes = [2, 128], strides = [1, 1]} : vector<2x384xf32> to vector<2x128xf32>
    %382 = vector.extract_strided_slice %364 {offsets = [0, 256], sizes = [2, 128], strides = [1, 1]} : vector<2x384xf32> to vector<2x128xf32>
    %383 = vector.broadcast %218 : vector<1x128xf32> to vector<2x128xf32>
    %384 = arith.addf %382, %383 : vector<2x128xf32>
    %385 = arith.mulf %372, %384 : vector<2x128xf32>
    %386 = arith.addf %381, %385 : vector<2x128xf32>
    %387 = math.tanh %386 : vector<2x128xf32>
    %cst_157 = arith.constant 1.000000e+00 : f32
    %388 = vector.broadcast %cst_157 : f32 to vector<2x128xf32>
    %389 = arith.subf %388, %380 : vector<2x128xf32>
    %390 = arith.mulf %389, %387 : vector<2x128xf32>
    %391 = arith.mulf %380, %325 : vector<2x128xf32>
    %392 = arith.addf %390, %391 : vector<2x128xf32>
    %cst_158 = arith.constant dense<0.000000e+00> : vector<2x384xf32>
    %393 = tpu.matmul %354, %217, %cst_158 {dimension_numbers = #tpu.dot_dimension_numbers<[1], [0], [0], [1], [0, 0, 1, 1], [], []>} : vector<2x128xf32>, vector<128x384xf32>, vector<2x384xf32> -> vector<2x384xf32>
    %394 = vector.extract_strided_slice %363 {offsets = [0, 0], sizes = [2, 128], strides = [1, 1]} : vector<2x384xf32> to vector<2x128xf32>
    %395 = vector.extract_strided_slice %393 {offsets = [0, 0], sizes = [2, 128], strides = [1, 1]} : vector<2x384xf32> to vector<2x128xf32>
    %396 = arith.addf %394, %395 : vector<2x128xf32>
    %397 = arith.negf %396 : vector<2x128xf32>
    %398 = math.exp %397 : vector<2x128xf32>
    %cst_159 = arith.constant 1.000000e+00 : f32
    %399 = vector.broadcast %cst_159 : f32 to vector<2x128xf32>
    %400 = arith.addf %399, %398 : vector<2x128xf32>
    %401 = arith.divf %399, %400 : vector<2x128xf32>
    %402 = vector.extract_strided_slice %363 {offsets = [0, 128], sizes = [2, 128], strides = [1, 1]} : vector<2x384xf32> to vector<2x128xf32>
    %403 = vector.extract_strided_slice %393 {offsets = [0, 128], sizes = [2, 128], strides = [1, 1]} : vector<2x384xf32> to vector<2x128xf32>
    %404 = arith.addf %402, %403 : vector<2x128xf32>
    %405 = arith.negf %404 : vector<2x128xf32>
    %406 = math.exp %405 : vector<2x128xf32>
    %cst_160 = arith.constant 1.000000e+00 : f32
    %407 = vector.broadcast %cst_160 : f32 to vector<2x128xf32>
    %408 = arith.addf %407, %406 : vector<2x128xf32>
    %409 = arith.divf %407, %408 : vector<2x128xf32>
    %410 = vector.extract_strided_slice %363 {offsets = [0, 256], sizes = [2, 128], strides = [1, 1]} : vector<2x384xf32> to vector<2x128xf32>
    %411 = vector.extract_strided_slice %393 {offsets = [0, 256], sizes = [2, 128], strides = [1, 1]} : vector<2x384xf32> to vector<2x128xf32>
    %412 = vector.broadcast %219 : vector<1x128xf32> to vector<2x128xf32>
    %413 = arith.addf %411, %412 : vector<2x128xf32>
    %414 = arith.mulf %401, %413 : vector<2x128xf32>
    %415 = arith.addf %410, %414 : vector<2x128xf32>
    %416 = math.tanh %415 : vector<2x128xf32>
    %cst_161 = arith.constant 1.000000e+00 : f32
    %417 = vector.broadcast %cst_161 : f32 to vector<2x128xf32>
    %418 = arith.subf %417, %409 : vector<2x128xf32>
    %419 = arith.mulf %418, %416 : vector<2x128xf32>
    %420 = arith.mulf %409, %354 : vector<2x128xf32>
    %421 = arith.addf %419, %420 : vector<2x128xf32>
    %c3_i32_162 = arith.constant 3 : i32
    %422 = arith.index_cast %c3_i32_162 : i32 to index
    %c0_163 = arith.constant 0 : index
    %c0_164 = arith.constant 0 : index
    %423 = vector.load %arg24[%422, %c0_163, %c0_164] : memref<8x2x768xf32, #tpu.memory_space<vmem>>, vector<1x2x768xf32>
    %424 = vector.shape_cast %423 : vector<1x2x768xf32> to vector<2x768xf32>
    %425 = vector.extract_strided_slice %424 {offsets = [0, 0], sizes = [2, 384], strides = [1, 1]} : vector<2x768xf32> to vector<2x384xf32>
    %c7_i32_165 = arith.constant 7 : i32
    %426 = arith.subi %c7_i32_165, %c3_i32_162 : i32
    %427 = arith.index_cast %426 : i32 to index
    %c0_166 = arith.constant 0 : index
    %c0_167 = arith.constant 0 : index
    %428 = vector.load %arg24[%427, %c0_166, %c0_167] : memref<8x2x768xf32, #tpu.memory_space<vmem>>, vector<1x2x768xf32>
    %429 = vector.shape_cast %428 : vector<1x2x768xf32> to vector<2x768xf32>
    %430 = vector.extract_strided_slice %429 {offsets = [0, 384], sizes = [2, 384], strides = [1, 1]} : vector<2x768xf32> to vector<2x384xf32>
    %cst_168 = arith.constant dense<0.000000e+00> : vector<2x384xf32>
    %431 = tpu.matmul %392, %216, %cst_168 {dimension_numbers = #tpu.dot_dimension_numbers<[1], [0], [0], [1], [0, 0, 1, 1], [], []>} : vector<2x128xf32>, vector<128x384xf32>, vector<2x384xf32> -> vector<2x384xf32>
    %432 = vector.extract_strided_slice %425 {offsets = [0, 0], sizes = [2, 128], strides = [1, 1]} : vector<2x384xf32> to vector<2x128xf32>
    %433 = vector.extract_strided_slice %431 {offsets = [0, 0], sizes = [2, 128], strides = [1, 1]} : vector<2x384xf32> to vector<2x128xf32>
    %434 = arith.addf %432, %433 : vector<2x128xf32>
    %435 = arith.negf %434 : vector<2x128xf32>
    %436 = math.exp %435 : vector<2x128xf32>
    %cst_169 = arith.constant 1.000000e+00 : f32
    %437 = vector.broadcast %cst_169 : f32 to vector<2x128xf32>
    %438 = arith.addf %437, %436 : vector<2x128xf32>
    %439 = arith.divf %437, %438 : vector<2x128xf32>
    %440 = vector.extract_strided_slice %425 {offsets = [0, 128], sizes = [2, 128], strides = [1, 1]} : vector<2x384xf32> to vector<2x128xf32>
    %441 = vector.extract_strided_slice %431 {offsets = [0, 128], sizes = [2, 128], strides = [1, 1]} : vector<2x384xf32> to vector<2x128xf32>
    %442 = arith.addf %440, %441 : vector<2x128xf32>
    %443 = arith.negf %442 : vector<2x128xf32>
    %444 = math.exp %443 : vector<2x128xf32>
    %cst_170 = arith.constant 1.000000e+00 : f32
    %445 = vector.broadcast %cst_170 : f32 to vector<2x128xf32>
    %446 = arith.addf %445, %444 : vector<2x128xf32>
    %447 = arith.divf %445, %446 : vector<2x128xf32>
    %448 = vector.extract_strided_slice %425 {offsets = [0, 256], sizes = [2, 128], strides = [1, 1]} : vector<2x384xf32> to vector<2x128xf32>
    %449 = vector.extract_strided_slice %431 {offsets = [0, 256], sizes = [2, 128], strides = [1, 1]} : vector<2x384xf32> to vector<2x128xf32>
    %450 = vector.broadcast %218 : vector<1x128xf32> to vector<2x128xf32>
    %451 = arith.addf %449, %450 : vector<2x128xf32>
    %452 = arith.mulf %439, %451 : vector<2x128xf32>
    %453 = arith.addf %448, %452 : vector<2x128xf32>
    %454 = math.tanh %453 : vector<2x128xf32>
    %cst_171 = arith.constant 1.000000e+00 : f32
    %455 = vector.broadcast %cst_171 : f32 to vector<2x128xf32>
    %456 = arith.subf %455, %447 : vector<2x128xf32>
    %457 = arith.mulf %456, %454 : vector<2x128xf32>
    %458 = arith.mulf %447, %392 : vector<2x128xf32>
    %459 = arith.addf %457, %458 : vector<2x128xf32>
    %cst_172 = arith.constant dense<0.000000e+00> : vector<2x384xf32>
    %460 = tpu.matmul %421, %217, %cst_172 {dimension_numbers = #tpu.dot_dimension_numbers<[1], [0], [0], [1], [0, 0, 1, 1], [], []>} : vector<2x128xf32>, vector<128x384xf32>, vector<2x384xf32> -> vector<2x384xf32>
    %461 = vector.extract_strided_slice %430 {offsets = [0, 0], sizes = [2, 128], strides = [1, 1]} : vector<2x384xf32> to vector<2x128xf32>
    %462 = vector.extract_strided_slice %460 {offsets = [0, 0], sizes = [2, 128], strides = [1, 1]} : vector<2x384xf32> to vector<2x128xf32>
    %463 = arith.addf %461, %462 : vector<2x128xf32>
    %464 = arith.negf %463 : vector<2x128xf32>
    %465 = math.exp %464 : vector<2x128xf32>
    %cst_173 = arith.constant 1.000000e+00 : f32
    %466 = vector.broadcast %cst_173 : f32 to vector<2x128xf32>
    %467 = arith.addf %466, %465 : vector<2x128xf32>
    %468 = arith.divf %466, %467 : vector<2x128xf32>
    %469 = vector.extract_strided_slice %430 {offsets = [0, 128], sizes = [2, 128], strides = [1, 1]} : vector<2x384xf32> to vector<2x128xf32>
    %470 = vector.extract_strided_slice %460 {offsets = [0, 128], sizes = [2, 128], strides = [1, 1]} : vector<2x384xf32> to vector<2x128xf32>
    %471 = arith.addf %469, %470 : vector<2x128xf32>
    %472 = arith.negf %471 : vector<2x128xf32>
    %473 = math.exp %472 : vector<2x128xf32>
    %cst_174 = arith.constant 1.000000e+00 : f32
    %474 = vector.broadcast %cst_174 : f32 to vector<2x128xf32>
    %475 = arith.addf %474, %473 : vector<2x128xf32>
    %476 = arith.divf %474, %475 : vector<2x128xf32>
    %477 = vector.extract_strided_slice %430 {offsets = [0, 256], sizes = [2, 128], strides = [1, 1]} : vector<2x384xf32> to vector<2x128xf32>
    %478 = vector.extract_strided_slice %460 {offsets = [0, 256], sizes = [2, 128], strides = [1, 1]} : vector<2x384xf32> to vector<2x128xf32>
    %479 = vector.broadcast %219 : vector<1x128xf32> to vector<2x128xf32>
    %480 = arith.addf %478, %479 : vector<2x128xf32>
    %481 = arith.mulf %468, %480 : vector<2x128xf32>
    %482 = arith.addf %477, %481 : vector<2x128xf32>
    %483 = math.tanh %482 : vector<2x128xf32>
    %cst_175 = arith.constant 1.000000e+00 : f32
    %484 = vector.broadcast %cst_175 : f32 to vector<2x128xf32>
    %485 = arith.subf %484, %476 : vector<2x128xf32>
    %486 = arith.mulf %485, %483 : vector<2x128xf32>
    %487 = arith.mulf %476, %421 : vector<2x128xf32>
    %488 = arith.addf %486, %487 : vector<2x128xf32>
    %c4_i32_176 = arith.constant 4 : i32
    %489 = arith.index_cast %c4_i32_176 : i32 to index
    %c0_177 = arith.constant 0 : index
    %c0_178 = arith.constant 0 : index
    %490 = vector.load %arg24[%489, %c0_177, %c0_178] : memref<8x2x768xf32, #tpu.memory_space<vmem>>, vector<1x2x768xf32>
    %491 = vector.shape_cast %490 : vector<1x2x768xf32> to vector<2x768xf32>
    %492 = vector.extract_strided_slice %491 {offsets = [0, 0], sizes = [2, 384], strides = [1, 1]} : vector<2x768xf32> to vector<2x384xf32>
    %c7_i32_179 = arith.constant 7 : i32
    %493 = arith.subi %c7_i32_179, %c4_i32_176 : i32
    %494 = arith.index_cast %493 : i32 to index
    %c0_180 = arith.constant 0 : index
    %c0_181 = arith.constant 0 : index
    %495 = vector.load %arg24[%494, %c0_180, %c0_181] : memref<8x2x768xf32, #tpu.memory_space<vmem>>, vector<1x2x768xf32>
    %496 = vector.shape_cast %495 : vector<1x2x768xf32> to vector<2x768xf32>
    %497 = vector.extract_strided_slice %496 {offsets = [0, 384], sizes = [2, 384], strides = [1, 1]} : vector<2x768xf32> to vector<2x384xf32>
    %cst_182 = arith.constant dense<0.000000e+00> : vector<2x384xf32>
    %498 = tpu.matmul %459, %216, %cst_182 {dimension_numbers = #tpu.dot_dimension_numbers<[1], [0], [0], [1], [0, 0, 1, 1], [], []>} : vector<2x128xf32>, vector<128x384xf32>, vector<2x384xf32> -> vector<2x384xf32>
    %499 = vector.extract_strided_slice %492 {offsets = [0, 0], sizes = [2, 128], strides = [1, 1]} : vector<2x384xf32> to vector<2x128xf32>
    %500 = vector.extract_strided_slice %498 {offsets = [0, 0], sizes = [2, 128], strides = [1, 1]} : vector<2x384xf32> to vector<2x128xf32>
    %501 = arith.addf %499, %500 : vector<2x128xf32>
    %502 = arith.negf %501 : vector<2x128xf32>
    %503 = math.exp %502 : vector<2x128xf32>
    %cst_183 = arith.constant 1.000000e+00 : f32
    %504 = vector.broadcast %cst_183 : f32 to vector<2x128xf32>
    %505 = arith.addf %504, %503 : vector<2x128xf32>
    %506 = arith.divf %504, %505 : vector<2x128xf32>
    %507 = vector.extract_strided_slice %492 {offsets = [0, 128], sizes = [2, 128], strides = [1, 1]} : vector<2x384xf32> to vector<2x128xf32>
    %508 = vector.extract_strided_slice %498 {offsets = [0, 128], sizes = [2, 128], strides = [1, 1]} : vector<2x384xf32> to vector<2x128xf32>
    %509 = arith.addf %507, %508 : vector<2x128xf32>
    %510 = arith.negf %509 : vector<2x128xf32>
    %511 = math.exp %510 : vector<2x128xf32>
    %cst_184 = arith.constant 1.000000e+00 : f32
    %512 = vector.broadcast %cst_184 : f32 to vector<2x128xf32>
    %513 = arith.addf %512, %511 : vector<2x128xf32>
    %514 = arith.divf %512, %513 : vector<2x128xf32>
    %515 = vector.extract_strided_slice %492 {offsets = [0, 256], sizes = [2, 128], strides = [1, 1]} : vector<2x384xf32> to vector<2x128xf32>
    %516 = vector.extract_strided_slice %498 {offsets = [0, 256], sizes = [2, 128], strides = [1, 1]} : vector<2x384xf32> to vector<2x128xf32>
    %517 = vector.broadcast %218 : vector<1x128xf32> to vector<2x128xf32>
    %518 = arith.addf %516, %517 : vector<2x128xf32>
    %519 = arith.mulf %506, %518 : vector<2x128xf32>
    %520 = arith.addf %515, %519 : vector<2x128xf32>
    %521 = math.tanh %520 : vector<2x128xf32>
    %cst_185 = arith.constant 1.000000e+00 : f32
    %522 = vector.broadcast %cst_185 : f32 to vector<2x128xf32>
    %523 = arith.subf %522, %514 : vector<2x128xf32>
    %524 = arith.mulf %523, %521 : vector<2x128xf32>
    %525 = arith.mulf %514, %459 : vector<2x128xf32>
    %526 = arith.addf %524, %525 : vector<2x128xf32>
    %cst_186 = arith.constant dense<0.000000e+00> : vector<2x384xf32>
    %527 = tpu.matmul %488, %217, %cst_186 {dimension_numbers = #tpu.dot_dimension_numbers<[1], [0], [0], [1], [0, 0, 1, 1], [], []>} : vector<2x128xf32>, vector<128x384xf32>, vector<2x384xf32> -> vector<2x384xf32>
    %528 = vector.extract_strided_slice %497 {offsets = [0, 0], sizes = [2, 128], strides = [1, 1]} : vector<2x384xf32> to vector<2x128xf32>
    %529 = vector.extract_strided_slice %527 {offsets = [0, 0], sizes = [2, 128], strides = [1, 1]} : vector<2x384xf32> to vector<2x128xf32>
    %530 = arith.addf %528, %529 : vector<2x128xf32>
    %531 = arith.negf %530 : vector<2x128xf32>
    %532 = math.exp %531 : vector<2x128xf32>
    %cst_187 = arith.constant 1.000000e+00 : f32
    %533 = vector.broadcast %cst_187 : f32 to vector<2x128xf32>
    %534 = arith.addf %533, %532 : vector<2x128xf32>
    %535 = arith.divf %533, %534 : vector<2x128xf32>
    %536 = vector.extract_strided_slice %497 {offsets = [0, 128], sizes = [2, 128], strides = [1, 1]} : vector<2x384xf32> to vector<2x128xf32>
    %537 = vector.extract_strided_slice %527 {offsets = [0, 128], sizes = [2, 128], strides = [1, 1]} : vector<2x384xf32> to vector<2x128xf32>
    %538 = arith.addf %536, %537 : vector<2x128xf32>
    %539 = arith.negf %538 : vector<2x128xf32>
    %540 = math.exp %539 : vector<2x128xf32>
    %cst_188 = arith.constant 1.000000e+00 : f32
    %541 = vector.broadcast %cst_188 : f32 to vector<2x128xf32>
    %542 = arith.addf %541, %540 : vector<2x128xf32>
    %543 = arith.divf %541, %542 : vector<2x128xf32>
    %544 = vector.extract_strided_slice %497 {offsets = [0, 256], sizes = [2, 128], strides = [1, 1]} : vector<2x384xf32> to vector<2x128xf32>
    %545 = vector.extract_strided_slice %527 {offsets = [0, 256], sizes = [2, 128], strides = [1, 1]} : vector<2x384xf32> to vector<2x128xf32>
    %546 = vector.broadcast %219 : vector<1x128xf32> to vector<2x128xf32>
    %547 = arith.addf %545, %546 : vector<2x128xf32>
    %548 = arith.mulf %535, %547 : vector<2x128xf32>
    %549 = arith.addf %544, %548 : vector<2x128xf32>
    %550 = math.tanh %549 : vector<2x128xf32>
    %cst_189 = arith.constant 1.000000e+00 : f32
    %551 = vector.broadcast %cst_189 : f32 to vector<2x128xf32>
    %552 = arith.subf %551, %543 : vector<2x128xf32>
    %553 = arith.mulf %552, %550 : vector<2x128xf32>
    %554 = arith.mulf %543, %488 : vector<2x128xf32>
    %555 = arith.addf %553, %554 : vector<2x128xf32>
    %c5_i32_190 = arith.constant 5 : i32
    %556 = arith.index_cast %c5_i32_190 : i32 to index
    %c0_191 = arith.constant 0 : index
    %c0_192 = arith.constant 0 : index
    %557 = vector.load %arg24[%556, %c0_191, %c0_192] : memref<8x2x768xf32, #tpu.memory_space<vmem>>, vector<1x2x768xf32>
    %558 = vector.shape_cast %557 : vector<1x2x768xf32> to vector<2x768xf32>
    %559 = vector.extract_strided_slice %558 {offsets = [0, 0], sizes = [2, 384], strides = [1, 1]} : vector<2x768xf32> to vector<2x384xf32>
    %c7_i32_193 = arith.constant 7 : i32
    %560 = arith.subi %c7_i32_193, %c5_i32_190 : i32
    %561 = arith.index_cast %560 : i32 to index
    %c0_194 = arith.constant 0 : index
    %c0_195 = arith.constant 0 : index
    %562 = vector.load %arg24[%561, %c0_194, %c0_195] : memref<8x2x768xf32, #tpu.memory_space<vmem>>, vector<1x2x768xf32>
    %563 = vector.shape_cast %562 : vector<1x2x768xf32> to vector<2x768xf32>
    %564 = vector.extract_strided_slice %563 {offsets = [0, 384], sizes = [2, 384], strides = [1, 1]} : vector<2x768xf32> to vector<2x384xf32>
    %cst_196 = arith.constant dense<0.000000e+00> : vector<2x384xf32>
    %565 = tpu.matmul %526, %216, %cst_196 {dimension_numbers = #tpu.dot_dimension_numbers<[1], [0], [0], [1], [0, 0, 1, 1], [], []>} : vector<2x128xf32>, vector<128x384xf32>, vector<2x384xf32> -> vector<2x384xf32>
    %566 = vector.extract_strided_slice %559 {offsets = [0, 0], sizes = [2, 128], strides = [1, 1]} : vector<2x384xf32> to vector<2x128xf32>
    %567 = vector.extract_strided_slice %565 {offsets = [0, 0], sizes = [2, 128], strides = [1, 1]} : vector<2x384xf32> to vector<2x128xf32>
    %568 = arith.addf %566, %567 : vector<2x128xf32>
    %569 = arith.negf %568 : vector<2x128xf32>
    %570 = math.exp %569 : vector<2x128xf32>
    %cst_197 = arith.constant 1.000000e+00 : f32
    %571 = vector.broadcast %cst_197 : f32 to vector<2x128xf32>
    %572 = arith.addf %571, %570 : vector<2x128xf32>
    %573 = arith.divf %571, %572 : vector<2x128xf32>
    %574 = vector.extract_strided_slice %559 {offsets = [0, 128], sizes = [2, 128], strides = [1, 1]} : vector<2x384xf32> to vector<2x128xf32>
    %575 = vector.extract_strided_slice %565 {offsets = [0, 128], sizes = [2, 128], strides = [1, 1]} : vector<2x384xf32> to vector<2x128xf32>
    %576 = arith.addf %574, %575 : vector<2x128xf32>
    %577 = arith.negf %576 : vector<2x128xf32>
    %578 = math.exp %577 : vector<2x128xf32>
    %cst_198 = arith.constant 1.000000e+00 : f32
    %579 = vector.broadcast %cst_198 : f32 to vector<2x128xf32>
    %580 = arith.addf %579, %578 : vector<2x128xf32>
    %581 = arith.divf %579, %580 : vector<2x128xf32>
    %582 = vector.extract_strided_slice %559 {offsets = [0, 256], sizes = [2, 128], strides = [1, 1]} : vector<2x384xf32> to vector<2x128xf32>
    %583 = vector.extract_strided_slice %565 {offsets = [0, 256], sizes = [2, 128], strides = [1, 1]} : vector<2x384xf32> to vector<2x128xf32>
    %584 = vector.broadcast %218 : vector<1x128xf32> to vector<2x128xf32>
    %585 = arith.addf %583, %584 : vector<2x128xf32>
    %586 = arith.mulf %573, %585 : vector<2x128xf32>
    %587 = arith.addf %582, %586 : vector<2x128xf32>
    %588 = math.tanh %587 : vector<2x128xf32>
    %cst_199 = arith.constant 1.000000e+00 : f32
    %589 = vector.broadcast %cst_199 : f32 to vector<2x128xf32>
    %590 = arith.subf %589, %581 : vector<2x128xf32>
    %591 = arith.mulf %590, %588 : vector<2x128xf32>
    %592 = arith.mulf %581, %526 : vector<2x128xf32>
    %593 = arith.addf %591, %592 : vector<2x128xf32>
    %cst_200 = arith.constant dense<0.000000e+00> : vector<2x384xf32>
    %594 = tpu.matmul %555, %217, %cst_200 {dimension_numbers = #tpu.dot_dimension_numbers<[1], [0], [0], [1], [0, 0, 1, 1], [], []>} : vector<2x128xf32>, vector<128x384xf32>, vector<2x384xf32> -> vector<2x384xf32>
    %595 = vector.extract_strided_slice %564 {offsets = [0, 0], sizes = [2, 128], strides = [1, 1]} : vector<2x384xf32> to vector<2x128xf32>
    %596 = vector.extract_strided_slice %594 {offsets = [0, 0], sizes = [2, 128], strides = [1, 1]} : vector<2x384xf32> to vector<2x128xf32>
    %597 = arith.addf %595, %596 : vector<2x128xf32>
    %598 = arith.negf %597 : vector<2x128xf32>
    %599 = math.exp %598 : vector<2x128xf32>
    %cst_201 = arith.constant 1.000000e+00 : f32
    %600 = vector.broadcast %cst_201 : f32 to vector<2x128xf32>
    %601 = arith.addf %600, %599 : vector<2x128xf32>
    %602 = arith.divf %600, %601 : vector<2x128xf32>
    %603 = vector.extract_strided_slice %564 {offsets = [0, 128], sizes = [2, 128], strides = [1, 1]} : vector<2x384xf32> to vector<2x128xf32>
    %604 = vector.extract_strided_slice %594 {offsets = [0, 128], sizes = [2, 128], strides = [1, 1]} : vector<2x384xf32> to vector<2x128xf32>
    %605 = arith.addf %603, %604 : vector<2x128xf32>
    %606 = arith.negf %605 : vector<2x128xf32>
    %607 = math.exp %606 : vector<2x128xf32>
    %cst_202 = arith.constant 1.000000e+00 : f32
    %608 = vector.broadcast %cst_202 : f32 to vector<2x128xf32>
    %609 = arith.addf %608, %607 : vector<2x128xf32>
    %610 = arith.divf %608, %609 : vector<2x128xf32>
    %611 = vector.extract_strided_slice %564 {offsets = [0, 256], sizes = [2, 128], strides = [1, 1]} : vector<2x384xf32> to vector<2x128xf32>
    %612 = vector.extract_strided_slice %594 {offsets = [0, 256], sizes = [2, 128], strides = [1, 1]} : vector<2x384xf32> to vector<2x128xf32>
    %613 = vector.broadcast %219 : vector<1x128xf32> to vector<2x128xf32>
    %614 = arith.addf %612, %613 : vector<2x128xf32>
    %615 = arith.mulf %602, %614 : vector<2x128xf32>
    %616 = arith.addf %611, %615 : vector<2x128xf32>
    %617 = math.tanh %616 : vector<2x128xf32>
    %cst_203 = arith.constant 1.000000e+00 : f32
    %618 = vector.broadcast %cst_203 : f32 to vector<2x128xf32>
    %619 = arith.subf %618, %610 : vector<2x128xf32>
    %620 = arith.mulf %619, %617 : vector<2x128xf32>
    %621 = arith.mulf %610, %555 : vector<2x128xf32>
    %622 = arith.addf %620, %621 : vector<2x128xf32>
    %c6_i32_204 = arith.constant 6 : i32
    %623 = arith.index_cast %c6_i32_204 : i32 to index
    %c0_205 = arith.constant 0 : index
    %c0_206 = arith.constant 0 : index
    %624 = vector.load %arg24[%623, %c0_205, %c0_206] : memref<8x2x768xf32, #tpu.memory_space<vmem>>, vector<1x2x768xf32>
    %625 = vector.shape_cast %624 : vector<1x2x768xf32> to vector<2x768xf32>
    %626 = vector.extract_strided_slice %625 {offsets = [0, 0], sizes = [2, 384], strides = [1, 1]} : vector<2x768xf32> to vector<2x384xf32>
    %c7_i32_207 = arith.constant 7 : i32
    %627 = arith.subi %c7_i32_207, %c6_i32_204 : i32
    %628 = arith.index_cast %627 : i32 to index
    %c0_208 = arith.constant 0 : index
    %c0_209 = arith.constant 0 : index
    %629 = vector.load %arg24[%628, %c0_208, %c0_209] : memref<8x2x768xf32, #tpu.memory_space<vmem>>, vector<1x2x768xf32>
    %630 = vector.shape_cast %629 : vector<1x2x768xf32> to vector<2x768xf32>
    %631 = vector.extract_strided_slice %630 {offsets = [0, 384], sizes = [2, 384], strides = [1, 1]} : vector<2x768xf32> to vector<2x384xf32>
    %cst_210 = arith.constant dense<0.000000e+00> : vector<2x384xf32>
    %632 = tpu.matmul %593, %216, %cst_210 {dimension_numbers = #tpu.dot_dimension_numbers<[1], [0], [0], [1], [0, 0, 1, 1], [], []>} : vector<2x128xf32>, vector<128x384xf32>, vector<2x384xf32> -> vector<2x384xf32>
    %633 = vector.extract_strided_slice %626 {offsets = [0, 0], sizes = [2, 128], strides = [1, 1]} : vector<2x384xf32> to vector<2x128xf32>
    %634 = vector.extract_strided_slice %632 {offsets = [0, 0], sizes = [2, 128], strides = [1, 1]} : vector<2x384xf32> to vector<2x128xf32>
    %635 = arith.addf %633, %634 : vector<2x128xf32>
    %636 = arith.negf %635 : vector<2x128xf32>
    %637 = math.exp %636 : vector<2x128xf32>
    %cst_211 = arith.constant 1.000000e+00 : f32
    %638 = vector.broadcast %cst_211 : f32 to vector<2x128xf32>
    %639 = arith.addf %638, %637 : vector<2x128xf32>
    %640 = arith.divf %638, %639 : vector<2x128xf32>
    %641 = vector.extract_strided_slice %626 {offsets = [0, 128], sizes = [2, 128], strides = [1, 1]} : vector<2x384xf32> to vector<2x128xf32>
    %642 = vector.extract_strided_slice %632 {offsets = [0, 128], sizes = [2, 128], strides = [1, 1]} : vector<2x384xf32> to vector<2x128xf32>
    %643 = arith.addf %641, %642 : vector<2x128xf32>
    %644 = arith.negf %643 : vector<2x128xf32>
    %645 = math.exp %644 : vector<2x128xf32>
    %cst_212 = arith.constant 1.000000e+00 : f32
    %646 = vector.broadcast %cst_212 : f32 to vector<2x128xf32>
    %647 = arith.addf %646, %645 : vector<2x128xf32>
    %648 = arith.divf %646, %647 : vector<2x128xf32>
    %649 = vector.extract_strided_slice %626 {offsets = [0, 256], sizes = [2, 128], strides = [1, 1]} : vector<2x384xf32> to vector<2x128xf32>
    %650 = vector.extract_strided_slice %632 {offsets = [0, 256], sizes = [2, 128], strides = [1, 1]} : vector<2x384xf32> to vector<2x128xf32>
    %651 = vector.broadcast %218 : vector<1x128xf32> to vector<2x128xf32>
    %652 = arith.addf %650, %651 : vector<2x128xf32>
    %653 = arith.mulf %640, %652 : vector<2x128xf32>
    %654 = arith.addf %649, %653 : vector<2x128xf32>
    %655 = math.tanh %654 : vector<2x128xf32>
    %cst_213 = arith.constant 1.000000e+00 : f32
    %656 = vector.broadcast %cst_213 : f32 to vector<2x128xf32>
    %657 = arith.subf %656, %648 : vector<2x128xf32>
    %658 = arith.mulf %657, %655 : vector<2x128xf32>
    %659 = arith.mulf %648, %593 : vector<2x128xf32>
    %660 = arith.addf %658, %659 : vector<2x128xf32>
    %cst_214 = arith.constant dense<0.000000e+00> : vector<2x384xf32>
    %661 = tpu.matmul %622, %217, %cst_214 {dimension_numbers = #tpu.dot_dimension_numbers<[1], [0], [0], [1], [0, 0, 1, 1], [], []>} : vector<2x128xf32>, vector<128x384xf32>, vector<2x384xf32> -> vector<2x384xf32>
    %662 = vector.extract_strided_slice %631 {offsets = [0, 0], sizes = [2, 128], strides = [1, 1]} : vector<2x384xf32> to vector<2x128xf32>
    %663 = vector.extract_strided_slice %661 {offsets = [0, 0], sizes = [2, 128], strides = [1, 1]} : vector<2x384xf32> to vector<2x128xf32>
    %664 = arith.addf %662, %663 : vector<2x128xf32>
    %665 = arith.negf %664 : vector<2x128xf32>
    %666 = math.exp %665 : vector<2x128xf32>
    %cst_215 = arith.constant 1.000000e+00 : f32
    %667 = vector.broadcast %cst_215 : f32 to vector<2x128xf32>
    %668 = arith.addf %667, %666 : vector<2x128xf32>
    %669 = arith.divf %667, %668 : vector<2x128xf32>
    %670 = vector.extract_strided_slice %631 {offsets = [0, 128], sizes = [2, 128], strides = [1, 1]} : vector<2x384xf32> to vector<2x128xf32>
    %671 = vector.extract_strided_slice %661 {offsets = [0, 128], sizes = [2, 128], strides = [1, 1]} : vector<2x384xf32> to vector<2x128xf32>
    %672 = arith.addf %670, %671 : vector<2x128xf32>
    %673 = arith.negf %672 : vector<2x128xf32>
    %674 = math.exp %673 : vector<2x128xf32>
    %cst_216 = arith.constant 1.000000e+00 : f32
    %675 = vector.broadcast %cst_216 : f32 to vector<2x128xf32>
    %676 = arith.addf %675, %674 : vector<2x128xf32>
    %677 = arith.divf %675, %676 : vector<2x128xf32>
    %678 = vector.extract_strided_slice %631 {offsets = [0, 256], sizes = [2, 128], strides = [1, 1]} : vector<2x384xf32> to vector<2x128xf32>
    %679 = vector.extract_strided_slice %661 {offsets = [0, 256], sizes = [2, 128], strides = [1, 1]} : vector<2x384xf32> to vector<2x128xf32>
    %680 = vector.broadcast %219 : vector<1x128xf32> to vector<2x128xf32>
    %681 = arith.addf %679, %680 : vector<2x128xf32>
    %682 = arith.mulf %669, %681 : vector<2x128xf32>
    %683 = arith.addf %678, %682 : vector<2x128xf32>
    %684 = math.tanh %683 : vector<2x128xf32>
    %cst_217 = arith.constant 1.000000e+00 : f32
    %685 = vector.broadcast %cst_217 : f32 to vector<2x128xf32>
    %686 = arith.subf %685, %677 : vector<2x128xf32>
    %687 = arith.mulf %686, %684 : vector<2x128xf32>
    %688 = arith.mulf %677, %622 : vector<2x128xf32>
    %689 = arith.addf %687, %688 : vector<2x128xf32>
    %c7_i32_218 = arith.constant 7 : i32
    %690 = arith.index_cast %c7_i32_218 : i32 to index
    %c0_219 = arith.constant 0 : index
    %c0_220 = arith.constant 0 : index
    %691 = vector.load %arg24[%690, %c0_219, %c0_220] : memref<8x2x768xf32, #tpu.memory_space<vmem>>, vector<1x2x768xf32>
    %692 = vector.shape_cast %691 : vector<1x2x768xf32> to vector<2x768xf32>
    %693 = vector.extract_strided_slice %692 {offsets = [0, 0], sizes = [2, 384], strides = [1, 1]} : vector<2x768xf32> to vector<2x384xf32>
    %c7_i32_221 = arith.constant 7 : i32
    %694 = arith.subi %c7_i32_221, %c7_i32_218 : i32
    %695 = arith.index_cast %694 : i32 to index
    %c0_222 = arith.constant 0 : index
    %c0_223 = arith.constant 0 : index
    %696 = vector.load %arg24[%695, %c0_222, %c0_223] : memref<8x2x768xf32, #tpu.memory_space<vmem>>, vector<1x2x768xf32>
    %697 = vector.shape_cast %696 : vector<1x2x768xf32> to vector<2x768xf32>
    %698 = vector.extract_strided_slice %697 {offsets = [0, 384], sizes = [2, 384], strides = [1, 1]} : vector<2x768xf32> to vector<2x384xf32>
    %cst_224 = arith.constant dense<0.000000e+00> : vector<2x384xf32>
    %699 = tpu.matmul %660, %216, %cst_224 {dimension_numbers = #tpu.dot_dimension_numbers<[1], [0], [0], [1], [0, 0, 1, 1], [], []>} : vector<2x128xf32>, vector<128x384xf32>, vector<2x384xf32> -> vector<2x384xf32>
    %700 = vector.extract_strided_slice %693 {offsets = [0, 0], sizes = [2, 128], strides = [1, 1]} : vector<2x384xf32> to vector<2x128xf32>
    %701 = vector.extract_strided_slice %699 {offsets = [0, 0], sizes = [2, 128], strides = [1, 1]} : vector<2x384xf32> to vector<2x128xf32>
    %702 = arith.addf %700, %701 : vector<2x128xf32>
    %703 = arith.negf %702 : vector<2x128xf32>
    %704 = math.exp %703 : vector<2x128xf32>
    %cst_225 = arith.constant 1.000000e+00 : f32
    %705 = vector.broadcast %cst_225 : f32 to vector<2x128xf32>
    %706 = arith.addf %705, %704 : vector<2x128xf32>
    %707 = arith.divf %705, %706 : vector<2x128xf32>
    %708 = vector.extract_strided_slice %693 {offsets = [0, 128], sizes = [2, 128], strides = [1, 1]} : vector<2x384xf32> to vector<2x128xf32>
    %709 = vector.extract_strided_slice %699 {offsets = [0, 128], sizes = [2, 128], strides = [1, 1]} : vector<2x384xf32> to vector<2x128xf32>
    %710 = arith.addf %708, %709 : vector<2x128xf32>
    %711 = arith.negf %710 : vector<2x128xf32>
    %712 = math.exp %711 : vector<2x128xf32>
    %cst_226 = arith.constant 1.000000e+00 : f32
    %713 = vector.broadcast %cst_226 : f32 to vector<2x128xf32>
    %714 = arith.addf %713, %712 : vector<2x128xf32>
    %715 = arith.divf %713, %714 : vector<2x128xf32>
    %716 = vector.extract_strided_slice %693 {offsets = [0, 256], sizes = [2, 128], strides = [1, 1]} : vector<2x384xf32> to vector<2x128xf32>
    %717 = vector.extract_strided_slice %699 {offsets = [0, 256], sizes = [2, 128], strides = [1, 1]} : vector<2x384xf32> to vector<2x128xf32>
    %718 = vector.broadcast %218 : vector<1x128xf32> to vector<2x128xf32>
    %719 = arith.addf %717, %718 : vector<2x128xf32>
    %720 = arith.mulf %707, %719 : vector<2x128xf32>
    %721 = arith.addf %716, %720 : vector<2x128xf32>
    %722 = math.tanh %721 : vector<2x128xf32>
    %cst_227 = arith.constant 1.000000e+00 : f32
    %723 = vector.broadcast %cst_227 : f32 to vector<2x128xf32>
    %724 = arith.subf %723, %715 : vector<2x128xf32>
    %725 = arith.mulf %724, %722 : vector<2x128xf32>
    %726 = arith.mulf %715, %660 : vector<2x128xf32>
    %727 = arith.addf %725, %726 : vector<2x128xf32>
    %cst_228 = arith.constant dense<0.000000e+00> : vector<2x384xf32>
    %728 = tpu.matmul %689, %217, %cst_228 {dimension_numbers = #tpu.dot_dimension_numbers<[1], [0], [0], [1], [0, 0, 1, 1], [], []>} : vector<2x128xf32>, vector<128x384xf32>, vector<2x384xf32> -> vector<2x384xf32>
    %729 = vector.extract_strided_slice %698 {offsets = [0, 0], sizes = [2, 128], strides = [1, 1]} : vector<2x384xf32> to vector<2x128xf32>
    %730 = vector.extract_strided_slice %728 {offsets = [0, 0], sizes = [2, 128], strides = [1, 1]} : vector<2x384xf32> to vector<2x128xf32>
    %731 = arith.addf %729, %730 : vector<2x128xf32>
    %732 = arith.negf %731 : vector<2x128xf32>
    %733 = math.exp %732 : vector<2x128xf32>
    %cst_229 = arith.constant 1.000000e+00 : f32
    %734 = vector.broadcast %cst_229 : f32 to vector<2x128xf32>
    %735 = arith.addf %734, %733 : vector<2x128xf32>
    %736 = arith.divf %734, %735 : vector<2x128xf32>
    %737 = vector.extract_strided_slice %698 {offsets = [0, 128], sizes = [2, 128], strides = [1, 1]} : vector<2x384xf32> to vector<2x128xf32>
    %738 = vector.extract_strided_slice %728 {offsets = [0, 128], sizes = [2, 128], strides = [1, 1]} : vector<2x384xf32> to vector<2x128xf32>
    %739 = arith.addf %737, %738 : vector<2x128xf32>
    %740 = arith.negf %739 : vector<2x128xf32>
    %741 = math.exp %740 : vector<2x128xf32>
    %cst_230 = arith.constant 1.000000e+00 : f32
    %742 = vector.broadcast %cst_230 : f32 to vector<2x128xf32>
    %743 = arith.addf %742, %741 : vector<2x128xf32>
    %744 = arith.divf %742, %743 : vector<2x128xf32>
    %745 = vector.extract_strided_slice %698 {offsets = [0, 256], sizes = [2, 128], strides = [1, 1]} : vector<2x384xf32> to vector<2x128xf32>
    %746 = vector.extract_strided_slice %728 {offsets = [0, 256], sizes = [2, 128], strides = [1, 1]} : vector<2x384xf32> to vector<2x128xf32>
    %747 = vector.broadcast %219 : vector<1x128xf32> to vector<2x128xf32>
    %748 = arith.addf %746, %747 : vector<2x128xf32>
    %749 = arith.mulf %736, %748 : vector<2x128xf32>
    %750 = arith.addf %745, %749 : vector<2x128xf32>
    %751 = math.tanh %750 : vector<2x128xf32>
    %cst_231 = arith.constant 1.000000e+00 : f32
    %752 = vector.broadcast %cst_231 : f32 to vector<2x128xf32>
    %753 = arith.subf %752, %744 : vector<2x128xf32>
    %754 = arith.mulf %753, %751 : vector<2x128xf32>
    %755 = arith.mulf %744, %689 : vector<2x128xf32>
    %756 = arith.addf %754, %755 : vector<2x128xf32>
    %c8_i32_232 = arith.constant 8 : i32
    %757 = vector.extract_strided_slice %727 {offsets = [0, 0], sizes = [2, 32], strides = [1, 1]} : vector<2x128xf32> to vector<2x32xf32>
    %758 = vector.extract_strided_slice %756 {offsets = [0, 0], sizes = [2, 32], strides = [1, 1]} : vector<2x128xf32> to vector<2x32xf32>
    %759 = tpu.concatenate %757, %758 in 1 : vector<2x32xf32>, vector<2x32xf32> -> vector<2x64xf32>
    %cst_233 = arith.constant dense<0.000000e+00> : vector<2xf32>
    %760 = vector.multi_reduction <add>, %759, %cst_233 [1] : vector<2x64xf32> to vector<2xf32>
    %761 = vector.shape_cast %760 : vector<2xf32> to vector<2x1xf32>
    %cst_234 = arith.constant 6.400000e+01 : f32
    %762 = vector.broadcast %cst_234 : f32 to vector<2x1xf32>
    %763 = arith.divf %761, %762 : vector<2x1xf32>
    %764 = vector.broadcast %763 : vector<2x1xf32> to vector<2x64xf32>
    %765 = arith.subf %759, %764 : vector<2x64xf32>
    %766 = arith.mulf %765, %765 : vector<2x64xf32>
    %cst_235 = arith.constant dense<0.000000e+00> : vector<2xf32>
    %767 = vector.multi_reduction <add>, %766, %cst_235 [1] : vector<2x64xf32> to vector<2xf32>
    %768 = vector.shape_cast %767 : vector<2xf32> to vector<2x1xf32>
    %cst_236 = arith.constant 6.400000e+01 : f32
    %769 = vector.broadcast %cst_236 : f32 to vector<2x1xf32>
    %770 = arith.divf %768, %769 : vector<2x1xf32>
    %771 = vector.broadcast %763 : vector<2x1xf32> to vector<2x64xf32>
    %772 = arith.subf %759, %771 : vector<2x64xf32>
    %cst_237 = arith.constant 9.99999974E-6 : f32
    %773 = vector.broadcast %cst_237 : f32 to vector<2x1xf32>
    %774 = arith.addf %770, %773 : vector<2x1xf32>
    %775 = math.rsqrt %774 : vector<2x1xf32>
    %776 = vector.broadcast %775 : vector<2x1xf32> to vector<2x64xf32>
    %777 = arith.mulf %772, %776 : vector<2x64xf32>
    %c0_238 = arith.constant 0 : index
    %c0_239 = arith.constant 0 : index
    %778 = vector.load %arg10[%c0_238, %c0_239] : memref<1x64xf32, #tpu.memory_space<vmem>>, vector<1x64xf32>
    %779 = vector.broadcast %778 : vector<1x64xf32> to vector<2x64xf32>
    %780 = arith.mulf %777, %779 : vector<2x64xf32>
    %c0_240 = arith.constant 0 : index
    %c0_241 = arith.constant 0 : index
    %781 = vector.load %arg11[%c0_240, %c0_241] : memref<1x64xf32, #tpu.memory_space<vmem>>, vector<1x64xf32>
    %782 = vector.broadcast %781 : vector<1x64xf32> to vector<2x64xf32>
    %783 = arith.addf %780, %782 : vector<2x64xf32>
    %c0_242 = arith.constant 0 : index
    %c0_243 = arith.constant 0 : index
    %784 = vector.load %arg12[%c0_242, %c0_243] : memref<64x128xf32, #tpu.memory_space<vmem>>, vector<64x128xf32>
    %cst_244 = arith.constant dense<0.000000e+00> : vector<2x128xf32>
    %785 = tpu.matmul %783, %784, %cst_244 {dimension_numbers = #tpu.dot_dimension_numbers<[1], [0], [0], [1], [0, 0, 1, 1], [], []>} : vector<2x64xf32>, vector<64x128xf32>, vector<2x128xf32> -> vector<2x128xf32>
    %c0_245 = arith.constant 0 : index
    %c0_246 = arith.constant 0 : index
    %786 = vector.load %arg13[%c0_245, %c0_246] : memref<1x128xf32, #tpu.memory_space<vmem>>, vector<1x128xf32>
    %787 = vector.broadcast %786 : vector<1x128xf32> to vector<2x128xf32>
    %788 = arith.addf %785, %787 : vector<2x128xf32>
    %789 = math.tanh %788 : vector<2x128xf32>
    %c0_247 = arith.constant 0 : index
    %c0_248 = arith.constant 0 : index
    %790 = vector.load %arg18[%c0_247, %c0_248] : memref<128x384xf32, #tpu.memory_space<vmem>>, vector<128x384xf32>
    %c0_249 = arith.constant 0 : index
    %c0_250 = arith.constant 0 : index
    %791 = vector.load %arg19[%c0_249, %c0_250] : memref<1x128xf32, #tpu.memory_space<vmem>>, vector<1x128xf32>
    %c0_251 = arith.constant 0 : index
    %c0_252 = arith.constant 0 : index
    %792 = vector.load %arg20[%c0_251, %c0_252] : memref<128x128xf32, #tpu.memory_space<vmem>>, vector<128x128xf32>
    %c0_253 = arith.constant 0 : index
    %c0_254 = arith.constant 0 : index
    %793 = vector.load %arg21[%c0_253, %c0_254] : memref<1x128xf32, #tpu.memory_space<vmem>>, vector<1x128xf32>
    %c0_i32_255 = arith.constant 0 : i32
    %794 = arith.index_cast %c0_i32_255 : i32 to index
    %c0_256 = arith.constant 0 : index
    %c0_257 = arith.constant 0 : index
    %795 = vector.load %arg25[%794, %c0_256, %c0_257] : memref<6x2x384xf32, #tpu.memory_space<vmem>>, vector<1x2x384xf32>
    %796 = vector.shape_cast %795 : vector<1x2x384xf32> to vector<2x384xf32>
    %cst_258 = arith.constant dense<0.000000e+00> : vector<2x384xf32>
    %797 = tpu.matmul %789, %790, %cst_258 {dimension_numbers = #tpu.dot_dimension_numbers<[1], [0], [0], [1], [0, 0, 1, 1], [], []>} : vector<2x128xf32>, vector<128x384xf32>, vector<2x384xf32> -> vector<2x384xf32>
    %798 = vector.extract_strided_slice %796 {offsets = [0, 0], sizes = [2, 128], strides = [1, 1]} : vector<2x384xf32> to vector<2x128xf32>
    %799 = vector.extract_strided_slice %797 {offsets = [0, 0], sizes = [2, 128], strides = [1, 1]} : vector<2x384xf32> to vector<2x128xf32>
    %800 = arith.addf %798, %799 : vector<2x128xf32>
    %801 = arith.negf %800 : vector<2x128xf32>
    %802 = math.exp %801 : vector<2x128xf32>
    %cst_259 = arith.constant 1.000000e+00 : f32
    %803 = vector.broadcast %cst_259 : f32 to vector<2x128xf32>
    %804 = arith.addf %803, %802 : vector<2x128xf32>
    %805 = arith.divf %803, %804 : vector<2x128xf32>
    %806 = vector.extract_strided_slice %796 {offsets = [0, 128], sizes = [2, 128], strides = [1, 1]} : vector<2x384xf32> to vector<2x128xf32>
    %807 = vector.extract_strided_slice %797 {offsets = [0, 128], sizes = [2, 128], strides = [1, 1]} : vector<2x384xf32> to vector<2x128xf32>
    %808 = arith.addf %806, %807 : vector<2x128xf32>
    %809 = arith.negf %808 : vector<2x128xf32>
    %810 = math.exp %809 : vector<2x128xf32>
    %cst_260 = arith.constant 1.000000e+00 : f32
    %811 = vector.broadcast %cst_260 : f32 to vector<2x128xf32>
    %812 = arith.addf %811, %810 : vector<2x128xf32>
    %813 = arith.divf %811, %812 : vector<2x128xf32>
    %814 = vector.extract_strided_slice %796 {offsets = [0, 256], sizes = [2, 128], strides = [1, 1]} : vector<2x384xf32> to vector<2x128xf32>
    %815 = vector.extract_strided_slice %797 {offsets = [0, 256], sizes = [2, 128], strides = [1, 1]} : vector<2x384xf32> to vector<2x128xf32>
    %816 = vector.broadcast %791 : vector<1x128xf32> to vector<2x128xf32>
    %817 = arith.addf %815, %816 : vector<2x128xf32>
    %818 = arith.mulf %805, %817 : vector<2x128xf32>
    %819 = arith.addf %814, %818 : vector<2x128xf32>
    %820 = math.tanh %819 : vector<2x128xf32>
    %cst_261 = arith.constant 1.000000e+00 : f32
    %821 = vector.broadcast %cst_261 : f32 to vector<2x128xf32>
    %822 = arith.subf %821, %813 : vector<2x128xf32>
    %823 = arith.mulf %822, %820 : vector<2x128xf32>
    %824 = arith.mulf %813, %789 : vector<2x128xf32>
    %825 = arith.addf %823, %824 : vector<2x128xf32>
    %cst_262 = arith.constant dense<0.000000e+00> : vector<2x128xf32>
    %826 = tpu.matmul %825, %792, %cst_262 {dimension_numbers = #tpu.dot_dimension_numbers<[1], [0], [0], [1], [0, 0, 1, 1], [], []>} : vector<2x128xf32>, vector<128x128xf32>, vector<2x128xf32> -> vector<2x128xf32>
    %827 = vector.broadcast %793 : vector<1x128xf32> to vector<2x128xf32>
    %828 = arith.addf %826, %827 : vector<2x128xf32>
    %829 = arith.index_cast %c0_i32_255 : i32 to index
    %c0_263 = arith.constant 0 : index
    %c0_264 = arith.constant 0 : index
    %830 = vector.load %arg22[%829, %c0_263, %c0_264] : memref<6x2x128xf32, #tpu.memory_space<vmem>>, vector<1x2x128xf32>
    %831 = vector.shape_cast %830 : vector<1x2x128xf32> to vector<2x128xf32>
    %832 = vector.shape_cast %828 : vector<2x128xf32> to vector<1x2x128xf32>
    tpu.vector_store %arg22[%829, %c0_263, %c0_264], %832 {strides = array<i32>} : memref<6x2x128xf32, #tpu.memory_space<vmem>>, vector<1x2x128xf32>,
    %c1_i32_265 = arith.constant 1 : i32
    %833 = arith.index_cast %c1_i32_265 : i32 to index
    %c0_266 = arith.constant 0 : index
    %c0_267 = arith.constant 0 : index
    %834 = vector.load %arg25[%833, %c0_266, %c0_267] : memref<6x2x384xf32, #tpu.memory_space<vmem>>, vector<1x2x384xf32>
    %835 = vector.shape_cast %834 : vector<1x2x384xf32> to vector<2x384xf32>
    %cst_268 = arith.constant dense<0.000000e+00> : vector<2x384xf32>
    %836 = tpu.matmul %825, %790, %cst_268 {dimension_numbers = #tpu.dot_dimension_numbers<[1], [0], [0], [1], [0, 0, 1, 1], [], []>} : vector<2x128xf32>, vector<128x384xf32>, vector<2x384xf32> -> vector<2x384xf32>
    %837 = vector.extract_strided_slice %835 {offsets = [0, 0], sizes = [2, 128], strides = [1, 1]} : vector<2x384xf32> to vector<2x128xf32>
    %838 = vector.extract_strided_slice %836 {offsets = [0, 0], sizes = [2, 128], strides = [1, 1]} : vector<2x384xf32> to vector<2x128xf32>
    %839 = arith.addf %837, %838 : vector<2x128xf32>
    %840 = arith.negf %839 : vector<2x128xf32>
    %841 = math.exp %840 : vector<2x128xf32>
    %cst_269 = arith.constant 1.000000e+00 : f32
    %842 = vector.broadcast %cst_269 : f32 to vector<2x128xf32>
    %843 = arith.addf %842, %841 : vector<2x128xf32>
    %844 = arith.divf %842, %843 : vector<2x128xf32>
    %845 = vector.extract_strided_slice %835 {offsets = [0, 128], sizes = [2, 128], strides = [1, 1]} : vector<2x384xf32> to vector<2x128xf32>
    %846 = vector.extract_strided_slice %836 {offsets = [0, 128], sizes = [2, 128], strides = [1, 1]} : vector<2x384xf32> to vector<2x128xf32>
    %847 = arith.addf %845, %846 : vector<2x128xf32>
    %848 = arith.negf %847 : vector<2x128xf32>
    %849 = math.exp %848 : vector<2x128xf32>
    %cst_270 = arith.constant 1.000000e+00 : f32
    %850 = vector.broadcast %cst_270 : f32 to vector<2x128xf32>
    %851 = arith.addf %850, %849 : vector<2x128xf32>
    %852 = arith.divf %850, %851 : vector<2x128xf32>
    %853 = vector.extract_strided_slice %835 {offsets = [0, 256], sizes = [2, 128], strides = [1, 1]} : vector<2x384xf32> to vector<2x128xf32>
    %854 = vector.extract_strided_slice %836 {offsets = [0, 256], sizes = [2, 128], strides = [1, 1]} : vector<2x384xf32> to vector<2x128xf32>
    %855 = vector.broadcast %791 : vector<1x128xf32> to vector<2x128xf32>
    %856 = arith.addf %854, %855 : vector<2x128xf32>
    %857 = arith.mulf %844, %856 : vector<2x128xf32>
    %858 = arith.addf %853, %857 : vector<2x128xf32>
    %859 = math.tanh %858 : vector<2x128xf32>
    %cst_271 = arith.constant 1.000000e+00 : f32
    %860 = vector.broadcast %cst_271 : f32 to vector<2x128xf32>
    %861 = arith.subf %860, %852 : vector<2x128xf32>
    %862 = arith.mulf %861, %859 : vector<2x128xf32>
    %863 = arith.mulf %852, %825 : vector<2x128xf32>
    %864 = arith.addf %862, %863 : vector<2x128xf32>
    %cst_272 = arith.constant dense<0.000000e+00> : vector<2x128xf32>
    %865 = tpu.matmul %864, %792, %cst_272 {dimension_numbers = #tpu.dot_dimension_numbers<[1], [0], [0], [1], [0, 0, 1, 1], [], []>} : vector<2x128xf32>, vector<128x128xf32>, vector<2x128xf32> -> vector<2x128xf32>
    %866 = vector.broadcast %793 : vector<1x128xf32> to vector<2x128xf32>
    %867 = arith.addf %865, %866 : vector<2x128xf32>
    %868 = arith.index_cast %c1_i32_265 : i32 to index
    %c0_273 = arith.constant 0 : index
    %c0_274 = arith.constant 0 : index
    %869 = vector.load %arg22[%868, %c0_273, %c0_274] : memref<6x2x128xf32, #tpu.memory_space<vmem>>, vector<1x2x128xf32>
    %870 = vector.shape_cast %869 : vector<1x2x128xf32> to vector<2x128xf32>
    %871 = vector.shape_cast %867 : vector<2x128xf32> to vector<1x2x128xf32>
    tpu.vector_store %arg22[%868, %c0_273, %c0_274], %871 {strides = array<i32>} : memref<6x2x128xf32, #tpu.memory_space<vmem>>, vector<1x2x128xf32>,
    %c2_i32_275 = arith.constant 2 : i32
    %872 = arith.index_cast %c2_i32_275 : i32 to index
    %c0_276 = arith.constant 0 : index
    %c0_277 = arith.constant 0 : index
    %873 = vector.load %arg25[%872, %c0_276, %c0_277] : memref<6x2x384xf32, #tpu.memory_space<vmem>>, vector<1x2x384xf32>
    %874 = vector.shape_cast %873 : vector<1x2x384xf32> to vector<2x384xf32>
    %cst_278 = arith.constant dense<0.000000e+00> : vector<2x384xf32>
    %875 = tpu.matmul %864, %790, %cst_278 {dimension_numbers = #tpu.dot_dimension_numbers<[1], [0], [0], [1], [0, 0, 1, 1], [], []>} : vector<2x128xf32>, vector<128x384xf32>, vector<2x384xf32> -> vector<2x384xf32>
    %876 = vector.extract_strided_slice %874 {offsets = [0, 0], sizes = [2, 128], strides = [1, 1]} : vector<2x384xf32> to vector<2x128xf32>
    %877 = vector.extract_strided_slice %875 {offsets = [0, 0], sizes = [2, 128], strides = [1, 1]} : vector<2x384xf32> to vector<2x128xf32>
    %878 = arith.addf %876, %877 : vector<2x128xf32>
    %879 = arith.negf %878 : vector<2x128xf32>
    %880 = math.exp %879 : vector<2x128xf32>
    %cst_279 = arith.constant 1.000000e+00 : f32
    %881 = vector.broadcast %cst_279 : f32 to vector<2x128xf32>
    %882 = arith.addf %881, %880 : vector<2x128xf32>
    %883 = arith.divf %881, %882 : vector<2x128xf32>
    %884 = vector.extract_strided_slice %874 {offsets = [0, 128], sizes = [2, 128], strides = [1, 1]} : vector<2x384xf32> to vector<2x128xf32>
    %885 = vector.extract_strided_slice %875 {offsets = [0, 128], sizes = [2, 128], strides = [1, 1]} : vector<2x384xf32> to vector<2x128xf32>
    %886 = arith.addf %884, %885 : vector<2x128xf32>
    %887 = arith.negf %886 : vector<2x128xf32>
    %888 = math.exp %887 : vector<2x128xf32>
    %cst_280 = arith.constant 1.000000e+00 : f32
    %889 = vector.broadcast %cst_280 : f32 to vector<2x128xf32>
    %890 = arith.addf %889, %888 : vector<2x128xf32>
    %891 = arith.divf %889, %890 : vector<2x128xf32>
    %892 = vector.extract_strided_slice %874 {offsets = [0, 256], sizes = [2, 128], strides = [1, 1]} : vector<2x384xf32> to vector<2x128xf32>
    %893 = vector.extract_strided_slice %875 {offsets = [0, 256], sizes = [2, 128], strides = [1, 1]} : vector<2x384xf32> to vector<2x128xf32>
    %894 = vector.broadcast %791 : vector<1x128xf32> to vector<2x128xf32>
    %895 = arith.addf %893, %894 : vector<2x128xf32>
    %896 = arith.mulf %883, %895 : vector<2x128xf32>
    %897 = arith.addf %892, %896 : vector<2x128xf32>
    %898 = math.tanh %897 : vector<2x128xf32>
    %cst_281 = arith.constant 1.000000e+00 : f32
    %899 = vector.broadcast %cst_281 : f32 to vector<2x128xf32>
    %900 = arith.subf %899, %891 : vector<2x128xf32>
    %901 = arith.mulf %900, %898 : vector<2x128xf32>
    %902 = arith.mulf %891, %864 : vector<2x128xf32>
    %903 = arith.addf %901, %902 : vector<2x128xf32>
    %cst_282 = arith.constant dense<0.000000e+00> : vector<2x128xf32>
    %904 = tpu.matmul %903, %792, %cst_282 {dimension_numbers = #tpu.dot_dimension_numbers<[1], [0], [0], [1], [0, 0, 1, 1], [], []>} : vector<2x128xf32>, vector<128x128xf32>, vector<2x128xf32> -> vector<2x128xf32>
    %905 = vector.broadcast %793 : vector<1x128xf32> to vector<2x128xf32>
    %906 = arith.addf %904, %905 : vector<2x128xf32>
    %907 = arith.index_cast %c2_i32_275 : i32 to index
    %c0_283 = arith.constant 0 : index
    %c0_284 = arith.constant 0 : index
    %908 = vector.load %arg22[%907, %c0_283, %c0_284] : memref<6x2x128xf32, #tpu.memory_space<vmem>>, vector<1x2x128xf32>
    %909 = vector.shape_cast %908 : vector<1x2x128xf32> to vector<2x128xf32>
    %910 = vector.shape_cast %906 : vector<2x128xf32> to vector<1x2x128xf32>
    tpu.vector_store %arg22[%907, %c0_283, %c0_284], %910 {strides = array<i32>} : memref<6x2x128xf32, #tpu.memory_space<vmem>>, vector<1x2x128xf32>,
    %c3_i32_285 = arith.constant 3 : i32
    %911 = arith.index_cast %c3_i32_285 : i32 to index
    %c0_286 = arith.constant 0 : index
    %c0_287 = arith.constant 0 : index
    %912 = vector.load %arg25[%911, %c0_286, %c0_287] : memref<6x2x384xf32, #tpu.memory_space<vmem>>, vector<1x2x384xf32>
    %913 = vector.shape_cast %912 : vector<1x2x384xf32> to vector<2x384xf32>
    %cst_288 = arith.constant dense<0.000000e+00> : vector<2x384xf32>
    %914 = tpu.matmul %903, %790, %cst_288 {dimension_numbers = #tpu.dot_dimension_numbers<[1], [0], [0], [1], [0, 0, 1, 1], [], []>} : vector<2x128xf32>, vector<128x384xf32>, vector<2x384xf32> -> vector<2x384xf32>
    %915 = vector.extract_strided_slice %913 {offsets = [0, 0], sizes = [2, 128], strides = [1, 1]} : vector<2x384xf32> to vector<2x128xf32>
    %916 = vector.extract_strided_slice %914 {offsets = [0, 0], sizes = [2, 128], strides = [1, 1]} : vector<2x384xf32> to vector<2x128xf32>
    %917 = arith.addf %915, %916 : vector<2x128xf32>
    %918 = arith.negf %917 : vector<2x128xf32>
    %919 = math.exp %918 : vector<2x128xf32>
    %cst_289 = arith.constant 1.000000e+00 : f32
    %920 = vector.broadcast %cst_289 : f32 to vector<2x128xf32>
    %921 = arith.addf %920, %919 : vector<2x128xf32>
    %922 = arith.divf %920, %921 : vector<2x128xf32>
    %923 = vector.extract_strided_slice %913 {offsets = [0, 128], sizes = [2, 128], strides = [1, 1]} : vector<2x384xf32> to vector<2x128xf32>
    %924 = vector.extract_strided_slice %914 {offsets = [0, 128], sizes = [2, 128], strides = [1, 1]} : vector<2x384xf32> to vector<2x128xf32>
    %925 = arith.addf %923, %924 : vector<2x128xf32>
    %926 = arith.negf %925 : vector<2x128xf32>
    %927 = math.exp %926 : vector<2x128xf32>
    %cst_290 = arith.constant 1.000000e+00 : f32
    %928 = vector.broadcast %cst_290 : f32 to vector<2x128xf32>
    %929 = arith.addf %928, %927 : vector<2x128xf32>
    %930 = arith.divf %928, %929 : vector<2x128xf32>
    %931 = vector.extract_strided_slice %913 {offsets = [0, 256], sizes = [2, 128], strides = [1, 1]} : vector<2x384xf32> to vector<2x128xf32>
    %932 = vector.extract_strided_slice %914 {offsets = [0, 256], sizes = [2, 128], strides = [1, 1]} : vector<2x384xf32> to vector<2x128xf32>
    %933 = vector.broadcast %791 : vector<1x128xf32> to vector<2x128xf32>
    %934 = arith.addf %932, %933 : vector<2x128xf32>
    %935 = arith.mulf %922, %934 : vector<2x128xf32>
    %936 = arith.addf %931, %935 : vector<2x128xf32>
    %937 = math.tanh %936 : vector<2x128xf32>
    %cst_291 = arith.constant 1.000000e+00 : f32
    %938 = vector.broadcast %cst_291 : f32 to vector<2x128xf32>
    %939 = arith.subf %938, %930 : vector<2x128xf32>
    %940 = arith.mulf %939, %937 : vector<2x128xf32>
    %941 = arith.mulf %930, %903 : vector<2x128xf32>
    %942 = arith.addf %940, %941 : vector<2x128xf32>
    %cst_292 = arith.constant dense<0.000000e+00> : vector<2x128xf32>
    %943 = tpu.matmul %942, %792, %cst_292 {dimension_numbers = #tpu.dot_dimension_numbers<[1], [0], [0], [1], [0, 0, 1, 1], [], []>} : vector<2x128xf32>, vector<128x128xf32>, vector<2x128xf32> -> vector<2x128xf32>
    %944 = vector.broadcast %793 : vector<1x128xf32> to vector<2x128xf32>
    %945 = arith.addf %943, %944 : vector<2x128xf32>
    %946 = arith.index_cast %c3_i32_285 : i32 to index
    %c0_293 = arith.constant 0 : index
    %c0_294 = arith.constant 0 : index
    %947 = vector.load %arg22[%946, %c0_293, %c0_294] : memref<6x2x128xf32, #tpu.memory_space<vmem>>, vector<1x2x128xf32>
    %948 = vector.shape_cast %947 : vector<1x2x128xf32> to vector<2x128xf32>
    %949 = vector.shape_cast %945 : vector<2x128xf32> to vector<1x2x128xf32>
    tpu.vector_store %arg22[%946, %c0_293, %c0_294], %949 {strides = array<i32>} : memref<6x2x128xf32, #tpu.memory_space<vmem>>, vector<1x2x128xf32>,
    %c4_i32_295 = arith.constant 4 : i32
    %950 = arith.index_cast %c4_i32_295 : i32 to index
    %c0_296 = arith.constant 0 : index
    %c0_297 = arith.constant 0 : index
    %951 = vector.load %arg25[%950, %c0_296, %c0_297] : memref<6x2x384xf32, #tpu.memory_space<vmem>>, vector<1x2x384xf32>
    %952 = vector.shape_cast %951 : vector<1x2x384xf32> to vector<2x384xf32>
    %cst_298 = arith.constant dense<0.000000e+00> : vector<2x384xf32>
    %953 = tpu.matmul %942, %790, %cst_298 {dimension_numbers = #tpu.dot_dimension_numbers<[1], [0], [0], [1], [0, 0, 1, 1], [], []>} : vector<2x128xf32>, vector<128x384xf32>, vector<2x384xf32> -> vector<2x384xf32>
    %954 = vector.extract_strided_slice %952 {offsets = [0, 0], sizes = [2, 128], strides = [1, 1]} : vector<2x384xf32> to vector<2x128xf32>
    %955 = vector.extract_strided_slice %953 {offsets = [0, 0], sizes = [2, 128], strides = [1, 1]} : vector<2x384xf32> to vector<2x128xf32>
    %956 = arith.addf %954, %955 : vector<2x128xf32>
    %957 = arith.negf %956 : vector<2x128xf32>
    %958 = math.exp %957 : vector<2x128xf32>
    %cst_299 = arith.constant 1.000000e+00 : f32
    %959 = vector.broadcast %cst_299 : f32 to vector<2x128xf32>
    %960 = arith.addf %959, %958 : vector<2x128xf32>
    %961 = arith.divf %959, %960 : vector<2x128xf32>
    %962 = vector.extract_strided_slice %952 {offsets = [0, 128], sizes = [2, 128], strides = [1, 1]} : vector<2x384xf32> to vector<2x128xf32>
    %963 = vector.extract_strided_slice %953 {offsets = [0, 128], sizes = [2, 128], strides = [1, 1]} : vector<2x384xf32> to vector<2x128xf32>
    %964 = arith.addf %962, %963 : vector<2x128xf32>
    %965 = arith.negf %964 : vector<2x128xf32>
    %966 = math.exp %965 : vector<2x128xf32>
    %cst_300 = arith.constant 1.000000e+00 : f32
    %967 = vector.broadcast %cst_300 : f32 to vector<2x128xf32>
    %968 = arith.addf %967, %966 : vector<2x128xf32>
    %969 = arith.divf %967, %968 : vector<2x128xf32>
    %970 = vector.extract_strided_slice %952 {offsets = [0, 256], sizes = [2, 128], strides = [1, 1]} : vector<2x384xf32> to vector<2x128xf32>
    %971 = vector.extract_strided_slice %953 {offsets = [0, 256], sizes = [2, 128], strides = [1, 1]} : vector<2x384xf32> to vector<2x128xf32>
    %972 = vector.broadcast %791 : vector<1x128xf32> to vector<2x128xf32>
    %973 = arith.addf %971, %972 : vector<2x128xf32>
    %974 = arith.mulf %961, %973 : vector<2x128xf32>
    %975 = arith.addf %970, %974 : vector<2x128xf32>
    %976 = math.tanh %975 : vector<2x128xf32>
    %cst_301 = arith.constant 1.000000e+00 : f32
    %977 = vector.broadcast %cst_301 : f32 to vector<2x128xf32>
    %978 = arith.subf %977, %969 : vector<2x128xf32>
    %979 = arith.mulf %978, %976 : vector<2x128xf32>
    %980 = arith.mulf %969, %942 : vector<2x128xf32>
    %981 = arith.addf %979, %980 : vector<2x128xf32>
    %cst_302 = arith.constant dense<0.000000e+00> : vector<2x128xf32>
    %982 = tpu.matmul %981, %792, %cst_302 {dimension_numbers = #tpu.dot_dimension_numbers<[1], [0], [0], [1], [0, 0, 1, 1], [], []>} : vector<2x128xf32>, vector<128x128xf32>, vector<2x128xf32> -> vector<2x128xf32>
    %983 = vector.broadcast %793 : vector<1x128xf32> to vector<2x128xf32>
    %984 = arith.addf %982, %983 : vector<2x128xf32>
    %985 = arith.index_cast %c4_i32_295 : i32 to index
    %c0_303 = arith.constant 0 : index
    %c0_304 = arith.constant 0 : index
    %986 = vector.load %arg22[%985, %c0_303, %c0_304] : memref<6x2x128xf32, #tpu.memory_space<vmem>>, vector<1x2x128xf32>
    %987 = vector.shape_cast %986 : vector<1x2x128xf32> to vector<2x128xf32>
    %988 = vector.shape_cast %984 : vector<2x128xf32> to vector<1x2x128xf32>
    tpu.vector_store %arg22[%985, %c0_303, %c0_304], %988 {strides = array<i32>} : memref<6x2x128xf32, #tpu.memory_space<vmem>>, vector<1x2x128xf32>,
    %c5_i32_305 = arith.constant 5 : i32
    %989 = arith.index_cast %c5_i32_305 : i32 to index
    %c0_306 = arith.constant 0 : index
    %c0_307 = arith.constant 0 : index
    %990 = vector.load %arg25[%989, %c0_306, %c0_307] : memref<6x2x384xf32, #tpu.memory_space<vmem>>, vector<1x2x384xf32>
    %991 = vector.shape_cast %990 : vector<1x2x384xf32> to vector<2x384xf32>
    %cst_308 = arith.constant dense<0.000000e+00> : vector<2x384xf32>
    %992 = tpu.matmul %981, %790, %cst_308 {dimension_numbers = #tpu.dot_dimension_numbers<[1], [0], [0], [1], [0, 0, 1, 1], [], []>} : vector<2x128xf32>, vector<128x384xf32>, vector<2x384xf32> -> vector<2x384xf32>
    %993 = vector.extract_strided_slice %991 {offsets = [0, 0], sizes = [2, 128], strides = [1, 1]} : vector<2x384xf32> to vector<2x128xf32>
    %994 = vector.extract_strided_slice %992 {offsets = [0, 0], sizes = [2, 128], strides = [1, 1]} : vector<2x384xf32> to vector<2x128xf32>
    %995 = arith.addf %993, %994 : vector<2x128xf32>
    %996 = arith.negf %995 : vector<2x128xf32>
    %997 = math.exp %996 : vector<2x128xf32>
    %cst_309 = arith.constant 1.000000e+00 : f32
    %998 = vector.broadcast %cst_309 : f32 to vector<2x128xf32>
    %999 = arith.addf %998, %997 : vector<2x128xf32>
    %1000 = arith.divf %998, %999 : vector<2x128xf32>
    %1001 = vector.extract_strided_slice %991 {offsets = [0, 128], sizes = [2, 128], strides = [1, 1]} : vector<2x384xf32> to vector<2x128xf32>
    %1002 = vector.extract_strided_slice %992 {offsets = [0, 128], sizes = [2, 128], strides = [1, 1]} : vector<2x384xf32> to vector<2x128xf32>
    %1003 = arith.addf %1001, %1002 : vector<2x128xf32>
    %1004 = arith.negf %1003 : vector<2x128xf32>
    %1005 = math.exp %1004 : vector<2x128xf32>
    %cst_310 = arith.constant 1.000000e+00 : f32
    %1006 = vector.broadcast %cst_310 : f32 to vector<2x128xf32>
    %1007 = arith.addf %1006, %1005 : vector<2x128xf32>
    %1008 = arith.divf %1006, %1007 : vector<2x128xf32>
    %1009 = vector.extract_strided_slice %991 {offsets = [0, 256], sizes = [2, 128], strides = [1, 1]} : vector<2x384xf32> to vector<2x128xf32>
    %1010 = vector.extract_strided_slice %992 {offsets = [0, 256], sizes = [2, 128], strides = [1, 1]} : vector<2x384xf32> to vector<2x128xf32>
    %1011 = vector.broadcast %791 : vector<1x128xf32> to vector<2x128xf32>
    %1012 = arith.addf %1010, %1011 : vector<2x128xf32>
    %1013 = arith.mulf %1000, %1012 : vector<2x128xf32>
    %1014 = arith.addf %1009, %1013 : vector<2x128xf32>
    %1015 = math.tanh %1014 : vector<2x128xf32>
    %cst_311 = arith.constant 1.000000e+00 : f32
    %1016 = vector.broadcast %cst_311 : f32 to vector<2x128xf32>
    %1017 = arith.subf %1016, %1008 : vector<2x128xf32>
    %1018 = arith.mulf %1017, %1015 : vector<2x128xf32>
    %1019 = arith.mulf %1008, %981 : vector<2x128xf32>
    %1020 = arith.addf %1018, %1019 : vector<2x128xf32>
    %cst_312 = arith.constant dense<0.000000e+00> : vector<2x128xf32>
    %1021 = tpu.matmul %1020, %792, %cst_312 {dimension_numbers = #tpu.dot_dimension_numbers<[1], [0], [0], [1], [0, 0, 1, 1], [], []>} : vector<2x128xf32>, vector<128x128xf32>, vector<2x128xf32> -> vector<2x128xf32>
    %1022 = vector.broadcast %793 : vector<1x128xf32> to vector<2x128xf32>
    %1023 = arith.addf %1021, %1022 : vector<2x128xf32>
    %1024 = arith.index_cast %c5_i32_305 : i32 to index
    %c0_313 = arith.constant 0 : index
    %c0_314 = arith.constant 0 : index
    %1025 = vector.load %arg22[%1024, %c0_313, %c0_314] : memref<6x2x128xf32, #tpu.memory_space<vmem>>, vector<1x2x128xf32>
    %1026 = vector.shape_cast %1025 : vector<1x2x128xf32> to vector<2x128xf32>
    %1027 = vector.shape_cast %1023 : vector<2x128xf32> to vector<1x2x128xf32>
    tpu.vector_store %arg22[%1024, %c0_313, %c0_314], %1027 {strides = array<i32>} : memref<6x2x128xf32, #tpu.memory_space<vmem>>, vector<1x2x128xf32>,
    %c6_i32_315 = arith.constant 6 : i32
    %c0_316 = arith.constant 0 : index
    %c0_317 = arith.constant 0 : index
    %1028 = vector.load %arg23[%c0_316, %c0_317] : memref<2x128xf32, #tpu.memory_space<vmem>>, vector<2x128xf32>
    tpu.vector_store %arg23[%c0_316, %c0_317], %1020 {strides = array<i32>} : memref<2x128xf32, #tpu.memory_space<vmem>>, vector<2x128xf32>,
    return
  }
}

</mosaic_0001>

<bundles_post_ra>
// kernel: s2s_forward.1
= control target key start
LH: loop header
LB: loop body
LE: loop exit
PB: predicated region body
PF: predicated region fallthrough
CT: control target
= control target key end

     0   :  { %s15361_s0 = inlined_call_operand.vmem [shape: f32[8,2,16], index: 0, kind: input, shape index: {}]   ;;  %s15362_s1 = inlined_call_operand.vmem [shape: f32[6,2,16], index: 1, kind: input, shape index: {}]   ;;  %s15363_s2 = inlined_call_operand.vmem [shape: f32[16,32], index: 2, kind: input, shape index: {}]   ;;  %s15364_s3 = inlined_call_operand.hbm [shape: f32[1,32], index: 3, kind: input, shape index: {}]   ;;  %s15365_s4 = inlined_call_operand.hbm [shape: f32[32,768], index: 4, kind: input, shape index: {}]   ;;  %s15366_s5 = inlined_call_operand.hbm [shape: f32[1,768], index: 5, kind: input, shape index: {}]   ;;  %s15367_s6 = inlined_call_operand.vmem [shape: f32[128,384], index: 6, kind: input, shape index: {}]   ;;  %s15368_s7 = inlined_call_operand.hbm [shape: f32[128,384], index: 7, kind: input, shape index: {}]   ;;  %s15369_s8 = inlined_call_operand.hbm [shape: f32[1,128], index: 8, kind: input, shape index: {}]   ;;  %s15370_s9 = inlined_call_operand.hbm [shape: f32[1,128], index: 9, kind: input, shape index: {}]   ;;  %s15371_s10 = inlined_call_operand.hbm [shape: f32[1,64], index: 10, kind: input, shape index: {}]   ;;  %s15372_s11 = inlined_call_operand.hbm [shape: f32[1,64], index: 11, kind: input, shape index: {}]   ;;  %s15373_s12 = inlined_call_operand.hbm [shape: f32[64,128], index: 12, kind: input, shape index: {}]   ;;  %s15374_s13 = inlined_call_operand.hbm [shape: f32[1,128], index: 13, kind: input, shape index: {}]   ;;  %s15375_s14 = inlined_call_operand.vmem [shape: f32[16,32], index: 14, kind: input, shape index: {}]   ;;  %s15376_s15 = inlined_call_operand.vmem [shape: f32[1,32], index: 15, kind: input, shape index: {}]   ;;  %s15377_s16 = inlined_call_operand.vmem [shape: f32[32,384], index: 16, kind: input, shape index: {}]   ;;  %s15378_s17 = inlined_call_operand.vmem [shape: f32[1,384], index: 17, kind: input, shape index: {}]   ;;  %s15379_s18 = inlined_call_operand.hbm [shape: f32[128,384], index: 18, kind: input, shape index: {}]   ;;  %s15380_s19 = inlined_call_operand.vmem [shape: f32[1,128], index: 19, kind: input, shape index: {}]   ;;  %s15381_s20 = inlined_call_operand.hbm [shape: f32[128,128], index: 20, kind: input, shape index: {}]   ;;  %s15382_s21 = inlined_call_operand.hbm [shape: f32[1,128], index: 21, kind: input, shape index: {}]   ;;  %s15383_s22 = inlined_call_operand.hbm [shape: f32[6,2,128], index: 22, kind: output, shape index: {0}]   ;;  %s15384_s23 = inlined_call_operand.vmem [shape: f32[2,128], index: 23, kind: output, shape index: {1}]  }
   0x1   :  { %15428 = sst [smem:[#allocation48_spill]] %s15361_s0 }
   0x2   :  { %15429 = sst [smem:[#allocation49_spill]] %s15362_s1 }
   0x3   :  { %15430 = sst [smem:[#allocation50_spill]] %s15363_s2 }
   0x4   :  { %15431 = sst [smem:[#allocation51_spill]] %s15364_s3 }
   0x5   :  { %15432 = sst [smem:[#allocation52_spill]] %s15365_s4 }
   0x6   :  { %15433 = sst [smem:[#allocation53_spill]] %s15366_s5 }
   0x7   :  { %15434 = sst [smem:[#allocation54_spill]] %s15367_s6 }
   0x8   :  { %15435 = sst [smem:[#allocation55_spill]] %s15368_s7 }
   0x9   :  { %15436 = sst [smem:[#allocation56_spill]] %s15383_s22 }
   0xa   :  { %15437 = sst [smem:[#allocation57_spill]] %s15384_s23 }
   0xb   :  { %29 = vsyncpa [#allocation5], 0 }
   0xc   :  { %30 = vsyncpa [#allocation8], 0 }
   0xd   :  { %31 = vsyncpa [#allocation11], 0 }
   0xe   :  { %32 = vsyncpa [#allocation14], 0 }
   0xf   :  { %33 = vsyncpa [#allocation17], 0 }
  0x10   :  { %34 = vsyncpa [#allocation20], 0 }
  0x11   :  { %35 = vsyncpa [#allocation23], 0 }
  0x12   :  { %36 = vsyncpa [#allocation6], 0  ;;  %s13073_s4 = smov [#allocation7]   ;;  %s15438_s5 = sld [smem:[#allocation52_spill]] }
  0x13   :  { %s58_s30 = sshll.u32 %s13073_s4, 4  ;;  %s59_s30 = int_to_ptr.vmem [resolvable:$true] %s58_s30 }
  0x18   :  { %s12749_s1 = scalar_lea.hbm %s15438_s5, 3072 }
  0x19   :  { %p12750_p0 = scmp.ne.s32.totalorder %s15438_s5, %s12749_s1  ;;  %p12753_p1 = scmp.lt.u32.totalorder %s12749_s1, %s15438_s5 }
  0x1b   :  { %p12755_p2 = pnand %p12753_p1, %p12750_p0 }
  0x1d   :  { %12758 = shalt.err (!%p12755_p2)
}
  0x1e   :  { %s12759_s7 = scalar_lea.vmem %s59_s30, 3072  ;;  %p12764_p4 = scmp.lt.s32.totalorder %s59_s30, %s59_s30 }
  0x1f   :  { %p12760_p3 = scmp.ne.s32.totalorder %s59_s30, %s12759_s7  ;;  %p12765_p5 = scmp.lt.s32.totalorder %s12759_s7, %s12759_s7 }
  0x21   :  { %p12766_p6 = por %p12765_p5, %p12764_p4 }
  0x23   :  { %p12767_p7 = pnand %p12766_p6, %p12760_p3 }
  0x25   :  { %12770 = shalt.err (!%p12767_p7)
}
  0x26   :  { %s13074_s28 = smov 768   ;;  %s13075_s29 = smov 48  }
  0x27   :  { %64 = dma.hbm_to_vmem [thread:$0]  %s15438_s5, 3072, %s59_s30, [#allocation8], %s13074_s28, %s13074_s28, %s13075_s29  }
  0x28   :  { %s13076_s4 = smov [#allocation10]   ;;  %s15439_s26 = sld [smem:[#allocation55_spill]] }
  0x29   :  { %s82_s24 = sshll.u32 %s13076_s4, 4  ;;  %s83_s24 = int_to_ptr.vmem [resolvable:$true] %s82_s24 }
  0x2e   :  { %s12771_s2 = scalar_lea.hbm %s15439_s26, 6144 }
  0x2f   :  { %p12772_p8 = scmp.ne.s32.totalorder %s15439_s26, %s12771_s2  ;;  %p12775_p9 = scmp.lt.u32.totalorder %s12771_s2, %s15439_s26 }
  0x31   :  { %p12777_p10 = pnand %p12775_p9, %p12772_p8 }
  0x33   :  { %12780 = shalt.err (!%p12777_p10)
}
  0x34   :  { %s12781_s23 = scalar_lea.vmem %s83_s24, 6144  ;;  %p12786_p12 = scmp.lt.s32.totalorder %s83_s24, %s83_s24 }
  0x35   :  { %p12782_p11 = scmp.ne.s32.totalorder %s83_s24, %s12781_s23  ;;  %p12787_p13 = scmp.lt.s32.totalorder %s12781_s23, %s12781_s23 }
  0x37   :  { %p12788_p0 = por %p12787_p13, %p12786_p12 }
  0x39   :  { %p12789_p1 = pnand %p12788_p0, %p12782_p11 }
  0x3b   :  { %12792 = shalt.err (!%p12789_p1)
}
  0x3c   :  { %s13077_s30 = smov 384   ;;  %s13078_s5 = smov 24  }
  0x3d   :  { %88 = dma.hbm_to_vmem [thread:$0]  %s15439_s26, 6144, %s83_s24, [#allocation11], %s13077_s30, %s13077_s30, %s13078_s5  }
  0x3e   :  { %s13079_s22 = smov [#allocation13]   ;;  %s13080_s0 = smov [#allocation16]  }
  0x3f   :  { %s105_s3 = sshll.u32 %s13079_s22, 4  ;;  %s125_s4 = sshll.u32 %s13080_s0, 4  ;;  %s106_s3 = int_to_ptr.vmem [resolvable:$true] %s105_s3  ;;  %s126_s4 = int_to_ptr.vmem [resolvable:$true] %s125_s4 }
  0x40   :  { %s12793_s1 = scalar_lea.hbm %s15370_s9, 16 }
  0x41   :  { %p12794_p2 = scmp.ne.s32.totalorder %s15370_s9, %s12793_s1  ;;  %p12797_p3 = scmp.lt.u32.totalorder %s12793_s1, %s15370_s9 }
  0x43   :  { %p12799_p4 = pnand %p12797_p3, %p12794_p2 }
  0x45   :  { %12802 = shalt.err (!%p12799_p4)
}
  0x46   :  { %s12803_s24 = scalar_lea.vmem %s106_s3, 16  ;;  %s12807_s26 = scalar_lea.vmem %s106_s3, 32 }
  0x47   :  { %p12804_p5 = scmp.ne.s32.totalorder %s106_s3, %s12803_s24  ;;  %p12808_p6 = scmp.lt.s32.totalorder %s106_s3, %s106_s3 }
  0x48   :  { %p12809_p7 = scmp.lt.s32.totalorder %s12807_s26, %s12803_s24 }
  0x4a   :  { %p12810_p8 = por %p12809_p7, %p12808_p6 }
  0x4c   :  { %p12811_p9 = pnand %p12810_p8, %p12804_p5 }
  0x4e   :  { %12814 = shalt.err (!%p12811_p9)
}
  0x4f   :  { %108 = dma.hbm_to_vmem [thread:$0]  %s15370_s9, 16, %s106_s3, [#allocation14]  }
  0x50   :  { %s12815_s25 = scalar_lea.hbm %s15372_s11, 16 }
  0x51   :  { %p12816_p10 = scmp.ne.s32.totalorder %s15372_s11, %s12815_s25  ;;  %p12819_p11 = scmp.lt.u32.totalorder %s12815_s25, %s15372_s11 }
  0x53   :  { %p12821_p12 = pnand %p12819_p11, %p12816_p10 }
  0x55   :  { %12824 = shalt.err (!%p12821_p12)
}
  0x56   :  { %s12825_s27 = scalar_lea.vmem %s126_s4, 16  ;;  %s12829_s7 = scalar_lea.vmem %s126_s4, 32 }
  0x57   :  { %p12826_p13 = scmp.ne.s32.totalorder %s126_s4, %s12825_s27  ;;  %p12830_p0 = scmp.lt.s32.totalorder %s126_s4, %s126_s4 }
  0x58   :  { %p12831_p1 = scmp.lt.s32.totalorder %s12829_s7, %s12825_s27 }
  0x5a   :  { %p12832_p2 = por %p12831_p1, %p12830_p0 }
  0x5c   :  { %p12833_p3 = pnand %p12832_p2, %p12826_p13 }
  0x5e   :  { %12836 = shalt.err (!%p12833_p3)
}
  0x5f   :  { %128 = dma.hbm_to_vmem [thread:$0]  %s15372_s11, 16, %s126_s4, [#allocation17]  }
  0x60   :  { %s13081_s24 = smov [#allocation19]   ;;  %s12837_s22 = scalar_lea.hbm %s15374_s13, 16 }
  0x61   :  { %s147_s26 = sshll.u32 %s13081_s24, 4  ;;  %p12838_p4 = scmp.ne.s32.totalorder %s15374_s13, %s12837_s22  ;;  %s148_s26 = int_to_ptr.vmem [resolvable:$true] %s147_s26 }
  0x62   :  { %p12841_p5 = scmp.lt.u32.totalorder %s12837_s22, %s15374_s13 }
  0x64   :  { %p12843_p6 = pnand %p12841_p5, %p12838_p4 }
  0x66   :  { %12846 = shalt.err (!%p12843_p6)
}
  0x67   :  { %s12847_s2 = scalar_lea.vmem %s148_s26, 16  ;;  %s12851_s11 = scalar_lea.vmem %s148_s26, 32 }
  0x68   :  { %p12848_p7 = scmp.ne.s32.totalorder %s148_s26, %s12847_s2  ;;  %p12852_p8 = scmp.lt.s32.totalorder %s148_s26, %s148_s26 }
  0x69   :  { %p12853_p9 = scmp.lt.s32.totalorder %s12851_s11, %s12847_s2 }
  0x6b   :  { %p12854_p10 = por %p12853_p9, %p12852_p8 }
  0x6d   :  { %p12855_p11 = pnand %p12854_p10, %p12848_p7 }
  0x6f   :  { %12858 = shalt.err (!%p12855_p11)
}
  0x70   :  { %150 = dma.hbm_to_vmem [thread:$0]  %s15374_s13, 16, %s148_s26, [#allocation20]  }
  0x71   :  { %s13082_s27 = smov [#allocation22]   ;;  %s13083_s9 = smov [#allocation4]  }
  0x72   :  { %s178_s7 = sshll.u32 %s13082_s27, 4  ;;  %s49_s3 = sshll.u32 %s13083_s9, 4  ;;  %s179_s7 = int_to_ptr.vmem [resolvable:$true] %s178_s7  ;;  %s50_s3 = int_to_ptr.vmem [resolvable:$true] %s49_s3 }
  0x73   :  { %s12859_s29 = scalar_lea.hbm %s15381_s20, 2048 }
  0x74   :  { %p12860_p12 = scmp.ne.s32.totalorder %s15381_s20, %s12859_s29  ;;  %p12863_p13 = scmp.lt.u32.totalorder %s12859_s29, %s15381_s20 }
  0x76   :  { %p12865_p0 = pnand %p12863_p13, %p12860_p12 }
  0x78   :  { %12868 = shalt.err (!%p12865_p0)
}
  0x79   :  { %s12869_s13 = scalar_lea.vmem %s179_s7, 2048  ;;  %p12874_p2 = scmp.lt.s32.totalorder %s179_s7, %s179_s7 }
  0x7a   :  { %p12870_p1 = scmp.ne.s32.totalorder %s179_s7, %s12869_s13  ;;  %p12875_p3 = scmp.lt.s32.totalorder %s12869_s13, %s12869_s13 }
  0x7c   :  { %p12876_p4 = por %p12875_p3, %p12874_p2 }
  0x7e   :  { %p12877_p5 = pnand %p12876_p4, %p12870_p1 }
  0x80   :  { %12880 = shalt.err (!%p12877_p5)
}
  0x81   :  { %s13084_s26 = smov 128   ;;  %s13085_s1 = smov 8  }
  0x82   :  { %184 = dma.hbm_to_vmem [thread:$0]  %s15381_s20, 2048, %s179_s7, [#allocation23], %s13084_s26, %s13084_s26, %s13085_s1  }
  0x83   :  { %s15440_s27 = sld [smem:[#allocation51_spill]] }
  0x89   :  { %s12881_s9 = scalar_lea.hbm %s15440_s27, 16 }
  0x8a   :  { %p12882_p6 = scmp.ne.s32.totalorder %s15440_s27, %s12881_s9  ;;  %p12885_p7 = scmp.lt.u32.totalorder %s12881_s9, %s15440_s27 }
  0x8c   :  { %p12887_p8 = pnand %p12885_p7, %p12882_p6 }
  0x8e   :  { %12890 = shalt.err (!%p12887_p8)
}
  0x8f   :  { %s12891_s0 = scalar_lea.vmem %s50_s3, 16  ;;  %s12895_s25 = scalar_lea.vmem %s50_s3, 32 }
  0x90   :  { %p12892_p9 = scmp.ne.s32.totalorder %s50_s3, %s12891_s0  ;;  %p12896_p10 = scmp.lt.s32.totalorder %s50_s3, %s50_s3 }
  0x91   :  { %p12897_p11 = scmp.lt.s32.totalorder %s12895_s25, %s12891_s0 }
  0x93   :  { %p12898_p12 = por %p12897_p11, %p12896_p10 }
  0x95   :  { %p12899_p13 = pnand %p12898_p12, %p12892_p9 }
  0x97   :  { %12902 = shalt.err (!%p12899_p13)
}
  0x98   :  { %52 = dma.hbm_to_vmem [thread:$0]  %s15440_s27, 16, %s50_s3, [#allocation5]  }
  0x99   :  { %s13086_s23 = smov [#allocation9]   ;;  %s13087_s2 = smov [#allocation12]  }
  0x9a   :  { %s71_s13 = sshll.u32 %s13086_s23, 4  ;;  %s95_s11 = sshll.u32 %s13087_s2, 4  ;;  %s72_s13 = int_to_ptr.vmem [resolvable:$true] %s71_s13  ;;  %s96_s11 = int_to_ptr.vmem [resolvable:$true] %s95_s11 }
  0x9b   :  { %s15441_s9 = sld [smem:[#allocation53_spill]] }
  0xa1   :  { %s12903_s24 = scalar_lea.hbm %s15441_s9, 96 }
  0xa2   :  { %p12904_p0 = scmp.ne.s32.totalorder %s15441_s9, %s12903_s24  ;;  %p12907_p1 = scmp.lt.u32.totalorder %s12903_s24, %s15441_s9 }
  0xa4   :  { %p12909_p2 = pnand %p12907_p1, %p12904_p0 }
  0xa6   :  { %12912 = shalt.err (!%p12909_p2)
}
  0xa7   :  { %s12913_s3 = scalar_lea.vmem %s72_s13, 96  ;;  %p12918_p4 = scmp.lt.s32.totalorder %s72_s13, %s72_s13 }
  0xa8   :  { %p12914_p3 = scmp.ne.s32.totalorder %s72_s13, %s12913_s3  ;;  %p12919_p5 = scmp.lt.s32.totalorder %s12913_s3, %s12913_s3 }
  0xaa   :  { %p12920_p6 = por %p12919_p5, %p12918_p4 }
  0xac   :  { %p12921_p7 = pnand %p12920_p6, %p12914_p3 }
  0xae   :  { %12924 = shalt.err (!%p12921_p7)
}
  0xaf   :  { %74 = dma.hbm_to_vmem [thread:$0]  %s15441_s9, 96, %s72_s13, [#allocation8]  }
  0xb0   :  { %s12925_s23 = scalar_lea.hbm %s15369_s8, 16 }
  0xb1   :  { %p12926_p8 = scmp.ne.s32.totalorder %s15369_s8, %s12925_s23  ;;  %p12929_p9 = scmp.lt.u32.totalorder %s12925_s23, %s15369_s8 }
  0xb3   :  { %p12931_p10 = pnand %p12929_p9, %p12926_p8 }
  0xb5   :  { %12934 = shalt.err (!%p12931_p10)
}
  0xb6   :  { %s12935_s28 = scalar_lea.vmem %s96_s11, 16  ;;  %s12939_s29 = scalar_lea.vmem %s96_s11, 32 }
  0xb7   :  { %p12936_p11 = scmp.ne.s32.totalorder %s96_s11, %s12935_s28  ;;  %p12940_p12 = scmp.lt.s32.totalorder %s96_s11, %s96_s11 }
  0xb8   :  { %p12941_p13 = scmp.lt.s32.totalorder %s12939_s29, %s12935_s28 }
  0xba   :  { %p12942_p0 = por %p12941_p13, %p12940_p12 }
  0xbc   :  { %p12943_p1 = pnand %p12942_p0, %p12936_p11 }
  0xbe   :  { %12946 = shalt.err (!%p12943_p1)
}
  0xbf   :  { %98 = dma.hbm_to_vmem [thread:$0]  %s15369_s8, 16, %s96_s11, [#allocation11]  }
  0xc0   :  { %s13088_s22 = smov [#allocation15]   ;;  %s13089_s3 = smov [#allocation18]  }
  0xc1   :  { %s115_s0 = sshll.u32 %s13088_s22, 4  ;;  %s134_s27 = sshll.u32 %s13089_s3, 4  ;;  %s116_s0 = int_to_ptr.vmem [resolvable:$true] %s115_s0  ;;  %s135_s27 = int_to_ptr.vmem [resolvable:$true] %s134_s27 }
  0xc2   :  { %s12947_s7 = scalar_lea.hbm %s15371_s10, 16 }
  0xc3   :  { %p12948_p2 = scmp.ne.s32.totalorder %s15371_s10, %s12947_s7  ;;  %p12951_p3 = scmp.lt.u32.totalorder %s12947_s7, %s15371_s10 }
  0xc5   :  { %p12953_p4 = pnand %p12951_p3, %p12948_p2 }
  0xc7   :  { %12956 = shalt.err (!%p12953_p4)
}
  0xc8   :  { %s12957_s8 = scalar_lea.vmem %s116_s0, 16  ;;  %s12961_s11 = scalar_lea.vmem %s116_s0, 32 }
  0xc9   :  { %p12958_p5 = scmp.ne.s32.totalorder %s116_s0, %s12957_s8  ;;  %p12962_p6 = scmp.lt.s32.totalorder %s116_s0, %s116_s0 }
  0xca   :  { %p12963_p7 = scmp.lt.s32.totalorder %s12961_s11, %s12957_s8 }
  0xcc   :  { %p12964_p8 = por %p12963_p7, %p12962_p6 }
  0xce   :  { %p12965_p9 = pnand %p12964_p8, %p12958_p5 }
  0xd0   :  { %12968 = shalt.err (!%p12965_p9)
}
  0xd1   :  { %118 = dma.hbm_to_vmem [thread:$0]  %s15371_s10, 16, %s116_s0, [#allocation14]  }
  0xd2   :  { %s12969_s9 = scalar_lea.hbm %s15373_s12, 1024 }
  0xd3   :  { %p12970_p10 = scmp.ne.s32.totalorder %s15373_s12, %s12969_s9  ;;  %p12973_p11 = scmp.lt.u32.totalorder %s12969_s9, %s15373_s12 }
  0xd5   :  { %p12975_p12 = pnand %p12973_p11, %p12970_p10 }
  0xd7   :  { %12978 = shalt.err (!%p12975_p12)
}
  0xd8   :  { %s12979_s7 = scalar_lea.vmem %s135_s27, 1024  ;;  %p12984_p0 = scmp.lt.s32.totalorder %s135_s27, %s135_s27 }
  0xd9   :  { %p12980_p13 = scmp.ne.s32.totalorder %s135_s27, %s12979_s7  ;;  %p12985_p1 = scmp.lt.s32.totalorder %s12979_s7, %s12979_s7 }
  0xdb   :  { %p12986_p2 = por %p12985_p1, %p12984_p0 }
  0xdd   :  { %p12987_p3 = pnand %p12986_p2, %p12980_p13 }
  0xdf   :  { %12990 = shalt.err (!%p12987_p3)
}
  0xe0   :  { %140 = dma.hbm_to_vmem [thread:$0]  %s15373_s12, 1024, %s135_s27, [#allocation17], %s13084_s26, %s13084_s26, %s13085_s1  }
  0xe1   :  { %s13090_s23 = smov [#allocation21]   ;;  %s13091_s4 = smov [#allocation24]  }
  0xe2   :  { %s164_s2 = sshll.u32 %s13090_s23, 4  ;;  %s191_s6 = sshll.u32 %s13091_s4, 4  ;;  %s165_s2 = int_to_ptr.vmem [resolvable:$true] %s164_s2  ;;  %s192_s6 = int_to_ptr.vmem [resolvable:$true] %s191_s6 }
  0xe3   :  { %s12991_s24 = scalar_lea.hbm %s15379_s18, 6144 }
  0xe4   :  { %p12992_p4 = scmp.ne.s32.totalorder %s15379_s18, %s12991_s24  ;;  %p12995_p5 = scmp.lt.u32.totalorder %s12991_s24, %s15379_s18 }
  0xe6   :  { %p12997_p6 = pnand %p12995_p5, %p12992_p4 }
  0xe8   :  { %13000 = shalt.err (!%p12997_p6)
}
  0xe9   :  { %s13001_s12 = scalar_lea.vmem %s165_s2, 6144  ;;  %p13006_p8 = scmp.lt.s32.totalorder %s165_s2, %s165_s2 }
  0xea   :  { %p13002_p7 = scmp.ne.s32.totalorder %s165_s2, %s13001_s12  ;;  %p13007_p9 = scmp.lt.s32.totalorder %s13001_s12, %s13001_s12 }
  0xec   :  { %p13008_p10 = por %p13007_p9, %p13006_p8 }
  0xee   :  { %p13009_p11 = pnand %p13008_p10, %p13002_p7 }
  0xf0   :  { %13012 = shalt.err (!%p13009_p11)
}
  0xf1   :  { %170 = dma.hbm_to_vmem [thread:$0]  %s15379_s18, 6144, %s165_s2, [#allocation20], %s13077_s30, %s13077_s30, %s13078_s5  }
  0xf2   :  { %s13013_s3 = scalar_lea.hbm %s15382_s21, 16 }
  0xf3   :  { %p13014_p12 = scmp.ne.s32.totalorder %s15382_s21, %s13013_s3  ;;  %p13017_p13 = scmp.lt.u32.totalorder %s13013_s3, %s15382_s21 }
  0xf5   :  { %p13019_p0 = pnand %p13017_p13, %p13014_p12 }
  0xf7   :  { %13022 = shalt.err (!%p13019_p0)
}
  0xf8   :  { %s13023_s0 = scalar_lea.vmem %s192_s6, 16  ;;  %s13027_s23 = scalar_lea.vmem %s192_s6, 32 }
  0xf9   :  { %p13024_p1 = scmp.ne.s32.totalorder %s192_s6, %s13023_s0  ;;  %p13028_p2 = scmp.lt.s32.totalorder %s192_s6, %s192_s6 }
  0xfa   :  { %p13029_p3 = scmp.lt.s32.totalorder %s13027_s23, %s13023_s0 }
  0xfc   :  { %p13030_p4 = por %p13029_p3, %p13028_p2 }
  0xfe   :  { %p13031_p5 = pnand %p13030_p4, %p13024_p1 }
 0x100   :  { %13034 = shalt.err (!%p13031_p5)
}
 0x101   :  { %194 = dma.hbm_to_vmem [thread:$0]  %s15382_s21, 16, %s192_s6, [#allocation23]  }
 0x102   :  { %13057 = dma.done.wait [#allocation5], 16  }
 0x103   :  { %13058 = vsyncadd [#allocation5], 4294967280 }
 0x104   :  { %13059 = dma.done.wait [#allocation8], 3168  }
 0x105   :  { %13060 = vsyncadd [#allocation8], 4294964128 }
 0x106   :  { %13061 = dma.done.wait [#allocation11], 6160  }
 0x107   :  { %13062 = vsyncadd [#allocation11], 4294961136 }
 0x108   :  { %13063 = dma.done.wait [#allocation14], 32  }
 0x109   :  { %13064 = vsyncadd [#allocation14], 4294967264 }
 0x10a   :  { %13065 = dma.done.wait [#allocation17], 1040  }
 0x10b   :  { %13066 = vsyncadd [#allocation17], 4294966256 }
 0x10c   :  { %13067 = dma.done.wait [#allocation20], 6160  }
 0x10d   :  { %13068 = vsyncadd [#allocation20], 4294961136 }
 0x10e   :  { %13069 = dma.done.wait [#allocation23], 2064  }
 0x10f   :  { %13070 = vsyncadd [#allocation23], 4294965232  ;;  %v15402_v0 = vmov 0.0|0.0   ;;  %vm13093_vm0 = vmmov 0   ;;  %v15394_v1 = vmov 0.0   ;;  %s15442_s2 = sld [smem:[#allocation50_spill]]  ;;  %v345_v53 = vlaneseq }
 0x110   :  { %10759 = vmatprep.subr.bf16.mxu0 %v15402_v0  ;;  %9600 = vmatprep.mubr.msk.f32.mxu0 %vm13093_vm0, %v15394_v1  ;;  %s15443_s24 = sld [smem:[#allocation48_spill]]  ;;  %vm269_vm1 = vcmask 130048   ;;  %v238_v7 = vld [vmem:[#allocation7 + $0x8] sm:$0xff]  ;;  %v244_v8 = vld [vmem:[#allocation7 + $0x38] sm:$0xff]  ;;  %v237_v10 = vld [vmem:[#allocation7] sm:$0xff]  ;;  %vm375_vm2 = vcmask 261120  }
 0x111   :  { %443 = vmatprep.mubr.f32.mxu1 %v15394_v1  ;;  %v13413_v9 = vpack.c.bf16 %v244_v8, %v238_v7  ;;  %v243_v11 = vld [vmem:[#allocation7 + $0x30] sm:$0xff]  ;;  %v250_v12 = vld [vmem:[#allocation7 + $0x68] sm:$0xff]  ;;  %v256_v14 = vld [vmem:[#allocation7 + $0x98] sm:$0xff]  ;;  %v13495_v54 = vshrl.u32 %v345_v53, 7  ;;  %s15446_s12 = sld [smem:[#allocation54_spill]]  ;;  %vm7243_vm3 = vcmask 517120  }
 0x112   :  { %v13415_v13 = vpack.c.bf16 %v243_v11, %v237_v10  ;;  %v249_v15 = vld [vmem:[#allocation7 + $0x60] sm:$0xff]  ;;  %v255_v16 = vld [vmem:[#allocation7 + $0x90] sm:$0xff]  ;;  %v13418_v17 = vpack.c.bf16 %v256_v14, %v250_v12  ;;  %v240_v18 = vld [vmem:[#allocation7 + $0x18] sm:$0xff]  ;;  %vm7289_vm4 = vcmask 523264   ;;  %s15523_s23 = sld [smem:[#allocation57_spill]]  ;;  %s13097_s18 = smov [#allocation25]  }
 0x113   :  { %10763 = vmatprep.subr.bf16.mxu1 %v13413_v9  ;;  %v246_v19 = vld [vmem:[#allocation7 + $0x48] sm:$0xff]  ;;  %v13422_v20 = vpack.c.bf16 %v255_v16, %v249_v15  ;;  %v248_v23 = vld [vmem:[#allocation7 + $0x58] sm:$0xff]  ;;  %v239_v32 = vld [vmem:[#allocation7 + $0x10] sm:$0xff]  ;;  %v347_v55 = vsub.s32 0, %v13495_v54  ;;  %v351_v57 = vsub.s32 1, %v13495_v54  ;;  %v355_v63 = vsub.s32 2, %v13495_v54 }
 0x114   :  { %10765 = vmatpush1.bf16.msra.mxu1 %v13415_v13  ;;  %v13426_v21 = vpack.c.bf16 %v246_v19, %v240_v18  ;;  %v242_v22 = vld [vmem:[#allocation7 + $0x28] sm:$0xff]  ;;  %v13435_v25 = vld [vmem:[#allocation4] ss:$0 sm:$0xff]  ;;  %v245_v33 = vld [vmem:[#allocation7 + $0x40] sm:$0xff]  ;;  %v363_v19 = vsub.s32 4, %v13495_v54  ;;  %s8893_s30 = sshll.u32 %s13097_s18, 4  ;;  %s8894_s30 = int_to_ptr.vmem [resolvable:$true] %s8893_s30 }
 0x115   :  { %v234_v2 = vld [vmem:[%s15442_s2] sm:$0xff]  ;;  %v235_v3 = vld [vmem:[%s15442_s2 + $0x8] sm:$0xff]  ;;  %10767 = vmatprep.subr.bf16.mxu1 %v13418_v17  ;;  %v13432_v24 = vpack.c.bf16 %v248_v23, %v242_v22  ;;  %v13439_v36 = vpack.c.bf16 %v245_v33, %v239_v32  ;;  %v251_v38 = vld [vmem:[#allocation7 + $0x70] sm:$0xff]  ;;  %s15445_s2 = sld [smem:[#allocation49_spill]]  ;;  %p13040_p7 = scmp.lt.s32.totalorder %s8894_s30, %s8894_s30 }
 0x116   :  { %v13397_v4 = vpack.c.bf16 %v235_v3, %v234_v2  ;;  %v262_v5 = vld [vmem:[%s15443_s24] sm:$0x3]  ;;  %v8921_v6 = vld [vmem:[%s15443_s24 + $0x2] sm:$0x3]  ;;  %v258_v35 = vld [vmem:[#allocation7 + $0xa8] sm:$0xff] }
 0x117   :  { %v252_v34 = vld [vmem:[#allocation7 + $0x78] sm:$0xff]  ;;  %v257_v39 = vld [vmem:[#allocation7 + $0xa0] sm:$0xff]  ;;  %v247_v42 = vld [vmem:[#allocation7 + $0x50] sm:$0xff]  ;;  %v13095_v3 = vmov 1983009808  }
 0x118   :  { %10761 = vmatpush3.bf16.msra.mxu0 %v13397_v4  ;;  %10769 = vmatpush1.bf16.msra.mxu1 %v13422_v20  ;;  %v13441_v37 = vpack.c.bf16 %v258_v35, %v252_v34  ;;  %v241_v41 = vld [vmem:[#allocation7 + $0x20] sm:$0xff]  ;;  %v13445_v43 = vpack.c.bf16 %v257_v39, %v251_v38  ;;  %v254_v44 = vld [vmem:[#allocation7 + $0x88] sm:$0xff]  ;;  %v260_v45 = vld [vmem:[#allocation7 + $0xb8] sm:$0xff] }
 0x119   :  { %10786 = vmatprep.subr.bf16.mxu0 %v15402_v0  ;;  %10771 = vmatprep.subr.bf16.mxu1 %v13426_v21  ;;  %v13449_v47 = vpack.c.bf16 %v247_v42, %v241_v41  ;;  %v13451_v48 = vpack.c.bf16 %v260_v45, %v254_v44  ;;  %v253_v49 = vld [vmem:[#allocation7 + $0x80] sm:$0xff]  ;;  %v259_v50 = vld [vmem:[#allocation7 + $0xb0] sm:$0xff]  ;;  %v8927_v52 = vld [vmem:[%s15443_s24 + $0x4] sm:$0x3] }
 0x11a   :  { %v13460_v51 = vpack.c.bf16 %v259_v50, %v253_v49  ;;  %v261_v56 = vld [vmem:[#allocation9] sm:$0x3f] }
 0x11b   :  { %9601 = vmatmul.mubr.msk.f32.vlgmr.msra.gmra.mrb[0].mxu0 %vm269_vm1, %v262_v5  ;;  %v13501_v58 = vrot.slane %v261_v56, %v347_v55  ;;  %v13505_v59 = vrot.slane %v261_v56, %v351_v57  ;;  %v601_v5 = vunpack.c.l.s4 %v13095_v3  ;;  %v13513_v10 = vrot.slane %v261_v56, %v355_v63 }
 0x11c   :  { %10788 = vmatpush3.bf16.msra.mxu0 %v13397_v4  ;;  %9607 = vmatprep.mubr.msk.f32.mxu0 %vm13093_vm0, %v15394_v1 }
 0x11d   :  { %10790 = vmatprep.subr.bf16.mxu0 %v13413_v9  ;;  %v602_v14 = vunpack.c.0.s8 %v601_v5 }
 0x11f   :  { %9608 = vmatmul.mubr.msk.f32.vlgmr.msra.gmra.mrb[2].mxu0 %vm269_vm1, %v8921_v6  ;;  %v359_v6 = vsub.s32 3, %v13495_v54 }
 0x120   :  { %770 = vmatprep.mubr.f32.mxu0 %v15394_v1  ;;  %10792 = vmatpush1.bf16.msra.mxu0 %v13415_v13 }
 0x121   :  { %10794 = vmatprep.subr.bf16.mxu0 %v13418_v17  ;;  %v13516_v15 = vrot.slane %v261_v56, %v359_v6 }
 0x124   :  { %10796 = vmatpush1.bf16.msra.mxu0 %v13422_v20 }
 0x125   :  { %10806 = vmatprep.subr.bf16.mxu0 %v13432_v24 }
 0x1ee   :  { %v339_v26 = vpop.f32.mrb[0].mxu0 }
 0x1ef   :  { %v340_v27 = vadd.f32 %v13435_v25, %v339_v26  ;;  %v9602_v28 = vpop.f32.mrb[1].mxu0 }
 0x1f0   :  { %v13523_v28 = vsub.s32 %v602_v14, %v13495_v54 }
 0x1f1   :  { %12491 = vtanh.f32 %v340_v27  ;;  %v367_v27 = vsub.s32 5, %v13495_v54 }
 0x1f2   :  { %v698_v29 = vpop.f32.mrb[2].mxu0  ;;  %15444 = vst [vmem:[#allocation34_spill] sm:$0xff] %v13523_v28 }
 0x1f3   :  { %v699_v30 = vadd.f32 %v13435_v25, %v698_v29  ;;  %v9609_v31 = vpop.f32.mrb[3].mxu0  ;;  %v13528_v32 = vrot.slane %v261_v56, %v367_v27 }
 0x1f4   :  { %v13526_v31 = vrot.slane %v261_v56, %v363_v19 }
 0x1f5   :  { %12493 = vtanh.f32 %v699_v30 }
 0x1fb   :  { %v12492_v40 = vpop.eup %12491 }
 0x1fc   :  { %8917 = vmatmul.mubr.msk.f32.vlgmr.msra.gmra.mrb[0].mxu1 %vm375_vm2, %v12492_v40 }
 0x1fd   :  { %10773 = vmatpush1.bf16.msra.mxu1 %v13439_v36  ;;  %514 = vmatprep.mubr.f32.mxu1 %v15394_v1 }
 0x1fe   :  { %10775 = vmatprep.subr.bf16.mxu1 %v13441_v37 }
 0x1ff   :  { %v12494_v46 = vpop.eup %12493 }
 0x200   :  { %8923 = vmatmul.mubr.msk.f32.vlgmr.msra.gmra.mrb[4].mxu0 %vm375_vm2, %v12494_v46 }
 0x201   :  { %10777 = vmatpush1.bf16.msra.mxu1 %v13445_v43  ;;  %10808 = vmatpush1.bf16.msra.mxu0 %v13449_v47 }
 0x202   :  { %10779 = vmatprep.subr.bf16.mxu1 %v13432_v24  ;;  %10810 = vmatprep.subr.bf16.mxu0 %v13451_v48 }
 0x203   :  { %912 = vmatprep.mubr.f32.mxu0 %v15394_v1 }
 0x204   :  { %8918 = vmatmul.mubr.msk.f32.vlgmr.msra.gmra.mrb[2].mxu1 %vm375_vm2, %v12492_v40 }
 0x205   :  { %10781 = vmatpush1.bf16.msra.mxu1 %v13449_v47  ;;  %585 = vmatprep.mubr.f32.mxu1 %v15394_v1 }
 0x206   :  { %10783 = vmatprep.subr.bf16.mxu1 %v13451_v48  ;;  %10812 = vmatpush1.bf16.msra.mxu0 %v13460_v51 }
 0x207   :  { %10825 = vmatprep.subr.bf16.mxu0 %v13426_v21 }
 0x209   :  { %10785 = vmatpush1.bf16.msra.mxu1 %v13460_v51  ;;  %8925 = vmatmul.mubr.msk.f32.vlgmr.msra.gmra.mrb[6].mxu0 %vm375_vm2, %v12494_v46 }
 0x20a   :  { %10798 = vmatprep.subr.bf16.mxu1 %v13426_v21  ;;  %10827 = vmatpush1.bf16.msra.mxu0 %v13439_v36 }
 0x20b   :  { %10829 = vmatprep.subr.bf16.mxu0 %v13441_v37  ;;  %1169 = vmatprep.mubr.f32.mxu0 %v15394_v1 }
 0x20c   :  { %8919 = vmatmul.mubr.msk.f32.vlgmr.msra.gmra.mrb[4].mxu1 %vm375_vm2, %v12492_v40 }
 0x20d   :  { %10800 = vmatpush1.bf16.msra.mxu1 %v13439_v36  ;;  %841 = vmatprep.mubr.f32.mxu1 %v15394_v1 }
 0x20e   :  { %10802 = vmatprep.subr.bf16.mxu1 %v13441_v37  ;;  %10831 = vmatpush1.bf16.msra.mxu0 %v13445_v43 }
 0x20f   :  { %10840 = vmatprep.subr.bf16.mxu0 %v15402_v0 }
 0x211   :  { %10804 = vmatpush1.bf16.msra.mxu1 %v13445_v43 }
 0x212   :  { %10813 = vmatprep.subr.bf16.mxu1 %v15402_v0 }
 0x214   :  { %8924 = vmatmul.mubr.msk.f32.vlgmr.msra.gmra.mrb[6].mxu1 %vm375_vm2, %v12494_v46 }
 0x215   :  { %10815 = vmatpush3.bf16.msra.mxu1 %v13397_v4  ;;  %9614 = vmatprep.mubr.msk.f32.mxu1 %vm13093_vm0, %v15394_v1 }
 0x216   :  { %10817 = vmatprep.subr.bf16.mxu1 %v13413_v9 }
 0x218   :  { %9615 = vmatmul.mubr.msk.f32.vlgmr.msra.gmra.mrb[8].mxu1 %vm269_vm1, %v8927_v52 }
 0x219   :  { %10819 = vmatpush1.bf16.msra.mxu1 %v13415_v13  ;;  %1098 = vmatprep.mubr.f32.mxu1 %v15394_v1 }
 0x21a   :  { %10821 = vmatprep.subr.bf16.mxu1 %v13418_v17 }
 0x21d   :  { %10823 = vmatpush1.bf16.msra.mxu1 %v13422_v20 }
 0x21e   :  { %10833 = vmatprep.subr.bf16.mxu1 %v13432_v24 }
 0x2cf   :  { %v445_v60 = vpop.f32.mrb[0].mxu1 }
 0x2d0   :  { %v446_v61 = vadd.f32 %v445_v60, %v13501_v58  ;;  %v447_v62 = vpop.f32.mrb[1].mxu1 }
 0x2d1   :  { %v448_v2 = vadd.f32 %v447_v62, %v13505_v59 }
 0x2d3   :  { %v598_v7 = vcombine.low %v446_v61, %v448_v2  ;;  %v772_v8 = vpop.f32.mrb[4].mxu0 }
 0x2d4   :  { %v773_v11 = vadd.f32 %v772_v8, %v13501_v58  ;;  %v774_v12 = vpop.f32.mrb[5].mxu0 }
 0x2d5   :  { %v775_v16 = vadd.f32 %v774_v12, %v13505_v59  ;;  %v606_v34 = vrot.slane %v598_v7, %v13523_v28 }
 0x2d7   :  { %v516_v18 = vpop.f32.mrb[2].mxu1  ;;  %v925_v22 = vcombine.low %v773_v11, %v775_v16  ;;  %v8933_v11 = vld [vmem:[%s15443_s24 + $0x6] sm:$0x3] }
 0x2d8   :  { %v517_v23 = vadd.f32 %v516_v18, %v13513_v10  ;;  %v518_v26 = vpop.f32.mrb[3].mxu1 }
 0x2d9   :  { %v519_v29 = vadd.f32 %v518_v26, %v13516_v15  ;;  %v933_v61 = vrot.slane %v925_v22, %v13523_v28 }
 0x2db   :  { %v599_v30 = vcombine.low %v517_v23, %v519_v29 }
 0x2dc   :  { %v914_v33 = vpop.f32.mrb[6].mxu0 }
 0x2dd   :  { %v613_v35 = vrot.slane %v599_v30, %v13523_v28  ;;  %v915_v38 = vadd.f32 %v914_v33, %v13526_v31  ;;  %v916_v39 = vpop.f32.mrb[7].mxu0 }
 0x2de   :  { %v917_v40 = vadd.f32 %v916_v39, %v13528_v32 }
 0x2df   :  { %v614_v41 = vcombine.low %v606_v34, %v613_v35  ;;  %v587_v42 = vpop.f32.mrb[4].mxu1 }
 0x2e0   :  { %v588_v44 = vadd.f32 %v587_v42, %v13526_v31  ;;  %v589_v45 = vpop.f32.mrb[5].mxu1  ;;  %v942_v46 = vcombine.low %v915_v38, %v917_v40 }
 0x2e1   :  { %625 = vst [vmem:[#allocation2] sm:$0xff] %v614_v41  ;;  %v590_v49 = vadd.f32 %v589_v45, %v13528_v32 }
 0x2e2   :  { %8926 = vst.sshfl [vmem:[#allocation2 + $0x14] sm:$0x33 pattern:$0x76325410] %v942_v46 }
 0x2e3   :  { %v615_v50 = vcombine.low %v588_v44, %v590_v49  ;;  %v8939_v49 = vld [vmem:[%s15443_s24 + $0x8] sm:$0x3] }
 0x2e5   :  { %8920 = vst.sshfl [vmem:[#allocation2 + $0x8] sm:$0x33 pattern:$0x76325410] %v615_v50 }
 0x2e7   :  { %v843_v52 = vpop.f32.mrb[6].mxu1 }
 0x2e8   :  { %v844_v53 = vadd.f32 %v843_v52, %v13513_v10  ;;  %v845_v56 = vpop.f32.mrb[7].mxu1 }
 0x2e9   :  { %v846_v60 = vadd.f32 %v845_v56, %v13516_v15 }
 0x2eb   :  { %v926_v62 = vcombine.low %v844_v53, %v846_v60  ;;  %v1026_v2 = vpop.f32.mrb[8].mxu1 }
 0x2ec   :  { %v1027_v3 = vadd.f32 %v13435_v25, %v1026_v2  ;;  %v9616_v5 = vpop.f32.mrb[9].mxu1 }
 0x2ed   :  { %v940_v6 = vrot.slane %v926_v62, %v13523_v28 }
 0x2ee   :  { %12495 = vtanh.f32 %v1027_v3 }
 0x2ef   :  { %v941_v7 = vcombine.low %v933_v61, %v940_v6 }
 0x2f1   :  { %953 = vst [vmem:[#allocation2 + $0xc] sm:$0xff] %v941_v7 }
 0x2f8   :  { %v12496_v8 = vpop.eup %12495 }
 0x2f9   :  { %8929 = vmatmul.mubr.msk.f32.vlgmr.msra.gmra.mrb[10].mxu1 %vm375_vm2, %v12496_v8  ;;  %8930 = vmatmul.mubr.msk.f32.vlgmr.msra.gmra.mrb[8].mxu0 %vm375_vm2, %v12496_v8 }
 0x2fa   :  { %10835 = vmatpush1.bf16.msra.mxu1 %v13449_v47  ;;  %10842 = vmatpush3.bf16.msra.mxu0 %v13397_v4 }
 0x2fb   :  { %10837 = vmatprep.subr.bf16.mxu1 %v13451_v48  ;;  %9621 = vmatprep.mubr.msk.f32.mxu0 %vm13093_vm0, %v15394_v1 }
 0x2fc   :  { %1240 = vmatprep.mubr.f32.mxu1 %v15394_v1  ;;  %10844 = vmatprep.subr.bf16.mxu0 %v13413_v9 }
 0x2fd   :  { %9622 = vmatmul.mubr.msk.f32.vlgmr.msra.gmra.mrb[10].mxu0 %vm269_vm1, %v8933_v11 }
 0x2fe   :  { %10839 = vmatpush1.bf16.msra.mxu1 %v13460_v51  ;;  %10846 = vmatpush1.bf16.msra.mxu0 %v13415_v13 }
 0x2ff   :  { %10852 = vmatprep.subr.bf16.mxu1 %v13426_v21  ;;  %10848 = vmatprep.subr.bf16.mxu0 %v13418_v17 }
 0x300   :  { %1426 = vmatprep.mubr.f32.mxu0 %v15394_v1 }
 0x301   :  { %8931 = vmatmul.mubr.msk.f32.vlgmr.msra.gmra.mrb[12].mxu1 %vm375_vm2, %v12496_v8 }
 0x302   :  { %10854 = vmatpush1.bf16.msra.mxu1 %v13439_v36  ;;  %10850 = vmatpush1.bf16.msra.mxu0 %v13422_v20 }
 0x303   :  { %10856 = vmatprep.subr.bf16.mxu1 %v13441_v37  ;;  %1497 = vmatprep.mubr.f32.mxu1 %v15394_v1 }
 0x304   :  { %10860 = vmatprep.subr.bf16.mxu0 %v13432_v24 }
 0x306   :  { %10858 = vmatpush1.bf16.msra.mxu1 %v13445_v43 }
 0x307   :  { %10867 = vmatprep.subr.bf16.mxu1 %v15402_v0 }
 0x3cc   :  { %v1100_v12 = vpop.f32.mrb[10].mxu1  ;;  %v1171_v14 = vpop.f32.mrb[8].mxu0 }
 0x3cd   :  { %v1101_v16 = vadd.f32 %v1100_v12, %v13501_v58  ;;  %v1172_v18 = vadd.f32 %v1171_v14, %v13513_v10  ;;  %v1102_v19 = vpop.f32.mrb[11].mxu1  ;;  %v1173_v22 = vpop.f32.mrb[9].mxu0 }
 0x3ce   :  { %v1103_v23 = vadd.f32 %v1102_v19, %v13505_v59  ;;  %v1174_v26 = vadd.f32 %v1173_v22, %v13516_v15 }
 0x3d0   :  { %v1253_v27 = vcombine.low %v1101_v16, %v1103_v23  ;;  %v1254_v29 = vcombine.low %v1172_v18, %v1174_v26  ;;  %v1354_v30 = vpop.f32.mrb[10].mxu0 }
 0x3d1   :  { %v1355_v33 = vadd.f32 %v13435_v25, %v1354_v30  ;;  %v9623_v34 = vpop.f32.mrb[11].mxu0 }
 0x3d2   :  { %v1261_v35 = vrot.slane %v1253_v27, %v13523_v28  ;;  %v1268_v38 = vrot.slane %v1254_v29, %v13523_v28  ;;  %v8945_v27 = vld [vmem:[%s15443_s24 + $0xa] sm:$0x3] }
 0x3d3   :  { %12497 = vtanh.f32 %v1355_v33 }
 0x3d4   :  { %v1269_v39 = vcombine.low %v1261_v35, %v1268_v38  ;;  %v1242_v40 = vpop.f32.mrb[12].mxu1 }
 0x3d5   :  { %v1243_v41 = vadd.f32 %v1242_v40, %v13526_v31  ;;  %v1244_v42 = vpop.f32.mrb[13].mxu1 }
 0x3d6   :  { %1281 = vst [vmem:[#allocation2 + $0x18] sm:$0xff] %v1269_v39  ;;  %v1245_v44 = vadd.f32 %v1244_v42, %v13528_v32 }
 0x3d8   :  { %v1270_v45 = vcombine.low %v1243_v41, %v1245_v44 }
 0x3da   :  { %8932 = vst.sshfl [vmem:[#allocation2 + $0x20] sm:$0x33 pattern:$0x76325410] %v1270_v45 }
 0x3dd   :  { %v12498_v46 = vpop.eup %12497 }
 0x3de   :  { %8935 = vmatmul.mubr.msk.f32.vlgmr.msra.gmra.mrb[12].mxu0 %vm375_vm2, %v12498_v46  ;;  %8936 = vmatmul.mubr.msk.f32.vlgmr.msra.gmra.mrb[14].mxu1 %vm375_vm2, %v12498_v46 }
 0x3df   :  { %10862 = vmatpush1.bf16.msra.mxu0 %v13449_v47  ;;  %10869 = vmatpush3.bf16.msra.mxu1 %v13397_v4 }
 0x3e0   :  { %10864 = vmatprep.subr.bf16.mxu0 %v13451_v48  ;;  %9628 = vmatprep.mubr.msk.f32.mxu1 %vm13093_vm0, %v15394_v1 }
 0x3e1   :  { %1568 = vmatprep.mubr.f32.mxu0 %v15394_v1  ;;  %10871 = vmatprep.subr.bf16.mxu1 %v13413_v9 }
 0x3e2   :  { %9629 = vmatmul.mubr.msk.f32.vlgmr.msra.gmra.mrb[16].mxu1 %vm269_vm1, %v8939_v49 }
 0x3e3   :  { %10866 = vmatpush1.bf16.msra.mxu0 %v13460_v51  ;;  %10873 = vmatpush1.bf16.msra.mxu1 %v13415_v13 }
 0x3e4   :  { %10879 = vmatprep.subr.bf16.mxu0 %v13426_v21  ;;  %10875 = vmatprep.subr.bf16.mxu1 %v13418_v17 }
 0x3e5   :  { %1754 = vmatprep.mubr.f32.mxu1 %v15394_v1 }
 0x3e6   :  { %8937 = vmatmul.mubr.msk.f32.vlgmr.msra.gmra.mrb[14].mxu0 %vm375_vm2, %v12498_v46 }
 0x3e7   :  { %10881 = vmatpush1.bf16.msra.mxu0 %v13439_v36  ;;  %10877 = vmatpush1.bf16.msra.mxu1 %v13422_v20 }
 0x3e8   :  { %10883 = vmatprep.subr.bf16.mxu0 %v13441_v37  ;;  %1825 = vmatprep.mubr.f32.mxu0 %v15394_v1 }
 0x3e9   :  { %10887 = vmatprep.subr.bf16.mxu1 %v13432_v24 }
 0x3eb   :  { %10885 = vmatpush1.bf16.msra.mxu0 %v13445_v43 }
 0x3ec   :  { %10894 = vmatprep.subr.bf16.mxu0 %v15402_v0 }
 0x4b1   :  { %v1428_v50 = vpop.f32.mrb[12].mxu0  ;;  %v1499_v52 = vpop.f32.mrb[14].mxu1 }
 0x4b2   :  { %v1429_v53 = vadd.f32 %v1428_v50, %v13501_v58  ;;  %v1500_v56 = vadd.f32 %v1499_v52, %v13513_v10  ;;  %v1430_v60 = vpop.f32.mrb[13].mxu0  ;;  %v1501_v61 = vpop.f32.mrb[15].mxu1 }
 0x4b3   :  { %v1431_v62 = vadd.f32 %v1430_v60, %v13505_v59  ;;  %v1502_v2 = vadd.f32 %v1501_v61, %v13516_v15 }
 0x4b5   :  { %v1581_v3 = vcombine.low %v1429_v53, %v1431_v62  ;;  %v1582_v5 = vcombine.low %v1500_v56, %v1502_v2  ;;  %v1682_v6 = vpop.f32.mrb[16].mxu1 }
 0x4b6   :  { %v1683_v7 = vadd.f32 %v13435_v25, %v1682_v6  ;;  %v9630_v8 = vpop.f32.mrb[17].mxu1 }
 0x4b7   :  { %v1589_v11 = vrot.slane %v1581_v3, %v13523_v28  ;;  %v1596_v12 = vrot.slane %v1582_v5, %v13523_v28  ;;  %v8951_v3 = vld [vmem:[%s15443_s24 + $0xc] sm:$0x3] }
 0x4b8   :  { %12499 = vtanh.f32 %v1683_v7 }
 0x4b9   :  { %v1597_v14 = vcombine.low %v1589_v11, %v1596_v12  ;;  %v1570_v16 = vpop.f32.mrb[14].mxu0 }
 0x4ba   :  { %v1571_v18 = vadd.f32 %v1570_v16, %v13526_v31  ;;  %v1572_v19 = vpop.f32.mrb[15].mxu0 }
 0x4bb   :  { %1609 = vst [vmem:[#allocation2 + $0x24] sm:$0xff] %v1597_v14  ;;  %v1573_v22 = vadd.f32 %v1572_v19, %v13528_v32 }
 0x4bd   :  { %v1598_v23 = vcombine.low %v1571_v18, %v1573_v22 }
 0x4bf   :  { %8938 = vst.sshfl [vmem:[#allocation2 + $0x2c] sm:$0x33 pattern:$0x76325410] %v1598_v23 }
 0x4c2   :  { %v12500_v26 = vpop.eup %12499 }
 0x4c3   :  { %8941 = vmatmul.mubr.msk.f32.vlgmr.msra.gmra.mrb[18].mxu1 %vm375_vm2, %v12500_v26  ;;  %8942 = vmatmul.mubr.msk.f32.vlgmr.msra.gmra.mrb[16].mxu0 %vm375_vm2, %v12500_v26 }
 0x4c4   :  { %10889 = vmatpush1.bf16.msra.mxu1 %v13449_v47  ;;  %10896 = vmatpush3.bf16.msra.mxu0 %v13397_v4 }
 0x4c5   :  { %10891 = vmatprep.subr.bf16.mxu1 %v13451_v48  ;;  %9635 = vmatprep.mubr.msk.f32.mxu0 %vm13093_vm0, %v15394_v1 }
 0x4c6   :  { %1896 = vmatprep.mubr.f32.mxu1 %v15394_v1  ;;  %10898 = vmatprep.subr.bf16.mxu0 %v13413_v9 }
 0x4c7   :  { %9636 = vmatmul.mubr.msk.f32.vlgmr.msra.gmra.mrb[18].mxu0 %vm269_vm1, %v8945_v27 }
 0x4c8   :  { %10893 = vmatpush1.bf16.msra.mxu1 %v13460_v51  ;;  %10900 = vmatpush1.bf16.msra.mxu0 %v13415_v13 }
 0x4c9   :  { %10906 = vmatprep.subr.bf16.mxu1 %v13426_v21  ;;  %10902 = vmatprep.subr.bf16.mxu0 %v13418_v17 }
 0x4ca   :  { %2082 = vmatprep.mubr.f32.mxu0 %v15394_v1 }
 0x4cb   :  { %8943 = vmatmul.mubr.msk.f32.vlgmr.msra.gmra.mrb[20].mxu1 %vm375_vm2, %v12500_v26 }
 0x4cc   :  { %10908 = vmatpush1.bf16.msra.mxu1 %v13439_v36  ;;  %10904 = vmatpush1.bf16.msra.mxu0 %v13422_v20 }
 0x4cd   :  { %10910 = vmatprep.subr.bf16.mxu1 %v13441_v37  ;;  %2153 = vmatprep.mubr.f32.mxu1 %v15394_v1 }
 0x4ce   :  { %10914 = vmatprep.subr.bf16.mxu0 %v13432_v24 }
 0x4d0   :  { %10912 = vmatpush1.bf16.msra.mxu1 %v13445_v43 }
 0x4d1   :  { %10921 = vmatprep.subr.bf16.mxu1 %v15402_v0 }
 0x596   :  { %v1756_v29 = vpop.f32.mrb[18].mxu1  ;;  %v1827_v30 = vpop.f32.mrb[16].mxu0 }
 0x597   :  { %v1757_v33 = vadd.f32 %v1756_v29, %v13501_v58  ;;  %v1828_v34 = vadd.f32 %v1827_v30, %v13513_v10  ;;  %v1758_v35 = vpop.f32.mrb[19].mxu1  ;;  %v1829_v38 = vpop.f32.mrb[17].mxu0 }
 0x598   :  { %v1759_v39 = vadd.f32 %v1758_v35, %v13505_v59  ;;  %v1830_v40 = vadd.f32 %v1829_v38, %v13516_v15 }
 0x59a   :  { %v1909_v41 = vcombine.low %v1757_v33, %v1759_v39  ;;  %v1910_v42 = vcombine.low %v1828_v34, %v1830_v40  ;;  %v2010_v44 = vpop.f32.mrb[18].mxu0 }
 0x59b   :  { %v2011_v45 = vadd.f32 %v13435_v25, %v2010_v44  ;;  %v9637_v46 = vpop.f32.mrb[19].mxu0 }
 0x59c   :  { %v1917_v49 = vrot.slane %v1909_v41, %v13523_v28  ;;  %v1924_v50 = vrot.slane %v1910_v42, %v13523_v28  ;;  %v8957_v41 = vld [vmem:[%s15443_s24 + $0xe] sm:$0x3] }
 0x59d   :  { %12501 = vtanh.f32 %v2011_v45 }
 0x59e   :  { %v1925_v52 = vcombine.low %v1917_v49, %v1924_v50  ;;  %v1898_v53 = vpop.f32.mrb[20].mxu1 }
 0x59f   :  { %v1899_v56 = vadd.f32 %v1898_v53, %v13526_v31  ;;  %v1900_v60 = vpop.f32.mrb[21].mxu1 }
 0x5a0   :  { %1937 = vst [vmem:[#allocation2 + $0x30] sm:$0xff] %v1925_v52  ;;  %v1901_v61 = vadd.f32 %v1900_v60, %v13528_v32 }
 0x5a2   :  { %v1926_v62 = vcombine.low %v1899_v56, %v1901_v61 }
 0x5a4   :  { %8944 = vst.sshfl [vmem:[#allocation2 + $0x38] sm:$0x33 pattern:$0x76325410] %v1926_v62  ;;  %v2923_v62 = vld [vmem:[%s15375_s14] sm:$0xff] }
 0x5a7   :  { %v12502_v2 = vpop.eup %12501 }
 0x5a8   :  { %8947 = vmatmul.mubr.msk.f32.vlgmr.msra.gmra.mrb[20].mxu0 %vm375_vm2, %v12502_v2  ;;  %8948 = vmatmul.mubr.msk.f32.vlgmr.msra.gmra.mrb[22].mxu1 %vm375_vm2, %v12502_v2 }
 0x5a9   :  { %10916 = vmatpush1.bf16.msra.mxu0 %v13449_v47  ;;  %10923 = vmatpush3.bf16.msra.mxu1 %v13397_v4 }
 0x5aa   :  { %10918 = vmatprep.subr.bf16.mxu0 %v13451_v48  ;;  %9642 = vmatprep.mubr.msk.f32.mxu1 %vm13093_vm0, %v15394_v1 }
 0x5ab   :  { %2224 = vmatprep.mubr.f32.mxu0 %v15394_v1  ;;  %10925 = vmatprep.subr.bf16.mxu1 %v13413_v9 }
 0x5ac   :  { %9643 = vmatmul.mubr.msk.f32.vlgmr.msra.gmra.mrb[24].mxu1 %vm269_vm1, %v8951_v3 }
 0x5ad   :  { %10920 = vmatpush1.bf16.msra.mxu0 %v13460_v51  ;;  %10927 = vmatpush1.bf16.msra.mxu1 %v13415_v13 }
 0x5ae   :  { %10933 = vmatprep.subr.bf16.mxu0 %v13426_v21  ;;  %10929 = vmatprep.subr.bf16.mxu1 %v13418_v17 }
 0x5af   :  { %2410 = vmatprep.mubr.f32.mxu1 %v15394_v1 }
 0x5b0   :  { %8949 = vmatmul.mubr.msk.f32.vlgmr.msra.gmra.mrb[22].mxu0 %vm375_vm2, %v12502_v2 }
 0x5b1   :  { %10935 = vmatpush1.bf16.msra.mxu0 %v13439_v36  ;;  %10931 = vmatpush1.bf16.msra.mxu1 %v13422_v20 }
 0x5b2   :  { %10937 = vmatprep.subr.bf16.mxu0 %v13441_v37  ;;  %2481 = vmatprep.mubr.f32.mxu0 %v15394_v1 }
 0x5b3   :  { %10941 = vmatprep.subr.bf16.mxu1 %v13432_v24 }
 0x5b5   :  { %10939 = vmatpush1.bf16.msra.mxu0 %v13445_v43 }
 0x5b6   :  { %10948 = vmatprep.subr.bf16.mxu0 %v15402_v0 }
 0x67b   :  { %v2084_v5 = vpop.f32.mrb[20].mxu0  ;;  %v2155_v6 = vpop.f32.mrb[22].mxu1 }
 0x67c   :  { %v2085_v7 = vadd.f32 %v2084_v5, %v13501_v58  ;;  %v2156_v8 = vadd.f32 %v2155_v6, %v13513_v10  ;;  %v2086_v11 = vpop.f32.mrb[21].mxu0  ;;  %v2157_v12 = vpop.f32.mrb[23].mxu1  ;;  %v2939_v5 = vld [vmem:[%s15445_s2] sm:$0x3] }
 0x67d   :  { %v2087_v14 = vadd.f32 %v2086_v11, %v13505_v59  ;;  %v2158_v16 = vadd.f32 %v2157_v12, %v13516_v15  ;;  %v2931_v12 = vld [vmem:[%s15377_s16 + $0x28] sm:$0xff] }
 0x67f   :  { %v2237_v18 = vcombine.low %v2085_v7, %v2087_v14  ;;  %v2238_v19 = vcombine.low %v2156_v8, %v2158_v16  ;;  %v2338_v22 = vpop.f32.mrb[24].mxu1  ;;  %v2929_v7 = vld [vmem:[%s15377_s16 + $0x18] sm:$0xff]  ;;  %v2928_v8 = vld [vmem:[%s15377_s16 + $0x10] sm:$0xff] }
 0x680   :  { %v2339_v23 = vadd.f32 %v13435_v25, %v2338_v22  ;;  %v9644_v26 = vpop.f32.mrb[25].mxu1  ;;  %v13765_v14 = vpack.c.bf16 %v2931_v12, %v2928_v8  ;;  %v2933_v16 = vld [vmem:[%s15377_s16 + $0x38] sm:$0xff]  ;;  %v2932_v22 = vld [vmem:[%s15377_s16 + $0x30] sm:$0xff] }
 0x681   :  { %v2245_v27 = vrot.slane %v2237_v18, %v13523_v28  ;;  %v2252_v29 = vrot.slane %v2238_v19, %v13523_v28  ;;  %v2936_v18 = vld [vmem:[%s15377_s16 + $0x50] sm:$0xff]  ;;  %v2934_v26 = vld [vmem:[%s15377_s16 + $0x40] sm:$0xff] }
 0x682   :  { %12503 = vtanh.f32 %v2339_v23  ;;  %v13775_v19 = vpack.c.bf16 %v2936_v18, %v2933_v16  ;;  %v2935_v23 = vld [vmem:[%s15377_s16 + $0x48] sm:$0xff] }
 0x683   :  { %v2253_v30 = vcombine.low %v2245_v27, %v2252_v29  ;;  %v2226_v33 = vpop.f32.mrb[22].mxu0  ;;  %v13787_v27 = vpack.c.bf16 %v2935_v23, %v2932_v22  ;;  %v2937_v29 = vld [vmem:[%s15377_s16 + $0x58] sm:$0xff] }
 0x684   :  { %v2227_v34 = vadd.f32 %v2226_v33, %v13526_v31  ;;  %v2228_v35 = vpop.f32.mrb[23].mxu0 }
 0x685   :  { %2265 = vst [vmem:[#allocation2 + $0x3c] sm:$0xff] %v2253_v30  ;;  %v2229_v38 = vadd.f32 %v2228_v35, %v13528_v32  ;;  %v13793_v30 = vpack.c.bf16 %v2937_v29, %v2934_v26 }
 0x687   :  { %v2254_v39 = vcombine.low %v2227_v34, %v2229_v38 }
 0x689   :  { %8950 = vst.sshfl [vmem:[#allocation2 + $0x44] sm:$0x33 pattern:$0x76325410] %v2254_v39 }
 0x68c   :  { %v12504_v40 = vpop.eup %12503 }
 0x68d   :  { %8953 = vmatmul.mubr.msk.f32.vlgmr.msra.gmra.mrb[26].mxu1 %vm375_vm2, %v12504_v40  ;;  %8954 = vmatmul.mubr.msk.f32.vlgmr.msra.gmra.mrb[24].mxu0 %vm375_vm2, %v12504_v40 }
 0x68e   :  { %10943 = vmatpush1.bf16.msra.mxu1 %v13449_v47  ;;  %10950 = vmatpush3.bf16.msra.mxu0 %v13397_v4 }
 0x68f   :  { %10945 = vmatprep.subr.bf16.mxu1 %v13451_v48  ;;  %9649 = vmatprep.mubr.msk.f32.mxu0 %vm13093_vm0, %v15394_v1 }
 0x690   :  { %2552 = vmatprep.mubr.f32.mxu1 %v15394_v1  ;;  %10952 = vmatprep.subr.bf16.mxu0 %v13413_v9 }
 0x691   :  { %9650 = vmatmul.mubr.msk.f32.vlgmr.msra.gmra.mrb[26].mxu0 %vm269_vm1, %v8957_v41 }
 0x692   :  { %10947 = vmatpush1.bf16.msra.mxu1 %v13460_v51  ;;  %10954 = vmatpush1.bf16.msra.mxu0 %v13415_v13 }
 0x693   :  { %10960 = vmatprep.subr.bf16.mxu1 %v13426_v21  ;;  %10956 = vmatprep.subr.bf16.mxu0 %v13418_v17 }
 0x694   :  { %2738 = vmatprep.mubr.f32.mxu0 %v15394_v1 }
 0x695   :  { %8955 = vmatmul.mubr.msk.f32.vlgmr.msra.gmra.mrb[28].mxu1 %vm375_vm2, %v12504_v40 }
 0x696   :  { %10962 = vmatpush1.bf16.msra.mxu1 %v13439_v36  ;;  %10958 = vmatpush1.bf16.msra.mxu0 %v13422_v20 }
 0x697   :  { %10964 = vmatprep.subr.bf16.mxu1 %v13441_v37  ;;  %2809 = vmatprep.mubr.f32.mxu1 %v15394_v1 }
 0x698   :  { %10968 = vmatprep.subr.bf16.mxu0 %v13432_v24 }
 0x69a   :  { %10966 = vmatpush1.bf16.msra.mxu1 %v13445_v43 }
 0x69b   :  { %10975 = vmatprep.subr.bf16.mxu1 %v15402_v0 }
 0x760   :  { %v2412_v4 = vpop.f32.mrb[26].mxu1  ;;  %v2483_v9 = vpop.f32.mrb[24].mxu0 }
 0x761   :  { %v2413_v13 = vadd.f32 %v2412_v4, %v13501_v58  ;;  %v2484_v17 = vadd.f32 %v2483_v9, %v13513_v10  ;;  %v2414_v21 = vpop.f32.mrb[27].mxu1  ;;  %v2485_v36 = vpop.f32.mrb[25].mxu0  ;;  %v13806_v9 = vld [vmem:[%s15376_s15] ss:$0 sm:$0xff] }
 0x762   :  { %v2415_v20 = vadd.f32 %v2414_v21, %v13505_v59  ;;  %v2486_v37 = vadd.f32 %v2485_v36, %v13516_v15 }
 0x764   :  { %v2565_v42 = vcombine.low %v2413_v13, %v2415_v20  ;;  %v2566_v44 = vcombine.low %v2484_v17, %v2486_v37  ;;  %v2666_v45 = vpop.f32.mrb[26].mxu0 }
 0x765   :  { %v2667_v24 = vadd.f32 %v13435_v25, %v2666_v45  ;;  %v9651_v43 = vpop.f32.mrb[27].mxu0  ;;  %v2924_v25 = vld [vmem:[%s15375_s14 + $0x8] sm:$0xff] }
 0x766   :  { %v2573_v46 = vrot.slane %v2565_v42, %v13523_v28  ;;  %v2580_v49 = vrot.slane %v2566_v44, %v13523_v28  ;;  %v13722_v2 = vpack.c.bf16 %v2924_v25, %v2923_v62 }
 0x767   :  { %12505 = vtanh.f32 %v2667_v24 }
 0x768   :  { %v2581_v50 = vcombine.low %v2573_v46, %v2580_v49  ;;  %v2554_v52 = vpop.f32.mrb[28].mxu1 }
 0x769   :  { %v2555_v53 = vadd.f32 %v2554_v52, %v13526_v31  ;;  %v2556_v56 = vpop.f32.mrb[29].mxu1 }
 0x76a   :  { %2593 = vst [vmem:[#allocation2 + $0x48] sm:$0xff] %v2581_v50  ;;  %v2557_v60 = vadd.f32 %v2556_v56, %v13528_v32 }
 0x76c   :  { %v2582_v61 = vcombine.low %v2555_v53, %v2557_v60 }
 0x76e   :  { %8956 = vst.sshfl [vmem:[#allocation2 + $0x50] sm:$0x33 pattern:$0x76325410] %v2582_v61 }
 0x771   :  { %v12506_v3 = vpop.eup %12505 }
 0x772   :  { %8959 = vmatmul.mubr.msk.f32.vlgmr.msra.gmra.mrb[28].mxu0 %vm375_vm2, %v12506_v3  ;;  %8960 = vmatmul.mubr.msk.f32.vlgmr.msra.gmra.mrb[30].mxu1 %vm375_vm2, %v12506_v3 }
 0x773   :  { %10970 = vmatpush1.bf16.msra.mxu0 %v13449_v47  ;;  %10977 = vmatpush3.bf16.msra.mxu1 %v13722_v2  ;;  %v2927_v47 = vld [vmem:[%s15377_s16 + $0x8] sm:$0xff] }
 0x774   :  { %10972 = vmatprep.subr.bf16.mxu0 %v13451_v48  ;;  %9656 = vmatprep.mubr.msk.f32.mxu1 %vm13093_vm0, %v15394_v1  ;;  %v2930_v48 = vld [vmem:[%s15377_s16 + $0x20] sm:$0xff] }
 0x775   :  { %2880 = vmatprep.mubr.f32.mxu0 %v15394_v1  ;;  %v13748_v6 = vpack.c.bf16 %v2930_v48, %v2927_v47 }
 0x776   :  { %9657 = vmatmul.mubr.msk.f32.vlgmr.msra.gmra.mrb[32].mxu1 %vm269_vm1, %v2939_v5 }
 0x777   :  { %10974 = vmatpush1.bf16.msra.mxu0 %v13460_v51  ;;  %3104 = vmatprep.mubr.f32.mxu1 %v15394_v1  ;;  %v2926_v51 = vld [vmem:[%s15377_s16] sm:$0xff]  ;;  %s13035_s16 = scalar_lea.vmem %s8894_s30, 192 }
 0x778   :  { %10986 = vmatprep.subr.bf16.mxu0 %v15402_v0  ;;  %v13759_v11 = vpack.c.bf16 %v2929_v7, %v2926_v51  ;;  %10979 = vmatprep.subr.bf16.mxu1 %v13748_v6  ;;  %v8971_v7 = vld [vmem:[%s15445_s2 + $0x4] sm:$0x3]  ;;  %p13036_p6 = scmp.ne.s32.totalorder %s8894_s30, %s13035_s16  ;;  %p13041_p8 = scmp.lt.s32.totalorder %s13035_s16, %s13035_s16 }
 0x77a   :  { %8961 = vmatmul.mubr.msk.f32.vlgmr.msra.gmra.mrb[30].mxu0 %vm375_vm2, %v12506_v3  ;;  %10981 = vmatpush1.bf16.msra.mxu1 %v13759_v11  ;;  %p13042_p9 = por %p13041_p8, %p13040_p7 }
 0x77b   :  { %9667 = vmatprep.mubr.msk.f32.mxu0 %vm13093_vm0, %v15394_v1  ;;  %10988 = vmatpush3.bf16.msra.mxu0 %v13765_v14 }
 0x77c   :  { %10989 = vmatprep.subr.bf16.mxu0 %v15402_v0  ;;  %10983 = vmatprep.subr.bf16.mxu1 %v13775_v19  ;;  %p13043_p10 = pnand %p13042_p9, %p13036_p6 }
 0x77e   :  { %10985 = vmatpush1.bf16.msra.mxu1 %v13787_v27 }
 0x77f   :  { %10991 = vmatpush3.bf16.msra.mxu0 %v13793_v30  ;;  %10992 = vmatprep.subr.bf16.mxu1 %v15402_v0 }
 0x780   :  { %10996 = vmatprep.subr.bf16.mxu0 %v13748_v6 }
 0x845   :  { %v2740_v33 = vpop.f32.mrb[28].mxu0  ;;  %v2811_v34 = vpop.f32.mrb[30].mxu1 }
 0x846   :  { %v2741_v35 = vadd.f32 %v2740_v33, %v13501_v58  ;;  %v2812_v38 = vadd.f32 %v2811_v34, %v13513_v10  ;;  %v2742_v39 = vpop.f32.mrb[29].mxu0  ;;  %v2813_v40 = vpop.f32.mrb[31].mxu1 }
 0x847   :  { %v2743_v41 = vadd.f32 %v2742_v39, %v13505_v59  ;;  %v2814_v4 = vadd.f32 %v2813_v40, %v13516_v15 }
 0x849   :  { %v2893_v13 = vcombine.low %v2741_v35, %v2743_v41  ;;  %v2894_v17 = vcombine.low %v2812_v38, %v2814_v4  ;;  %v3015_v21 = vpop.f32.mrb[32].mxu1 }
 0x84a   :  { %v3016_v36 = vadd.f32 %v13806_v9, %v3015_v21  ;;  %v9658_v20 = vpop.f32.mrb[33].mxu1 }
 0x84b   :  { %v2901_v58 = vrot.slane %v2893_v13, %v13523_v28  ;;  %v2908_v10 = vrot.slane %v2894_v17, %v13523_v28  ;;  %v8975_v13 = vld [vmem:[%s15445_s2 + $0x6] sm:$0x3] }
 0x84c   :  { %12507 = vtanh.f32 %v3016_v36 }
 0x84d   :  { %v13811_v37 = vcombine.low %v2901_v58, %v2908_v10  ;;  %v2882_v59 = vpop.f32.mrb[30].mxu0 }
 0x84e   :  { %v2883_v15 = vadd.f32 %v2882_v59, %v13526_v31  ;;  %v2884_v42 = vpop.f32.mrb[31].mxu0  ;;  %v8967_v31 = vld [vmem:[%s15445_s2 + $0x2] sm:$0x3] }
 0x84f   :  { %2921 = vst [vmem:[#allocation2 + $0x54] sm:$0xff] %v13811_v37  ;;  %v2885_v44 = vadd.f32 %v2884_v42, %v13528_v32  ;;  %v2938_v32 = vld [vmem:[%s15378_s17] sm:$0x7] }
 0x850   :  { %v13842_v46 = vrot.slane %v2938_v32, %v347_v55  ;;  %v13846_v49 = vrot.slane %v2938_v32, %v355_v63  ;;  %v13850_v50 = vrot.slane %v2938_v32, %v351_v57 }
 0x851   :  { %v2910_v45 = vcombine.low %v2883_v15, %v2885_v44 }
 0x853   :  { %8962 = vst.sshfl [vmem:[#allocation2 + $0x5c] sm:$0x33 pattern:$0x76325410] %v2910_v45 }
 0x856   :  { %v12508_v24 = vpop.eup %12507 }
 0x857   :  { %v3020_v43 = vmax.f32 %v12508_v24, 0.0 }
 0x859   :  { %8965 = vmatmul.mubr.msk.f32.vlgmr.msra.gmra.mrb[34].mxu1 %vm375_vm2, %v3020_v43  ;;  %9668 = vmatmul.mubr.msk.f32.vlgmr.msra.gmra.mrb[32].mxu0 %vm375_vm2, %v3020_v43 }
 0x85a   :  { %10994 = vmatpush3.bf16.msra.mxu1 %v13722_v2  ;;  %9674 = vmatprep.mubr.msk.f32.mxu1 %vm13093_vm0, %v15394_v1 }
 0x85b   :  { %11003 = vmatprep.subr.bf16.mxu1 %v15402_v0  ;;  %10998 = vmatpush1.bf16.msra.mxu0 %v13759_v11 }
 0x85c   :  { %11000 = vmatprep.subr.bf16.mxu0 %v13775_v19  ;;  %3346 = vmatprep.mubr.f32.mxu0 %v15394_v1 }
 0x85d   :  { %9675 = vmatmul.mubr.msk.f32.vlgmr.msra.gmra.mrb[36].mxu1 %vm269_vm1, %v8967_v31 }
 0x85e   :  { %11005 = vmatpush3.bf16.msra.mxu1 %v13765_v14  ;;  %9685 = vmatprep.mubr.msk.f32.mxu1 %vm13093_vm0, %v15394_v1 }
 0x85f   :  { %11006 = vmatprep.subr.bf16.mxu1 %v15402_v0  ;;  %11002 = vmatpush1.bf16.msra.mxu0 %v13787_v27 }
 0x860   :  { %11009 = vmatprep.subr.bf16.mxu0 %v15402_v0 }
 0x862   :  { %11008 = vmatpush3.bf16.msra.mxu1 %v13793_v30 }
 0x863   :  { %11013 = vmatprep.subr.bf16.mxu1 %v13748_v6 }
 0x92c   :  { %v3106_v52 = vpop.f32.mrb[34].mxu1  ;;  %v3177_v53 = vpop.f32.mrb[32].mxu0 }
 0x92d   :  { %v3107_v56 = vadd.f32 %v3106_v52, %v13842_v46  ;;  %v3108_v60 = vpop.f32.mrb[35].mxu1  ;;  %v9669_v61 = vpop.f32.mrb[33].mxu0  ;;  %v3178_v62 = vadd.f32 %v3177_v53, %v13846_v49  ;;  %v8979_v53 = vld [vmem:[%s15445_s2 + $0x8] sm:$0x3] }
 0x92e   :  { %v3109_v25 = vadd.f32 %v3108_v60, %v13850_v50 }
 0x92f   :  { %v3198_v47 = vrot.slane %v3178_v62, %v13523_v28 }
 0x930   :  { %v3184_v55 = vcombine.low %v3107_v56, %v3109_v25  ;;  %v3273_v3 = vpop.f32.mrb[36].mxu1 }
 0x931   :  { %v3274_v5 = vadd.f32 %v13806_v9, %v3273_v3  ;;  %v9676_v63 = vpop.f32.mrb[37].mxu1 }
 0x932   :  { %v3191_v54 = vrot.slane %v3184_v55, %v13523_v28 }
 0x933   :  { %12509 = vtanh.f32 %v3274_v5 }
 0x934   :  { %v3199_v57 = vcombine.low %v3191_v54, %v3198_v47 }
 0x936   :  { %3201 = vst [vmem:[#allocation3] sm:$0x3f] %v3199_v57 }
 0x93d   :  { %v12510_v48 = vpop.eup %12509 }
 0x93e   :  { %v3278_v51 = vmax.f32 %v12510_v48, 0.0 }
 0x940   :  { %8969 = vmatmul.mubr.msk.f32.vlgmr.msra.gmra.mrb[34].mxu0 %vm375_vm2, %v3278_v51  ;;  %9686 = vmatmul.mubr.msk.f32.vlgmr.msra.gmra.mrb[38].mxu1 %vm375_vm2, %v3278_v51 }
 0x941   :  { %11011 = vmatpush3.bf16.msra.mxu0 %v13722_v2  ;;  %9692 = vmatprep.mubr.msk.f32.mxu0 %vm13093_vm0, %v15394_v1 }
 0x942   :  { %11020 = vmatprep.subr.bf16.mxu0 %v15402_v0  ;;  %11015 = vmatpush1.bf16.msra.mxu1 %v13759_v11 }
 0x943   :  { %11017 = vmatprep.subr.bf16.mxu1 %v13775_v19  ;;  %3589 = vmatprep.mubr.f32.mxu1 %v15394_v1 }
 0x944   :  { %9693 = vmatmul.mubr.msk.f32.vlgmr.msra.gmra.mrb[36].mxu0 %vm269_vm1, %v8971_v7 }
 0x945   :  { %11022 = vmatpush3.bf16.msra.mxu0 %v13765_v14  ;;  %9703 = vmatprep.mubr.msk.f32.mxu0 %vm13093_vm0, %v15394_v1 }
 0x946   :  { %11023 = vmatprep.subr.bf16.mxu0 %v15402_v0  ;;  %11019 = vmatpush1.bf16.msra.mxu1 %v13787_v27 }
 0x947   :  { %11026 = vmatprep.subr.bf16.mxu1 %v15402_v0 }
 0x949   :  { %11025 = vmatpush3.bf16.msra.mxu0 %v13793_v30 }
 0x94a   :  { %11030 = vmatprep.subr.bf16.mxu0 %v13748_v6 }
 0xa13   :  { %v3348_v8 = vpop.f32.mrb[34].mxu0  ;;  %v3419_v12 = vpop.f32.mrb[38].mxu1 }
 0xa14   :  { %v3349_v16 = vadd.f32 %v3348_v8, %v13842_v46  ;;  %v3350_v18 = vpop.f32.mrb[35].mxu0  ;;  %v9687_v22 = vpop.f32.mrb[39].mxu1  ;;  %v3420_v23 = vadd.f32 %v3419_v12, %v13846_v49  ;;  %v8983_v8 = vld [vmem:[%s15445_s2 + $0xa] sm:$0x3] }
 0xa15   :  { %v3351_v26 = vadd.f32 %v3350_v18, %v13850_v50 }
 0xa16   :  { %v3440_v38 = vrot.slane %v3420_v23, %v13523_v28 }
 0xa17   :  { %v3426_v29 = vcombine.low %v3349_v16, %v3351_v26  ;;  %v3516_v33 = vpop.f32.mrb[36].mxu0 }
 0xa18   :  { %v3517_v34 = vadd.f32 %v13806_v9, %v3516_v33  ;;  %v9694_v35 = vpop.f32.mrb[37].mxu0 }
 0xa19   :  { %v3433_v39 = vrot.slane %v3426_v29, %v13523_v28 }
 0xa1a   :  { %12511 = vtanh.f32 %v3517_v34 }
 0xa1b   :  { %v3441_v40 = vcombine.low %v3433_v39, %v3440_v38  ;;  %v4417_v39 = vld [vmem:[%s15446_s12] sm:$0xff] }
 0xa1d   :  { %3444 = vst [vmem:[#allocation3 + $0x6] sm:$0x3f] %v3441_v40  ;;  %v4420_v40 = vld [vmem:[%s15446_s12 + $0x18] sm:$0xff] }
 0xa24   :  { %v12512_v41 = vpop.eup %12511 }
 0xa25   :  { %v3521_v4 = vmax.f32 %v12512_v41, 0.0  ;;  %v4422_v41 = vld [vmem:[%s15446_s12 + $0x28] sm:$0xff] }
 0xa27   :  { %8973 = vmatmul.mubr.msk.f32.vlgmr.msra.gmra.mrb[40].mxu1 %vm375_vm2, %v3521_v4  ;;  %9704 = vmatmul.mubr.msk.f32.vlgmr.msra.gmra.mrb[38].mxu0 %vm375_vm2, %v3521_v4  ;;  %v4424_v4 = vld [vmem:[%s15446_s12 + $0x38] sm:$0xff] }
 0xa28   :  { %11028 = vmatpush3.bf16.msra.mxu1 %v13722_v2  ;;  %9710 = vmatprep.mubr.msk.f32.mxu1 %vm13093_vm0, %v15394_v1 }
 0xa29   :  { %11037 = vmatprep.subr.bf16.mxu1 %v15402_v0  ;;  %11032 = vmatpush1.bf16.msra.mxu0 %v13759_v11 }
 0xa2a   :  { %11034 = vmatprep.subr.bf16.mxu0 %v13775_v19  ;;  %3832 = vmatprep.mubr.f32.mxu0 %v15394_v1 }
 0xa2b   :  { %9711 = vmatmul.mubr.msk.f32.vlgmr.msra.gmra.mrb[42].mxu1 %vm269_vm1, %v8975_v13  ;;  %v4427_v13 = vld [vmem:[%s15446_s12 + $0x50] sm:$0xff] }
 0xa2c   :  { %11039 = vmatpush3.bf16.msra.mxu1 %v13765_v14  ;;  %9721 = vmatprep.mubr.msk.f32.mxu1 %vm13093_vm0, %v15394_v1 }
 0xa2d   :  { %11040 = vmatprep.subr.bf16.mxu1 %v15402_v0  ;;  %11036 = vmatpush1.bf16.msra.mxu0 %v13787_v27 }
 0xa2e   :  { %11043 = vmatprep.subr.bf16.mxu0 %v15402_v0 }
 0xa30   :  { %11042 = vmatpush3.bf16.msra.mxu1 %v13793_v30 }
 0xa31   :  { %11047 = vmatprep.subr.bf16.mxu1 %v13748_v6 }
 0xafa   :  { %v3591_v17 = vpop.f32.mrb[40].mxu1  ;;  %v3662_v21 = vpop.f32.mrb[38].mxu0 }
 0xafb   :  { %v3592_v36 = vadd.f32 %v3591_v17, %v13842_v46  ;;  %v3593_v20 = vpop.f32.mrb[41].mxu1  ;;  %v9705_v58 = vpop.f32.mrb[39].mxu0  ;;  %v3663_v10 = vadd.f32 %v3662_v21, %v13846_v49  ;;  %v13992_v21 = vpack.c.bf16 %v4420_v40, %v4417_v39  ;;  %v4456_v40 = vld [vmem:[%s15446_s12 + $0x138] sm:$0xff] }
 0xafc   :  { %v3594_v59 = vadd.f32 %v3593_v20, %v13850_v50 }
 0xafd   :  { %v3683_v24 = vrot.slane %v3663_v10, %v13523_v28  ;;  %v13999_v10 = vpack.c.bf16 %v4427_v13, %v4424_v4  ;;  %v4460_v4 = vld [vmem:[%s15446_s12 + $0x158] sm:$0xff]  ;;  %v4463_v13 = vld [vmem:[%s15446_s12 + $0x170] sm:$0xff] }
 0xafe   :  { %v3669_v15 = vcombine.low %v3592_v36, %v3594_v59  ;;  %v3759_v42 = vpop.f32.mrb[42].mxu1  ;;  %v4423_v36 = vld [vmem:[%s15446_s12 + $0x30] sm:$0xff]  ;;  %v4426_v59 = vld [vmem:[%s15446_s12 + $0x48] sm:$0xff] }
 0xaff   :  { %v3760_v44 = vadd.f32 %v13806_v9, %v3759_v42  ;;  %v9712_v45 = vpop.f32.mrb[43].mxu1  ;;  %v4428_v42 = vld [vmem:[%s15446_s12 + $0x58] sm:$0xff] }
 0xb00   :  { %v3676_v43 = vrot.slane %v3669_v15, %v13523_v28  ;;  %v4425_v15 = vld [vmem:[%s15446_s12 + $0x40] sm:$0xff] }
 0xb01   :  { %12513 = vtanh.f32 %v3760_v44  ;;  %v4430_v44 = vld [vmem:[%s15446_s12 + $0x68] sm:$0xff]  ;;  %v4433_v45 = vld [vmem:[%s15446_s12 + $0x80] sm:$0xff] }
 0xb02   :  { %v3684_v31 = vcombine.low %v3676_v43, %v3683_v24  ;;  %v14019_v24 = vpack.c.bf16 %v4426_v59, %v4423_v36  ;;  %v4429_v43 = vld [vmem:[%s15446_s12 + $0x60] sm:$0xff]  ;;  %v4459_v36 = vld [vmem:[%s15446_s12 + $0x150] sm:$0xff]  ;;  %v14171_v59 = vpack.c.bf16 %v4463_v13, %v4460_v4 }
 0xb03   :  { %v4483_v13 = vld [vmem:[#allocation10 + $0x90] sm:$0xff] }
 0xb04   :  { %3687 = vst [vmem:[#allocation3 + $0xc] sm:$0x3f] %v3684_v31  ;;  %v14025_v31 = vpack.c.bf16 %v4428_v42, %v4425_v15  ;;  %15453 = vst [vmem:[#allocation41_spill] sm:$0xff] %v14171_v59  ;;  %v4462_v15 = vld [vmem:[%s15446_s12 + $0x168] sm:$0xff]  ;;  %v4461_v42 = vld [vmem:[%s15446_s12 + $0x160] sm:$0xff] }
 0xb0b   :  { %v12514_v32 = vpop.eup %12513 }
 0xb0c   :  { %v3764_v52 = vmax.f32 %v12514_v32, 0.0  ;;  %v14028_v32 = vpack.c.bf16 %v4433_v45, %v4430_v44  ;;  %v4464_v44 = vld [vmem:[%s15446_s12 + $0x178] sm:$0xff] }
 0xb0d   :  { %v4466_v45 = vld [vmem:[#allocation10 + $0x8] sm:$0xff] }
 0xb0e   :  { %8977 = vmatmul.mubr.msk.f32.vlgmr.msra.gmra.mrb[40].mxu0 %vm375_vm2, %v3764_v52  ;;  %9722 = vmatmul.mubr.msk.f32.vlgmr.msra.gmra.mrb[44].mxu1 %vm375_vm2, %v3764_v52  ;;  %v4432_v52 = vld [vmem:[%s15446_s12 + $0x78] sm:$0xff] }
 0xb0f   :  { %11045 = vmatpush3.bf16.msra.mxu0 %v13722_v2  ;;  %9728 = vmatprep.mubr.msk.f32.mxu0 %vm13093_vm0, %v15394_v1 }
 0xb10   :  { %11054 = vmatprep.subr.bf16.mxu0 %v15402_v0  ;;  %11049 = vmatpush1.bf16.msra.mxu1 %v13759_v11 }
 0xb11   :  { %11051 = vmatprep.subr.bf16.mxu1 %v13775_v19  ;;  %4075 = vmatprep.mubr.f32.mxu1 %v15394_v1 }
 0xb12   :  { %9729 = vmatmul.mubr.msk.f32.vlgmr.msra.gmra.mrb[42].mxu0 %vm269_vm1, %v8979_v53  ;;  %v4431_v53 = vld [vmem:[%s15446_s12 + $0x70] sm:$0xff] }
 0xb13   :  { %11056 = vmatpush3.bf16.msra.mxu0 %v13765_v14  ;;  %9739 = vmatprep.mubr.msk.f32.mxu0 %vm13093_vm0, %v15394_v1 }
 0xb14   :  { %11057 = vmatprep.subr.bf16.mxu0 %v15402_v0  ;;  %11053 = vmatpush1.bf16.msra.mxu1 %v13787_v27 }
 0xb15   :  { %11060 = vmatprep.subr.bf16.mxu1 %v15402_v0 }
 0xb17   :  { %11059 = vmatpush3.bf16.msra.mxu0 %v13793_v30 }
 0xb18   :  { %11064 = vmatprep.subr.bf16.mxu0 %v13748_v6 }
 0xbe1   :  { %v3834_v56 = vpop.f32.mrb[40].mxu0  ;;  %v3905_v60 = vpop.f32.mrb[44].mxu1 }
 0xbe2   :  { %v3835_v61 = vadd.f32 %v3834_v56, %v13842_v46  ;;  %v3836_v62 = vpop.f32.mrb[41].mxu0  ;;  %v9723_v25 = vpop.f32.mrb[45].mxu1  ;;  %v3906_v55 = vadd.f32 %v3905_v60, %v13846_v49  ;;  %v4434_v56 = vld [vmem:[%s15446_s12 + $0x88] sm:$0xff]  ;;  %v4436_v60 = vld [vmem:[%s15446_s12 + $0x98] sm:$0xff] }
 0xbe3   :  { %v3837_v3 = vadd.f32 %v3836_v62, %v13850_v50  ;;  %v14050_v62 = vpack.c.bf16 %v4432_v52, %v4429_v43  ;;  %v4435_v25 = vld [vmem:[%s15446_s12 + $0x90] sm:$0xff]  ;;  %v14184_v52 = vpack.c.bf16 %v4462_v15, %v4459_v36 }
 0xbe4   :  { %v3926_v57 = vrot.slane %v3906_v55, %v13523_v28  ;;  %v14056_v55 = vpack.c.bf16 %v4434_v56, %v4431_v53  ;;  %v4469_v43 = vld [vmem:[#allocation10 + $0x20] sm:$0xff]  ;;  %v14187_v56 = vpack.c.bf16 %v4464_v44, %v4461_v42  ;;  %v4486_v42 = vld [vmem:[#allocation10 + $0xa8] sm:$0xff] }
 0xbe5   :  { %v3912_v5 = vcombine.low %v3835_v61, %v3837_v3  ;;  %v4002_v63 = vpop.f32.mrb[42].mxu0  ;;  %v4439_v61 = vld [vmem:[%s15446_s12 + $0xb0] sm:$0xff]  ;;  %15454 = vst [vmem:[#allocation42_spill] sm:$0xff] %v14184_v52 }
 0xbe6   :  { %v4003_v47 = vadd.f32 %v13806_v9, %v4002_v63  ;;  %v9730_v54 = vpop.f32.mrb[43].mxu0  ;;  %v14059_v3 = vpack.c.bf16 %v4439_v61, %v4436_v60  ;;  %v4437_v63 = vld [vmem:[%s15446_s12 + $0xa0] sm:$0xff]  ;;  %v4465_v53 = vld [vmem:[#allocation10] sm:$0xff]  ;;  %15455 = vst [vmem:[#allocation43_spill] sm:$0xff] %v14187_v56  ;;  %v14190_v60 = vpack.c.bf16 %v4469_v43, %v4466_v45  ;;  %v4490_v43 = vld [vmem:[#allocation10 + $0xc8] sm:$0xff] }
 0xbe7   :  { %v3919_v48 = vrot.slane %v3912_v5, %v13523_v28  ;;  %v4438_v5 = vld [vmem:[%s15446_s12 + $0xa8] sm:$0xff] }
 0xbe8   :  { %12515 = vtanh.f32 %v4003_v47  ;;  %v4440_v47 = vld [vmem:[%s15446_s12 + $0xb8] sm:$0xff]  ;;  %v4442_v54 = vld [vmem:[%s15446_s12 + $0xc8] sm:$0xff]  ;;  %15456 = vst [vmem:[#allocation44_spill] sm:$0xff] %v14190_v60 }
 0xbe9   :  { %v3927_v6 = vcombine.low %v3919_v48, %v3926_v57  ;;  %v4445_v57 = vld [vmem:[%s15446_s12 + $0xe0] sm:$0xff]  ;;  %v14078_v48 = vpack.c.bf16 %v4438_v5, %v4435_v25  ;;  %v4470_v5 = vld [vmem:[#allocation10 + $0x28] sm:$0xff]  ;;  %v4485_v44 = vld [vmem:[#allocation10 + $0xa0] sm:$0xff] }
 0xbea   :  { %v4468_v61 = vld [vmem:[#allocation10 + $0x18] sm:$0xff]  ;;  %v4467_v25 = vld [vmem:[#allocation10 + $0x10] sm:$0xff] }
 0xbeb   :  { %3930 = vst [vmem:[#allocation3 + $0x12] sm:$0x3f] %v3927_v6  ;;  %v4441_v6 = vld [vmem:[%s15446_s12 + $0xc0] sm:$0xff] }
 0xbec   :  { %v4488_v45 = vld [vmem:[#allocation10 + $0xb8] sm:$0xff] }
 0xbf2   :  { %v12516_v51 = vpop.eup %12515 }
 0xbf3   :  { %v4007_v7 = vmax.f32 %v12516_v51, 0.0  ;;  %v14084_v51 = vpack.c.bf16 %v4440_v47, %v4437_v63  ;;  %v4472_v63 = vld [vmem:[#allocation10 + $0x38] sm:$0xff]  ;;  %v4475_v47 = vld [vmem:[#allocation10 + $0x50] sm:$0xff] }
 0xbf5   :  { %8981 = vmatmul.mubr.msk.f32.vlgmr.msra.gmra.mrb[46].mxu1 %vm375_vm2, %v4007_v7  ;;  %9740 = vmatmul.mubr.msk.f32.vlgmr.msra.gmra.mrb[44].mxu0 %vm375_vm2, %v4007_v7  ;;  %v14087_v7 = vpack.c.bf16 %v4445_v57, %v4442_v54  ;;  %v14194_v54 = vpack.c.bf16 %v4468_v61, %v4465_v53  ;;  %v4471_v57 = vld [vmem:[#allocation10 + $0x30] sm:$0xff]  ;;  %v4493_v53 = vld [vmem:[#allocation10 + $0xe0] sm:$0xff]  ;;  %v14229_v61 = vpack.c.bf16 %v4486_v42, %v4483_v13 }
 0xbf6   :  { %11062 = vmatpush3.bf16.msra.mxu1 %v13722_v2  ;;  %9746 = vmatprep.mubr.msk.f32.mxu1 %vm13093_vm0, %v15394_v1  ;;  %v4418_v2 = vld [vmem:[%s15446_s12 + $0x8] sm:$0xff] }
 0xbf7   :  { %11066 = vmatpush1.bf16.msra.mxu0 %v13759_v11  ;;  %11071 = vmatprep.subr.bf16.mxu1 %v15402_v0  ;;  %v4421_v11 = vld [vmem:[%s15446_s12 + $0x20] sm:$0xff]  ;;  %v4505_v13 = vld [vmem:[#allocation10 + $0x140] sm:$0xff] }
 0xbf8   :  { %11068 = vmatprep.subr.bf16.mxu0 %v13775_v19  ;;  %4318 = vmatprep.mubr.f32.mxu0 %v15394_v1 }
 0xbf9   :  { %9747 = vmatmul.mubr.msk.f32.vlgmr.msra.gmra.mrb[48].mxu1 %vm269_vm1, %v8983_v8  ;;  %v4444_v8 = vld [vmem:[%s15446_s12 + $0xd8] sm:$0xff] }
 0xbfa   :  { %11073 = vmatpush3.bf16.msra.mxu1 %v13765_v14  ;;  %9757 = vmatprep.mubr.msk.f32.mxu1 %vm13093_vm0, %v15394_v1  ;;  %v13965_v14 = vpack.c.bf16 %v4421_v11, %v4418_v2  ;;  %v4443_v2 = vld [vmem:[%s15446_s12 + $0xd0] sm:$0xff]  ;;  %v4446_v11 = vld [vmem:[%s15446_s12 + $0xe8] sm:$0xff] }
 0xbfb   :  { %11070 = vmatpush1.bf16.msra.mxu0 %v13787_v27  ;;  %11074 = vmatprep.subr.bf16.mxu1 %v15402_v0 }
 0xbfc   :  { %11078 = vmatprep.subr.bf16.mxu0 %v13965_v14 }
 0xbfe   :  { %11076 = vmatpush3.bf16.msra.mxu1 %v13793_v30 }
 0xbff   :  { %11109 = vmatprep.subr.bf16.mxu1 %v15402_v0 }
 0xcc8   :  { %v4077_v19 = vpop.f32.mrb[46].mxu1  ;;  %v4148_v27 = vpop.f32.mrb[44].mxu0 }
 0xcc9   :  { %v4078_v12 = vadd.f32 %v4077_v19, %v13842_v46  ;;  %v4079_v16 = vpop.f32.mrb[47].mxu1  ;;  %v9741_v30 = vpop.f32.mrb[45].mxu0  ;;  %v4149_v18 = vadd.f32 %v4148_v27, %v13846_v49  ;;  %v4448_v19 = vld [vmem:[%s15446_s12 + $0xf8] sm:$0xff]  ;;  %v4451_v27 = vld [vmem:[%s15446_s12 + $0x110] sm:$0xff] }
 0xcca   :  { %v4080_v22 = vadd.f32 %v4079_v16, %v13850_v50  ;;  %v4447_v16 = vld [vmem:[%s15446_s12 + $0xf0] sm:$0xff]  ;;  %v14112_v30 = vpack.c.bf16 %v4446_v11, %v4443_v2 }
 0xccb   :  { %v4169_v34 = vrot.slane %v4149_v18, %v13523_v28  ;;  %v14115_v18 = vpack.c.bf16 %v4451_v27, %v4448_v19  ;;  %v4474_v2 = vld [vmem:[#allocation10 + $0x48] sm:$0xff]  ;;  %v4473_v11 = vld [vmem:[#allocation10 + $0x40] sm:$0xff]  ;;  %v4476_v19 = vld [vmem:[#allocation10 + $0x58] sm:$0xff] }
 0xccc   :  { %v4155_v23 = vcombine.low %v4078_v12, %v4080_v22  ;;  %v4245_v26 = vpop.f32.mrb[48].mxu1  ;;  %v14106_v12 = vpack.c.bf16 %v4444_v8, %v4441_v6  ;;  %v4450_v22 = vld [vmem:[%s15446_s12 + $0x108] sm:$0xff]  ;;  %v14197_v6 = vpack.c.bf16 %v4470_v5, %v4467_v25  ;;  %v14200_v8 = vpack.c.bf16 %v4475_v47, %v4472_v63  ;;  %v4478_v27 = vld [vmem:[#allocation10 + $0x68] sm:$0xff] }
 0xccd   :  { %v4246_v29 = vadd.f32 %v13806_v9, %v4245_v26  ;;  %v9748_v33 = vpop.f32.mrb[49].mxu1  ;;  %v4419_v9 = vld [vmem:[%s15446_s12 + $0x10] sm:$0xff]  ;;  %15447 = vst [vmem:[#allocation35_spill] sm:$0xff] %v14115_v18  ;;  %v4452_v26 = vld [vmem:[%s15446_s12 + $0x118] sm:$0xff]  ;;  %v14232_v5 = vpack.c.bf16 %v4488_v45, %v4485_v44  ;;  %v14235_v63 = vpack.c.bf16 %v4493_v53, %v4490_v43  ;;  %v4492_v47 = vld [vmem:[#allocation10 + $0xd8] sm:$0xff] }
 0xcce   :  { %v4162_v35 = vrot.slane %v4155_v23, %v13523_v28  ;;  %v13997_v20 = vpack.c.bf16 %v4422_v41, %v4419_v9  ;;  %v4449_v23 = vld [vmem:[%s15446_s12 + $0x100] sm:$0xff]  ;;  %v4455_v9 = vld [vmem:[%s15446_s12 + $0x130] sm:$0xff]  ;;  %v4458_v41 = vld [vmem:[%s15446_s12 + $0x148] sm:$0xff] }
 0xccf   :  { %12517 = vtanh.f32 %v4246_v29  ;;  %v4454_v29 = vld [vmem:[%s15446_s12 + $0x128] sm:$0xff]  ;;  %v4457_v33 = vld [vmem:[%s15446_s12 + $0x140] sm:$0xff] }
 0xcd0   :  { %v4170_v38 = vcombine.low %v4162_v35, %v4169_v34  ;;  %v14134_v34 = vpack.c.bf16 %v4450_v22, %v4447_v16  ;;  %v4453_v35 = vld [vmem:[%s15446_s12 + $0x120] sm:$0xff]  ;;  %v14143_v39 = vpack.c.bf16 %v4457_v33, %v4454_v29  ;;  %v4481_v16 = vld [vmem:[#allocation10 + $0x80] sm:$0xff]  ;;  %v14206_v22 = vpack.c.bf16 %v4474_v2, %v4471_v57  ;;  %v4494_v2 = vld [vmem:[#allocation10 + $0xe8] sm:$0xff]  ;;  %s13096_s12 = smov 32  }
 0xcd1   :  { %v14212_v29 = vpack.c.bf16 %v4481_v16, %v4478_v27  ;;  %v4480_v33 = vld [vmem:[#allocation10 + $0x78] sm:$0xff]  ;;  %v4489_v25 = vld [vmem:[#allocation10 + $0xc0] sm:$0xff]  ;;  %v4491_v57 = vld [vmem:[#allocation10 + $0xd0] sm:$0xff] }
 0xcd2   :  { %4173 = vst [vmem:[#allocation3 + $0x18] sm:$0x3f] %v4170_v38  ;;  %15448 = vst [vmem:[#allocation36_spill] sm:$0xff] %v14134_v34  ;;  %v14140_v38 = vpack.c.bf16 %v4452_v26, %v4449_v23  ;;  %v4477_v23 = vld [vmem:[#allocation10 + $0x60] sm:$0xff]  ;;  %v14209_v26 = vpack.c.bf16 %v4476_v19, %v4473_v11  ;;  %v4496_v11 = vld [vmem:[#allocation10 + $0xf8] sm:$0xff]  ;;  %v14239_v27 = vpack.c.bf16 %v4492_v47, %v4489_v25 }
 0xcd3   :  { %15450 = vst [vmem:[#allocation38_spill] sm:$0xff] %v14143_v39  ;;  %v14219_v4 = vpack.c.bf16 %v4480_v33, %v4477_v23  ;;  %v4499_v19 = vld [vmem:[#allocation10 + $0x110] sm:$0xff]  ;;  %v14242_v23 = vpack.c.bf16 %v4494_v2, %v4491_v57  ;;  %v4501_v44 = vld [vmem:[#allocation10 + $0x120] sm:$0xff]  ;;  %v4504_v53 = vld [vmem:[#allocation10 + $0x138] sm:$0xff] }
 0xcd4   :  { %15449 = vst [vmem:[#allocation37_spill] sm:$0xff] %v14140_v38  ;;  %v4495_v16 = vld [vmem:[#allocation10 + $0xf0] sm:$0xff]  ;;  %v14245_v33 = vpack.c.bf16 %v4499_v19, %v4496_v11  ;;  %v4506_v47 = vld [vmem:[#allocation10 + $0x148] sm:$0xff]  ;;  %v4508_v57 = vld [vmem:[#allocation10 + $0x158] sm:$0xff]  ;;  %v14259_v11 = vpack.c.bf16 %v4504_v53, %v4501_v44 }
 0xcd5   :  { %v4503_v25 = vld [vmem:[#allocation10 + $0x130] sm:$0xff] }
 0xcd6   :  { %v4511_v2 = vld [vmem:[#allocation10 + $0x170] sm:$0xff] }
 0xcd7   :  { %v4507_v19 = vld [vmem:[#allocation10 + $0x150] sm:$0xff] }
 0xcd9   :  { %v12518_v17 = vpop.eup %12517 }
 0xcda   :  { %v4250_v58 = vmax.f32 %v12518_v17, 0.0  ;;  %v14162_v17 = vpack.c.bf16 %v4456_v40, %v4453_v35  ;;  %v4479_v35 = vld [vmem:[#allocation10 + $0x70] sm:$0xff]  ;;  %v4482_v40 = vld [vmem:[#allocation10 + $0x88] sm:$0xff] }
 0xcdb   :  { %v14222_v36 = vpack.c.bf16 %v4482_v40, %v4479_v35  ;;  %v4498_v35 = vld [vmem:[#allocation10 + $0x108] sm:$0xff]  ;;  %v4497_v40 = vld [vmem:[#allocation10 + $0x100] sm:$0xff] }
 0xcdc   :  { %8985 = vmatmul.mubr.msk.f32.vlgmr.msra.gmra.mrb[46].mxu0 %vm375_vm2, %v4250_v58  ;;  %9758 = vmatmul.mubr.msk.f32.vlgmr.msra.gmra.mrb[50].mxu1 %vm375_vm2, %v4250_v58  ;;  %15451 = vst [vmem:[#allocation39_spill] sm:$0xff] %v14162_v17  ;;  %v14168_v58 = vpack.c.bf16 %v4458_v41, %v4455_v9  ;;  %v4484_v9 = vld [vmem:[#allocation10 + $0x98] sm:$0xff]  ;;  %v4487_v41 = vld [vmem:[#allocation10 + $0xb0] sm:$0xff]  ;;  %v14249_v42 = vpack.c.bf16 %v4498_v35, %v4495_v16 }
 0xcdd   :  { %11080 = vmatpush1.bf16.msra.mxu0 %v13992_v21  ;;  %11111 = vmatpush3.bf16.msra.mxu1 %v13997_v20  ;;  %v14225_v15 = vpack.c.bf16 %v4487_v41, %v4484_v9  ;;  %v4500_v9 = vld [vmem:[#allocation10 + $0x118] sm:$0xff]  ;;  %v4502_v41 = vld [vmem:[#allocation10 + $0x128] sm:$0xff]  ;;  %v14262_v16 = vpack.c.bf16 %v4506_v47, %v4503_v25  ;;  %v14265_v35 = vpack.c.bf16 %v4511_v2, %v4508_v57 }
 0xcde   :  { %11082 = vmatprep.subr.bf16.mxu0 %v13999_v10  ;;  %11112 = vmatprep.subr.bf16.mxu1 %v15402_v0  ;;  %15452 = vst [vmem:[#allocation40_spill] sm:$0xff] %v14168_v58  ;;  %v14252_v45 = vpack.c.bf16 %v4500_v9, %v4497_v40  ;;  %v14255_v43 = vpack.c.bf16 %v4505_v13, %v4502_v41  ;;  %v4510_v40 = vld [vmem:[#allocation10 + $0x168] sm:$0xff]  ;;  %v4509_v9 = vld [vmem:[#allocation10 + $0x160] sm:$0xff]  ;;  %v4512_v41 = vld [vmem:[#allocation10 + $0x178] sm:$0xff] }
 0xcdf   :  { %4583 = vmatprep.mubr.f32.mxu0 %v15394_v1  ;;  %9792 = vmatprep.mubr.msk.f32.mxu1 %vm13093_vm0, %v15394_v1  ;;  %v14269_v13 = vpack.c.bf16 %v4510_v40, %v4507_v19  ;;  %v14272_v44 = vpack.c.bf16 %v4512_v41, %v4509_v9 }
 0xce1   :  { %11084 = vmatpush1.bf16.msra.mxu0 %v14019_v24  ;;  %11114 = vmatpush3.bf16.msra.mxu1 %v14025_v31 }
 0xce2   :  { %11086 = vmatprep.subr.bf16.mxu0 %v14028_v32  ;;  %11115 = vmatprep.subr.bf16.mxu1 %v15402_v0 }
 0xce5   :  { %11088 = vmatpush1.bf16.msra.mxu0 %v14050_v62  ;;  %11117 = vmatpush3.bf16.msra.mxu1 %v14056_v55 }
 0xce6   :  { %11090 = vmatprep.subr.bf16.mxu0 %v14059_v3  ;;  %11118 = vmatprep.subr.bf16.mxu1 %v15402_v0 }
 0xce9   :  { %11092 = vmatpush1.bf16.msra.mxu0 %v14078_v48  ;;  %11120 = vmatpush3.bf16.msra.mxu1 %v14084_v51 }
 0xcea   :  { %11094 = vmatprep.subr.bf16.mxu0 %v14087_v7  ;;  %11121 = vmatprep.subr.bf16.mxu1 %v15402_v0 }
 0xced   :  { %11096 = vmatpush1.bf16.msra.mxu0 %v14106_v12  ;;  %11123 = vmatpush3.bf16.msra.mxu1 %v14112_v30 }
 0xcee   :  { %11098 = vmatprep.subr.bf16.mxu0 %v14115_v18  ;;  %11124 = vmatprep.subr.bf16.mxu1 %v15402_v0 }
 0xcf1   :  { %11100 = vmatpush1.bf16.msra.mxu0 %v14134_v34  ;;  %11126 = vmatpush3.bf16.msra.mxu1 %v14140_v38 }
 0xcf2   :  { %11102 = vmatprep.subr.bf16.mxu0 %v14143_v39  ;;  %11127 = vmatprep.subr.bf16.mxu1 %v15402_v0 }
 0xcf5   :  { %11104 = vmatpush1.bf16.msra.mxu0 %v14162_v17  ;;  %11129 = vmatpush3.bf16.msra.mxu1 %v14168_v58 }
 0xcf6   :  { %11106 = vmatprep.subr.bf16.mxu0 %v14171_v59  ;;  %11130 = vmatprep.subr.bf16.mxu1 %v15402_v0 }
 0xcf9   :  { %11108 = vmatpush1.bf16.msra.mxu0 %v14184_v52  ;;  %11132 = vmatpush3.bf16.msra.mxu1 %v14187_v56 }
 0xcfa   :  { %11134 = vmatprep.subr.bf16.mxu0 %v14190_v60  ;;  %11165 = vmatprep.subr.bf16.mxu1 %v15402_v0 }
 0xcfc   :  { %4584 = vmatmul.mubr.f32.vlgmr.msra.gmra.mrb[48].mxu0 %v15394_v1  ;;  %9793 = vmatmul.mubr.f32.vlgmr.msra.gmra.mrb[52].mxu1 %v15394_v1 }
 0xcfd   :  { %11136 = vmatpush1.bf16.msra.mxu0 %v14194_v54  ;;  %11167 = vmatpush3.bf16.msra.mxu1 %v14197_v6 }
 0xcfe   :  { %11138 = vmatprep.subr.bf16.mxu0 %v14200_v8  ;;  %11168 = vmatprep.subr.bf16.mxu1 %v15402_v0 }
 0xcff   :  { %4757 = vmatprep.mubr.f32.mxu0 %v15394_v1  ;;  %9827 = vmatprep.mubr.msk.f32.mxu1 %vm13093_vm0, %v15394_v1 }
 0xd01   :  { %11140 = vmatpush1.bf16.msra.mxu0 %v14206_v22  ;;  %11170 = vmatpush3.bf16.msra.mxu1 %v14209_v26 }
 0xd02   :  { %11142 = vmatprep.subr.bf16.mxu0 %v14212_v29  ;;  %11171 = vmatprep.subr.bf16.mxu1 %v15402_v0 }
 0xd05   :  { %11144 = vmatpush1.bf16.msra.mxu0 %v14219_v4  ;;  %11173 = vmatpush3.bf16.msra.mxu1 %v14222_v36 }
 0xd06   :  { %11146 = vmatprep.subr.bf16.mxu0 %v14225_v15  ;;  %11174 = vmatprep.subr.bf16.mxu1 %v15402_v0 }
 0xd09   :  { %11148 = vmatpush1.bf16.msra.mxu0 %v14229_v61  ;;  %11176 = vmatpush3.bf16.msra.mxu1 %v14232_v5 }
 0xd0a   :  { %11150 = vmatprep.subr.bf16.mxu0 %v14235_v63  ;;  %11177 = vmatprep.subr.bf16.mxu1 %v15402_v0 }
 0xd0d   :  { %11152 = vmatpush1.bf16.msra.mxu0 %v14239_v27  ;;  %11179 = vmatpush3.bf16.msra.mxu1 %v14242_v23 }
 0xd0e   :  { %11154 = vmatprep.subr.bf16.mxu0 %v14245_v33  ;;  %11180 = vmatprep.subr.bf16.mxu1 %v15402_v0 }
 0xd11   :  { %11156 = vmatpush1.bf16.msra.mxu0 %v14249_v42  ;;  %11182 = vmatpush3.bf16.msra.mxu1 %v14252_v45 }
 0xd12   :  { %11158 = vmatprep.subr.bf16.mxu0 %v14255_v43  ;;  %11183 = vmatprep.subr.bf16.mxu1 %v15402_v0 }
 0xd15   :  { %11160 = vmatpush1.bf16.msra.mxu0 %v14259_v11  ;;  %11185 = vmatpush3.bf16.msra.mxu1 %v14262_v16 }
 0xd16   :  { %11162 = vmatprep.subr.bf16.mxu0 %v14265_v35  ;;  %11186 = vmatprep.subr.bf16.mxu1 %v15402_v0 }
 0xd19   :  { %11164 = vmatpush1.bf16.msra.mxu0 %v14269_v13  ;;  %11188 = vmatpush3.bf16.msra.mxu1 %v14272_v44 }
 0xd1a   :  { %11190 = vmatprep.subr.bf16.mxu0 %v13965_v14  ;;  %11221 = vmatprep.subr.bf16.mxu1 %v15402_v0 }
 0xd1c   :  { %4758 = vmatmul.mubr.f32.vlgmr.msra.gmra.mrb[50].mxu0 %v15394_v1  ;;  %9828 = vmatmul.mubr.f32.vlgmr.msra.gmra.mrb[54].mxu1 %v15394_v1 }
 0xd1d   :  { %11192 = vmatpush1.bf16.msra.mxu0 %v13992_v21  ;;  %11223 = vmatpush3.bf16.msra.mxu1 %v13997_v20 }
 0xd1e   :  { %11194 = vmatprep.subr.bf16.mxu0 %v13999_v10  ;;  %11224 = vmatprep.subr.bf16.mxu1 %v15402_v0 }
 0xd1f   :  { %4936 = vmatprep.mubr.f32.mxu0 %v15394_v1  ;;  %9862 = vmatprep.mubr.msk.f32.mxu1 %vm13093_vm0, %v15394_v1 }
 0xd21   :  { %11196 = vmatpush1.bf16.msra.mxu0 %v14019_v24  ;;  %11226 = vmatpush3.bf16.msra.mxu1 %v14025_v31 }
 0xd22   :  { %11198 = vmatprep.subr.bf16.mxu0 %v14028_v32  ;;  %11227 = vmatprep.subr.bf16.mxu1 %v15402_v0 }
 0xd25   :  { %11200 = vmatpush1.bf16.msra.mxu0 %v14050_v62  ;;  %11229 = vmatpush3.bf16.msra.mxu1 %v14056_v55 }
 0xd26   :  { %11202 = vmatprep.subr.bf16.mxu0 %v14059_v3  ;;  %11230 = vmatprep.subr.bf16.mxu1 %v15402_v0 }
 0xd29   :  { %11204 = vmatpush1.bf16.msra.mxu0 %v14078_v48  ;;  %11232 = vmatpush3.bf16.msra.mxu1 %v14084_v51 }
 0xd2a   :  { %11206 = vmatprep.subr.bf16.mxu0 %v14087_v7  ;;  %11233 = vmatprep.subr.bf16.mxu1 %v15402_v0 }
 0xd2d   :  { %11208 = vmatpush1.bf16.msra.mxu0 %v14106_v12  ;;  %11235 = vmatpush3.bf16.msra.mxu1 %v14112_v30 }
 0xd2e   :  { %11210 = vmatprep.subr.bf16.mxu0 %v14115_v18  ;;  %11236 = vmatprep.subr.bf16.mxu1 %v15402_v0 }
 0xd31   :  { %11212 = vmatpush1.bf16.msra.mxu0 %v14134_v34  ;;  %11238 = vmatpush3.bf16.msra.mxu1 %v14140_v38 }
 0xd32   :  { %11214 = vmatprep.subr.bf16.mxu0 %v14143_v39  ;;  %11239 = vmatprep.subr.bf16.mxu1 %v15402_v0 }
 0xd35   :  { %11216 = vmatpush1.bf16.msra.mxu0 %v14162_v17  ;;  %11241 = vmatpush3.bf16.msra.mxu1 %v14168_v58 }
 0xd36   :  { %11218 = vmatprep.subr.bf16.mxu0 %v14171_v59  ;;  %11242 = vmatprep.subr.bf16.mxu1 %v15402_v0 }
 0xd39   :  { %11220 = vmatpush1.bf16.msra.mxu0 %v14184_v52  ;;  %11244 = vmatpush3.bf16.msra.mxu1 %v14187_v56 }
 0xd3a   :  { %11246 = vmatprep.subr.bf16.mxu0 %v14190_v60  ;;  %11277 = vmatprep.subr.bf16.mxu1 %v15402_v0  ;;  %v4515_v60 = vld [vmem:[#allocation2] sm:$0xff] }
 0xdaf   :  { %v4320_v53 = vpop.f32.mrb[46].mxu0  ;;  %v4391_v25 = vpop.f32.mrb[50].mxu1 }
 0xdb0   :  { %v4321_v47 = vadd.f32 %v4320_v53, %v13842_v46  ;;  %v4322_v57 = vpop.f32.mrb[47].mxu0  ;;  %v9759_v2 = vpop.f32.mrb[51].mxu1  ;;  %v4392_v19 = vadd.f32 %v4391_v25, %v13846_v49  ;;  %v4668_v46 = vrot.slane %v4515_v60, 2 }
 0xdb1   :  { %v4323_v40 = vadd.f32 %v4322_v57, %v13850_v50  ;;  %v14322_v57 = vld [vmem:[#allocation12] ss:$0 sm:$0xff] }
 0xdb2   :  { %v4412_v41 = vrot.slane %v4392_v19, %v13523_v28  ;;  %15457 = vst [vmem:[#allocation45_spill] sm:$0xff] %v14322_v57 }
 0xdb3   :  { %v4398_v9 = vcombine.low %v4321_v47, %v4323_v40  ;;  %v4685_v40 = vrot.slane %v4515_v60, 4 }
 0xdb5   :  { %v4405_v1 = vrot.slane %v4398_v9, %v13523_v28 }
 0xdb7   :  { %v4413_v56 = vcombine.low %v4405_v1, %v4412_v41 }
 0xdb9   :  { %4416 = vst [vmem:[#allocation3 + $0x1e] sm:$0x3f] %v4413_v56 }
 0xdcf   :  { %v4585_v52 = vpop.f32.mrb[48].mxu0  ;;  %v4656_v0 = vpop.f32.mrb[52].mxu1 }
 0xdd0   :  { %v4660_v59 = vadd.f32 %v4585_v52, %v4515_v60  ;;  %v4587_v58 = vpop.f32.mrb[49].mxu0  ;;  %v9794_v17 = vpop.f32.mrb[53].mxu1  ;;  %v4683_v56 = vadd.f32 %v14322_v57, %v4656_v0 }
 0xdd1   :  { %v4670_v2 = vadd.f32 %v4668_v46, %v4587_v58 }
 0xdd2   :  { %v8987_v53 = vmul.f32 -1.442695, %v4660_v59  ;;  %v4835_v59 = vrot.slane %v13811_v37, 6 }
 0xdd3   :  { %v8988_v49 = vmul.f32 -1.442695, %v4670_v2 }
 0xdd4   :  { %12519 = vpow2.f32 %v8987_v53 }
 0xdd5   :  { %12521 = vpow2.f32 %v8988_v49  ;;  %v4518_v49 = vld [vmem:[#allocation2 + $0x5c] sm:$0xf] }
 0xdde   :  { %v12520_v50 = vpop.eup %12519 }
 0xddf   :  { %v4664_v25 = vadd.f32 1.0, %v12520_v50  ;;  %v12522_v47 = vpop.eup %12521 }
 0xde0   :  { %v4674_v1 = vadd.f32 1.0, %v12522_v47 }
 0xde1   :  { %12523 = vrcp.f32 %v4664_v25 }
 0xde2   :  { %12525 = vrcp.f32 %v4674_v1 }
 0xdeb   :  { %v12524_v19 = vpop.eup %12523 }
 0xdec   :  { %v4684_v52 = vmul.f32 %v12524_v19, %v4683_v56  ;;  %v12526_v25 = vpop.eup %12525 }
 0xded   :  { %v4689_v0 = vsub.f32 1.0, %v12526_v25  ;;  %v4691_v60 = vmul.f32 0.0, %v12526_v25 }
 0xdee   :  { %v4687_v17 = vadd.f32 %v4685_v40, %v4684_v52  ;;  %v15458_v52 = vmov 0.0|0.0   ;;  %v15459_v40 = vmov 0.0  }
 0xdef   :  { %v4759_v58 = vpop.f32.mrb[50].mxu0  ;;  %v4830_v9 = vpop.f32.mrb[54].mxu1 }
 0xdf0   :  { %12527 = vtanh.f32 %v4687_v17  ;;  %v4837_v41 = vadd.f32 %v4835_v59, %v4759_v58  ;;  %v4761_v46 = vpop.f32.mrb[51].mxu0  ;;  %v9829_v53 = vpop.f32.mrb[55].mxu1  ;;  %v14341_v17 = vld [vmem:[#allocation13] ss:$0 sm:$0xff] }
 0xdf1   :  { %v4844_v50 = vadd.f32 %v4761_v46, %v4518_v49  ;;  %v4857_v58 = vadd.f32 %v14341_v17, %v4830_v9  ;;  %v4860_v46 = vrot.slane %v4518_v49, 2 }
 0xdf2   :  { %v8990_v2 = vmul.f32 -1.442695, %v4837_v41 }
 0xdf3   :  { %v8991_v47 = vmul.f32 -1.442695, %v4844_v50 }
 0xdf4   :  { %12529 = vpow2.f32 %v8990_v2 }
 0xdf5   :  { %12531 = vpow2.f32 %v8991_v47 }
 0xdfa   :  { %v12528_v28 = vpop.eup %12527 }
 0xdfb   :  { %v4690_v1 = vmul.f32 %v12528_v28, %v4689_v0 }
 0xdfd   :  { %v14326_v56 = vadd.f32 %v4691_v60, %v4690_v1  ;;  %v15460_v1 = vld [vmem:[#allocation39_spill] sm:$0xff]  ;;  %v15461_v60 = vld [vmem:[#allocation40_spill] sm:$0xff] }
 0xdfe   :  { %v12530_v37 = vpop.eup %12529 }
 0xdff   :  { %v4841_v19 = vadd.f32 1.0, %v12530_v37  ;;  %4937 = vmatmul.mubr.f32.vlgmr.msra.gmra.mrb[52].mxu0 %v14326_v56  ;;  %9863 = vmatmul.mubr.f32.vlgmr.msra.gmra.mrb[56].mxu1 %v14326_v56  ;;  %v12532_v28 = vpop.eup %12531  ;;  %v15462_v37 = vld [vmem:[#allocation41_spill] sm:$0xff] }
 0xe00   :  { %11248 = vmatpush1.bf16.msra.mxu0 %v14194_v54  ;;  %11279 = vmatpush3.bf16.msra.mxu1 %v14197_v6  ;;  %v4848_v59 = vadd.f32 1.0, %v12532_v28  ;;  %v15464_v28 = vld [vmem:[#allocation43_spill] sm:$0xff] }
 0xe01   :  { %12533 = vrcp.f32 %v4841_v19  ;;  %11250 = vmatprep.subr.bf16.mxu0 %v14200_v8  ;;  %11280 = vmatprep.subr.bf16.mxu1 %v15458_v52  ;;  %v15463_v19 = vld [vmem:[#allocation42_spill] sm:$0xff] }
 0xe02   :  { %5104 = vmatprep.mubr.f32.mxu0 %v15459_v40  ;;  %9897 = vmatprep.mubr.msk.f32.mxu1 %vm13093_vm0, %v15459_v40  ;;  %12535 = vrcp.f32 %v4848_v59  ;;  %v15465_v59 = vld [vmem:[#allocation44_spill] sm:$0xff] }
 0xe04   :  { %11252 = vmatpush1.bf16.msra.mxu0 %v14206_v22  ;;  %11282 = vmatpush3.bf16.msra.mxu1 %v14209_v26 }
 0xe05   :  { %11254 = vmatprep.subr.bf16.mxu0 %v14212_v29  ;;  %11283 = vmatprep.subr.bf16.mxu1 %v15458_v52 }
 0xe08   :  { %11256 = vmatpush1.bf16.msra.mxu0 %v14219_v4  ;;  %11285 = vmatpush3.bf16.msra.mxu1 %v14222_v36 }
 0xe09   :  { %11258 = vmatprep.subr.bf16.mxu0 %v14225_v15  ;;  %11286 = vmatprep.subr.bf16.mxu1 %v15458_v52 }
 0xe0b   :  { %v12534_v41 = vpop.eup %12533 }
 0xe0c   :  { %v4858_v53 = vmul.f32 %v12534_v41, %v4857_v58  ;;  %11260 = vmatpush1.bf16.msra.mxu0 %v14229_v61  ;;  %11288 = vmatpush3.bf16.msra.mxu1 %v14232_v5  ;;  %v12536_v9 = vpop.eup %12535  ;;  %v4868_v58 = vld [vmem:[#allocation2 + $0xc] sm:$0xff] }
 0xe0d   :  { %11262 = vmatprep.subr.bf16.mxu0 %v14235_v63  ;;  %11289 = vmatprep.subr.bf16.mxu1 %v15458_v52  ;;  %v4864_v49 = vsub.f32 1.0, %v12536_v9  ;;  %v4866_v47 = vmul.f32 0.0, %v12536_v9 }
 0xe0e   :  { %v4862_v2 = vadd.f32 %v4860_v46, %v4858_v53 }
 0xe10   :  { %12537 = vtanh.f32 %v4862_v2  ;;  %11264 = vmatpush1.bf16.msra.mxu0 %v14239_v27  ;;  %11291 = vmatpush3.bf16.msra.mxu1 %v14242_v23 }
 0xe11   :  { %11266 = vmatprep.subr.bf16.mxu0 %v14245_v33  ;;  %11292 = vmatprep.subr.bf16.mxu1 %v15458_v52 }
 0xe14   :  { %11268 = vmatpush1.bf16.msra.mxu0 %v14249_v42  ;;  %11294 = vmatpush3.bf16.msra.mxu1 %v14252_v45 }
 0xe15   :  { %11270 = vmatprep.subr.bf16.mxu0 %v14255_v43  ;;  %11295 = vmatprep.subr.bf16.mxu1 %v15458_v52 }
 0xe18   :  { %11272 = vmatpush1.bf16.msra.mxu0 %v14259_v11  ;;  %11297 = vmatpush3.bf16.msra.mxu1 %v14262_v16 }
 0xe19   :  { %11274 = vmatprep.subr.bf16.mxu0 %v14265_v35  ;;  %11298 = vmatprep.subr.bf16.mxu1 %v15458_v52 }
 0xe1a   :  { %v12538_v50 = vpop.eup %12537 }
 0xe1b   :  { %v4865_v25 = vmul.f32 %v12538_v50, %v4864_v49  ;;  %v5021_v49 = vrot.slane %v4868_v58, 2 }
 0xe1c   :  { %11276 = vmatpush1.bf16.msra.mxu0 %v14269_v13  ;;  %11300 = vmatpush3.bf16.msra.mxu1 %v14272_v44 }
 0xe1d   :  { %v14366_v0 = vadd.f32 %v4866_v47, %v4865_v25  ;;  %11302 = vmatprep.subr.bf16.mxu0 %v13965_v14  ;;  %11333 = vmatprep.subr.bf16.mxu1 %v15458_v52 }
 0xe1f   :  { %5105 = vmatmul.mubr.f32.vlgmr.msra.gmra.mrb[54].mxu0 %v14366_v0  ;;  %9898 = vmatmul.mubr.f32.vlgmr.msra.gmra.mrb[58].mxu1 %v14366_v0 }
 0xe20   :  { %11304 = vmatpush1.bf16.msra.mxu0 %v13992_v21  ;;  %11335 = vmatpush3.bf16.msra.mxu1 %v13997_v20 }
 0xe21   :  { %11306 = vmatprep.subr.bf16.mxu0 %v13999_v10  ;;  %11336 = vmatprep.subr.bf16.mxu1 %v15458_v52 }
 0xe22   :  { %5277 = vmatprep.mubr.f32.mxu0 %v15459_v40  ;;  %9932 = vmatprep.mubr.msk.f32.mxu1 %vm13093_vm0, %v15459_v40 }
 0xe24   :  { %11308 = vmatpush1.bf16.msra.mxu0 %v14019_v24  ;;  %11338 = vmatpush3.bf16.msra.mxu1 %v14025_v31 }
 0xe25   :  { %11310 = vmatprep.subr.bf16.mxu0 %v14028_v32  ;;  %11339 = vmatprep.subr.bf16.mxu1 %v15458_v52 }
 0xe28   :  { %11312 = vmatpush1.bf16.msra.mxu0 %v14050_v62  ;;  %11341 = vmatpush3.bf16.msra.mxu1 %v14056_v55 }
 0xe29   :  { %11314 = vmatprep.subr.bf16.mxu0 %v14059_v3  ;;  %11342 = vmatprep.subr.bf16.mxu1 %v15458_v52 }
 0xe2c   :  { %11316 = vmatpush1.bf16.msra.mxu0 %v14078_v48  ;;  %11344 = vmatpush3.bf16.msra.mxu1 %v14084_v51 }
 0xe2d   :  { %11318 = vmatprep.subr.bf16.mxu0 %v14087_v7  ;;  %11345 = vmatprep.subr.bf16.mxu1 %v15458_v52 }
 0xe30   :  { %11320 = vmatpush1.bf16.msra.mxu0 %v14106_v12  ;;  %11347 = vmatpush3.bf16.msra.mxu1 %v14112_v30 }
 0xe31   :  { %11322 = vmatprep.subr.bf16.mxu0 %v14115_v18  ;;  %11348 = vmatprep.subr.bf16.mxu1 %v15458_v52 }
 0xe34   :  { %11324 = vmatpush1.bf16.msra.mxu0 %v14134_v34  ;;  %11350 = vmatpush3.bf16.msra.mxu1 %v14140_v38  ;;  %v5032_v34 = vrot.slane %v4868_v58, 4 }
 0xe35   :  { %11326 = vmatprep.subr.bf16.mxu0 %v14143_v39  ;;  %11351 = vmatprep.subr.bf16.mxu1 %v15458_v52  ;;  %v4870_v39 = vld [vmem:[#allocation2 + $0x48] sm:$0xff] }
 0xe38   :  { %11328 = vmatpush1.bf16.msra.mxu0 %v15460_v1  ;;  %11353 = vmatpush3.bf16.msra.mxu1 %v15461_v60 }
 0xe39   :  { %11330 = vmatprep.subr.bf16.mxu0 %v15462_v37  ;;  %11354 = vmatprep.subr.bf16.mxu1 %v15458_v52 }
 0xe3c   :  { %11332 = vmatpush1.bf16.msra.mxu0 %v15463_v19  ;;  %11356 = vmatpush3.bf16.msra.mxu1 %v15464_v28 }
 0xe3d   :  { %11358 = vmatprep.subr.bf16.mxu0 %v15465_v59  ;;  %11389 = vmatprep.subr.bf16.mxu1 %v15458_v52 }
 0xed2   :  { %v4938_v41 = vpop.f32.mrb[52].mxu0  ;;  %v5009_v46 = vpop.f32.mrb[56].mxu1 }
 0xed3   :  { %v5013_v53 = vadd.f32 %v4938_v41, %v4868_v58  ;;  %v4940_v2 = vpop.f32.mrb[53].mxu0  ;;  %v9864_v9 = vpop.f32.mrb[57].mxu1  ;;  %v5030_v59 = vadd.f32 %v14322_v57, %v5009_v46 }
 0xed4   :  { %v5023_v25 = vadd.f32 %v5021_v49, %v4940_v2  ;;  %v5182_v9 = vrot.slane %v4870_v39, 6 }
 0xed5   :  { %v8993_v50 = vmul.f32 -1.442695, %v5013_v53 }
 0xed6   :  { %v8994_v47 = vmul.f32 -1.442695, %v5023_v25 }
 0xed7   :  { %12539 = vpow2.f32 %v8993_v50 }
 0xed8   :  { %12541 = vpow2.f32 %v8994_v47 }
 0xee1   :  { %v12540_v37 = vpop.eup %12539 }
 0xee2   :  { %v5017_v19 = vadd.f32 1.0, %v12540_v37  ;;  %v12542_v28 = vpop.eup %12541  ;;  %v4871_v37 = vld [vmem:[#allocation2 + $0x50] sm:$0xf] }
 0xee3   :  { %v5027_v60 = vadd.f32 1.0, %v12542_v28 }
 0xee4   :  { %12543 = vrcp.f32 %v5017_v19 }
 0xee5   :  { %12545 = vrcp.f32 %v5027_v60 }
 0xeee   :  { %v12544_v1 = vpop.eup %12543 }
 0xeef   :  { %v5031_v38 = vmul.f32 %v12544_v1, %v5030_v59  ;;  %v12546_v28 = vpop.eup %12545 }
 0xef0   :  { %v5036_v46 = vsub.f32 1.0, %v12546_v28  ;;  %v5038_v60 = vmul.f32 %v12546_v28, %v14326_v56  ;;  %v15468_v28 = vld [vmem:[#allocation37_spill] sm:$0xff] }
 0xef1   :  { %v5034_v41 = vadd.f32 %v5032_v34, %v5031_v38 }
 0xef2   :  { %v5106_v18 = vpop.f32.mrb[54].mxu0  ;;  %v5177_v53 = vpop.f32.mrb[58].mxu1 }
 0xef3   :  { %12547 = vtanh.f32 %v5034_v41  ;;  %v5184_v2 = vadd.f32 %v5182_v9, %v5106_v18  ;;  %v5108_v49 = vpop.f32.mrb[55].mxu0  ;;  %v9899_v50 = vpop.f32.mrb[59].mxu1  ;;  %v5198_v56 = vadd.f32 %v14341_v17, %v5177_v53  ;;  %v5201_v41 = vrot.slane %v4871_v37, 2 }
 0xef4   :  { %v5191_v19 = vadd.f32 %v5108_v49, %v4871_v37 }
 0xef5   :  { %v8995_v25 = vmul.f32 -1.442695, %v5184_v2 }
 0xef6   :  { %v8996_v47 = vmul.f32 -1.442695, %v5191_v19  ;;  %v15467_v19 = vld [vmem:[#allocation36_spill] sm:$0xff] }
 0xef7   :  { %12549 = vpow2.f32 %v8995_v25 }
 0xef8   :  { %12551 = vpow2.f32 %v8996_v47  ;;  %v15469_v47 = vld [vmem:[#allocation38_spill] sm:$0xff] }
 0xefd   :  { %v12548_v57 = vpop.eup %12547 }
 0xefe   :  { %v5037_v1 = vmul.f32 %v12548_v57, %v5036_v46  ;;  %v15470_v46 = vld [vmem:[#allocation39_spill] sm:$0xff] }
 0xf00   :  { %v14409_v34 = vadd.f32 %v5038_v60, %v5037_v1  ;;  %v15471_v1 = vld [vmem:[#allocation40_spill] sm:$0xff]  ;;  %v15472_v60 = vld [vmem:[#allocation41_spill] sm:$0xff] }
 0xf01   :  { %v12550_v38 = vpop.eup %12549 }
 0xf02   :  { %v5188_v39 = vadd.f32 1.0, %v12550_v38  ;;  %5278 = vmatmul.mubr.f32.vlgmr.msra.gmra.mrb[56].mxu0 %v14409_v34  ;;  %9933 = vmatmul.mubr.f32.vlgmr.msra.gmra.mrb[60].mxu1 %v14409_v34  ;;  %v12552_v18 = vpop.eup %12551  ;;  %v15473_v38 = vld [vmem:[#allocation42_spill] sm:$0xff] }
 0xf03   :  { %11360 = vmatpush1.bf16.msra.mxu0 %v14194_v54  ;;  %11391 = vmatpush3.bf16.msra.mxu1 %v14197_v6  ;;  %v5195_v57 = vadd.f32 1.0, %v12552_v18  ;;  %v15475_v18 = vld [vmem:[#allocation44_spill] sm:$0xff] }
 0xf04   :  { %12553 = vrcp.f32 %v5188_v39  ;;  %11362 = vmatprep.subr.bf16.mxu0 %v14200_v8  ;;  %11392 = vmatprep.subr.bf16.mxu1 %v15458_v52  ;;  %v15474_v39 = vld [vmem:[#allocation43_spill] sm:$0xff] }
 0xf05   :  { %5445 = vmatprep.mubr.f32.mxu0 %v15459_v40  ;;  %9967 = vmatprep.mubr.msk.f32.mxu1 %vm13093_vm0, %v15459_v40  ;;  %12555 = vrcp.f32 %v5195_v57  ;;  %v14489_v57 = vld [vmem:[#allocation2 + $0x18] sm:$0xff] }
 0xf07   :  { %11364 = vmatpush1.bf16.msra.mxu0 %v14206_v22  ;;  %11394 = vmatpush3.bf16.msra.mxu1 %v14209_v26 }
 0xf08   :  { %11366 = vmatprep.subr.bf16.mxu0 %v14212_v29  ;;  %11395 = vmatprep.subr.bf16.mxu1 %v15458_v52 }
 0xf0b   :  { %11368 = vmatpush1.bf16.msra.mxu0 %v14219_v4  ;;  %11397 = vmatpush3.bf16.msra.mxu1 %v14222_v36 }
 0xf0c   :  { %11370 = vmatprep.subr.bf16.mxu0 %v14225_v15  ;;  %11398 = vmatprep.subr.bf16.mxu1 %v15458_v52 }
 0xf0e   :  { %v12554_v59 = vpop.eup %12553 }
 0xf0f   :  { %v5199_v58 = vmul.f32 %v12554_v59, %v5198_v56  ;;  %11372 = vmatpush1.bf16.msra.mxu0 %v14229_v61  ;;  %11400 = vmatpush3.bf16.msra.mxu1 %v14232_v5  ;;  %v12556_v53 = vpop.eup %12555 }
 0xf10   :  { %11374 = vmatprep.subr.bf16.mxu0 %v14235_v63  ;;  %11401 = vmatprep.subr.bf16.mxu1 %v15458_v52  ;;  %v5205_v2 = vsub.f32 1.0, %v12556_v53  ;;  %v5207_v25 = vmul.f32 %v12556_v53, %v14366_v0  ;;  %v15466_v0 = vld [vmem:[#allocation35_spill] sm:$0xff]  ;;  %v5362_v53 = vrot.slane %v14489_v57, 2 }
 0xf11   :  { %v5203_v9 = vadd.f32 %v5201_v41, %v5199_v58  ;;  %15476 = vst [vmem:[#allocation35_spill] sm:$0xff] %v14489_v57 }
 0xf13   :  { %12557 = vtanh.f32 %v5203_v9  ;;  %11376 = vmatpush1.bf16.msra.mxu0 %v14239_v27  ;;  %11403 = vmatpush3.bf16.msra.mxu1 %v14242_v23 }
 0xf14   :  { %11378 = vmatprep.subr.bf16.mxu0 %v14245_v33  ;;  %11404 = vmatprep.subr.bf16.mxu1 %v15458_v52 }
 0xf17   :  { %11380 = vmatpush1.bf16.msra.mxu0 %v14249_v42  ;;  %11406 = vmatpush3.bf16.msra.mxu1 %v14252_v45 }
 0xf18   :  { %11382 = vmatprep.subr.bf16.mxu0 %v14255_v43  ;;  %11407 = vmatprep.subr.bf16.mxu1 %v15458_v52 }
 0xf1b   :  { %11384 = vmatpush1.bf16.msra.mxu0 %v14259_v11  ;;  %11409 = vmatpush3.bf16.msra.mxu1 %v14262_v16 }
 0xf1c   :  { %11386 = vmatprep.subr.bf16.mxu0 %v14265_v35  ;;  %11410 = vmatprep.subr.bf16.mxu1 %v15458_v52 }
 0xf1d   :  { %v12558_v49 = vpop.eup %12557 }
 0xf1e   :  { %v5206_v50 = vmul.f32 %v12558_v49, %v5205_v2 }
 0xf1f   :  { %11388 = vmatpush1.bf16.msra.mxu0 %v14269_v13  ;;  %11412 = vmatpush3.bf16.msra.mxu1 %v14272_v44 }
 0xf20   :  { %v14448_v37 = vadd.f32 %v5207_v25, %v5206_v50  ;;  %11414 = vmatprep.subr.bf16.mxu0 %v13965_v14  ;;  %11445 = vmatprep.subr.bf16.mxu1 %v15458_v52 }
 0xf22   :  { %5446 = vmatmul.mubr.f32.vlgmr.msra.gmra.mrb[58].mxu0 %v14448_v37  ;;  %9968 = vmatmul.mubr.f32.vlgmr.msra.gmra.mrb[62].mxu1 %v14448_v37 }
 0xf23   :  { %11416 = vmatpush1.bf16.msra.mxu0 %v13992_v21  ;;  %11447 = vmatpush3.bf16.msra.mxu1 %v13997_v20 }
 0xf24   :  { %11418 = vmatprep.subr.bf16.mxu0 %v13999_v10  ;;  %11448 = vmatprep.subr.bf16.mxu1 %v15458_v52 }
 0xf25   :  { %5618 = vmatprep.mubr.f32.mxu0 %v15459_v40  ;;  %10002 = vmatprep.mubr.msk.f32.mxu1 %vm13093_vm0, %v15459_v40 }
 0xf27   :  { %11420 = vmatpush1.bf16.msra.mxu0 %v14019_v24  ;;  %11450 = vmatpush3.bf16.msra.mxu1 %v14025_v31 }
 0xf28   :  { %11422 = vmatprep.subr.bf16.mxu0 %v14028_v32  ;;  %11451 = vmatprep.subr.bf16.mxu1 %v15458_v52 }
 0xf2b   :  { %11424 = vmatpush1.bf16.msra.mxu0 %v14050_v62  ;;  %11453 = vmatpush3.bf16.msra.mxu1 %v14056_v55 }
 0xf2c   :  { %11426 = vmatprep.subr.bf16.mxu0 %v14059_v3  ;;  %11454 = vmatprep.subr.bf16.mxu1 %v15458_v52 }
 0xf2f   :  { %11428 = vmatpush1.bf16.msra.mxu0 %v14078_v48  ;;  %11456 = vmatpush3.bf16.msra.mxu1 %v14084_v51 }
 0xf30   :  { %11430 = vmatprep.subr.bf16.mxu0 %v14087_v7  ;;  %11457 = vmatprep.subr.bf16.mxu1 %v15458_v52 }
 0xf33   :  { %11432 = vmatpush1.bf16.msra.mxu0 %v14106_v12  ;;  %11459 = vmatpush3.bf16.msra.mxu1 %v14112_v30 }
 0xf34   :  { %11434 = vmatprep.subr.bf16.mxu0 %v15466_v0  ;;  %11460 = vmatprep.subr.bf16.mxu1 %v15458_v52 }
 0xf37   :  { %11436 = vmatpush1.bf16.msra.mxu0 %v15467_v19  ;;  %11462 = vmatpush3.bf16.msra.mxu1 %v15468_v28 }
 0xf38   :  { %11438 = vmatprep.subr.bf16.mxu0 %v15469_v47  ;;  %11463 = vmatprep.subr.bf16.mxu1 %v15458_v52  ;;  %v14494_v47 = vld [vmem:[#allocation2 + $0x3c] sm:$0xff] }
 0xf39   :  { %15478 = vst [vmem:[#allocation46_spill] sm:$0xff] %v14494_v47 }
 0xf3b   :  { %11440 = vmatpush1.bf16.msra.mxu0 %v15470_v46  ;;  %11465 = vmatpush3.bf16.msra.mxu1 %v15471_v1 }
 0xf3c   :  { %11442 = vmatprep.subr.bf16.mxu0 %v15472_v60  ;;  %11466 = vmatprep.subr.bf16.mxu1 %v15458_v52  ;;  %v15477_v60 = vld [vmem:[#allocation45_spill] sm:$0xff] }
 0xf3f   :  { %11444 = vmatpush1.bf16.msra.mxu0 %v15473_v38  ;;  %11468 = vmatpush3.bf16.msra.mxu1 %v15474_v39 }
 0xf40   :  { %11470 = vmatprep.subr.bf16.mxu0 %v15475_v18  ;;  %11501 = vmatprep.subr.bf16.mxu1 %v15458_v52 }
 0xfd5   :  { %v5279_v56 = vpop.f32.mrb[56].mxu0  ;;  %v5350_v59 = vpop.f32.mrb[60].mxu1 }
 0xfd6   :  { %v5354_v58 = vadd.f32 %v5279_v56, %v14489_v57  ;;  %v5281_v41 = vpop.f32.mrb[57].mxu0  ;;  %v9934_v9 = vpop.f32.mrb[61].mxu1  ;;  %v5371_v1 = vadd.f32 %v15477_v60, %v5350_v59 }
 0xfd7   :  { %v5364_v49 = vadd.f32 %v5362_v53, %v5281_v41  ;;  %v5373_v9 = vrot.slane %v14489_v57, 4 }
 0xfd8   :  { %v8997_v2 = vmul.f32 -1.442695, %v5354_v58  ;;  %v5523_v58 = vrot.slane %v14494_v47, 6 }
 0xfd9   :  { %v8998_v50 = vmul.f32 -1.442695, %v5364_v49 }
 0xfda   :  { %12559 = vpow2.f32 %v8997_v2 }
 0xfdb   :  { %12561 = vpow2.f32 %v8998_v50 }
 0xfe4   :  { %v12560_v25 = vpop.eup %12559 }
 0xfe5   :  { %v5358_v39 = vadd.f32 1.0, %v12560_v25  ;;  %v12562_v18 = vpop.eup %12561 }
 0xfe6   :  { %v5368_v38 = vadd.f32 1.0, %v12562_v18  ;;  %v5212_v18 = vld [vmem:[#allocation2 + $0x44] sm:$0xf] }
 0xfe7   :  { %12563 = vrcp.f32 %v5358_v39 }
 0xfe8   :  { %12565 = vrcp.f32 %v5368_v38 }
 0xff1   :  { %v12564_v46 = vpop.eup %12563 }
 0xff2   :  { %v5372_v56 = vmul.f32 %v12564_v46, %v5371_v1  ;;  %v12566_v59 = vpop.eup %12565 }
 0xff3   :  { %v5377_v19 = vsub.f32 1.0, %v12566_v59  ;;  %v5379_v38 = vmul.f32 %v12566_v59, %v14409_v34  ;;  %v15481_v59 = vld [vmem:[#allocation38_spill] sm:$0xff] }
 0xff4   :  { %v5375_v28 = vadd.f32 %v5373_v9, %v5372_v56 }
 0xff5   :  { %v5447_v41 = vpop.f32.mrb[58].mxu0  ;;  %v5518_v53 = vpop.f32.mrb[62].mxu1 }
 0xff6   :  { %12567 = vtanh.f32 %v5375_v28  ;;  %v5525_v2 = vadd.f32 %v5523_v58, %v5447_v41  ;;  %v5449_v49 = vpop.f32.mrb[59].mxu0  ;;  %v9969_v39 = vpop.f32.mrb[63].mxu1  ;;  %v5539_v28 = vadd.f32 %v14341_v17, %v5518_v53  ;;  %v5542_v58 = vrot.slane %v5212_v18, 2 }
 0xff7   :  { %v5532_v25 = vadd.f32 %v5449_v49, %v5212_v18 }
 0xff8   :  { %v8999_v50 = vmul.f32 -1.442695, %v5525_v2 }
 0xff9   :  { %v9000_v60 = vmul.f32 -1.442695, %v5532_v25  ;;  %v15480_v25 = vld [vmem:[#allocation37_spill] sm:$0xff] }
 0xffa   :  { %12569 = vpow2.f32 %v8999_v50 }
 0xffb   :  { %12571 = vpow2.f32 %v9000_v60 }
0x1000   :  { %v12568_v46 = vpop.eup %12567 }
0x1001   :  { %v5378_v1 = vmul.f32 %v12568_v46, %v5377_v19  ;;  %v15482_v46 = vld [vmem:[#allocation39_spill] sm:$0xff] }
0x1003   :  { %v14499_v56 = vadd.f32 %v5379_v38, %v5378_v1  ;;  %v15483_v1 = vld [vmem:[#allocation40_spill] sm:$0xff]  ;;  %v15484_v38 = vld [vmem:[#allocation41_spill] sm:$0xff] }
0x1004   :  { %v12570_v9 = vpop.eup %12569 }
0x1005   :  { %v5529_v57 = vadd.f32 1.0, %v12570_v9  ;;  %5619 = vmatmul.mubr.f32.vlgmr.msra.gmra.mrb[60].mxu0 %v14499_v56  ;;  %10003 = vmatmul.mubr.f32.vlgmr.msra.gmra.mrb[64].mxu1 %v14499_v56  ;;  %v12572_v34 = vpop.eup %12571  ;;  %v15485_v9 = vld [vmem:[#allocation42_spill] sm:$0xff] }
0x1006   :  { %11472 = vmatpush1.bf16.msra.mxu0 %v14194_v54  ;;  %11503 = vmatpush3.bf16.msra.mxu1 %v14197_v6  ;;  %v5536_v19 = vadd.f32 1.0, %v12572_v34  ;;  %v15486_v34 = vld [vmem:[#allocation43_spill] sm:$0xff] }
0x1007   :  { %12573 = vrcp.f32 %v5529_v57  ;;  %11474 = vmatprep.subr.bf16.mxu0 %v14200_v8  ;;  %11504 = vmatprep.subr.bf16.mxu1 %v15458_v52 }
0x1008   :  { %5786 = vmatprep.mubr.f32.mxu0 %v15459_v40  ;;  %10037 = vmatprep.mubr.msk.f32.mxu1 %vm13093_vm0, %v15459_v40  ;;  %12575 = vrcp.f32 %v5536_v19  ;;  %v15487_v19 = vld [vmem:[#allocation44_spill] sm:$0xff] }
0x100a   :  { %11476 = vmatpush1.bf16.msra.mxu0 %v14206_v22  ;;  %11506 = vmatpush3.bf16.msra.mxu1 %v14209_v26 }
0x100b   :  { %11478 = vmatprep.subr.bf16.mxu0 %v14212_v29  ;;  %11507 = vmatprep.subr.bf16.mxu1 %v15458_v52 }
0x100e   :  { %11480 = vmatpush1.bf16.msra.mxu0 %v14219_v4  ;;  %11509 = vmatpush3.bf16.msra.mxu1 %v14222_v36 }
0x100f   :  { %11482 = vmatprep.subr.bf16.mxu0 %v14225_v15  ;;  %11510 = vmatprep.subr.bf16.mxu1 %v15458_v52 }
0x1011   :  { %v12574_v60 = vpop.eup %12573 }
0x1012   :  { %v5540_v57 = vmul.f32 %v12574_v60, %v5539_v28  ;;  %11484 = vmatpush1.bf16.msra.mxu0 %v14229_v61  ;;  %11512 = vmatpush3.bf16.msra.mxu1 %v14232_v5  ;;  %v12576_v53 = vpop.eup %12575  ;;  %v14579_v28 = vld [vmem:[#allocation2 + $0x24] sm:$0xff] }
0x1013   :  { %11486 = vmatprep.subr.bf16.mxu0 %v14235_v63  ;;  %11513 = vmatprep.subr.bf16.mxu1 %v15458_v52  ;;  %v5546_v2 = vsub.f32 1.0, %v12576_v53  ;;  %v5548_v50 = vmul.f32 %v12576_v53, %v14448_v37  ;;  %v15479_v37 = vld [vmem:[#allocation36_spill] sm:$0xff]  ;;  %15488 = vst [vmem:[#allocation47_spill] sm:$0xff] %v14579_v28 }
0x1014   :  { %v5544_v41 = vadd.f32 %v5542_v58, %v5540_v57 }
0x1016   :  { %12577 = vtanh.f32 %v5544_v41  ;;  %11488 = vmatpush1.bf16.msra.mxu0 %v14239_v27  ;;  %11515 = vmatpush3.bf16.msra.mxu1 %v14242_v23 }
0x1017   :  { %11490 = vmatprep.subr.bf16.mxu0 %v14245_v33  ;;  %11516 = vmatprep.subr.bf16.mxu1 %v15458_v52 }
0x101a   :  { %11492 = vmatpush1.bf16.msra.mxu0 %v14249_v42  ;;  %11518 = vmatpush3.bf16.msra.mxu1 %v14252_v45 }
0x101b   :  { %11494 = vmatprep.subr.bf16.mxu0 %v14255_v43  ;;  %11519 = vmatprep.subr.bf16.mxu1 %v15458_v52 }
0x101e   :  { %11496 = vmatpush1.bf16.msra.mxu0 %v14259_v11  ;;  %11521 = vmatpush3.bf16.msra.mxu1 %v14262_v16 }
0x101f   :  { %11498 = vmatprep.subr.bf16.mxu0 %v14265_v35  ;;  %11522 = vmatprep.subr.bf16.mxu1 %v15458_v52 }
0x1020   :  { %v12578_v49 = vpop.eup %12577 }
0x1021   :  { %v5547_v39 = vmul.f32 %v12578_v49, %v5546_v2  ;;  %v5703_v2 = vrot.slane %v14579_v28, 2 }
0x1022   :  { %11500 = vmatpush1.bf16.msra.mxu0 %v14269_v13  ;;  %11524 = vmatpush3.bf16.msra.mxu1 %v14272_v44 }
0x1023   :  { %v14538_v18 = vadd.f32 %v5548_v50, %v5547_v39  ;;  %11526 = vmatprep.subr.bf16.mxu0 %v13965_v14  ;;  %11557 = vmatprep.subr.bf16.mxu1 %v15458_v52 }
0x1025   :  { %5787 = vmatmul.mubr.f32.vlgmr.msra.gmra.mrb[62].mxu0 %v14538_v18  ;;  %10038 = vmatmul.mubr.f32.vlgmr.msra.gmra.mrb[66].mxu1 %v14538_v18 }
0x1026   :  { %11528 = vmatpush1.bf16.msra.mxu0 %v13992_v21  ;;  %11559 = vmatpush3.bf16.msra.mxu1 %v13997_v20 }
0x1027   :  { %11530 = vmatprep.subr.bf16.mxu0 %v13999_v10  ;;  %11560 = vmatprep.subr.bf16.mxu1 %v15458_v52 }
0x1028   :  { %5955 = vmatprep.mubr.f32.mxu0 %v15459_v40  ;;  %10072 = vmatprep.mubr.msk.f32.mxu1 %vm13093_vm0, %v15459_v40 }
0x102a   :  { %11532 = vmatpush1.bf16.msra.mxu0 %v14019_v24  ;;  %11562 = vmatpush3.bf16.msra.mxu1 %v14025_v31 }
0x102b   :  { %11534 = vmatprep.subr.bf16.mxu0 %v14028_v32  ;;  %11563 = vmatprep.subr.bf16.mxu1 %v15458_v52 }
0x102e   :  { %11536 = vmatpush1.bf16.msra.mxu0 %v14050_v62  ;;  %11565 = vmatpush3.bf16.msra.mxu1 %v14056_v55 }
0x102f   :  { %11538 = vmatprep.subr.bf16.mxu0 %v14059_v3  ;;  %11566 = vmatprep.subr.bf16.mxu1 %v15458_v52 }
0x1032   :  { %11540 = vmatpush1.bf16.msra.mxu0 %v14078_v48  ;;  %11568 = vmatpush3.bf16.msra.mxu1 %v14084_v51 }
0x1033   :  { %11542 = vmatprep.subr.bf16.mxu0 %v14087_v7  ;;  %11569 = vmatprep.subr.bf16.mxu1 %v15458_v52 }
0x1036   :  { %11544 = vmatpush1.bf16.msra.mxu0 %v14106_v12  ;;  %11571 = vmatpush3.bf16.msra.mxu1 %v14112_v30 }
0x1037   :  { %11546 = vmatprep.subr.bf16.mxu0 %v15466_v0  ;;  %11572 = vmatprep.subr.bf16.mxu1 %v15458_v52 }
0x103a   :  { %11548 = vmatpush1.bf16.msra.mxu0 %v15479_v37  ;;  %11574 = vmatpush3.bf16.msra.mxu1 %v15480_v25 }
0x103b   :  { %11550 = vmatprep.subr.bf16.mxu0 %v15481_v59  ;;  %11575 = vmatprep.subr.bf16.mxu1 %v15458_v52  ;;  %v14584_v59 = vld [vmem:[#allocation2 + $0x30] sm:$0xff] }
0x103e   :  { %11552 = vmatpush1.bf16.msra.mxu0 %v15482_v46  ;;  %11577 = vmatpush3.bf16.msra.mxu1 %v15483_v1 }
0x103f   :  { %11554 = vmatprep.subr.bf16.mxu0 %v15484_v38  ;;  %11578 = vmatprep.subr.bf16.mxu1 %v15458_v52  ;;  %v15489_v38 = vld [vmem:[#allocation45_spill] sm:$0xff] }
0x1042   :  { %11556 = vmatpush1.bf16.msra.mxu0 %v15485_v9  ;;  %11580 = vmatpush3.bf16.msra.mxu1 %v15486_v34 }
0x1043   :  { %11582 = vmatprep.subr.bf16.mxu0 %v15487_v19  ;;  %11613 = vmatprep.subr.bf16.mxu1 %v15458_v52 }
0x10d8   :  { %v5620_v60 = vpop.f32.mrb[60].mxu0  ;;  %v5691_v57 = vpop.f32.mrb[64].mxu1 }
0x10d9   :  { %v5695_v58 = vadd.f32 %v5620_v60, %v14579_v28  ;;  %v5622_v41 = vpop.f32.mrb[61].mxu0  ;;  %v10004_v53 = vpop.f32.mrb[65].mxu1  ;;  %v5712_v1 = vadd.f32 %v15489_v38, %v5691_v57 }
0x10da   :  { %v5705_v39 = vadd.f32 %v5703_v2, %v5622_v41  ;;  %v5714_v53 = vrot.slane %v14579_v28, 4 }
0x10db   :  { %v9001_v49 = vmul.f32 -1.442695, %v5695_v58  ;;  %v5864_v58 = vrot.slane %v14584_v59, 6 }
0x10dc   :  { %v9002_v50 = vmul.f32 -1.442695, %v5705_v39 }
0x10dd   :  { %12579 = vpow2.f32 %v9001_v49 }
0x10de   :  { %12581 = vpow2.f32 %v9002_v50 }
0x10e7   :  { %v12580_v47 = vpop.eup %12579 }
0x10e8   :  { %v5699_v34 = vadd.f32 1.0, %v12580_v47  ;;  %v12582_v19 = vpop.eup %12581 }
0x10e9   :  { %v5709_v9 = vadd.f32 1.0, %v12582_v19  ;;  %v5553_v19 = vld [vmem:[#allocation2 + $0x38] sm:$0xf] }
0x10ea   :  { %12583 = vrcp.f32 %v5699_v34 }
0x10eb   :  { %12585 = vrcp.f32 %v5709_v9 }
0x10f4   :  { %v12584_v46 = vpop.eup %12583 }
0x10f5   :  { %v5713_v60 = vmul.f32 %v12584_v46, %v5712_v1  ;;  %v12586_v38 = vpop.eup %12585 }
0x10f6   :  { %v5718_v37 = vsub.f32 1.0, %v12586_v38  ;;  %v5720_v9 = vmul.f32 %v12586_v38, %v14499_v56  ;;  %v15492_v38 = vld [vmem:[#allocation38_spill] sm:$0xff] }
0x10f7   :  { %v5716_v25 = vadd.f32 %v5714_v53, %v5713_v60 }
0x10f8   :  { %v5788_v41 = vpop.f32.mrb[62].mxu0  ;;  %v5859_v2 = vpop.f32.mrb[66].mxu1 }
0x10f9   :  { %12587 = vtanh.f32 %v5716_v25  ;;  %v5866_v49 = vadd.f32 %v5864_v58, %v5788_v41  ;;  %v5790_v47 = vpop.f32.mrb[63].mxu0  ;;  %v10039_v34 = vpop.f32.mrb[67].mxu1  ;;  %v5880_v25 = vadd.f32 %v14341_v17, %v5859_v2  ;;  %v5883_v41 = vrot.slane %v5553_v19, 2 }
0x10fa   :  { %v5873_v50 = vadd.f32 %v5790_v47, %v5553_v19 }
0x10fb   :  { %v9003_v39 = vmul.f32 -1.442695, %v5866_v49 }
0x10fc   :  { %v9004_v57 = vmul.f32 -1.442695, %v5873_v50  ;;  %v15491_v50 = vld [vmem:[#allocation37_spill] sm:$0xff] }
0x10fd   :  { %12589 = vpow2.f32 %v9003_v39 }
0x10fe   :  { %12591 = vpow2.f32 %v9004_v57  ;;  %v15493_v57 = vld [vmem:[#allocation39_spill] sm:$0xff] }
0x1103   :  { %v12588_v46 = vpop.eup %12587 }
0x1104   :  { %v5719_v1 = vmul.f32 %v12588_v46, %v5718_v37  ;;  %v15494_v46 = vld [vmem:[#allocation40_spill] sm:$0xff] }
0x1106   :  { %v14589_v60 = vadd.f32 %v5720_v9, %v5719_v1  ;;  %v15495_v1 = vld [vmem:[#allocation41_spill] sm:$0xff]  ;;  %v15496_v9 = vld [vmem:[#allocation42_spill] sm:$0xff] }
0x1107   :  { %v12590_v53 = vpop.eup %12589 }
0x1108   :  { %v5870_v28 = vadd.f32 1.0, %v12590_v53  ;;  %5956 = vmatmul.mubr.f32.vlgmr.msra.gmra.mrb[64].mxu0 %v14589_v60  ;;  %10073 = vmatmul.mubr.f32.vlgmr.msra.gmra.mrb[68].mxu1 %v14589_v60  ;;  %v12592_v56 = vpop.eup %12591  ;;  %v15497_v53 = vld [vmem:[#allocation43_spill] sm:$0xff] }
0x1109   :  { %11584 = vmatpush1.bf16.msra.mxu0 %v14194_v54  ;;  %11615 = vmatpush3.bf16.msra.mxu1 %v14197_v6  ;;  %v5877_v37 = vadd.f32 1.0, %v12592_v56  ;;  %v15498_v56 = vld [vmem:[#allocation44_spill] sm:$0xff] }
0x110a   :  { %12593 = vrcp.f32 %v5870_v28  ;;  %11586 = vmatprep.subr.bf16.mxu0 %v14200_v8  ;;  %11616 = vmatprep.subr.bf16.mxu1 %v15458_v52 }
0x110b   :  { %6122 = vmatprep.mubr.f32.mxu0 %v15459_v40  ;;  %10107 = vmatprep.mubr.msk.f32.mxu1 %vm13093_vm0, %v15459_v40  ;;  %12595 = vrcp.f32 %v5877_v37 }
0x110d   :  { %11588 = vmatpush1.bf16.msra.mxu0 %v14206_v22  ;;  %11618 = vmatpush3.bf16.msra.mxu1 %v14209_v26 }
0x110e   :  { %11590 = vmatprep.subr.bf16.mxu0 %v14212_v29  ;;  %11619 = vmatprep.subr.bf16.mxu1 %v15458_v52 }
0x1111   :  { %11592 = vmatpush1.bf16.msra.mxu0 %v14219_v4  ;;  %11621 = vmatpush3.bf16.msra.mxu1 %v14222_v36 }
0x1112   :  { %11594 = vmatprep.subr.bf16.mxu0 %v14225_v15  ;;  %11622 = vmatprep.subr.bf16.mxu1 %v15458_v52 }
0x1114   :  { %v12594_v28 = vpop.eup %12593 }
0x1115   :  { %v5881_v58 = vmul.f32 %v12594_v28, %v5880_v25  ;;  %11596 = vmatpush1.bf16.msra.mxu0 %v14229_v61  ;;  %11624 = vmatpush3.bf16.msra.mxu1 %v14232_v5  ;;  %v12596_v17 = vpop.eup %12595 }
0x1116   :  { %11598 = vmatprep.subr.bf16.mxu0 %v14235_v63  ;;  %11625 = vmatprep.subr.bf16.mxu1 %v15458_v52  ;;  %v5887_v2 = vsub.f32 1.0, %v12596_v17  ;;  %v5889_v39 = vmul.f32 %v12596_v17, %v14538_v18  ;;  %v15490_v18 = vld [vmem:[#allocation36_spill] sm:$0xff] }
0x1117   :  { %v5885_v49 = vadd.f32 %v5883_v41, %v5881_v58 }
0x1119   :  { %12597 = vtanh.f32 %v5885_v49  ;;  %11600 = vmatpush1.bf16.msra.mxu0 %v14239_v27  ;;  %11627 = vmatpush3.bf16.msra.mxu1 %v14242_v23  ;;  %v6039_v49 = vrot.slane %v14584_v59, 2 }
0x111a   :  { %11602 = vmatprep.subr.bf16.mxu0 %v14245_v33  ;;  %11628 = vmatprep.subr.bf16.mxu1 %v15458_v52 }
0x111d   :  { %11604 = vmatpush1.bf16.msra.mxu0 %v14249_v42  ;;  %11630 = vmatpush3.bf16.msra.mxu1 %v14252_v45 }
0x111e   :  { %11606 = vmatprep.subr.bf16.mxu0 %v14255_v43  ;;  %11631 = vmatprep.subr.bf16.mxu1 %v15458_v52 }
0x1121   :  { %11608 = vmatpush1.bf16.msra.mxu0 %v14259_v11  ;;  %11633 = vmatpush3.bf16.msra.mxu1 %v14262_v16 }
0x1122   :  { %11610 = vmatprep.subr.bf16.mxu0 %v14265_v35  ;;  %11634 = vmatprep.subr.bf16.mxu1 %v15458_v52 }
0x1123   :  { %v12598_v47 = vpop.eup %12597 }
0x1124   :  { %v5888_v34 = vmul.f32 %v12598_v47, %v5887_v2 }
0x1125   :  { %11612 = vmatpush1.bf16.msra.mxu0 %v14269_v13  ;;  %11636 = vmatpush3.bf16.msra.mxu1 %v14272_v44 }
0x1126   :  { %v14628_v19 = vadd.f32 %v5889_v39, %v5888_v34  ;;  %11638 = vmatprep.subr.bf16.mxu0 %v13965_v14  ;;  %11669 = vmatprep.subr.bf16.mxu1 %v15458_v52 }
0x1128   :  { %6123 = vmatmul.mubr.f32.vlgmr.msra.gmra.mrb[66].mxu0 %v14628_v19  ;;  %10108 = vmatmul.mubr.f32.vlgmr.msra.gmra.mrb[70].mxu1 %v14628_v19 }
0x1129   :  { %11640 = vmatpush1.bf16.msra.mxu0 %v13992_v21  ;;  %11671 = vmatpush3.bf16.msra.mxu1 %v13997_v20 }
0x112a   :  { %11642 = vmatprep.subr.bf16.mxu0 %v13999_v10  ;;  %11672 = vmatprep.subr.bf16.mxu1 %v15458_v52 }
0x112b   :  { %6290 = vmatprep.mubr.f32.mxu0 %v15459_v40  ;;  %10142 = vmatprep.mubr.msk.f32.mxu1 %vm13093_vm0, %v15459_v40 }
0x112d   :  { %11644 = vmatpush1.bf16.msra.mxu0 %v14019_v24  ;;  %11674 = vmatpush3.bf16.msra.mxu1 %v14025_v31 }
0x112e   :  { %11646 = vmatprep.subr.bf16.mxu0 %v14028_v32  ;;  %11675 = vmatprep.subr.bf16.mxu1 %v15458_v52 }
0x1131   :  { %11648 = vmatpush1.bf16.msra.mxu0 %v14050_v62  ;;  %11677 = vmatpush3.bf16.msra.mxu1 %v14056_v55 }
0x1132   :  { %11650 = vmatprep.subr.bf16.mxu0 %v14059_v3  ;;  %11678 = vmatprep.subr.bf16.mxu1 %v15458_v52 }
0x1135   :  { %11652 = vmatpush1.bf16.msra.mxu0 %v14078_v48  ;;  %11680 = vmatpush3.bf16.msra.mxu1 %v14084_v51 }
0x1136   :  { %11654 = vmatprep.subr.bf16.mxu0 %v14087_v7  ;;  %11681 = vmatprep.subr.bf16.mxu1 %v15458_v52 }
0x1139   :  { %11656 = vmatpush1.bf16.msra.mxu0 %v14106_v12  ;;  %11683 = vmatpush3.bf16.msra.mxu1 %v14112_v30 }
0x113a   :  { %11658 = vmatprep.subr.bf16.mxu0 %v15466_v0  ;;  %11684 = vmatprep.subr.bf16.mxu1 %v15458_v52 }
0x113d   :  { %11660 = vmatpush1.bf16.msra.mxu0 %v15490_v18  ;;  %11686 = vmatpush3.bf16.msra.mxu1 %v15491_v50 }
0x113e   :  { %11662 = vmatprep.subr.bf16.mxu0 %v15492_v38  ;;  %11687 = vmatprep.subr.bf16.mxu1 %v15458_v52 }
0x1141   :  { %11664 = vmatpush1.bf16.msra.mxu0 %v15493_v57  ;;  %11689 = vmatpush3.bf16.msra.mxu1 %v15494_v46 }
0x1142   :  { %11666 = vmatprep.subr.bf16.mxu0 %v15495_v1  ;;  %11690 = vmatprep.subr.bf16.mxu1 %v15458_v52 }
0x1145   :  { %11668 = vmatpush1.bf16.msra.mxu0 %v15496_v9  ;;  %11692 = vmatpush3.bf16.msra.mxu1 %v15497_v53  ;;  %v14671_v9 = vld [vmem:[#allocation12] ss:$0 sm:$0xff] }
0x1146   :  { %11694 = vmatprep.subr.bf16.mxu0 %v15498_v56  ;;  %11725 = vmatprep.subr.bf16.mxu1 %v15458_v52  ;;  %15499 = vst [vmem:[#allocation45_spill] sm:$0xff] %v14671_v9 }
0x11db   :  { %v5957_v37 = vpop.f32.mrb[64].mxu0  ;;  %v6028_v25 = vpop.f32.mrb[68].mxu1 }
0x11dc   :  { %v6032_v28 = vadd.f32 %v5957_v37, %v14584_v59  ;;  %v5959_v58 = vpop.f32.mrb[65].mxu0  ;;  %v10074_v41 = vpop.f32.mrb[69].mxu1  ;;  %v6048_v1 = vadd.f32 %v14671_v9, %v6028_v25 }
0x11dd   :  { %v6041_v2 = vadd.f32 %v6039_v49, %v5959_v58  ;;  %v6050_v41 = vrot.slane %v14584_v59, 4 }
0x11de   :  { %v9005_v17 = vmul.f32 -1.442695, %v6032_v28  ;;  %v15500_v28 = vld [vmem:[#allocation47_spill] sm:$0xff] }
0x11df   :  { %v9006_v47 = vmul.f32 -1.442695, %v6041_v2  ;;  %v6199_v58 = vrot.slane %v15500_v28, 6 }
0x11e0   :  { %12599 = vpow2.f32 %v9005_v17 }
0x11e1   :  { %12601 = vpow2.f32 %v9006_v47 }
0x11ea   :  { %v12600_v34 = vpop.eup %12599 }
0x11eb   :  { %v6036_v39 = vadd.f32 1.0, %v12600_v34  ;;  %v12602_v53 = vpop.eup %12601 }
0x11ec   :  { %v6045_v56 = vadd.f32 1.0, %v12602_v53  ;;  %v5551_v53 = vld [vmem:[#allocation2 + $0x2c] sm:$0xf] }
0x11ed   :  { %12603 = vrcp.f32 %v6036_v39 }
0x11ee   :  { %12605 = vrcp.f32 %v6045_v56 }
0x11f7   :  { %v12604_v46 = vpop.eup %12603 }
0x11f8   :  { %v6049_v37 = vmul.f32 %v12604_v46, %v6048_v1  ;;  %v12606_v50 = vpop.eup %12605 }
0x11f9   :  { %v6054_v9 = vsub.f32 1.0, %v12606_v50  ;;  %v6056_v1 = vmul.f32 %v12606_v50, %v14589_v60 }
0x11fa   :  { %v6052_v57 = vadd.f32 %v6050_v41, %v6049_v37 }
0x11fb   :  { %v6124_v49 = vpop.f32.mrb[66].mxu0  ;;  %v6195_v17 = vpop.f32.mrb[70].mxu1 }
0x11fc   :  { %12607 = vtanh.f32 %v6052_v57  ;;  %v6201_v2 = vadd.f32 %v6199_v58, %v6124_v49  ;;  %v6126_v47 = vpop.f32.mrb[67].mxu0  ;;  %v10109_v34 = vpop.f32.mrb[71].mxu1  ;;  %v6218_v58 = vrot.slane %v5551_v53, 2 }
0x11fd   :  { %v6208_v38 = vadd.f32 %v6126_v47, %v5551_v53 }
0x11fe   :  { %v9007_v39 = vmul.f32 -1.442695, %v6201_v2 }
0x11ff   :  { %v9008_v25 = vmul.f32 -1.442695, %v6208_v38  ;;  %v14696_v38 = vld [vmem:[#allocation13] ss:$0 sm:$0xff] }
0x1200   :  { %12609 = vpow2.f32 %v9007_v39  ;;  %v6215_v57 = vadd.f32 %v14696_v38, %v6195_v17 }
0x1201   :  { %12611 = vpow2.f32 %v9008_v25  ;;  %v15502_v25 = vld [vmem:[#allocation38_spill] sm:$0xff] }
0x1206   :  { %v12608_v46 = vpop.eup %12607 }
0x1207   :  { %v6055_v59 = vmul.f32 %v12608_v46, %v6054_v9  ;;  %v15503_v46 = vld [vmem:[#allocation39_spill] sm:$0xff] }
0x1209   :  { %v14677_v56 = vadd.f32 %v6056_v1, %v6055_v59  ;;  %v15504_v59 = vld [vmem:[#allocation40_spill] sm:$0xff]  ;;  %v15505_v1 = vld [vmem:[#allocation41_spill] sm:$0xff] }
0x120a   :  { %v12610_v37 = vpop.eup %12609 }
0x120b   :  { %v6205_v41 = vadd.f32 1.0, %v12610_v37  ;;  %6291 = vmatmul.mubr.f32.vlgmr.msra.gmra.mrb[68].mxu0 %v14677_v56  ;;  %10143 = vmatmul.mubr.f32.vlgmr.msra.gmra.mrb[72].mxu1 %v14677_v56  ;;  %v12612_v60 = vpop.eup %12611  ;;  %v15506_v37 = vld [vmem:[#allocation42_spill] sm:$0xff] }
0x120c   :  { %11696 = vmatpush1.bf16.msra.mxu0 %v14194_v54  ;;  %11727 = vmatpush3.bf16.msra.mxu1 %v14197_v6  ;;  %v6212_v50 = vadd.f32 1.0, %v12612_v60  ;;  %v15508_v60 = vld [vmem:[#allocation44_spill] sm:$0xff] }
0x120d   :  { %12613 = vrcp.f32 %v6205_v41  ;;  %11698 = vmatprep.subr.bf16.mxu0 %v14200_v8  ;;  %11728 = vmatprep.subr.bf16.mxu1 %v15458_v52  ;;  %v15507_v41 = vld [vmem:[#allocation43_spill] sm:$0xff] }
0x120e   :  { %6457 = vmatprep.mubr.f32.mxu0 %v15459_v40  ;;  %10177 = vmatprep.mubr.msk.f32.mxu1 %vm13093_vm0, %v15459_v40  ;;  %12615 = vrcp.f32 %v6212_v50 }
0x1210   :  { %11700 = vmatpush1.bf16.msra.mxu0 %v14206_v22  ;;  %11730 = vmatpush3.bf16.msra.mxu1 %v14209_v26 }
0x1211   :  { %11702 = vmatprep.subr.bf16.mxu0 %v14212_v29  ;;  %11731 = vmatprep.subr.bf16.mxu1 %v15458_v52 }
0x1214   :  { %11704 = vmatpush1.bf16.msra.mxu0 %v14219_v4  ;;  %11733 = vmatpush3.bf16.msra.mxu1 %v14222_v36 }
0x1215   :  { %11706 = vmatprep.subr.bf16.mxu0 %v14225_v15  ;;  %11734 = vmatprep.subr.bf16.mxu1 %v15458_v52 }
0x1217   :  { %v12614_v9 = vpop.eup %12613 }
0x1218   :  { %v6216_v28 = vmul.f32 %v12614_v9, %v6215_v57  ;;  %11708 = vmatpush1.bf16.msra.mxu0 %v14229_v61  ;;  %11736 = vmatpush3.bf16.msra.mxu1 %v14232_v5  ;;  %v12616_v17 = vpop.eup %12615  ;;  %v15509_v9 = vld [vmem:[#allocation46_spill] sm:$0xff] }
0x1219   :  { %11710 = vmatprep.subr.bf16.mxu0 %v14235_v63  ;;  %11737 = vmatprep.subr.bf16.mxu1 %v15458_v52  ;;  %v6222_v2 = vsub.f32 1.0, %v12616_v17  ;;  %v6224_v39 = vmul.f32 %v12616_v17, %v14628_v19  ;;  %v15501_v19 = vld [vmem:[#allocation37_spill] sm:$0xff]  ;;  %v6374_v17 = vrot.slane %v15509_v9, 2 }
0x121a   :  { %v6220_v49 = vadd.f32 %v6218_v58, %v6216_v28 }
0x121c   :  { %12617 = vtanh.f32 %v6220_v49  ;;  %11712 = vmatpush1.bf16.msra.mxu0 %v14239_v27  ;;  %11739 = vmatpush3.bf16.msra.mxu1 %v14242_v23 }
0x121d   :  { %11714 = vmatprep.subr.bf16.mxu0 %v14245_v33  ;;  %11740 = vmatprep.subr.bf16.mxu1 %v15458_v52 }
0x1220   :  { %11716 = vmatpush1.bf16.msra.mxu0 %v14249_v42  ;;  %11742 = vmatpush3.bf16.msra.mxu1 %v14252_v45 }
0x1221   :  { %11718 = vmatprep.subr.bf16.mxu0 %v14255_v43  ;;  %11743 = vmatprep.subr.bf16.mxu1 %v15458_v52 }
0x1224   :  { %11720 = vmatpush1.bf16.msra.mxu0 %v14259_v11  ;;  %11745 = vmatpush3.bf16.msra.mxu1 %v14262_v16 }
0x1225   :  { %11722 = vmatprep.subr.bf16.mxu0 %v14265_v35  ;;  %11746 = vmatprep.subr.bf16.mxu1 %v15458_v52 }
0x1226   :  { %v12618_v47 = vpop.eup %12617 }
0x1227   :  { %v6223_v34 = vmul.f32 %v12618_v47, %v6222_v2 }
0x1228   :  { %11724 = vmatpush1.bf16.msra.mxu0 %v14269_v13  ;;  %11748 = vmatpush3.bf16.msra.mxu1 %v14272_v44 }
0x1229   :  { %v14718_v53 = vadd.f32 %v6224_v39, %v6223_v34  ;;  %11750 = vmatprep.subr.bf16.mxu0 %v13965_v14  ;;  %11781 = vmatprep.subr.bf16.mxu1 %v15458_v52 }
0x122b   :  { %6458 = vmatmul.mubr.f32.vlgmr.msra.gmra.mrb[70].mxu0 %v14718_v53  ;;  %10178 = vmatmul.mubr.f32.vlgmr.msra.gmra.mrb[74].mxu1 %v14718_v53 }
0x122c   :  { %11752 = vmatpush1.bf16.msra.mxu0 %v13992_v21  ;;  %11783 = vmatpush3.bf16.msra.mxu1 %v13997_v20 }
0x122d   :  { %11754 = vmatprep.subr.bf16.mxu0 %v13999_v10  ;;  %11784 = vmatprep.subr.bf16.mxu1 %v15458_v52 }
0x122e   :  { %6625 = vmatprep.mubr.f32.mxu0 %v15459_v40  ;;  %10212 = vmatprep.mubr.msk.f32.mxu1 %vm13093_vm0, %v15459_v40 }
0x1230   :  { %11756 = vmatpush1.bf16.msra.mxu0 %v14019_v24  ;;  %11786 = vmatpush3.bf16.msra.mxu1 %v14025_v31 }
0x1231   :  { %11758 = vmatprep.subr.bf16.mxu0 %v14028_v32  ;;  %11787 = vmatprep.subr.bf16.mxu1 %v15458_v52 }
0x1234   :  { %11760 = vmatpush1.bf16.msra.mxu0 %v14050_v62  ;;  %11789 = vmatpush3.bf16.msra.mxu1 %v14056_v55 }
0x1235   :  { %11762 = vmatprep.subr.bf16.mxu0 %v14059_v3  ;;  %11790 = vmatprep.subr.bf16.mxu1 %v15458_v52 }
0x1238   :  { %11764 = vmatpush1.bf16.msra.mxu0 %v14078_v48  ;;  %11792 = vmatpush3.bf16.msra.mxu1 %v14084_v51 }
0x1239   :  { %11766 = vmatprep.subr.bf16.mxu0 %v14087_v7  ;;  %11793 = vmatprep.subr.bf16.mxu1 %v15458_v52 }
0x123c   :  { %11768 = vmatpush1.bf16.msra.mxu0 %v14106_v12  ;;  %11795 = vmatpush3.bf16.msra.mxu1 %v14112_v30 }
0x123d   :  { %11770 = vmatprep.subr.bf16.mxu0 %v15466_v0  ;;  %11796 = vmatprep.subr.bf16.mxu1 %v15458_v52 }
0x1240   :  { %11772 = vmatpush1.bf16.msra.mxu0 %v15490_v18  ;;  %11798 = vmatpush3.bf16.msra.mxu1 %v15501_v19  ;;  %v15511_v19 = vld [vmem:[#allocation35_spill] sm:$0xff] }
0x1241   :  { %11774 = vmatprep.subr.bf16.mxu0 %v15502_v25  ;;  %11799 = vmatprep.subr.bf16.mxu1 %v15458_v52  ;;  %v6534_v18 = vrot.slane %v15511_v19, 6 }
0x1244   :  { %11776 = vmatpush1.bf16.msra.mxu0 %v15503_v46  ;;  %11801 = vmatpush3.bf16.msra.mxu1 %v15504_v59 }
0x1245   :  { %11778 = vmatprep.subr.bf16.mxu0 %v15505_v1  ;;  %11802 = vmatprep.subr.bf16.mxu1 %v15458_v52  ;;  %v15510_v1 = vld [vmem:[#allocation45_spill] sm:$0xff] }
0x1248   :  { %11780 = vmatpush1.bf16.msra.mxu0 %v15506_v37  ;;  %11804 = vmatpush3.bf16.msra.mxu1 %v15507_v41 }
0x1249   :  { %11806 = vmatprep.subr.bf16.mxu0 %v15508_v60  ;;  %11837 = vmatprep.subr.bf16.mxu1 %v15458_v52 }
0x12de   :  { %v6292_v50 = vpop.f32.mrb[68].mxu0  ;;  %v6363_v57 = vpop.f32.mrb[72].mxu1 }
0x12df   :  { %v6367_v28 = vadd.f32 %v6292_v50, %v15509_v9  ;;  %v6294_v58 = vpop.f32.mrb[69].mxu0  ;;  %v10144_v49 = vpop.f32.mrb[73].mxu1  ;;  %v6383_v59 = vadd.f32 %v15510_v1, %v6363_v57  ;;  %v6385_v50 = vrot.slane %v15509_v9, 4 }
0x12e0   :  { %v6376_v47 = vadd.f32 %v6374_v17, %v6294_v58 }
0x12e1   :  { %v9009_v2 = vmul.f32 -1.442695, %v6367_v28 }
0x12e2   :  { %v9010_v34 = vmul.f32 -1.442695, %v6376_v47 }
0x12e3   :  { %12619 = vpow2.f32 %v9009_v2 }
0x12e4   :  { %12621 = vpow2.f32 %v9010_v34 }
0x12ed   :  { %v12620_v39 = vpop.eup %12619 }
0x12ee   :  { %v6371_v37 = vadd.f32 1.0, %v12620_v39  ;;  %v12622_v41 = vpop.eup %12621 }
0x12ef   :  { %v6380_v60 = vadd.f32 1.0, %v12622_v41 }
0x12f0   :  { %12623 = vrcp.f32 %v6371_v37  ;;  %v5210_v37 = vld [vmem:[#allocation2 + $0x20] sm:$0xf] }
0x12f1   :  { %12625 = vrcp.f32 %v6380_v60 }
0x12fa   :  { %v12624_v46 = vpop.eup %12623 }
0x12fb   :  { %v6384_v25 = vmul.f32 %v12624_v46, %v6383_v59  ;;  %v12626_v41 = vpop.eup %12625 }
0x12fc   :  { %v6389_v1 = vsub.f32 1.0, %v12626_v41 }
0x12fd   :  { %v6387_v49 = vadd.f32 %v6385_v50, %v6384_v25  ;;  %v6391_v25 = vmul.f32 %v12626_v41, %v14677_v56 }
0x12fe   :  { %v6459_v28 = vpop.f32.mrb[70].mxu0  ;;  %v6530_v58 = vpop.f32.mrb[74].mxu1 }
0x12ff   :  { %12627 = vtanh.f32 %v6387_v49  ;;  %v6536_v17 = vadd.f32 %v6534_v18, %v6459_v28  ;;  %v6461_v2 = vpop.f32.mrb[71].mxu0  ;;  %v10179_v47 = vpop.f32.mrb[75].mxu1  ;;  %v6553_v28 = vrot.slane %v5210_v37, 2 }
0x1300   :  { %v6543_v39 = vadd.f32 %v6461_v2, %v5210_v37 }
0x1301   :  { %v9011_v34 = vmul.f32 -1.442695, %v6536_v17 }
0x1302   :  { %v9012_v57 = vmul.f32 -1.442695, %v6543_v39 }
0x1303   :  { %12629 = vpow2.f32 %v9011_v34 }
0x1304   :  { %12631 = vpow2.f32 %v9012_v57 }
0x1309   :  { %v12628_v46 = vpop.eup %12627 }
0x130a   :  { %v6390_v59 = vmul.f32 %v12628_v46, %v6389_v1  ;;  %v6550_v1 = vadd.f32 %v14696_v38, %v6530_v58 }
0x130c   :  { %v14765_v60 = vadd.f32 %v6391_v25, %v6390_v59 }
0x130d   :  { %v12630_v19 = vpop.eup %12629 }
0x130e   :  { %v6540_v9 = vadd.f32 1.0, %v12630_v19  ;;  %6626 = vmatmul.mubr.f32.vlgmr.msra.gmra.mrb[72].mxu0 %v14765_v60  ;;  %10213 = vmatmul.mubr.f32.vlgmr.msra.gmra.mrb[76].mxu1 %v14765_v60  ;;  %v12632_v18 = vpop.eup %12631 }
0x130f   :  { %11808 = vmatpush1.bf16.msra.mxu0 %v14194_v54  ;;  %11839 = vmatpush3.bf16.msra.mxu1 %v14197_v6  ;;  %v6547_v56 = vadd.f32 1.0, %v12632_v18 }
0x1310   :  { %12633 = vrcp.f32 %v6540_v9  ;;  %11810 = vmatprep.subr.bf16.mxu0 %v14200_v8  ;;  %11840 = vmatprep.subr.bf16.mxu1 %v15458_v52  ;;  %v15521_v9 = vld [vmem:[#allocation45_spill] sm:$0xff] }
0x1311   :  { %6792 = vmatprep.mubr.f32.mxu0 %v15459_v40  ;;  %10247 = vmatprep.mubr.msk.f32.mxu1 %vm13093_vm0, %v15459_v40  ;;  %12635 = vrcp.f32 %v6547_v56 }
0x1313   :  { %11812 = vmatpush1.bf16.msra.mxu0 %v14206_v22  ;;  %11842 = vmatpush3.bf16.msra.mxu1 %v14209_v26 }
0x1314   :  { %11814 = vmatprep.subr.bf16.mxu0 %v14212_v29  ;;  %11843 = vmatprep.subr.bf16.mxu1 %v15458_v52 }
0x1317   :  { %11816 = vmatpush1.bf16.msra.mxu0 %v14219_v4  ;;  %11845 = vmatpush3.bf16.msra.mxu1 %v14222_v36 }
0x1318   :  { %11818 = vmatprep.subr.bf16.mxu0 %v14225_v15  ;;  %11846 = vmatprep.subr.bf16.mxu1 %v15458_v52 }
0x131a   :  { %v12634_v50 = vpop.eup %12633 }
0x131b   :  { %v6551_v49 = vmul.f32 %v12634_v50, %v6550_v1  ;;  %11820 = vmatpush1.bf16.msra.mxu0 %v14229_v61  ;;  %11848 = vmatpush3.bf16.msra.mxu1 %v14232_v5  ;;  %v12636_v58 = vpop.eup %12635 }
0x131c   :  { %11822 = vmatprep.subr.bf16.mxu0 %v14235_v63  ;;  %11849 = vmatprep.subr.bf16.mxu1 %v15458_v52  ;;  %v6557_v2 = vsub.f32 1.0, %v12636_v58  ;;  %v6559_v37 = vmul.f32 %v12636_v58, %v14718_v53 }
0x131d   :  { %v6555_v17 = vadd.f32 %v6553_v28, %v6551_v49  ;;  %v12746_v28 = vld [vmem:[#allocation2 + $0xc] sm:$0xff] }
0x131f   :  { %12637 = vtanh.f32 %v6555_v17  ;;  %11824 = vmatpush1.bf16.msra.mxu0 %v14239_v27  ;;  %11851 = vmatpush3.bf16.msra.mxu1 %v14242_v23  ;;  %v6869_v17 = vrot.slane %v12746_v28, 6 }
0x1320   :  { %11826 = vmatprep.subr.bf16.mxu0 %v14245_v33  ;;  %11852 = vmatprep.subr.bf16.mxu1 %v15458_v52 }
0x1323   :  { %11828 = vmatpush1.bf16.msra.mxu0 %v14249_v42  ;;  %11854 = vmatpush3.bf16.msra.mxu1 %v14252_v45 }
0x1324   :  { %11830 = vmatprep.subr.bf16.mxu0 %v14255_v43  ;;  %11855 = vmatprep.subr.bf16.mxu1 %v15458_v52 }
0x1327   :  { %11832 = vmatpush1.bf16.msra.mxu0 %v14259_v11  ;;  %11857 = vmatpush3.bf16.msra.mxu1 %v14262_v16 }
0x1328   :  { %11834 = vmatprep.subr.bf16.mxu0 %v14265_v35  ;;  %11858 = vmatprep.subr.bf16.mxu1 %v15458_v52 }
0x1329   :  { %v12638_v47 = vpop.eup %12637 }
0x132a   :  { %v6558_v34 = vmul.f32 %v12638_v47, %v6557_v2 }
0x132b   :  { %11836 = vmatpush1.bf16.msra.mxu0 %v14269_v13  ;;  %11860 = vmatpush3.bf16.msra.mxu1 %v14272_v44 }
0x132c   :  { %v14804_v39 = vadd.f32 %v6559_v37, %v6558_v34  ;;  %11862 = vmatprep.subr.bf16.mxu0 %v13965_v14  ;;  %11893 = vmatprep.subr.bf16.mxu1 %v15458_v52  ;;  %v15512_v14 = vld [vmem:[#allocation36_spill] sm:$0xff] }
0x132e   :  { %6793 = vmatmul.mubr.f32.vlgmr.msra.gmra.mrb[74].mxu0 %v14804_v39  ;;  %10248 = vmatmul.mubr.f32.vlgmr.msra.gmra.mrb[78].mxu1 %v14804_v39 }
0x132f   :  { %11864 = vmatpush1.bf16.msra.mxu0 %v13992_v21  ;;  %11895 = vmatpush3.bf16.msra.mxu1 %v13997_v20  ;;  %v15513_v21 = vld [vmem:[#allocation37_spill] sm:$0xff]  ;;  %v15514_v20 = vld [vmem:[#allocation38_spill] sm:$0xff] }
0x1330   :  { %11866 = vmatprep.subr.bf16.mxu0 %v13999_v10  ;;  %11896 = vmatprep.subr.bf16.mxu1 %v15458_v52  ;;  %v15515_v10 = vld [vmem:[#allocation39_spill] sm:$0xff] }
0x1331   :  { %6960 = vmatprep.mubr.f32.mxu0 %v15459_v40  ;;  %10282 = vmatprep.mubr.msk.f32.mxu1 %vm13093_vm0, %v15459_v40 }
0x1333   :  { %11868 = vmatpush1.bf16.msra.mxu0 %v14019_v24  ;;  %11898 = vmatpush3.bf16.msra.mxu1 %v14025_v31  ;;  %v15516_v24 = vld [vmem:[#allocation40_spill] sm:$0xff]  ;;  %v15517_v31 = vld [vmem:[#allocation41_spill] sm:$0xff] }
0x1334   :  { %11870 = vmatprep.subr.bf16.mxu0 %v14028_v32  ;;  %11899 = vmatprep.subr.bf16.mxu1 %v15458_v52  ;;  %v15518_v32 = vld [vmem:[#allocation42_spill] sm:$0xff] }
0x1337   :  { %11872 = vmatpush1.bf16.msra.mxu0 %v14050_v62  ;;  %11901 = vmatpush3.bf16.msra.mxu1 %v14056_v55  ;;  %v15519_v62 = vld [vmem:[#allocation43_spill] sm:$0xff]  ;;  %v15520_v55 = vld [vmem:[#allocation44_spill] sm:$0xff] }
0x1338   :  { %11874 = vmatprep.subr.bf16.mxu0 %v14059_v3  ;;  %11902 = vmatprep.subr.bf16.mxu1 %v15458_v52 }
0x133b   :  { %11876 = vmatpush1.bf16.msra.mxu0 %v14078_v48  ;;  %11904 = vmatpush3.bf16.msra.mxu1 %v14084_v51  ;;  %v12745_v51 = vld [vmem:[#allocation2 + $0x48] sm:$0xff] }
0x133c   :  { %11878 = vmatprep.subr.bf16.mxu0 %v14087_v7  ;;  %11905 = vmatprep.subr.bf16.mxu1 %v15458_v52  ;;  %v6720_v50 = vrot.slane %v12745_v51, 4 }
0x133f   :  { %11880 = vmatpush1.bf16.msra.mxu0 %v14106_v12  ;;  %11907 = vmatpush3.bf16.msra.mxu1 %v14112_v30 }
0x1340   :  { %11882 = vmatprep.subr.bf16.mxu0 %v15466_v0  ;;  %11908 = vmatprep.subr.bf16.mxu1 %v15458_v52  ;;  %v6709_v0 = vrot.slane %v12745_v51, 2 }
0x1343   :  { %11884 = vmatpush1.bf16.msra.mxu0 %v15512_v14  ;;  %11910 = vmatpush3.bf16.msra.mxu1 %v15513_v21  ;;  %v4869_v21 = vld [vmem:[#allocation2 + $0x14] sm:$0xf] }
0x1344   :  { %11886 = vmatprep.subr.bf16.mxu0 %v15514_v20  ;;  %11911 = vmatprep.subr.bf16.mxu1 %v15458_v52 }
0x1347   :  { %11888 = vmatpush1.bf16.msra.mxu0 %v15515_v10  ;;  %11913 = vmatpush3.bf16.msra.mxu1 %v15516_v24 }
0x1348   :  { %11890 = vmatprep.subr.bf16.mxu0 %v15517_v31  ;;  %11914 = vmatprep.subr.bf16.mxu1 %v15458_v52 }
0x134b   :  { %11892 = vmatpush1.bf16.msra.mxu0 %v15518_v32  ;;  %11916 = vmatpush3.bf16.msra.mxu1 %v15519_v62 }
0x134c   :  { %11918 = vmatprep.subr.bf16.mxu0 %v15520_v55  ;;  %11949 = vmatprep.subr.bf16.mxu1 %v15458_v52 }
0x13e1   :  { %v6627_v3 = vpop.f32.mrb[72].mxu0  ;;  %v6698_v48 = vpop.f32.mrb[76].mxu1 }
0x13e2   :  { %v6702_v7 = vadd.f32 %v12745_v51, %v6627_v3  ;;  %v6629_v12 = vpop.f32.mrb[73].mxu0  ;;  %v10214_v30 = vpop.f32.mrb[77].mxu1  ;;  %v6718_v18 = vadd.f32 %v15521_v9, %v6698_v48 }
0x13e3   :  { %v6711_v41 = vadd.f32 %v6709_v0, %v6629_v12 }
0x13e4   :  { %v9013_v53 = vmul.f32 -1.442695, %v6702_v7 }
0x13e5   :  { %v9014_v57 = vmul.f32 -1.442695, %v6711_v41 }
0x13e6   :  { %12639 = vpow2.f32 %v9013_v53 }
0x13e7   :  { %12641 = vpow2.f32 %v9014_v57 }
0x13f0   :  { %v12640_v46 = vpop.eup %12639 }
0x13f1   :  { %v6706_v59 = vadd.f32 1.0, %v12640_v46  ;;  %v12642_v25 = vpop.eup %12641  ;;  %v12748_v46 = vld [vmem:[#allocation2] sm:$0xff] }
0x13f2   :  { %v6715_v19 = vadd.f32 1.0, %v12642_v25 }
0x13f3   :  { %12643 = vrcp.f32 %v6706_v59  ;;  %v7204_v59 = vrot.slane %v12748_v46, 6  ;;  %v7370_v46 = vld [vmem:[#allocation21 + $0x30] sm:$0xff] }
0x13f4   :  { %12645 = vrcp.f32 %v6715_v19 }
0x13fd   :  { %v12644_v56 = vpop.eup %12643 }
0x13fe   :  { %v6719_v1 = vmul.f32 %v12644_v56, %v6718_v18  ;;  %v12646_v10 = vpop.eup %12645 }
0x13ff   :  { %v6724_v31 = vsub.f32 1.0, %v12646_v10  ;;  %v6726_v55 = vmul.f32 %v12646_v10, %v14765_v60 }
0x1400   :  { %v6722_v49 = vadd.f32 %v6720_v50, %v6719_v1 }
0x1401   :  { %v6794_v58 = vpop.f32.mrb[74].mxu0  ;;  %v6865_v2 = vpop.f32.mrb[78].mxu1 }
0x1402   :  { %12647 = vtanh.f32 %v6722_v49  ;;  %v6871_v47 = vadd.f32 %v6869_v17, %v6794_v58  ;;  %v6796_v34 = vpop.f32.mrb[75].mxu0  ;;  %v10249_v37 = vpop.f32.mrb[79].mxu1  ;;  %v4516_v49 = vld [vmem:[#allocation2 + $0x8] sm:$0xf] }
0x1403   :  { %v6878_v20 = vadd.f32 %v6796_v34, %v4869_v21 }
0x1404   :  { %v9015_v14 = vmul.f32 -1.442695, %v6871_v47 }
0x1405   :  { %v9016_v24 = vmul.f32 -1.442695, %v6878_v20 }
0x1406   :  { %12649 = vpow2.f32 %v9015_v14 }
0x1407   :  { %12651 = vpow2.f32 %v9016_v24 }
0x140c   :  { %v12648_v32 = vpop.eup %12647 }
0x140d   :  { %v6725_v62 = vmul.f32 %v12648_v32, %v6724_v31 }
0x140f   :  { %v14847_v3 = vadd.f32 %v6726_v55, %v6725_v62  ;;  %v7223_v62 = vrot.slane %v4516_v49, 2 }
0x1410   :  { %v12650_v48 = vpop.eup %12649 }
0x1411   :  { %v6875_v51 = vadd.f32 1.0, %v12650_v48  ;;  %6961 = vmatmul.mubr.f32.vlgmr.msra.gmra.mrb[76].mxu0 %v14847_v3  ;;  %10283 = vmatmul.mubr.f32.vlgmr.msra.gmra.mrb[80].mxu1 %v14847_v3  ;;  %v12652_v60 = vpop.eup %12651 }
0x1412   :  { %11920 = vmatpush1.bf16.msra.mxu0 %v14194_v54  ;;  %11951 = vmatpush3.bf16.msra.mxu1 %v14197_v6  ;;  %v6882_v54 = vadd.f32 1.0, %v12652_v60  ;;  %v6885_v6 = vadd.f32 %v14696_v38, %v6865_v2 }
0x1413   :  { %12653 = vrcp.f32 %v6875_v51  ;;  %11922 = vmatprep.subr.bf16.mxu0 %v14200_v8  ;;  %11952 = vmatprep.subr.bf16.mxu1 %v15458_v52 }
0x1414   :  { %7127 = vmatprep.mubr.f32.mxu0 %v15459_v40  ;;  %10317 = vmatprep.mubr.msk.f32.mxu1 %vm13093_vm0, %v15459_v40  ;;  %12655 = vrcp.f32 %v6882_v54 }
0x1416   :  { %11924 = vmatpush1.bf16.msra.mxu0 %v14206_v22  ;;  %11954 = vmatpush3.bf16.msra.mxu1 %v14209_v26  ;;  %v6888_v26 = vrot.slane %v4869_v21, 2 }
0x1417   :  { %11926 = vmatprep.subr.bf16.mxu0 %v14212_v29  ;;  %11955 = vmatprep.subr.bf16.mxu1 %v15458_v52 }
0x141a   :  { %11928 = vmatpush1.bf16.msra.mxu0 %v14219_v4  ;;  %11957 = vmatpush3.bf16.msra.mxu1 %v14222_v36 }
0x141b   :  { %11930 = vmatprep.subr.bf16.mxu0 %v14225_v15  ;;  %11958 = vmatprep.subr.bf16.mxu1 %v15458_v52 }
0x141d   :  { %v12654_v8 = vpop.eup %12653 }
0x141e   :  { %v6886_v22 = vmul.f32 %v12654_v8, %v6885_v6  ;;  %11932 = vmatpush1.bf16.msra.mxu0 %v14229_v61  ;;  %11960 = vmatpush3.bf16.msra.mxu1 %v14232_v5  ;;  %v12656_v4 = vpop.eup %12655  ;;  %v15522_v8 = vld [vmem:[#allocation34_spill] sm:$0xff] }
0x141f   :  { %11934 = vmatprep.subr.bf16.mxu0 %v14235_v63  ;;  %11961 = vmatprep.subr.bf16.mxu1 %v15458_v52  ;;  %v6892_v36 = vsub.f32 1.0, %v12656_v4  ;;  %v6894_v5 = vmul.f32 %v12656_v4, %v14804_v39 }
0x1420   :  { %v6890_v29 = vadd.f32 %v6888_v26, %v6886_v22 }
0x1422   :  { %12657 = vtanh.f32 %v6890_v29  ;;  %11936 = vmatpush1.bf16.msra.mxu0 %v14239_v27  ;;  %11963 = vmatpush3.bf16.msra.mxu1 %v14242_v23 }
0x1423   :  { %11938 = vmatprep.subr.bf16.mxu0 %v14245_v33  ;;  %11964 = vmatprep.subr.bf16.mxu1 %v15458_v52  ;;  %v12747_v33 = vld [vmem:[#allocation2 + $0x54] sm:$0xff] }
0x1424   :  { %v7055_v41 = vrot.slane %v12747_v33, 4 }
0x1426   :  { %11940 = vmatpush1.bf16.msra.mxu0 %v14249_v42  ;;  %11966 = vmatpush3.bf16.msra.mxu1 %v14252_v45 }
0x1427   :  { %11942 = vmatprep.subr.bf16.mxu0 %v14255_v43  ;;  %11967 = vmatprep.subr.bf16.mxu1 %v15458_v52 }
0x142a   :  { %11944 = vmatpush1.bf16.msra.mxu0 %v14259_v11  ;;  %11969 = vmatpush3.bf16.msra.mxu1 %v14262_v16  ;;  %v7044_v11 = vrot.slane %v12747_v33, 2 }
0x142b   :  { %11946 = vmatprep.subr.bf16.mxu0 %v14265_v35  ;;  %11970 = vmatprep.subr.bf16.mxu1 %v15458_v52 }
0x142c   :  { %v12658_v15 = vpop.eup %12657 }
0x142d   :  { %v6893_v61 = vmul.f32 %v12658_v15, %v6892_v36 }
0x142e   :  { %11948 = vmatpush1.bf16.msra.mxu0 %v14269_v13  ;;  %11972 = vmatpush3.bf16.msra.mxu1 %v14272_v44 }
0x142f   :  { %v14886_v63 = vadd.f32 %v6894_v5, %v6893_v61  ;;  %11973 = vmatprep.subr.bf16.mxu0 %v15458_v52 }
0x1431   :  { %7128 = vmatmul.mubr.f32.vlgmr.msra.gmra.mrb[78].mxu0 %v14886_v63  ;;  %10318 = vmatmul.mubr.f32.vlgmr.msra.gmra.mrb[82].mxu1 %v14886_v63 }
0x1432   :  { %10336 = vmatprep.mubr.msk.f32.mxu0 %vm13093_vm0, %v15459_v40  ;;  %7495 = vmatprep.mubr.f32.mxu1 %v15459_v40 }
0x14e4   :  { %v6962_v27 = vpop.f32.mrb[76].mxu0  ;;  %v7033_v23 = vpop.f32.mrb[80].mxu1 }
0x14e5   :  { %v7037_v42 = vadd.f32 %v12747_v33, %v6962_v27  ;;  %v6964_v45 = vpop.f32.mrb[77].mxu0  ;;  %v10284_v43 = vpop.f32.mrb[81].mxu1  ;;  %v7053_v30 = vadd.f32 %v15521_v9, %v7033_v23  ;;  %v7275_v27 = vld [vmem:[#allocation18 + $0x8] sm:$0xff]  ;;  %v7276_v33 = vld [vmem:[#allocation18 + $0x10] sm:$0xff] }
0x14e6   :  { %v7046_v35 = vadd.f32 %v7044_v11, %v6964_v45  ;;  %v7278_v43 = vld [vmem:[#allocation18 + $0x20] sm:$0xff]  ;;  %v7279_v11 = vld [vmem:[#allocation18 + $0x28] sm:$0xff] }
0x14e7   :  { %v9017_v16 = vmul.f32 -1.442695, %v7037_v42  ;;  %v7277_v42 = vld [vmem:[#allocation18 + $0x18] sm:$0xff] }
0x14e8   :  { %v9018_v13 = vmul.f32 -1.442695, %v7046_v35  ;;  %v11977_v45 = vpack.c.bf16 %v7277_v42, %v7276_v33  ;;  %v7280_v35 = vld [vmem:[#allocation18 + $0x30] sm:$0xff]  ;;  %v7395_v42 = vld [vmem:[#allocation21 + $0xf8] sm:$0xff] }
0x14e9   :  { %12659 = vpow2.f32 %v9017_v16  ;;  %v11980_v16 = vpack.c.bf16 %v7279_v11, %v7278_v43  ;;  %v7394_v11 = vld [vmem:[#allocation21 + $0xf0] sm:$0xff] }
0x14ea   :  { %12661 = vpow2.f32 %v9018_v13  ;;  %v7281_v13 = vld [vmem:[#allocation18 + $0x38] sm:$0xff] }
0x14f3   :  { %v12660_v44 = vpop.eup %12659 }
0x14f4   :  { %v7041_v39 = vadd.f32 1.0, %v12660_v44  ;;  %v12662_v7 = vpop.eup %12661  ;;  %v11983_v44 = vpack.c.bf16 %v7281_v13, %v7280_v35  ;;  %v7396_v35 = vld [vmem:[#allocation21 + $0x100] sm:$0xff] }
0x14f5   :  { %v7050_v12 = vadd.f32 1.0, %v12662_v7  ;;  %v7368_v7 = vld [vmem:[#allocation21 + $0x20] sm:$0xff] }
0x14f6   :  { %12663 = vrcp.f32 %v7041_v39  ;;  %v7365_v39 = vld [vmem:[#allocation21 + $0x8] sm:$0xff] }
0x14f7   :  { %12665 = vrcp.f32 %v7050_v12  ;;  %v7364_v12 = vld [vmem:[#allocation21] sm:$0xff] }
0x1500   :  { %v12664_v0 = vpop.eup %12663 }
0x1501   :  { %v7054_v53 = vmul.f32 %v12664_v0, %v7053_v30  ;;  %v12666_v17 = vpop.eup %12665  ;;  %v14909_v30 = vpack.c.bf16 %v7368_v7, %v7365_v39  ;;  %v7367_v0 = vld [vmem:[#allocation21 + $0x18] sm:$0xff]  ;;  %v7401_v7 = vld [vmem:[#allocation21 + $0x128] sm:$0xff] }
0x1502   :  { %v7059_v9 = vsub.f32 1.0, %v12666_v17  ;;  %v7061_v34 = vmul.f32 %v12666_v17, %v14847_v3  ;;  %v7383_v17 = vld [vmem:[#allocation21 + $0x98] sm:$0xff] }
0x1503   :  { %v7057_v57 = vadd.f32 %v7055_v41, %v7054_v53  ;;  %v14911_v53 = vpack.c.bf16 %v7367_v0, %v7364_v12  ;;  %v7371_v41 = vld [vmem:[#allocation21 + $0x38] sm:$0xff]  ;;  %11986 = vmatprep.subr.bf16.mxu1 %v14909_v30  ;;  %v7404_v12 = vld [vmem:[#allocation21 + $0x140] sm:$0xff] }
0x1504   :  { %v7129_v25 = vpop.f32.mrb[78].mxu0  ;;  %v7200_v19 = vpop.f32.mrb[82].mxu1  ;;  %v7400_v0 = vld [vmem:[#allocation21 + $0x120] sm:$0xff] }
0x1505   :  { %12667 = vtanh.f32 %v7057_v57  ;;  %v7206_v18 = vadd.f32 %v7204_v59, %v7129_v25  ;;  %v7131_v56 = vpop.f32.mrb[79].mxu0  ;;  %v10319_v1 = vpop.f32.mrb[83].mxu1  ;;  %v7220_v24 = vadd.f32 %v14696_v38, %v7200_v19  ;;  %v7374_v57 = vld [vmem:[#allocation21 + $0x50] sm:$0xff]  ;;  %v7373_v25 = vld [vmem:[#allocation21 + $0x48] sm:$0xff]  ;;  %11988 = vmatpush1.bf16.msra.mxu1 %v14911_v53 }
0x1506   :  { %v7213_v28 = vadd.f32 %v7131_v56, %v4516_v49  ;;  %v14914_v59 = vpack.c.bf16 %v7374_v57, %v7371_v41  ;;  %v14917_v19 = vpack.c.bf16 %v7373_v25, %v7370_v46  ;;  %v7380_v56 = vld [vmem:[#allocation21 + $0x80] sm:$0xff]  ;;  %v7379_v49 = vld [vmem:[#allocation21 + $0x78] sm:$0xff]  ;;  %v14971_v41 = vpack.c.bf16 %v7404_v12, %v7401_v7  ;;  %v7402_v46 = vld [vmem:[#allocation21 + $0x130] sm:$0xff] }
0x1507   :  { %v9019_v50 = vmul.f32 -1.442695, %v7206_v18  ;;  %v7377_v18 = vld [vmem:[#allocation21 + $0x68] sm:$0xff]  ;;  %v7403_v57 = vld [vmem:[#allocation21 + $0x138] sm:$0xff]  ;;  %v7427_v7 = vld [vmem:[#allocation22 + $0x70] sm:$0xff] }
0x1508   :  { %v9020_v58 = vmul.f32 -1.442695, %v7213_v28  ;;  %11990 = vmatprep.subr.bf16.mxu1 %v14914_v59  ;;  %v14920_v1 = vpack.c.bf16 %v7380_v56, %v7377_v18  ;;  %v7405_v25 = vld [vmem:[#allocation21 + $0x148] sm:$0xff]  ;;  %v14974_v18 = vpack.c.bf16 %v7403_v57, %v7400_v0  ;;  %v7428_v12 = vld [vmem:[#allocation22 + $0x78] sm:$0xff] }
0x1509   :  { %12669 = vpow2.f32 %v9019_v50  ;;  %v7376_v50 = vld [vmem:[#allocation21 + $0x60] sm:$0xff]  ;;  %11992 = vmatpush1.bf16.msra.mxu1 %v14917_v19  ;;  %v14976_v56 = vpack.c.bf16 %v7405_v25, %v7402_v46  ;;  %v15043_v0 = vpack.c.bf16 %v7428_v12, %v7427_v7  ;;  %v7430_v57 = vld [vmem:[#allocation3] sm:$0x3f]  ;;  %v7682_v7 = vld [vmem:[#allocation3 + $0x6] sm:$0x3f] }
0x150a   :  { %12671 = vpow2.f32 %v9020_v58  ;;  %v14923_v28 = vpack.c.bf16 %v7379_v49, %v7376_v50  ;;  %11994 = vmatprep.subr.bf16.mxu1 %v14920_v1  ;;  %v7386_v58 = vld [vmem:[#allocation21 + $0xb0] sm:$0xff]  ;;  %v7407_v50 = vld [vmem:[#allocation21 + $0x158] sm:$0xff] }
0x150b   :  { %v7410_v49 = vld [vmem:[#allocation21 + $0x170] sm:$0xff] }
0x150d   :  { %11996 = vmatpush1.bf16.msra.mxu1 %v14923_v28 }
0x150f   :  { %v12668_v2 = vpop.eup %12667 }
0x1510   :  { %v7060_v47 = vmul.f32 %v12668_v2, %v7059_v9  ;;  %v14926_v9 = vpack.c.bf16 %v7386_v58, %v7383_v17  ;;  %v7382_v2 = vld [vmem:[#allocation21 + $0x90] sm:$0xff]  ;;  %v14979_v58 = vpack.c.bf16 %v7410_v49, %v7407_v50 }
0x1511   :  { %v7406_v17 = vld [vmem:[#allocation21 + $0x150] sm:$0xff] }
0x1512   :  { %v7062_v37 = vadd.f32 %v7061_v34, %v7060_v47  ;;  %v7385_v47 = vld [vmem:[#allocation21 + $0xa8] sm:$0xff]  ;;  %11998 = vmatprep.subr.bf16.mxu1 %v14926_v9 }
0x1513   :  { %v12670_v14 = vpop.eup %12669  ;;  %v14929_v34 = vpack.c.bf16 %v7385_v47, %v7382_v2  ;;  %v7409_v2 = vld [vmem:[#allocation21 + $0x168] sm:$0xff]  ;;  %v7408_v47 = vld [vmem:[#allocation21 + $0x160] sm:$0xff] }
0x1514   :  { %v7210_v21 = vadd.f32 1.0, %v12670_v14  ;;  %v12672_v20 = vpop.eup %12671  ;;  %v7392_v14 = vld [vmem:[#allocation21 + $0xe0] sm:$0xff] }
0x1515   :  { %v7217_v10 = vadd.f32 1.0, %v12672_v20  ;;  %v7388_v20 = vld [vmem:[#allocation21 + $0xc0] sm:$0xff]  ;;  %12000 = vmatpush1.bf16.msra.mxu1 %v14929_v34 }
0x1516   :  { %12673 = vrcp.f32 %v7210_v21 }
0x1517   :  { %12675 = vrcp.f32 %v7217_v10  ;;  %v7391_v10 = vld [vmem:[#allocation21 + $0xd8] sm:$0xff] }
0x1520   :  { %v12674_v31 = vpop.eup %12673 }
0x1521   :  { %v7221_v32 = vmul.f32 %v12674_v31, %v7220_v24  ;;  %v12676_v48 = vpop.eup %12675  ;;  %v14935_v24 = vpack.c.bf16 %v7391_v10, %v7388_v20  ;;  %v9023_v10 = vld [vmem:[#allocation19] ss:$0 sm:$0xff] }
0x1522   :  { %v7227_v51 = vsub.f32 1.0, %v12676_v48  ;;  %v7229_v3 = vmul.f32 %v12676_v48, %v14886_v63  ;;  %v7274_v63 = vld [vmem:[#allocation18] sm:$0xff]  ;;  %v9021_v48 = vld [vmem:[#allocation15] ss:$0 sm:$0xff] }
0x1523   :  { %v7225_v55 = vadd.f32 %v7223_v62, %v7221_v32  ;;  %v11974_v23 = vpack.c.bf16 %v7275_v27, %v7274_v63  ;;  %v7390_v27 = vld [vmem:[#allocation21 + $0xd0] sm:$0xff] }
0x1525   :  { %12677 = vtanh.f32 %v7225_v55  ;;  %11975 = vmatpush3.bf16.msra.mxu0 %v11974_v23  ;;  %v7393_v23 = vld [vmem:[#allocation21 + $0xe8] sm:$0xff] }
0x1526   :  { %11976 = vmatprep.subr.bf16.mxu0 %v15458_v52  ;;  %v14957_v33 = vpack.c.bf16 %v7393_v23, %v7390_v27  ;;  %v7422_v27 = vld [vmem:[#allocation22 + $0x48] sm:$0xff] }
0x1529   :  { %11978 = vmatpush3.bf16.msra.mxu0 %v11977_v45  ;;  %v7398_v45 = vld [vmem:[#allocation21 + $0x110] sm:$0xff] }
0x152a   :  { %11979 = vmatprep.subr.bf16.mxu0 %v15458_v52  ;;  %v14962_v43 = vpack.c.bf16 %v7398_v45, %v7395_v42  ;;  %v7423_v42 = vld [vmem:[#allocation22 + $0x50] sm:$0xff]  ;;  %v7424_v45 = vld [vmem:[#allocation22 + $0x58] sm:$0xff] }
0x152d   :  { %11981 = vmatpush3.bf16.msra.mxu0 %v11980_v16  ;;  %v7397_v16 = vld [vmem:[#allocation21 + $0x108] sm:$0xff] }
0x152e   :  { %11982 = vmatprep.subr.bf16.mxu0 %v15458_v52  ;;  %v14964_v13 = vpack.c.bf16 %v7397_v16, %v7394_v11  ;;  %v7425_v11 = vld [vmem:[#allocation22 + $0x60] sm:$0xff]  ;;  %v15036_v16 = vpack.c.bf16 %v7424_v45, %v7423_v42 }
0x152f   :  { %v12678_v60 = vpop.eup %12677 }
0x1530   :  { %v7228_v54 = vmul.f32 %v12678_v60, %v7227_v51  ;;  %v7366_v60 = vld [vmem:[#allocation21 + $0x10] sm:$0xff] }
0x1531   :  { %11984 = vmatpush3.bf16.msra.mxu0 %v11983_v44  ;;  %v7399_v44 = vld [vmem:[#allocation21 + $0x118] sm:$0xff] }
0x1532   :  { %v7230_v6 = vadd.f32 %v7229_v3, %v7228_v54  ;;  %12017 = vmatprep.subr.bf16.mxu0 %v15458_v52  ;;  %v7369_v54 = vld [vmem:[#allocation21 + $0x28] sm:$0xff]  ;;  %v9022_v3 = vld [vmem:[#allocation16] ss:$0 sm:$0xff]  ;;  %v14967_v39 = vpack.c.bf16 %v7399_v44, %v7396_v35 }
0x1533   :  { %v7426_v35 = vld [vmem:[#allocation22 + $0x68] sm:$0xff] }
0x1534   :  { %v7238_v22 = vrot.slane %v7230_v6, %v15522_v8  ;;  %v14940_v8 = vpack.c.bf16 %v7369_v54, %v7366_v60  ;;  %v7415_v54 = vld [vmem:[#allocation22 + $0x10] sm:$0xff]  ;;  %v15039_v44 = vpack.c.bf16 %v7426_v35, %v7425_v11 }
0x1536   :  { %7239 = vrot.lane.b32.xlu0 %v7238_v22, %s13096_s12 }
0x15a8   :  { %v7240_v38 = vpop.permute.xlu0 %7239 }
0x15a9   :  { %v7242_v26 = vsel %vm375_vm2, %v7062_v37, %v7240_v38  ;;  %v7389_v37 = vld [vmem:[#allocation21 + $0xc8] sm:$0xff]  ;;  %v7372_v38 = vld [vmem:[#allocation21 + $0x40] sm:$0xff] }
0x15aa   :  { %v7244_v29 = vsel %vm7243_vm3, %v7242_v26, 0.0  ;;  %v14932_v21 = vpack.c.bf16 %v7392_v14, %v7389_v37  ;;  %v7411_v37 = vld [vmem:[#allocation21 + $0x178] sm:$0xff]  ;;  %v14982_v14 = vpack.c.bf16 %v7409_v2, %v7406_v17  ;;  %v7580_v2 = vrot.slane %v7430_v57, 2 }
0x15ab   :  { %7245 = vadd.xlane.f32.xlu0 %v7244_v29  ;;  %v14986_v20 = vpack.c.bf16 %v7411_v37, %v7408_v47 }
0x15ac   :  { %12002 = vmatprep.subr.bf16.mxu1 %v14932_v21 }
0x15ad   :  { %12004 = vmatpush1.bf16.msra.mxu1 %v14935_v24 }
0x15ae   :  { %12006 = vmatprep.subr.bf16.mxu1 %v14962_v43 }
0x15b1   :  { %12008 = vmatpush1.bf16.msra.mxu1 %v14964_v13 }
0x15b2   :  { %12010 = vmatprep.subr.bf16.mxu1 %v14971_v41 }
0x15b5   :  { %12012 = vmatpush1.bf16.msra.mxu1 %v14974_v18 }
0x15b6   :  { %12014 = vmatprep.subr.bf16.mxu1 %v14979_v58 }
0x15b9   :  { %12016 = vmatpush1.bf16.msra.mxu1 %v14982_v14 }
0x15ba   :  { %12041 = vmatprep.subr.bf16.mxu1 %v15458_v52 }
0x1638   :  { %v7246_v4 = vpop.xlane.xlu0 %7245 }
0x1639   :  { %v7248_v36 = vmul.f32 0.015625, %v7246_v4  ;;  %v7378_v4 = vld [vmem:[#allocation21 + $0x70] sm:$0xff] }
0x163b   :  { %v14901_v15 = vsub.f32 %v7242_v26, %v7248_v36  ;;  %v7375_v26 = vld [vmem:[#allocation21 + $0x58] sm:$0xff]  ;;  %v7381_v36 = vld [vmem:[#allocation21 + $0x88] sm:$0xff] }
0x163c   :  { %v14943_v29 = vpack.c.bf16 %v7375_v26, %v7372_v38  ;;  %v7418_v38 = vld [vmem:[#allocation22 + $0x28] sm:$0xff] }
0x163d   :  { %v7250_v61 = vmul.f32 %v14901_v15, %v14901_v15 }
0x163f   :  { %v7251_v5 = vsel %vm7243_vm3, %v7250_v61, 0.0  ;;  %v7384_v61 = vld [vmem:[#allocation21 + $0xa0] sm:$0xff] }
0x1640   :  { %7252 = vadd.xlane.f32.xlu1 %v7251_v5  ;;  %v7387_v5 = vld [vmem:[#allocation21 + $0xb8] sm:$0xff] }
0x1641   :  { %v14953_v63 = vpack.c.bf16 %v7387_v5, %v7384_v61  ;;  %v7421_v5 = vld [vmem:[#allocation22 + $0x40] sm:$0xff] }
0x1642   :  { %v15032_v23 = vpack.c.bf16 %v7422_v27, %v7421_v5 }
0x16cd   :  { %v7253_v31 = vpop.xlane.xlu1 %7252 }
0x16ce   :  { %v7254_v32 = vmul.f32 0.015625, %v7253_v31 }
0x16d0   :  { %v7255_v62 = vadd.f32 1e-05, %v7254_v32 }
0x16d2   :  { %12679 = vrsqrt.f32 %v7255_v62 }
0x16dc   :  { %v12680_v55 = vpop.eup %12679 }
0x16dd   :  { %v7257_v51 = vmul.f32 %v12680_v55, %v14901_v15  ;;  %v14949_v15 = vpack.c.bf16 %v7381_v36, %v7378_v4  ;;  %v7419_v4 = vld [vmem:[#allocation22 + $0x30] sm:$0xff]  ;;  %v7420_v36 = vld [vmem:[#allocation22 + $0x38] sm:$0xff] }
0x16de   :  { %v15028_v61 = vpack.c.bf16 %v7420_v36, %v7419_v4 }
0x16df   :  { %v7265_v6 = vmul.f32 %v9021_v48, %v7257_v51  ;;  %v7413_v48 = vld [vmem:[#allocation22] sm:$0xff]  ;;  %v7414_v51 = vld [vmem:[#allocation22 + $0x8] sm:$0xff] }
0x16e0   :  { %v15016_v60 = vpack.c.bf16 %v7414_v51, %v7413_v48  ;;  %v15051_v48 = vld [vmem:[%s15380_s19] ss:$0 sm:$0xff] }
0x16e1   :  { %v7273_v22 = vadd.f32 %v9022_v3, %v7265_v6  ;;  %v7416_v3 = vld [vmem:[#allocation22 + $0x18] sm:$0xff] }
0x16e2   :  { %v15020_v6 = vpack.c.bf16 %v7416_v3, %v7415_v54 }
0x16e3   :  { %10337 = vmatmul.mubr.msk.f32.vlgmr.msra.gmra.mrb[80].mxu0 %vm7289_vm4, %v7273_v22  ;;  %v7417_v22 = vld [vmem:[#allocation22 + $0x20] sm:$0xff] }
0x16e4   :  { %12019 = vmatpush3.bf16.msra.mxu0 %v14940_v8  ;;  %10371 = vmatprep.mubr.msk.f32.mxu0 %vm13093_vm0, %v15459_v40  ;;  %v15024_v26 = vpack.c.bf16 %v7418_v38, %v7417_v22  ;;  %v7597_v22 = vrot.slane %v7430_v57, 4 }
0x16e5   :  { %12020 = vmatprep.subr.bf16.mxu0 %v15458_v52 }
0x16e8   :  { %12022 = vmatpush3.bf16.msra.mxu0 %v14943_v29 }
0x16e9   :  { %12023 = vmatprep.subr.bf16.mxu0 %v15458_v52 }
0x16ec   :  { %12025 = vmatpush3.bf16.msra.mxu0 %v14949_v15 }
0x16ed   :  { %12026 = vmatprep.subr.bf16.mxu0 %v15458_v52 }
0x16f0   :  { %12028 = vmatpush3.bf16.msra.mxu0 %v14953_v63 }
0x16f1   :  { %12029 = vmatprep.subr.bf16.mxu0 %v15458_v52 }
0x16f4   :  { %12031 = vmatpush3.bf16.msra.mxu0 %v14957_v33 }
0x16f5   :  { %12032 = vmatprep.subr.bf16.mxu0 %v15458_v52 }
0x16f8   :  { %12034 = vmatpush3.bf16.msra.mxu0 %v14967_v39 }
0x16f9   :  { %12035 = vmatprep.subr.bf16.mxu0 %v15458_v52 }
0x16fc   :  { %12037 = vmatpush3.bf16.msra.mxu0 %v14976_v56 }
0x16fd   :  { %12038 = vmatprep.subr.bf16.mxu0 %v15458_v52 }
0x1700   :  { %12040 = vmatpush3.bf16.msra.mxu0 %v14986_v20 }
0x1701   :  { %12066 = vmatprep.subr.bf16.mxu0 %v14909_v30 }
0x17b6   :  { %v7359_v31 = vpop.f32.mrb[80].mxu0 }
0x17b7   :  { %v7360_v32 = vadd.f32 %v9023_v10, %v7359_v31  ;;  %v10338_v62 = vpop.f32.mrb[81].mxu0 }
0x17b9   :  { %12681 = vtanh.f32 %v7360_v32 }
0x17c3   :  { %v14993_v55 = vpop.eup %12681 }
0x17c4   :  { %7496 = vmatmul.mubr.f32.vlgmr.msra.gmra.mrb[84].mxu1 %v14993_v55  ;;  %10372 = vmatmul.mubr.f32.vlgmr.msra.gmra.mrb[82].mxu0 %v14993_v55 }
0x17c5   :  { %12068 = vmatpush1.bf16.msra.mxu0 %v14911_v53  ;;  %10406 = vmatprep.mubr.msk.f32.mxu1 %vm13093_vm0, %v15459_v40 }
0x17c6   :  { %12070 = vmatprep.subr.bf16.mxu0 %v14914_v59  ;;  %7747 = vmatprep.mubr.f32.mxu0 %v15459_v40 }
0x17c7   :  { %12043 = vmatpush3.bf16.msra.mxu1 %v15016_v60 }
0x17c8   :  { %12044 = vmatprep.subr.bf16.mxu1 %v15458_v52 }
0x17c9   :  { %12072 = vmatpush1.bf16.msra.mxu0 %v14917_v19 }
0x17ca   :  { %12074 = vmatprep.subr.bf16.mxu0 %v14920_v1 }
0x17cb   :  { %12046 = vmatpush3.bf16.msra.mxu1 %v15020_v6 }
0x17cc   :  { %12047 = vmatprep.subr.bf16.mxu1 %v15458_v52 }
0x17cd   :  { %12076 = vmatpush1.bf16.msra.mxu0 %v14923_v28 }
0x17ce   :  { %12078 = vmatprep.subr.bf16.mxu0 %v14926_v9 }
0x17cf   :  { %12049 = vmatpush3.bf16.msra.mxu1 %v15024_v26 }
0x17d0   :  { %12050 = vmatprep.subr.bf16.mxu1 %v15458_v52 }
0x17d1   :  { %12080 = vmatpush1.bf16.msra.mxu0 %v14929_v34 }
0x17d2   :  { %12082 = vmatprep.subr.bf16.mxu0 %v14932_v21 }
0x17d3   :  { %12052 = vmatpush3.bf16.msra.mxu1 %v15028_v61 }
0x17d4   :  { %12053 = vmatprep.subr.bf16.mxu1 %v15458_v52 }
0x17d5   :  { %12084 = vmatpush1.bf16.msra.mxu0 %v14935_v24 }
0x17d6   :  { %12086 = vmatprep.subr.bf16.mxu0 %v14962_v43 }
0x17d7   :  { %12055 = vmatpush3.bf16.msra.mxu1 %v15032_v23 }
0x17d8   :  { %12056 = vmatprep.subr.bf16.mxu1 %v15458_v52 }
0x17d9   :  { %12088 = vmatpush1.bf16.msra.mxu0 %v14964_v13 }
0x17da   :  { %12090 = vmatprep.subr.bf16.mxu0 %v14971_v41 }
0x17db   :  { %12058 = vmatpush3.bf16.msra.mxu1 %v15036_v16 }
0x17dc   :  { %12059 = vmatprep.subr.bf16.mxu1 %v15458_v52 }
0x17dd   :  { %12092 = vmatpush1.bf16.msra.mxu0 %v14974_v18 }
0x17de   :  { %12094 = vmatprep.subr.bf16.mxu0 %v14979_v58 }
0x17df   :  { %12061 = vmatpush3.bf16.msra.mxu1 %v15039_v44 }
0x17e0   :  { %12062 = vmatprep.subr.bf16.mxu1 %v15458_v52 }
0x17e1   :  { %12096 = vmatpush1.bf16.msra.mxu0 %v14982_v14 }
0x17e2   :  { %12121 = vmatprep.subr.bf16.mxu0 %v15458_v52 }
0x17e3   :  { %12064 = vmatpush3.bf16.msra.mxu1 %v15043_v0 }
0x17e4   :  { %12097 = vmatprep.subr.bf16.mxu1 %v15458_v52 }
0x1897   :  { %v7497_v46 = vpop.f32.mrb[84].mxu1  ;;  %v7568_v25 = vpop.f32.mrb[82].mxu0 }
0x1898   :  { %v7572_v50 = vadd.f32 %v7497_v46, %v7430_v57  ;;  %v7499_v49 = vpop.f32.mrb[85].mxu1  ;;  %v10373_v17 = vpop.f32.mrb[83].mxu0  ;;  %v7595_v54 = vadd.f32 %v15051_v48, %v7568_v25 }
0x1899   :  { %v7582_v37 = vadd.f32 %v7580_v2, %v7499_v49  ;;  %v7832_v17 = vrot.slane %v7682_v7, 2 }
0x189a   :  { %v9025_v47 = vmul.f32 -1.442695, %v7572_v50 }
0x189b   :  { %v9026_v10 = vmul.f32 -1.442695, %v7582_v37 }
0x189c   :  { %12683 = vpow2.f32 %v9025_v47 }
0x189d   :  { %12685 = vpow2.f32 %v9026_v10 }
0x18a6   :  { %v12684_v31 = vpop.eup %12683 }
0x18a7   :  { %v7576_v32 = vadd.f32 1.0, %v12684_v31  ;;  %v12686_v62 = vpop.eup %12685 }
0x18a8   :  { %v7586_v51 = vadd.f32 1.0, %v12686_v62 }
0x18a9   :  { %12687 = vrcp.f32 %v7576_v32 }
0x18aa   :  { %12689 = vrcp.f32 %v7586_v51 }
0x18b3   :  { %v12688_v3 = vpop.eup %12687 }
0x18b4   :  { %v7596_v38 = vmul.f32 %v12688_v3, %v7595_v54  ;;  %v12690_v36 = vpop.eup %12689 }
0x18b5   :  { %v7601_v5 = vsub.f32 1.0, %v12690_v36  ;;  %v7603_v45 = vmul.f32 %v12690_v36, %v14993_v55  ;;  %v15113_v55 = vld [vmem:[#allocation24] ss:$0 sm:$0xff] }
0x18b6   :  { %v7599_v4 = vadd.f32 %v7597_v22, %v7596_v38  ;;  %v7843_v22 = vrot.slane %v7682_v7, 4 }
0x18b8   :  { %12691 = vtanh.f32 %v7599_v4 }
0x18c2   :  { %v12692_v27 = vpop.eup %12691 }
0x18c3   :  { %v7602_v42 = vmul.f32 %v12692_v27, %v7601_v5 }
0x18c5   :  { %v15055_v11 = vadd.f32 %v7603_v45, %v7602_v42 }
0x18c7   :  { %10407 = vmatmul.mubr.f32.vlgmr.msra.gmra.mrb[86].mxu1 %v15055_v11  ;;  %7748 = vmatmul.mubr.f32.vlgmr.msra.gmra.mrb[84].mxu0 %v15055_v11 }
0x18c8   :  { %12099 = vmatpush3.bf16.msra.mxu1 %v14940_v8  ;;  %10441 = vmatprep.mubr.msk.f32.mxu1 %vm13093_vm0, %v15459_v40 }
0x18c9   :  { %12100 = vmatprep.subr.bf16.mxu1 %v15458_v52  ;;  %12123 = vmatpush3.bf16.msra.mxu0 %v15016_v60 }
0x18ca   :  { %12124 = vmatprep.subr.bf16.mxu0 %v15458_v52  ;;  %10476 = vmatprep.mubr.msk.f32.mxu0 %vm13093_vm0, %v15459_v40 }
0x18cc   :  { %12102 = vmatpush3.bf16.msra.mxu1 %v14943_v29 }
0x18cd   :  { %12103 = vmatprep.subr.bf16.mxu1 %v15458_v52  ;;  %12126 = vmatpush3.bf16.msra.mxu0 %v15020_v6 }
0x18ce   :  { %12127 = vmatprep.subr.bf16.mxu0 %v15458_v52 }
0x18d0   :  { %12105 = vmatpush3.bf16.msra.mxu1 %v14949_v15 }
0x18d1   :  { %12106 = vmatprep.subr.bf16.mxu1 %v15458_v52  ;;  %12129 = vmatpush3.bf16.msra.mxu0 %v15024_v26 }
0x18d2   :  { %12130 = vmatprep.subr.bf16.mxu0 %v15458_v52 }
0x18d4   :  { %12108 = vmatpush3.bf16.msra.mxu1 %v14953_v63 }
0x18d5   :  { %12109 = vmatprep.subr.bf16.mxu1 %v15458_v52  ;;  %12132 = vmatpush3.bf16.msra.mxu0 %v15028_v61 }
0x18d6   :  { %12133 = vmatprep.subr.bf16.mxu0 %v15458_v52 }
0x18d8   :  { %12111 = vmatpush3.bf16.msra.mxu1 %v14957_v33 }
0x18d9   :  { %12112 = vmatprep.subr.bf16.mxu1 %v15458_v52  ;;  %12135 = vmatpush3.bf16.msra.mxu0 %v15032_v23 }
0x18da   :  { %12136 = vmatprep.subr.bf16.mxu0 %v15458_v52 }
0x18dc   :  { %12114 = vmatpush3.bf16.msra.mxu1 %v14967_v39 }
0x18dd   :  { %12115 = vmatprep.subr.bf16.mxu1 %v15458_v52  ;;  %12138 = vmatpush3.bf16.msra.mxu0 %v15036_v16 }
0x18de   :  { %12139 = vmatprep.subr.bf16.mxu0 %v15458_v52 }
0x18e0   :  { %12117 = vmatpush3.bf16.msra.mxu1 %v14976_v56 }
0x18e1   :  { %12118 = vmatprep.subr.bf16.mxu1 %v15458_v52  ;;  %12141 = vmatpush3.bf16.msra.mxu0 %v15039_v44 }
0x18e2   :  { %12142 = vmatprep.subr.bf16.mxu0 %v15458_v52 }
0x18e4   :  { %12120 = vmatpush3.bf16.msra.mxu1 %v14986_v20 }
0x18e5   :  { %12146 = vmatprep.subr.bf16.mxu1 %v14909_v30  ;;  %12144 = vmatpush3.bf16.msra.mxu0 %v15043_v0 }
0x18e6   :  { %12177 = vmatprep.subr.bf16.mxu0 %v15458_v52 }
0x18e7   :  { %10442 = vmatmul.mubr.f32.vlgmr.msra.gmra.mrb[88].mxu1 %v15055_v11 }
0x18e8   :  { %12148 = vmatpush1.bf16.msra.mxu1 %v14911_v53  ;;  %7988 = vmatprep.mubr.f32.mxu1 %v15459_v40 }
0x18e9   :  { %12150 = vmatprep.subr.bf16.mxu1 %v14914_v59 }
0x18ec   :  { %12152 = vmatpush1.bf16.msra.mxu1 %v14917_v19 }
0x18ed   :  { %12154 = vmatprep.subr.bf16.mxu1 %v14920_v1 }
0x18f0   :  { %12156 = vmatpush1.bf16.msra.mxu1 %v14923_v28 }
0x18f1   :  { %12158 = vmatprep.subr.bf16.mxu1 %v14926_v9 }
0x18f4   :  { %12160 = vmatpush1.bf16.msra.mxu1 %v14929_v34 }
0x18f5   :  { %12162 = vmatprep.subr.bf16.mxu1 %v14932_v21 }
0x18f8   :  { %12164 = vmatpush1.bf16.msra.mxu1 %v14935_v24 }
0x18f9   :  { %12166 = vmatprep.subr.bf16.mxu1 %v14962_v43 }
0x18fc   :  { %12168 = vmatpush1.bf16.msra.mxu1 %v14964_v13 }
0x18fd   :  { %12170 = vmatprep.subr.bf16.mxu1 %v14971_v41 }
0x1900   :  { %12172 = vmatpush1.bf16.msra.mxu1 %v14974_v18 }
0x1901   :  { %12174 = vmatprep.subr.bf16.mxu1 %v14979_v58 }
0x1904   :  { %12176 = vmatpush1.bf16.msra.mxu1 %v14982_v14 }
0x1905   :  { %12201 = vmatprep.subr.bf16.mxu1 %v15458_v52 }
0x199a   :  { %v7677_v35 = vpop.f32.mrb[86].mxu1  ;;  %v7749_v12 = vpop.f32.mrb[84].mxu0 }
0x199b   :  { %v7678_v57 = vadd.f32 %v15113_v55, %v7677_v35  ;;  %v7824_v46 = vadd.f32 %v7749_v12, %v7682_v7  ;;  %v10408_v25 = vpop.f32.mrb[87].mxu1  ;;  %v7751_v50 = vpop.f32.mrb[85].mxu0  ;;  %v7923_v7 = vld [vmem:[#allocation3 + $0xc] sm:$0x3f] }
0x199c   :  { %v7834_v2 = vadd.f32 %v7832_v17, %v7751_v50  ;;  %v8073_v17 = vrot.slane %v7923_v7, 2 }
0x199d   :  { %7681 = vst [vmem:[#allocation25] sm:$0x3] %v7678_v57  ;;  %v9029_v49 = vmul.f32 -1.442695, %v7824_v46 }
0x199e   :  { %v9030_v47 = vmul.f32 -1.442695, %v7834_v2 }
0x199f   :  { %12693 = vpow2.f32 %v9029_v49 }
0x19a0   :  { %12695 = vpow2.f32 %v9030_v47 }
0x19a9   :  { %v12694_v37 = vpop.eup %12693 }
0x19aa   :  { %v7828_v10 = vadd.f32 1.0, %v12694_v37  ;;  %v12696_v31 = vpop.eup %12695 }
0x19ab   :  { %v7838_v32 = vadd.f32 1.0, %v12696_v31 }
0x19ac   :  { %12697 = vrcp.f32 %v7828_v10 }
0x19ad   :  { %12699 = vrcp.f32 %v7838_v32 }
0x19b6   :  { %v12698_v3 = vpop.eup %12697 }
0x19b7   :  { %v12700_v36 = vpop.eup %12699 }
0x19b8   :  { %v7847_v5 = vsub.f32 1.0, %v12700_v36  ;;  %v7849_v45 = vmul.f32 %v12700_v36, %v15055_v11 }
0x19ba   :  { %v7820_v62 = vpop.f32.mrb[88].mxu1 }
0x19bb   :  { %v7841_v51 = vadd.f32 %v15051_v48, %v7820_v62  ;;  %v10443_v54 = vpop.f32.mrb[89].mxu1 }
0x19bd   :  { %v7842_v38 = vmul.f32 %v12698_v3, %v7841_v51 }
0x19bf   :  { %v7845_v4 = vadd.f32 %v7843_v22, %v7842_v38  ;;  %v8084_v22 = vrot.slane %v7923_v7, 4 }
0x19c1   :  { %12701 = vtanh.f32 %v7845_v4 }
0x19cb   :  { %v12702_v27 = vpop.eup %12701 }
0x19cc   :  { %v7848_v42 = vmul.f32 %v12702_v27, %v7847_v5 }
0x19ce   :  { %v15118_v35 = vadd.f32 %v7849_v45, %v7848_v42 }
0x19d0   :  { %10477 = vmatmul.mubr.f32.vlgmr.msra.gmra.mrb[86].mxu0 %v15118_v35  ;;  %7989 = vmatmul.mubr.f32.vlgmr.msra.gmra.mrb[90].mxu1 %v15118_v35 }
0x19d1   :  { %12179 = vmatpush3.bf16.msra.mxu0 %v14940_v8  ;;  %10511 = vmatprep.mubr.msk.f32.mxu0 %vm13093_vm0, %v15459_v40 }
0x19d2   :  { %12180 = vmatprep.subr.bf16.mxu0 %v15458_v52  ;;  %12203 = vmatpush3.bf16.msra.mxu1 %v15016_v60 }
0x19d3   :  { %12204 = vmatprep.subr.bf16.mxu1 %v15458_v52  ;;  %10546 = vmatprep.mubr.msk.f32.mxu1 %vm13093_vm0, %v15459_v40 }
0x19d5   :  { %12182 = vmatpush3.bf16.msra.mxu0 %v14943_v29 }
0x19d6   :  { %12183 = vmatprep.subr.bf16.mxu0 %v15458_v52  ;;  %12206 = vmatpush3.bf16.msra.mxu1 %v15020_v6 }
0x19d7   :  { %12207 = vmatprep.subr.bf16.mxu1 %v15458_v52 }
0x19d9   :  { %12185 = vmatpush3.bf16.msra.mxu0 %v14949_v15 }
0x19da   :  { %12186 = vmatprep.subr.bf16.mxu0 %v15458_v52  ;;  %12209 = vmatpush3.bf16.msra.mxu1 %v15024_v26 }
0x19db   :  { %12210 = vmatprep.subr.bf16.mxu1 %v15458_v52 }
0x19dd   :  { %12188 = vmatpush3.bf16.msra.mxu0 %v14953_v63 }
0x19de   :  { %12189 = vmatprep.subr.bf16.mxu0 %v15458_v52  ;;  %12212 = vmatpush3.bf16.msra.mxu1 %v15028_v61 }
0x19df   :  { %12213 = vmatprep.subr.bf16.mxu1 %v15458_v52 }
0x19e1   :  { %12191 = vmatpush3.bf16.msra.mxu0 %v14957_v33 }
0x19e2   :  { %12192 = vmatprep.subr.bf16.mxu0 %v15458_v52  ;;  %12215 = vmatpush3.bf16.msra.mxu1 %v15032_v23 }
0x19e3   :  { %12216 = vmatprep.subr.bf16.mxu1 %v15458_v52 }
0x19e5   :  { %12194 = vmatpush3.bf16.msra.mxu0 %v14967_v39 }
0x19e6   :  { %12195 = vmatprep.subr.bf16.mxu0 %v15458_v52  ;;  %12218 = vmatpush3.bf16.msra.mxu1 %v15036_v16 }
0x19e7   :  { %12219 = vmatprep.subr.bf16.mxu1 %v15458_v52 }
0x19e9   :  { %12197 = vmatpush3.bf16.msra.mxu0 %v14976_v56 }
0x19ea   :  { %12198 = vmatprep.subr.bf16.mxu0 %v15458_v52  ;;  %12221 = vmatpush3.bf16.msra.mxu1 %v15039_v44 }
0x19eb   :  { %12222 = vmatprep.subr.bf16.mxu1 %v15458_v52 }
0x19ed   :  { %12200 = vmatpush3.bf16.msra.mxu0 %v14986_v20 }
0x19ee   :  { %12226 = vmatprep.subr.bf16.mxu0 %v14909_v30  ;;  %12224 = vmatpush3.bf16.msra.mxu1 %v15043_v0 }
0x19ef   :  { %12257 = vmatprep.subr.bf16.mxu1 %v15458_v52 }
0x19f0   :  { %10512 = vmatmul.mubr.f32.vlgmr.msra.gmra.mrb[88].mxu0 %v15118_v35 }
0x19f1   :  { %12228 = vmatpush1.bf16.msra.mxu0 %v14911_v53  ;;  %8229 = vmatprep.mubr.f32.mxu0 %v15459_v40 }
0x19f2   :  { %12230 = vmatprep.subr.bf16.mxu0 %v14914_v59 }
0x19f5   :  { %12232 = vmatpush1.bf16.msra.mxu0 %v14917_v19 }
0x19f6   :  { %12234 = vmatprep.subr.bf16.mxu0 %v14920_v1 }
0x19f9   :  { %12236 = vmatpush1.bf16.msra.mxu0 %v14923_v28 }
0x19fa   :  { %12238 = vmatprep.subr.bf16.mxu0 %v14926_v9 }
0x19fd   :  { %12240 = vmatpush1.bf16.msra.mxu0 %v14929_v34 }
0x19fe   :  { %12242 = vmatprep.subr.bf16.mxu0 %v14932_v21 }
0x1a01   :  { %12244 = vmatpush1.bf16.msra.mxu0 %v14935_v24 }
0x1a02   :  { %12246 = vmatprep.subr.bf16.mxu0 %v14962_v43 }
0x1a05   :  { %12248 = vmatpush1.bf16.msra.mxu0 %v14964_v13 }
0x1a06   :  { %12250 = vmatprep.subr.bf16.mxu0 %v14971_v41 }
0x1a09   :  { %12252 = vmatpush1.bf16.msra.mxu0 %v14974_v18 }
0x1a0a   :  { %12254 = vmatprep.subr.bf16.mxu0 %v14979_v58 }
0x1a0d   :  { %12256 = vmatpush1.bf16.msra.mxu0 %v14982_v14 }
0x1a0e   :  { %12281 = vmatprep.subr.bf16.mxu0 %v15458_v52 }
0x1aa3   :  { %v7917_v11 = vpop.f32.mrb[86].mxu0  ;;  %v7990_v12 = vpop.f32.mrb[90].mxu1 }
0x1aa4   :  { %v7918_v57 = vadd.f32 %v15113_v55, %v7917_v11  ;;  %v8065_v46 = vadd.f32 %v7990_v12, %v7923_v7  ;;  %v10478_v25 = vpop.f32.mrb[87].mxu0  ;;  %v7992_v50 = vpop.f32.mrb[91].mxu1  ;;  %v8164_v7 = vld [vmem:[#allocation3 + $0x12] sm:$0x3f] }
0x1aa5   :  { %v8075_v2 = vadd.f32 %v8073_v17, %v7992_v50  ;;  %v8314_v17 = vrot.slane %v8164_v7, 2 }
0x1aa6   :  { %7922 = vst [vmem:[#allocation25 + $0x2] sm:$0x3] %v7918_v57  ;;  %v9031_v49 = vmul.f32 -1.442695, %v8065_v46 }
0x1aa7   :  { %v9032_v47 = vmul.f32 -1.442695, %v8075_v2 }
0x1aa8   :  { %12703 = vpow2.f32 %v9031_v49 }
0x1aa9   :  { %12705 = vpow2.f32 %v9032_v47 }
0x1ab2   :  { %v12704_v37 = vpop.eup %12703 }
0x1ab3   :  { %v8069_v10 = vadd.f32 1.0, %v12704_v37  ;;  %v12706_v31 = vpop.eup %12705 }
0x1ab4   :  { %v8079_v32 = vadd.f32 1.0, %v12706_v31 }
0x1ab5   :  { %12707 = vrcp.f32 %v8069_v10 }
0x1ab6   :  { %12709 = vrcp.f32 %v8079_v32 }
0x1abf   :  { %v12708_v3 = vpop.eup %12707 }
0x1ac0   :  { %v12710_v36 = vpop.eup %12709 }
0x1ac1   :  { %v8088_v5 = vsub.f32 1.0, %v12710_v36  ;;  %v8090_v45 = vmul.f32 %v12710_v36, %v15118_v35 }
0x1ac3   :  { %v8061_v62 = vpop.f32.mrb[88].mxu0 }
0x1ac4   :  { %v8082_v51 = vadd.f32 %v15051_v48, %v8061_v62  ;;  %v10513_v54 = vpop.f32.mrb[89].mxu0 }
0x1ac6   :  { %v8083_v38 = vmul.f32 %v12708_v3, %v8082_v51 }
0x1ac8   :  { %v8086_v4 = vadd.f32 %v8084_v22, %v8083_v38  ;;  %v8325_v22 = vrot.slane %v8164_v7, 4 }
0x1aca   :  { %12711 = vtanh.f32 %v8086_v4 }
0x1ad4   :  { %v12712_v27 = vpop.eup %12711 }
0x1ad5   :  { %v8089_v42 = vmul.f32 %v12712_v27, %v8088_v5 }
0x1ad7   :  { %v15179_v11 = vadd.f32 %v8090_v45, %v8089_v42 }
0x1ad9   :  { %10547 = vmatmul.mubr.f32.vlgmr.msra.gmra.mrb[92].mxu1 %v15179_v11  ;;  %8230 = vmatmul.mubr.f32.vlgmr.msra.gmra.mrb[90].mxu0 %v15179_v11 }
0x1ada   :  { %12259 = vmatpush3.bf16.msra.mxu1 %v14940_v8  ;;  %10581 = vmatprep.mubr.msk.f32.mxu1 %vm13093_vm0, %v15459_v40 }
0x1adb   :  { %12260 = vmatprep.subr.bf16.mxu1 %v15458_v52  ;;  %12283 = vmatpush3.bf16.msra.mxu0 %v15016_v60 }
0x1adc   :  { %12284 = vmatprep.subr.bf16.mxu0 %v15458_v52  ;;  %10616 = vmatprep.mubr.msk.f32.mxu0 %vm13093_vm0, %v15459_v40 }
0x1ade   :  { %12262 = vmatpush3.bf16.msra.mxu1 %v14943_v29 }
0x1adf   :  { %12263 = vmatprep.subr.bf16.mxu1 %v15458_v52  ;;  %12286 = vmatpush3.bf16.msra.mxu0 %v15020_v6 }
0x1ae0   :  { %12287 = vmatprep.subr.bf16.mxu0 %v15458_v52 }
0x1ae2   :  { %12265 = vmatpush3.bf16.msra.mxu1 %v14949_v15 }
0x1ae3   :  { %12266 = vmatprep.subr.bf16.mxu1 %v15458_v52  ;;  %12289 = vmatpush3.bf16.msra.mxu0 %v15024_v26 }
0x1ae4   :  { %12290 = vmatprep.subr.bf16.mxu0 %v15458_v52 }
0x1ae6   :  { %12268 = vmatpush3.bf16.msra.mxu1 %v14953_v63 }
0x1ae7   :  { %12269 = vmatprep.subr.bf16.mxu1 %v15458_v52  ;;  %12292 = vmatpush3.bf16.msra.mxu0 %v15028_v61 }
0x1ae8   :  { %12293 = vmatprep.subr.bf16.mxu0 %v15458_v52 }
0x1aea   :  { %12271 = vmatpush3.bf16.msra.mxu1 %v14957_v33 }
0x1aeb   :  { %12272 = vmatprep.subr.bf16.mxu1 %v15458_v52  ;;  %12295 = vmatpush3.bf16.msra.mxu0 %v15032_v23 }
0x1aec   :  { %12296 = vmatprep.subr.bf16.mxu0 %v15458_v52 }
0x1aee   :  { %12274 = vmatpush3.bf16.msra.mxu1 %v14967_v39 }
0x1aef   :  { %12275 = vmatprep.subr.bf16.mxu1 %v15458_v52  ;;  %12298 = vmatpush3.bf16.msra.mxu0 %v15036_v16 }
0x1af0   :  { %12299 = vmatprep.subr.bf16.mxu0 %v15458_v52 }
0x1af2   :  { %12277 = vmatpush3.bf16.msra.mxu1 %v14976_v56 }
0x1af3   :  { %12278 = vmatprep.subr.bf16.mxu1 %v15458_v52  ;;  %12301 = vmatpush3.bf16.msra.mxu0 %v15039_v44 }
0x1af4   :  { %12302 = vmatprep.subr.bf16.mxu0 %v15458_v52 }
0x1af6   :  { %12280 = vmatpush3.bf16.msra.mxu1 %v14986_v20 }
0x1af7   :  { %12306 = vmatprep.subr.bf16.mxu1 %v14909_v30  ;;  %12304 = vmatpush3.bf16.msra.mxu0 %v15043_v0 }
0x1af8   :  { %12337 = vmatprep.subr.bf16.mxu0 %v15458_v52 }
0x1af9   :  { %10582 = vmatmul.mubr.f32.vlgmr.msra.gmra.mrb[94].mxu1 %v15179_v11 }
0x1afa   :  { %12308 = vmatpush1.bf16.msra.mxu1 %v14911_v53  ;;  %8470 = vmatprep.mubr.f32.mxu1 %v15459_v40 }
0x1afb   :  { %12310 = vmatprep.subr.bf16.mxu1 %v14914_v59 }
0x1afe   :  { %12312 = vmatpush1.bf16.msra.mxu1 %v14917_v19 }
0x1aff   :  { %12314 = vmatprep.subr.bf16.mxu1 %v14920_v1 }
0x1b02   :  { %12316 = vmatpush1.bf16.msra.mxu1 %v14923_v28 }
0x1b03   :  { %12318 = vmatprep.subr.bf16.mxu1 %v14926_v9 }
0x1b06   :  { %12320 = vmatpush1.bf16.msra.mxu1 %v14929_v34 }
0x1b07   :  { %12322 = vmatprep.subr.bf16.mxu1 %v14932_v21 }
0x1b0a   :  { %12324 = vmatpush1.bf16.msra.mxu1 %v14935_v24 }
0x1b0b   :  { %12326 = vmatprep.subr.bf16.mxu1 %v14962_v43 }
0x1b0e   :  { %12328 = vmatpush1.bf16.msra.mxu1 %v14964_v13 }
0x1b0f   :  { %12330 = vmatprep.subr.bf16.mxu1 %v14971_v41 }
0x1b12   :  { %12332 = vmatpush1.bf16.msra.mxu1 %v14974_v18 }
0x1b13   :  { %12334 = vmatprep.subr.bf16.mxu1 %v14979_v58 }
0x1b16   :  { %12336 = vmatpush1.bf16.msra.mxu1 %v14982_v14 }
0x1b17   :  { %12361 = vmatprep.subr.bf16.mxu1 %v15458_v52 }
0x1bac   :  { %v8158_v35 = vpop.f32.mrb[92].mxu1  ;;  %v8231_v12 = vpop.f32.mrb[90].mxu0 }
0x1bad   :  { %v8159_v57 = vadd.f32 %v15113_v55, %v8158_v35  ;;  %v8306_v46 = vadd.f32 %v8231_v12, %v8164_v7  ;;  %v10548_v25 = vpop.f32.mrb[93].mxu1  ;;  %v8233_v50 = vpop.f32.mrb[91].mxu0 }
0x1bae   :  { %v8316_v2 = vadd.f32 %v8314_v17, %v8233_v50 }
0x1baf   :  { %8163 = vst [vmem:[#allocation25 + $0x4] sm:$0x3] %v8159_v57  ;;  %v9033_v49 = vmul.f32 -1.442695, %v8306_v46 }
0x1bb0   :  { %v9034_v47 = vmul.f32 -1.442695, %v8316_v2 }
0x1bb1   :  { %12713 = vpow2.f32 %v9033_v49 }
0x1bb2   :  { %12715 = vpow2.f32 %v9034_v47 }
0x1bbb   :  { %v12714_v37 = vpop.eup %12713 }
0x1bbc   :  { %v8310_v10 = vadd.f32 1.0, %v12714_v37  ;;  %v12716_v31 = vpop.eup %12715 }
0x1bbd   :  { %v8320_v32 = vadd.f32 1.0, %v12716_v31 }
0x1bbe   :  { %12717 = vrcp.f32 %v8310_v10 }
0x1bbf   :  { %12719 = vrcp.f32 %v8320_v32 }
0x1bc8   :  { %v12718_v3 = vpop.eup %12717 }
0x1bc9   :  { %v12720_v36 = vpop.eup %12719 }
0x1bca   :  { %v8329_v5 = vsub.f32 1.0, %v12720_v36  ;;  %v8331_v45 = vmul.f32 %v12720_v36, %v15179_v11 }
0x1bcc   :  { %v8302_v62 = vpop.f32.mrb[94].mxu1 }
0x1bcd   :  { %v8323_v51 = vadd.f32 %v15051_v48, %v8302_v62  ;;  %v10583_v54 = vpop.f32.mrb[95].mxu1 }
0x1bcf   :  { %v8324_v38 = vmul.f32 %v12718_v3, %v8323_v51 }
0x1bd1   :  { %v8327_v4 = vadd.f32 %v8325_v22, %v8324_v38 }
0x1bd3   :  { %12721 = vtanh.f32 %v8327_v4 }
0x1bdd   :  { %v12722_v27 = vpop.eup %12721 }
0x1bde   :  { %v8330_v42 = vmul.f32 %v12722_v27, %v8329_v5 }
0x1be0   :  { %v15240_v35 = vadd.f32 %v8331_v45, %v8330_v42 }
0x1be2   :  { %10617 = vmatmul.mubr.f32.vlgmr.msra.gmra.mrb[92].mxu0 %v15240_v35  ;;  %8471 = vmatmul.mubr.f32.vlgmr.msra.gmra.mrb[96].mxu1 %v15240_v35 }
0x1be3   :  { %12339 = vmatpush3.bf16.msra.mxu0 %v14940_v8  ;;  %10651 = vmatprep.mubr.msk.f32.mxu0 %vm13093_vm0, %v15459_v40 }
0x1be4   :  { %12340 = vmatprep.subr.bf16.mxu0 %v15458_v52  ;;  %12363 = vmatpush3.bf16.msra.mxu1 %v15016_v60 }
0x1be5   :  { %12364 = vmatprep.subr.bf16.mxu1 %v15458_v52  ;;  %10686 = vmatprep.mubr.msk.f32.mxu1 %vm13093_vm0, %v15459_v40 }
0x1be7   :  { %12342 = vmatpush3.bf16.msra.mxu0 %v14943_v29 }
0x1be8   :  { %12343 = vmatprep.subr.bf16.mxu0 %v15458_v52  ;;  %12366 = vmatpush3.bf16.msra.mxu1 %v15020_v6 }
0x1be9   :  { %12367 = vmatprep.subr.bf16.mxu1 %v15458_v52 }
0x1beb   :  { %12345 = vmatpush3.bf16.msra.mxu0 %v14949_v15 }
0x1bec   :  { %12346 = vmatprep.subr.bf16.mxu0 %v15458_v52  ;;  %12369 = vmatpush3.bf16.msra.mxu1 %v15024_v26 }
0x1bed   :  { %12370 = vmatprep.subr.bf16.mxu1 %v15458_v52 }
0x1bef   :  { %12348 = vmatpush3.bf16.msra.mxu0 %v14953_v63 }
0x1bf0   :  { %12349 = vmatprep.subr.bf16.mxu0 %v15458_v52  ;;  %12372 = vmatpush3.bf16.msra.mxu1 %v15028_v61 }
0x1bf1   :  { %12373 = vmatprep.subr.bf16.mxu1 %v15458_v52 }
0x1bf3   :  { %12351 = vmatpush3.bf16.msra.mxu0 %v14957_v33 }
0x1bf4   :  { %12352 = vmatprep.subr.bf16.mxu0 %v15458_v52  ;;  %12375 = vmatpush3.bf16.msra.mxu1 %v15032_v23 }
0x1bf5   :  { %12376 = vmatprep.subr.bf16.mxu1 %v15458_v52 }
0x1bf7   :  { %12354 = vmatpush3.bf16.msra.mxu0 %v14967_v39 }
0x1bf8   :  { %12355 = vmatprep.subr.bf16.mxu0 %v15458_v52  ;;  %12378 = vmatpush3.bf16.msra.mxu1 %v15036_v16 }
0x1bf9   :  { %12379 = vmatprep.subr.bf16.mxu1 %v15458_v52 }
0x1bfb   :  { %12357 = vmatpush3.bf16.msra.mxu0 %v14976_v56 }
0x1bfc   :  { %12358 = vmatprep.subr.bf16.mxu0 %v15458_v52  ;;  %12381 = vmatpush3.bf16.msra.mxu1 %v15039_v44 }
0x1bfd   :  { %12382 = vmatprep.subr.bf16.mxu1 %v15458_v52 }
0x1bff   :  { %12360 = vmatpush3.bf16.msra.mxu0 %v14986_v20 }
0x1c00   :  { %12386 = vmatprep.subr.bf16.mxu0 %v14909_v30  ;;  %12384 = vmatpush3.bf16.msra.mxu1 %v15043_v0 }
0x1c01   :  { %12417 = vmatprep.subr.bf16.mxu1 %v15458_v52 }
0x1c02   :  { %10652 = vmatmul.mubr.f32.vlgmr.msra.gmra.mrb[94].mxu0 %v15240_v35 }
0x1c03   :  { %12388 = vmatpush1.bf16.msra.mxu0 %v14911_v53  ;;  %8711 = vmatprep.mubr.f32.mxu0 %v15459_v40  ;;  %v8405_v53 = vld [vmem:[#allocation3 + $0x18] sm:$0x3f] }
0x1c04   :  { %12390 = vmatprep.subr.bf16.mxu0 %v14914_v59  ;;  %v8566_v57 = vrot.slane %v8405_v53, 4 }
0x1c07   :  { %12392 = vmatpush1.bf16.msra.mxu0 %v14917_v19 }
0x1c08   :  { %12394 = vmatprep.subr.bf16.mxu0 %v14920_v1 }
0x1c0b   :  { %12396 = vmatpush1.bf16.msra.mxu0 %v14923_v28 }
0x1c0c   :  { %12398 = vmatprep.subr.bf16.mxu0 %v14926_v9 }
0x1c0f   :  { %12400 = vmatpush1.bf16.msra.mxu0 %v14929_v34 }
0x1c10   :  { %12402 = vmatprep.subr.bf16.mxu0 %v14932_v21  ;;  %v8555_v21 = vrot.slane %v8405_v53, 2 }
0x1c13   :  { %12404 = vmatpush1.bf16.msra.mxu0 %v14935_v24 }
0x1c14   :  { %12406 = vmatprep.subr.bf16.mxu0 %v14962_v43 }
0x1c17   :  { %12408 = vmatpush1.bf16.msra.mxu0 %v14964_v13 }
0x1c18   :  { %12410 = vmatprep.subr.bf16.mxu0 %v14971_v41 }
0x1c1b   :  { %12412 = vmatpush1.bf16.msra.mxu0 %v14974_v18 }
0x1c1c   :  { %12414 = vmatprep.subr.bf16.mxu0 %v14979_v58 }
0x1c1f   :  { %12416 = vmatpush1.bf16.msra.mxu0 %v14982_v14 }
0x1c20   :  { %12441 = vmatprep.subr.bf16.mxu0 %v15458_v52 }
0x1cb5   :  { %v8399_v30 = vpop.f32.mrb[92].mxu0  ;;  %v8472_v59 = vpop.f32.mrb[96].mxu1 }
0x1cb6   :  { %v8400_v19 = vadd.f32 %v15113_v55, %v8399_v30  ;;  %v8547_v1 = vadd.f32 %v8472_v59, %v8405_v53  ;;  %v10618_v28 = vpop.f32.mrb[93].mxu0  ;;  %v8474_v9 = vpop.f32.mrb[97].mxu1 }
0x1cb7   :  { %v8557_v24 = vadd.f32 %v8555_v21, %v8474_v9 }
0x1cb8   :  { %8404 = vst [vmem:[#allocation25 + $0x6] sm:$0x3] %v8400_v19  ;;  %v9035_v34 = vmul.f32 -1.442695, %v8547_v1 }
0x1cb9   :  { %v9036_v43 = vmul.f32 -1.442695, %v8557_v24 }
0x1cba   :  { %12723 = vpow2.f32 %v9035_v34 }
0x1cbb   :  { %12725 = vpow2.f32 %v9036_v43 }
0x1cc4   :  { %v12724_v13 = vpop.eup %12723 }
0x1cc5   :  { %v8551_v41 = vadd.f32 1.0, %v12724_v13  ;;  %v12726_v18 = vpop.eup %12725 }
0x1cc6   :  { %v8561_v58 = vadd.f32 1.0, %v12726_v18 }
0x1cc7   :  { %12727 = vrcp.f32 %v8551_v41 }
0x1cc8   :  { %12729 = vrcp.f32 %v8561_v58 }
0x1cd1   :  { %v12728_v12 = vpop.eup %12727 }
0x1cd2   :  { %v12730_v50 = vpop.eup %12729 }
0x1cd3   :  { %v8570_v49 = vsub.f32 1.0, %v12730_v50  ;;  %v8572_v47 = vmul.f32 %v12730_v50, %v15240_v35 }
0x1cd5   :  { %v8543_v14 = vpop.f32.mrb[94].mxu0 }
0x1cd6   :  { %v8564_v11 = vadd.f32 %v15051_v48, %v8543_v14  ;;  %v10653_v7 = vpop.f32.mrb[95].mxu0 }
0x1cd8   :  { %v8565_v46 = vmul.f32 %v12728_v12, %v8564_v11 }
0x1cda   :  { %v8568_v25 = vadd.f32 %v8566_v57, %v8565_v46 }
0x1cdc   :  { %12731 = vtanh.f32 %v8568_v25 }
0x1ce6   :  { %v12732_v17 = vpop.eup %12731 }
0x1ce7   :  { %v8571_v2 = vmul.f32 %v12732_v17, %v8570_v49 }
0x1ce9   :  { %v15301_v37 = vadd.f32 %v8572_v47, %v8571_v2 }
0x1ceb   :  { %10687 = vmatmul.mubr.f32.vlgmr.msra.gmra.mrb[98].mxu1 %v15301_v37  ;;  %8712 = vmatmul.mubr.f32.vlgmr.msra.gmra.mrb[96].mxu0 %v15301_v37 }
0x1cec   :  { %12419 = vmatpush3.bf16.msra.mxu1 %v14940_v8  ;;  %10721 = vmatprep.mubr.msk.f32.mxu1 %vm13093_vm0, %v15459_v40  ;;  %v8646_v8 = vld [vmem:[#allocation3 + $0x1e] sm:$0x3f] }
0x1ced   :  { %12420 = vmatprep.subr.bf16.mxu1 %v15458_v52  ;;  %12443 = vmatpush3.bf16.msra.mxu0 %v15016_v60  ;;  %v8796_v60 = vrot.slane %v8646_v8, 2  ;;  %v8807_v31 = vrot.slane %v8646_v8, 4 }
0x1cee   :  { %12444 = vmatprep.subr.bf16.mxu0 %v15458_v52  ;;  %10756 = vmatprep.mubr.msk.f32.mxu0 %vm13093_vm0, %v15459_v40 }
0x1cf0   :  { %12422 = vmatpush3.bf16.msra.mxu1 %v14943_v29 }
0x1cf1   :  { %12423 = vmatprep.subr.bf16.mxu1 %v15458_v52  ;;  %12446 = vmatpush3.bf16.msra.mxu0 %v15020_v6 }
0x1cf2   :  { %12447 = vmatprep.subr.bf16.mxu0 %v15458_v52 }
0x1cf4   :  { %12425 = vmatpush3.bf16.msra.mxu1 %v14949_v15 }
0x1cf5   :  { %12426 = vmatprep.subr.bf16.mxu1 %v15458_v52  ;;  %12449 = vmatpush3.bf16.msra.mxu0 %v15024_v26 }
0x1cf6   :  { %12450 = vmatprep.subr.bf16.mxu0 %v15458_v52 }
0x1cf8   :  { %12428 = vmatpush3.bf16.msra.mxu1 %v14953_v63 }
0x1cf9   :  { %12429 = vmatprep.subr.bf16.mxu1 %v15458_v52  ;;  %12452 = vmatpush3.bf16.msra.mxu0 %v15028_v61 }
0x1cfa   :  { %12453 = vmatprep.subr.bf16.mxu0 %v15458_v52 }
0x1cfc   :  { %12431 = vmatpush3.bf16.msra.mxu1 %v14957_v33 }
0x1cfd   :  { %12432 = vmatprep.subr.bf16.mxu1 %v15458_v52  ;;  %12455 = vmatpush3.bf16.msra.mxu0 %v15032_v23 }
0x1cfe   :  { %12456 = vmatprep.subr.bf16.mxu0 %v15458_v52 }
0x1d00   :  { %12434 = vmatpush3.bf16.msra.mxu1 %v14967_v39 }
0x1d01   :  { %12435 = vmatprep.subr.bf16.mxu1 %v15458_v52  ;;  %12458 = vmatpush3.bf16.msra.mxu0 %v15036_v16 }
0x1d02   :  { %12459 = vmatprep.subr.bf16.mxu0 %v15458_v52 }
0x1d04   :  { %12437 = vmatpush3.bf16.msra.mxu1 %v14976_v56 }
0x1d05   :  { %12438 = vmatprep.subr.bf16.mxu1 %v15458_v52  ;;  %12461 = vmatpush3.bf16.msra.mxu0 %v15039_v44 }
0x1d06   :  { %12462 = vmatprep.subr.bf16.mxu0 %v15458_v52 }
0x1d08   :  { %12440 = vmatpush3.bf16.msra.mxu1 %v14986_v20 }
0x1d09   :  { %12464 = vmatpush3.bf16.msra.mxu0 %v15043_v0 }
0x1d0b   :  { %10722 = vmatmul.mubr.f32.vlgmr.msra.gmra.mrb[100].mxu1 %v15301_v37 }
0x1dbe   :  { %v8640_v40 = vpop.f32.mrb[98].mxu1  ;;  %v8713_v29 = vpop.f32.mrb[96].mxu0 }
0x1dbf   :  { %v8641_v15 = vadd.f32 %v15113_v55, %v8640_v40  ;;  %v8788_v63 = vadd.f32 %v8713_v29, %v8646_v8  ;;  %v10688_v33 = vpop.f32.mrb[99].mxu1  ;;  %v8715_v39 = vpop.f32.mrb[97].mxu0 }
0x1dc0   :  { %v8798_v6 = vadd.f32 %v8796_v60, %v8715_v39 }
0x1dc1   :  { %8645 = vst [vmem:[#allocation25 + $0x8] sm:$0x3] %v8641_v15  ;;  %v9037_v56 = vmul.f32 -1.442695, %v8788_v63 }
0x1dc2   :  { %v9038_v52 = vmul.f32 -1.442695, %v8798_v6 }
0x1dc3   :  { %12733 = vpow2.f32 %v9037_v56 }
0x1dc4   :  { %12735 = vpow2.f32 %v9038_v52 }
0x1dcd   :  { %v12734_v26 = vpop.eup %12733 }
0x1dce   :  { %v8792_v20 = vadd.f32 1.0, %v12734_v26  ;;  %v12736_v61 = vpop.eup %12735 }
0x1dcf   :  { %v8802_v23 = vadd.f32 1.0, %v12736_v61 }
0x1dd0   :  { %12737 = vrcp.f32 %v8792_v20 }
0x1dd1   :  { %12739 = vrcp.f32 %v8802_v23 }
0x1dda   :  { %v12738_v10 = vpop.eup %12737 }
0x1ddb   :  { %v12740_v51 = vpop.eup %12739 }
0x1ddc   :  { %v8811_v54 = vsub.f32 1.0, %v12740_v51  ;;  %v8813_v38 = vmul.f32 %v12740_v51, %v15301_v37 }
0x1dde   :  { %v8784_v16 = vpop.f32.mrb[100].mxu1 }
0x1ddf   :  { %v8805_v44 = vadd.f32 %v15051_v48, %v8784_v16  ;;  %v10723_v0 = vpop.f32.mrb[101].mxu1 }
0x1de1   :  { %v8806_v32 = vmul.f32 %v12738_v10, %v8805_v44 }
0x1de3   :  { %v8809_v62 = vadd.f32 %v8807_v31, %v8806_v32 }
0x1de5   :  { %12741 = vtanh.f32 %v8809_v62 }
0x1def   :  { %v12742_v3 = vpop.eup %12741 }
0x1df0   :  { %v8812_v22 = vmul.f32 %v12742_v3, %v8811_v54 }
0x1df2   :  { %v8814_v4 = vadd.f32 %v8813_v38, %v8812_v22 }
0x1df4   :  { %10757 = vmatmul.mubr.f32.vlgmr.msra.gmra.mrb[98].mxu0 %v8814_v4  ;;  %8887 = vst [vmem:[%s15523_s23] sm:$0x3] %v8814_v4 }
0x1ec7   :  { %v8881_v48 = vpop.f32.mrb[98].mxu0 }
0x1ec8   :  { %v8882_v36 = vadd.f32 %v15113_v55, %v8881_v48  ;;  %v10758_v5 = vpop.f32.mrb[99].mxu0 }
0x1eca   :  { %8886 = vst [vmem:[#allocation25 + $0xa] sm:$0x3] %v8882_v36 }
0x1ecb   :  { %13046 = shalt.err (!%p13043_p10)
}
0x1ecc   :  { %s15524_s5 = sld [smem:[#allocation56_spill]] }
0x1ed2   :  { %s13047_s14 = scalar_lea.hbm %s15524_s5, 192 }
0x1ed3   :  { %p13048_p11 = scmp.ne.s32.totalorder %s15524_s5, %s13047_s14  ;;  %p13051_p12 = scmp.lt.u32.totalorder %s13047_s14, %s15524_s5 }
0x1ed5   :  { %p13053_p13 = pnand %p13051_p12, %p13048_p11 }
0x1ed7   :  { %13056 = shalt.err (!%p13053_p13)
}
0x1ed8   :  { %s13098_s11 = smov 2  }
0x1ed9   :  { %8899 = dma.vmem_to_hbm [thread:$0]  %s8894_s30, 192, %s15524_s5, [#allocation6], %s13096_s12, %s13096_s12, %s13098_s11  }
0x1eda   :  { %13071 = dma.done.wait [#allocation6], 192  }
0x1edb   :  { %13072 = vsyncadd [#allocation6], 4294967104 }
0x1edc   :  { %8907 = vsyncpa [#allocation5], 1 }
0x1edd   :  { %8908 = vsyncpa [#allocation8], 1 }
0x1ede   :  { %8909 = vsyncpa [#allocation11], 1 }
0x1edf   :  { %8910 = vsyncpa [#allocation14], 1 }
0x1ee0   :  { %8911 = vsyncpa [#allocation17], 1 }
0x1ee1   :  { %8912 = vsyncpa [#allocation20], 1 }
0x1ee2   :  { %8913 = vsyncpa [#allocation23], 1 }
0x1ee3   :  { %8914 = vsyncpa [#allocation6], 1 }

</bundles_post_ra>
